<compile_context>
chip_gen: v6e
topology: v6e:2x2x1
jax: 0.10.0
libtpu: 0.0.40
codegen_flags: <defaults>
</compile_context>

<pallas_src>
import functools

import jax
import jax.numpy as jnp
from jax.experimental import pallas as pl
from jax.experimental.pallas import tpu as pltpu


# ----------------------------- Pallas kernels ------------------------------ #

def _fc_head_kernel(sub_ref, wsub_ref, bsub_ref, wfc_ref, bfc_ref, o_ref):
    # sub_ref: (1, n_sub), wsub_ref: (n_sub, H), bsub_ref: (1, H)
    # wfc_ref: (H, tn) column tile, bfc_ref: (1, tn), o_ref: (1, tn)
    hidden = (jnp.dot(sub_ref[...], wsub_ref[...],
                      preferred_element_type=jnp.float32) + bsub_ref[...])
    o_ref[...] = (jnp.dot(hidden, wfc_ref[...],
                          preferred_element_type=jnp.float32) + bfc_ref[...])


def _bn_lrelu_conv_kernel(gh_ref, scale7_ref, shift7_ref, w_ref, b_ref,
                          out_ref, stats_ref, *, rows, slope):
    # gh_ref:     (tm, 7*cin)  raw activations gathered over the 7-neighbourhood
    # scale7/shift7: (1, 7*cin) per-channel BN scale/shift, tiled over neighbours
    # w_ref:      (7*cin, cout), b_ref: (1, cout)
    # out_ref:    (tm, cout)
    # stats_ref:  (1, 8, cout)  sublane0 = sum, sublane1 = sum of squares
    y = gh_ref[...] * scale7_ref[...] + shift7_ref[...]      # BN apply
    y = jnp.where(y >= 0, y, slope * y)                      # LeakyReLU(0.2)
    o = (jnp.dot(y, w_ref[...], preferred_element_type=jnp.float32)
         + b_ref[...])                                       # 1-ring conv
    out_ref[...] = o

    # Per-tile partial stats for the NEXT layer's BatchNorm (masked ragged tail).
    tm, cout = o.shape
    row = pl.program_id(0) * tm + jax.lax.broadcasted_iota(jnp.int32, (tm, 1), 0)
    om = jnp.where(row < rows, o, 0.0)
    s = jnp.sum(om, axis=0, keepdims=True)                   # (1, cout)
    q = jnp.sum(om * om, axis=0, keepdims=True)              # (1, cout)
    rid = jax.lax.broadcasted_iota(jnp.int32, (8, cout), 0)
    stats = jnp.where(rid == 0, s, jnp.where(rid == 1, q, 0.0))
    stats_ref[...] = stats[None]


# ------------------------------ Pallas wrappers ----------------------------- #

_ROW_TILE = 2048      # rows per grid step when the array does not fit in one block
_COL_TILE = 2048      # fc output columns per grid step (multiple of 128 -> lane dense)


def fc_head(sub_id, w_sub, b_sub, w_fc, b_fc):
    """sub_id:[1,n_sub] -> fc_sub -> fc -> [1, 3*n_vertex], fused in one kernel."""
    _, n_sub = sub_id.shape
    hid = w_sub.shape[1]
    total = w_fc.shape[1]
    tn = total if total <= _COL_TILE else _COL_TILE
    nt = pl.cdiv(total, tn)
    return pl.pallas_call(
        _fc_head_kernel,
        out_shape=jax.ShapeDtypeStruct((1, total), jnp.float32),
        grid=(nt,),
        in_specs=[
            pl.BlockSpec((1, n_sub), lambda j: (0, 0)),
            pl.BlockSpec((n_sub, hid), lambda j: (0, 0)),
            pl.BlockSpec((1, hid), lambda j: (0, 0)),
            pl.BlockSpec((hid, tn), lambda j: (0, j)),
            pl.BlockSpec((1, tn), lambda j: (0, j)),
        ],
        out_specs=pl.BlockSpec((1, tn), lambda j: (0, j)),
        compiler_params=pltpu.CompilerParams(dimension_semantics=("parallel",)),
    )(sub_id, w_sub, b_sub, w_fc, b_fc)


def bn_lrelu_conv(x, neigh_orders, gamma, beta, mean, var, w, b,
                  *, eps=1e-5, slope=0.2):
    """One conv_block layer, fused:  BN(batch stats) -> LeakyReLU -> onering conv.

    x: [M, cin] raw (pre-BN) activations; mean/var: per-channel batch stats of x.
    Returns (out [M, cout], mean_out [cout], var_out [cout]) where the output
    stats are produced by the same kernel for the next layer's BatchNorm.
    """
    m, cin = x.shape
    k = 7 * cin
    cout = w.shape[1]

    # Precompute BN scale/shift once (feedback: no per-tile rsqrt/div), tiled x7
    # to match the (neighbour-major, channel-minor) concat layout of the gather.
    inv = jax.lax.rsqrt(var + eps)
    scale = (gamma * inv).reshape(1, cin)
    shift = (beta - mean * gamma * inv).reshape(1, cin)
    scale7 = jnp.tile(scale, (1, 7))
    shift7 = jnp.tile(shift, (1, 7))

    # Gather the RAW activations (BN+LReLU are applied per-row in-kernel, so the
    # gather commutes with them and no normalized copy is ever materialized).
    gh = jnp.take(x, neigh_orders, axis=0).reshape(m, k)

    tm = m if m <= _ROW_TILE else _ROW_TILE
    nt = pl.cdiv(m, tm)
    kern = functools.partial(_bn_lrelu_conv_kernel, rows=m, slope=slope)

    out, stats = pl.pallas_call(
        kern,
        out_shape=(jax.ShapeDtypeStruct((m, cout), jnp.float32),
                   jax.ShapeDtypeStruct((nt, 8, cout), jnp.float32)),
        grid=(nt,),
        in_specs=[
            pl.BlockSpec((tm, k), lambda i: (i, 0)),
            pl.BlockSpec((1, k), lambda i: (0, 0)),
            pl.BlockSpec((1, k), lambda i: (0, 0)),
            pl.BlockSpec((k, cout), lambda i: (0, 0)),
            pl.BlockSpec((1, cout), lambda i: (0, 0)),
        ],
        out_specs=(pl.BlockSpec((tm, cout), lambda i: (i, 0)),
                   pl.BlockSpec((1, 8, cout), lambda i: (i, 0, 0))),
        compiler_params=pltpu.CompilerParams(dimension_semantics=("parallel",)),
    )(gh, scale7, shift7, w, b)

    sums = jnp.sum(stats[:, 0, :], axis=0)
    sqs = jnp.sum(stats[:, 1, :], axis=0)
    mean_out = sums / m
    var_out = sqs / m - mean_out * mean_out          # biased variance (PyTorch BN)
    return out, mean_out, var_out


# ------------------------------ Forward (module) ---------------------------- #

def gen_phi_forward(sub_id, params, neigh_orders, *, eps=1e-5, slope=0.2):
    """GenPhiUsingSubId.forward for level <= 6: [1,n_sub] -> [n_vertex, 2]."""
    x_flat = fc_head(sub_id, params["w_sub"], params["b_sub"],
                     params["w_fc"], params["b_fc"])          # (1, 3*n_vertex)
    n_vertex = params["w_fc"].shape[1] // 3
    x = x_flat.reshape(n_vertex, 3)

    # Layer-0 BN batch stats: tiny [n_vertex, 3] reduction (later layers' stats
    # come fused out of the previous layer's Pallas kernel).
    mean = jnp.mean(x, axis=0)
    var = jnp.mean(x * x, axis=0) - mean * mean

    for i in range(3):
        x, mean, var = bn_lrelu_conv(
            x, neigh_orders,
            params[f"g{i}"], params[f"be{i}"], mean, var,
            params[f"w{i}"], params[f"b{i}"],
            eps=eps, slope=slope)
    return x


# ------------------------------ Pure-JAX reference -------------------------- #

def reference_forward(sub_id, params, neigh_orders, *, eps=1e-5, slope=0.2):
    h = sub_id @ params["w_sub"] + params["b_sub"]
    x = (h @ params["w_fc"] + params["b_fc"]).reshape(-1, 3)
    m = x.shape[0]
    for i in range(3):
        mean = jnp.mean(x, axis=0, keepdims=True)
        var = jnp.mean((x - mean) ** 2, axis=0, keepdims=True)
        y = ((x - mean) * jax.lax.rsqrt(var + eps) * params[f"g{i}"][None, :]
             + params[f"be{i}"][None, :])
        y = jnp.where(y >= 0, y, slope * y)
        gh = jnp.take(y, neigh_orders, axis=0).reshape(m, -1)
        x = gh @ params[f"w{i}"] + params[f"b{i}"]
    return x


# ----------------------------------- main ----------------------------------- #

if __name__ == "__main__":
    key = jax.random.PRNGKey(0)
    ks = jax.random.split(key, 20)

    n_sub = 8
    n_vertex = 642            # level-4 icosahedral sphere
    hid = 256
    chs = [3, 8, 8, 2]

    sub_id = jax.nn.one_hot(jnp.array([3]), n_sub, dtype=jnp.float32)   # (1, n_sub)
    # synthetic 7-ring neighbour ordering (fixed mesh connectivity in the model)
    neigh_orders = jax.random.randint(ks[0], (n_vertex * 7,), 0, n_vertex,
                                      dtype=jnp.int32)

    params = {
        "w_sub": jax.random.normal(ks[1], (n_sub, hid), jnp.float32)
                 / jnp.sqrt(float(n_sub)),
        "b_sub": 0.05 * jax.random.normal(ks[2], (1, hid), jnp.float32),
        "w_fc": jax.random.normal(ks[3], (hid, chs[0] * n_vertex), jnp.float32)
                / jnp.sqrt(float(hid)),
        "b_fc": 0.05 * jax.random.normal(ks[4], (1, chs[0] * n_vertex), jnp.float32),
    }
    ki = 5
    for i in range(3):
        cin, cout = chs[i], chs[i + 1]
        params[f"g{i}"] = 1.0 + 0.1 * jax.random.normal(ks[ki], (cin,), jnp.float32)
        ki += 1
        params[f"be{i}"] = 0.1 * jax.random.normal(ks[ki], (cin,), jnp.float32)
        ki += 1
        params[f"w{i}"] = (jax.random.normal(ks[ki], (7 * cin, cout), jnp.float32)
                           / jnp.sqrt(7.0 * cin))
        ki += 1
        params[f"b{i}"] = 0.05 * jax.random.normal(ks[ki], (1, cout), jnp.float32)
        ki += 1

    fwd = jax.jit(gen_phi_forward)
    out = jax.block_until_ready(fwd(sub_id, params, neigh_orders))
    ref = jax.block_until_ready(reference_forward(sub_id, params, neigh_orders))

    assert out.shape == (n_vertex, chs[-1]), out.shape
    max_err = float(jnp.max(jnp.abs(out - ref)))
    assert max_err < 5e-3, f"max abs error too large: {max_err}"

    print("KERNEL_OK")
</pallas_src>

<mosaic_0001>
module attributes {stable_mosaic.version = 11 : i64} {
  func.func @_fc_head_kernel(%arg0: i32, %arg1: memref<1x8xf32, #tpu.memory_space<vmem>>, %arg2: memref<8x256xf32, #tpu.memory_space<vmem>>, %arg3: memref<1x256xf32, #tpu.memory_space<vmem>>, %arg4: memref<256x1926xf32, #tpu.memory_space<vmem>>, %arg5: memref<1x1926xf32, #tpu.memory_space<vmem>>, %arg6: memref<1x1926xf32, #tpu.memory_space<vmem>>) attributes {dimension_semantics = [#tpu.dimension_semantics<parallel>], iteration_bounds = array<i64: 1>, scalar_prefetch = 0 : i64, scratch_operands = 0 : i64, tpu.core_type = #tpu.core_type<tc>, window_params = [{pipeline_mode = #tpu.pipeline_mode<synchronous>, transform_indices = @transform_0, window_bounds = array<i64: 1, 8>}, {pipeline_mode = #tpu.pipeline_mode<synchronous>, transform_indices = @transform_1, window_bounds = array<i64: 8, 256>}, {pipeline_mode = #tpu.pipeline_mode<synchronous>, transform_indices = @transform_2, window_bounds = array<i64: 1, 256>}, {transform_indices = @transform_3, window_bounds = array<i64: 256, 1926>}, {transform_indices = @transform_4, window_bounds = array<i64: 1, 1926>}, {transform_indices = @transform_5, window_bounds = array<i64: 1, 1926>}]} {
    %c0 = arith.constant 0 : index
    %c0_0 = arith.constant 0 : index
    %0 = vector.load %arg1[%c0, %c0_0] : memref<1x8xf32, #tpu.memory_space<vmem>>, vector<1x8xf32>
    %c0_1 = arith.constant 0 : index
    %c0_2 = arith.constant 0 : index
    %1 = vector.load %arg2[%c0_1, %c0_2] : memref<8x256xf32, #tpu.memory_space<vmem>>, vector<8x256xf32>
    %cst = arith.constant dense<0.000000e+00> : vector<1x256xf32>
    %2 = tpu.matmul %0, %1, %cst {dimension_numbers = #tpu.dot_dimension_numbers<[1], [0], [0], [1], [0, 0, 1, 1], [], []>} : vector<1x8xf32>, vector<8x256xf32>, vector<1x256xf32> -> vector<1x256xf32>
    %c0_3 = arith.constant 0 : index
    %c0_4 = arith.constant 0 : index
    %3 = vector.load %arg3[%c0_3, %c0_4] : memref<1x256xf32, #tpu.memory_space<vmem>>, vector<1x256xf32>
    %4 = arith.addf %2, %3 : vector<1x256xf32>
    %c0_5 = arith.constant 0 : index
    %c0_6 = arith.constant 0 : index
    %5 = vector.load %arg4[%c0_5, %c0_6] : memref<256x1926xf32, #tpu.memory_space<vmem>>, vector<256x1926xf32>
    %cst_7 = arith.constant dense<0.000000e+00> : vector<1x1926xf32>
    %6 = tpu.matmul %4, %5, %cst_7 {dimension_numbers = #tpu.dot_dimension_numbers<[1], [0], [0], [1], [0, 0, 1, 1], [], []>} : vector<1x256xf32>, vector<256x1926xf32>, vector<1x1926xf32> -> vector<1x1926xf32>
    %c0_8 = arith.constant 0 : index
    %c0_9 = arith.constant 0 : index
    %7 = vector.load %arg5[%c0_8, %c0_9] : memref<1x1926xf32, #tpu.memory_space<vmem>>, vector<1x1926xf32>
    %8 = arith.addf %6, %7 : vector<1x1926xf32>
    %c0_10 = arith.constant 0 : index
    %c0_11 = arith.constant 0 : index
    %9 = vector.load %arg6[%c0_10, %c0_11] : memref<1x1926xf32, #tpu.memory_space<vmem>>, vector<1x1926xf32>
    tpu.vector_store %arg6[%c0_10, %c0_11], %8 {strides = array<i32>} : memref<1x1926xf32, #tpu.memory_space<vmem>>, vector<1x1926xf32>,
    return
  }
  func.func @transform_0(%arg0: i32) -> (i32, i32) {
    %c0_i32 = arith.constant 0 : i32
    %c0_i32_0 = arith.constant 0 : i32
    %c0_i32_1 = arith.constant 0 : i32
    return %c0_i32, %c0_i32_0 : i32, i32
  }
  func.func @transform_1(%arg0: i32) -> (i32, i32) {
    %c0_i32 = arith.constant 0 : i32
    %c0_i32_0 = arith.constant 0 : i32
    %c0_i32_1 = arith.constant 0 : i32
    return %c0_i32, %c0_i32_0 : i32, i32
  }
  func.func @transform_2(%arg0: i32) -> (i32, i32) {
    %c0_i32 = arith.constant 0 : i32
    %c0_i32_0 = arith.constant 0 : i32
    %c0_i32_1 = arith.constant 0 : i32
    return %c0_i32, %c0_i32_0 : i32, i32
  }
  func.func @transform_3(%arg0: i32) -> (i32, i32) {
    %c0_i32 = arith.constant 0 : i32
    %c0_i32_0 = arith.constant 0 : i32
    return %c0_i32, %arg0 : i32, i32
  }
  func.func @transform_4(%arg0: i32) -> (i32, i32) {
    %c0_i32 = arith.constant 0 : i32
    %c0_i32_0 = arith.constant 0 : i32
    return %c0_i32, %arg0 : i32, i32
  }
  func.func @transform_5(%arg0: i32) -> (i32, i32) {
    %c0_i32 = arith.constant 0 : i32
    %c0_i32_0 = arith.constant 0 : i32
    return %c0_i32, %arg0 : i32, i32
  }
}

module attributes {stable_mosaic.version = 11 : i64} {
  func.func @_bn_lrelu_conv_kernel(%arg0: i32, %arg1: memref<642x21xf32, #tpu.memory_space<vmem>>, %arg2: memref<1x21xf32, #tpu.memory_space<vmem>>, %arg3: memref<1x21xf32, #tpu.memory_space<vmem>>, %arg4: memref<21x8xf32, #tpu.memory_space<vmem>>, %arg5: memref<1x8xf32, #tpu.memory_space<vmem>>, %arg6: memref<642x8xf32, #tpu.memory_space<vmem>>, %arg7: memref<1x8x8xf32, #tpu.memory_space<vmem>>) attributes {dimension_semantics = [#tpu.dimension_semantics<parallel>], iteration_bounds = array<i64: 1>, scalar_prefetch = 0 : i64, scratch_operands = 0 : i64, tpu.core_type = #tpu.core_type<tc>, window_params = [{transform_indices = @transform_0, window_bounds = array<i64: 642, 21>}, {pipeline_mode = #tpu.pipeline_mode<synchronous>, transform_indices = @transform_1, window_bounds = array<i64: 1, 21>}, {pipeline_mode = #tpu.pipeline_mode<synchronous>, transform_indices = @transform_2, window_bounds = array<i64: 1, 21>}, {pipeline_mode = #tpu.pipeline_mode<synchronous>, transform_indices = @transform_3, window_bounds = array<i64: 21, 8>}, {pipeline_mode = #tpu.pipeline_mode<synchronous>, transform_indices = @transform_4, window_bounds = array<i64: 1, 8>}, {transform_indices = @transform_5, window_bounds = array<i64: 642, 8>}, {transform_indices = @transform_6, window_bounds = array<i64: 1, 8, 8>}]} {
    %c0 = arith.constant 0 : index
    %c0_0 = arith.constant 0 : index
    %0 = vector.load %arg1[%c0, %c0_0] : memref<642x21xf32, #tpu.memory_space<vmem>>, vector<642x21xf32>
    %c0_1 = arith.constant 0 : index
    %c0_2 = arith.constant 0 : index
    %1 = vector.load %arg2[%c0_1, %c0_2] : memref<1x21xf32, #tpu.memory_space<vmem>>, vector<1x21xf32>
    %2 = vector.broadcast %1 : vector<1x21xf32> to vector<642x21xf32>
    %3 = arith.mulf %0, %2 : vector<642x21xf32>
    %c0_3 = arith.constant 0 : index
    %c0_4 = arith.constant 0 : index
    %4 = vector.load %arg3[%c0_3, %c0_4] : memref<1x21xf32, #tpu.memory_space<vmem>>, vector<1x21xf32>
    %5 = vector.broadcast %4 : vector<1x21xf32> to vector<642x21xf32>
    %6 = arith.addf %3, %5 : vector<642x21xf32>
    %cst = arith.constant 0.000000e+00 : f32
    %7 = vector.broadcast %cst : f32 to vector<642x21xf32>
    %8 = arith.cmpf oge, %6, %7 : vector<642x21xf32>
    %cst_5 = arith.constant 2.000000e-01 : f32
    %9 = vector.broadcast %cst_5 : f32 to vector<642x21xf32>
    %10 = arith.mulf %9, %6 : vector<642x21xf32>
    %11 = arith.select %8, %6, %10 : vector<642x21xi1>, vector<642x21xf32>
    %c0_6 = arith.constant 0 : index
    %c0_7 = arith.constant 0 : index
    %12 = vector.load %arg4[%c0_6, %c0_7] : memref<21x8xf32, #tpu.memory_space<vmem>>, vector<21x8xf32>
    %cst_8 = arith.constant dense<0.000000e+00> : vector<642x8xf32>
    %13 = tpu.matmul %11, %12, %cst_8 {dimension_numbers = #tpu.dot_dimension_numbers<[1], [0], [0], [1], [0, 0, 1, 1], [], []>} : vector<642x21xf32>, vector<21x8xf32>, vector<642x8xf32> -> vector<642x8xf32>
    %c0_9 = arith.constant 0 : index
    %c0_10 = arith.constant 0 : index
    %14 = vector.load %arg5[%c0_9, %c0_10] : memref<1x8xf32, #tpu.memory_space<vmem>>, vector<1x8xf32>
    %15 = vector.broadcast %14 : vector<1x8xf32> to vector<642x8xf32>
    %16 = arith.addf %13, %15 : vector<642x8xf32>
    %c0_11 = arith.constant 0 : index
    %c0_12 = arith.constant 0 : index
    %17 = vector.load %arg6[%c0_11, %c0_12] : memref<642x8xf32, #tpu.memory_space<vmem>>, vector<642x8xf32>
    tpu.vector_store %arg6[%c0_11, %c0_12], %16 {strides = array<i32>} : memref<642x8xf32, #tpu.memory_space<vmem>>, vector<642x8xf32>,
    %c642_i32 = arith.constant 642 : i32
    %18 = arith.muli %arg0, %c642_i32 : i32
    %19 = tpu.iota {dimensions = array<i32: 0>} : vector<642x1xi32>
    %20 = vector.broadcast %18 : i32 to vector<642x1xi32>
    %21 = arith.addi %20, %19 : vector<642x1xi32>
    %c642_i32_13 = arith.constant 642 : i32
    %22 = vector.broadcast %c642_i32_13 : i32 to vector<642x1xi32>
    %23 = arith.cmpi slt, %21, %22 : vector<642x1xi32>
    %cst_14 = arith.constant 0.000000e+00 : f32
    %24 = vector.shape_cast %23 : vector<642x1xi1> to vector<642x1xi1>
    %25 = vector.broadcast %24 : vector<642x1xi1> to vector<642x8xi1>
    %26 = vector.broadcast %cst_14 : f32 to vector<642x8xf32>
    %27 = arith.select %25, %16, %26 : vector<642x8xi1>, vector<642x8xf32>
    %cst_15 = arith.constant dense<0.000000e+00> : vector<8xf32>
    %28 = vector.multi_reduction <add>, %27, %cst_15 [0] : vector<642x8xf32> to vector<8xf32>
    %29 = vector.shape_cast %28 : vector<8xf32> to vector<1x8xf32>
    %30 = arith.mulf %27, %27 : vector<642x8xf32>
    %cst_16 = arith.constant dense<0.000000e+00> : vector<8xf32>
    %31 = vector.multi_reduction <add>, %30, %cst_16 [0] : vector<642x8xf32> to vector<8xf32>
    %32 = vector.shape_cast %31 : vector<8xf32> to vector<1x8xf32>
    %33 = tpu.iota {dimensions = array<i32: 0>} : vector<8x8xi32>
    %c0_i32 = arith.constant 0 : i32
    %34 = vector.broadcast %c0_i32 : i32 to vector<8x8xi32>
    %35 = arith.cmpi eq, %33, %34 : vector<8x8xi32>
    %c1_i32 = arith.constant 1 : i32
    %36 = vector.broadcast %c1_i32 : i32 to vector<8x8xi32>
    %37 = arith.cmpi eq, %33, %36 : vector<8x8xi32>
    %cst_17 = arith.constant 0.000000e+00 : f32
    %38 = vector.shape_cast %32 : vector<1x8xf32> to vector<1x8xf32>
    %39 = vector.broadcast %38 : vector<1x8xf32> to vector<8x8xf32>
    %40 = vector.broadcast %cst_17 : f32 to vector<8x8xf32>
    %41 = arith.select %37, %39, %40 : vector<8x8xi1>, vector<8x8xf32>
    %42 = vector.shape_cast %29 : vector<1x8xf32> to vector<1x8xf32>
    %43 = vector.broadcast %42 : vector<1x8xf32> to vector<8x8xf32>
    %44 = arith.select %35, %43, %41 : vector<8x8xi1>, vector<8x8xf32>
    %45 = vector.shape_cast %44 : vector<8x8xf32> to vector<1x8x8xf32>
    %c0_18 = arith.constant 0 : index
    %c0_19 = arith.constant 0 : index
    %c0_20 = arith.constant 0 : index
    %46 = vector.load %arg7[%c0_18, %c0_19, %c0_20] : memref<1x8x8xf32, #tpu.memory_space<vmem>>, vector<1x8x8xf32>
    tpu.vector_store %arg7[%c0_18, %c0_19, %c0_20], %45 {strides = array<i32>} : memref<1x8x8xf32, #tpu.memory_space<vmem>>, vector<1x8x8xf32>,
    return
  }
  func.func @transform_0(%arg0: i32) -> (i32, i32) {
    %c0_i32 = arith.constant 0 : i32
    %c0_i32_0 = arith.constant 0 : i32
    return %arg0, %c0_i32 : i32, i32
  }
  func.func @transform_1(%arg0: i32) -> (i32, i32) {
    %c0_i32 = arith.constant 0 : i32
    %c0_i32_0 = arith.constant 0 : i32
    %c0_i32_1 = arith.constant 0 : i32
    return %c0_i32, %c0_i32_0 : i32, i32
  }
  func.func @transform_2(%arg0: i32) -> (i32, i32) {
    %c0_i32 = arith.constant 0 : i32
    %c0_i32_0 = arith.constant 0 : i32
    %c0_i32_1 = arith.constant 0 : i32
    return %c0_i32, %c0_i32_0 : i32, i32
  }
  func.func @transform_3(%arg0: i32) -> (i32, i32) {
    %c0_i32 = arith.constant 0 : i32
    %c0_i32_0 = arith.constant 0 : i32
    %c0_i32_1 = arith.constant 0 : i32
    return %c0_i32, %c0_i32_0 : i32, i32
  }
  func.func @transform_4(%arg0: i32) -> (i32, i32) {
    %c0_i32 = arith.constant 0 : i32
    %c0_i32_0 = arith.constant 0 : i32
    %c0_i32_1 = arith.constant 0 : i32
    return %c0_i32, %c0_i32_0 : i32, i32
  }
  func.func @transform_5(%arg0: i32) -> (i32, i32) {
    %c0_i32 = arith.constant 0 : i32
    %c0_i32_0 = arith.constant 0 : i32
    return %arg0, %c0_i32 : i32, i32
  }
  func.func @transform_6(%arg0: i32) -> (i32, i32, i32) {
    %c0_i32 = arith.constant 0 : i32
    %c0_i32_0 = arith.constant 0 : i32
    %c0_i32_1 = arith.constant 0 : i32
    return %arg0, %c0_i32, %c0_i32_0 : i32, i32, i32
  }
}

module attributes {stable_mosaic.version = 11 : i64} {
  func.func @_bn_lrelu_conv_kernel(%arg0: i32, %arg1: memref<642x56xf32, #tpu.memory_space<vmem>>, %arg2: memref<1x56xf32, #tpu.memory_space<vmem>>, %arg3: memref<1x56xf32, #tpu.memory_space<vmem>>, %arg4: memref<56x8xf32, #tpu.memory_space<vmem>>, %arg5: memref<1x8xf32, #tpu.memory_space<vmem>>, %arg6: memref<642x8xf32, #tpu.memory_space<vmem>>, %arg7: memref<1x8x8xf32, #tpu.memory_space<vmem>>) attributes {dimension_semantics = [#tpu.dimension_semantics<parallel>], iteration_bounds = array<i64: 1>, scalar_prefetch = 0 : i64, scratch_operands = 0 : i64, tpu.core_type = #tpu.core_type<tc>, window_params = [{transform_indices = @transform_0, window_bounds = array<i64: 642, 56>}, {pipeline_mode = #tpu.pipeline_mode<synchronous>, transform_indices = @transform_1, window_bounds = array<i64: 1, 56>}, {pipeline_mode = #tpu.pipeline_mode<synchronous>, transform_indices = @transform_2, window_bounds = array<i64: 1, 56>}, {pipeline_mode = #tpu.pipeline_mode<synchronous>, transform_indices = @transform_3, window_bounds = array<i64: 56, 8>}, {pipeline_mode = #tpu.pipeline_mode<synchronous>, transform_indices = @transform_4, window_bounds = array<i64: 1, 8>}, {transform_indices = @transform_5, window_bounds = array<i64: 642, 8>}, {transform_indices = @transform_6, window_bounds = array<i64: 1, 8, 8>}]} {
    %c0 = arith.constant 0 : index
    %c0_0 = arith.constant 0 : index
    %0 = vector.load %arg1[%c0, %c0_0] : memref<642x56xf32, #tpu.memory_space<vmem>>, vector<642x56xf32>
    %c0_1 = arith.constant 0 : index
    %c0_2 = arith.constant 0 : index
    %1 = vector.load %arg2[%c0_1, %c0_2] : memref<1x56xf32, #tpu.memory_space<vmem>>, vector<1x56xf32>
    %2 = vector.broadcast %1 : vector<1x56xf32> to vector<642x56xf32>
    %3 = arith.mulf %0, %2 : vector<642x56xf32>
    %c0_3 = arith.constant 0 : index
    %c0_4 = arith.constant 0 : index
    %4 = vector.load %arg3[%c0_3, %c0_4] : memref<1x56xf32, #tpu.memory_space<vmem>>, vector<1x56xf32>
    %5 = vector.broadcast %4 : vector<1x56xf32> to vector<642x56xf32>
    %6 = arith.addf %3, %5 : vector<642x56xf32>
    %cst = arith.constant 0.000000e+00 : f32
    %7 = vector.broadcast %cst : f32 to vector<642x56xf32>
    %8 = arith.cmpf oge, %6, %7 : vector<642x56xf32>
    %cst_5 = arith.constant 2.000000e-01 : f32
    %9 = vector.broadcast %cst_5 : f32 to vector<642x56xf32>
    %10 = arith.mulf %9, %6 : vector<642x56xf32>
    %11 = arith.select %8, %6, %10 : vector<642x56xi1>, vector<642x56xf32>
    %c0_6 = arith.constant 0 : index
    %c0_7 = arith.constant 0 : index
    %12 = vector.load %arg4[%c0_6, %c0_7] : memref<56x8xf32, #tpu.memory_space<vmem>>, vector<56x8xf32>
    %cst_8 = arith.constant dense<0.000000e+00> : vector<642x8xf32>
    %13 = tpu.matmul %11, %12, %cst_8 {dimension_numbers = #tpu.dot_dimension_numbers<[1], [0], [0], [1], [0, 0, 1, 1], [], []>} : vector<642x56xf32>, vector<56x8xf32>, vector<642x8xf32> -> vector<642x8xf32>
    %c0_9 = arith.constant 0 : index
    %c0_10 = arith.constant 0 : index
    %14 = vector.load %arg5[%c0_9, %c0_10] : memref<1x8xf32, #tpu.memory_space<vmem>>, vector<1x8xf32>
    %15 = vector.broadcast %14 : vector<1x8xf32> to vector<642x8xf32>
    %16 = arith.addf %13, %15 : vector<642x8xf32>
    %c0_11 = arith.constant 0 : index
    %c0_12 = arith.constant 0 : index
    %17 = vector.load %arg6[%c0_11, %c0_12] : memref<642x8xf32, #tpu.memory_space<vmem>>, vector<642x8xf32>
    tpu.vector_store %arg6[%c0_11, %c0_12], %16 {strides = array<i32>} : memref<642x8xf32, #tpu.memory_space<vmem>>, vector<642x8xf32>,
    %c642_i32 = arith.constant 642 : i32
    %18 = arith.muli %arg0, %c642_i32 : i32
    %19 = tpu.iota {dimensions = array<i32: 0>} : vector<642x1xi32>
    %20 = vector.broadcast %18 : i32 to vector<642x1xi32>
    %21 = arith.addi %20, %19 : vector<642x1xi32>
    %c642_i32_13 = arith.constant 642 : i32
    %22 = vector.broadcast %c642_i32_13 : i32 to vector<642x1xi32>
    %23 = arith.cmpi slt, %21, %22 : vector<642x1xi32>
    %cst_14 = arith.constant 0.000000e+00 : f32
    %24 = vector.shape_cast %23 : vector<642x1xi1> to vector<642x1xi1>
    %25 = vector.broadcast %24 : vector<642x1xi1> to vector<642x8xi1>
    %26 = vector.broadcast %cst_14 : f32 to vector<642x8xf32>
    %27 = arith.select %25, %16, %26 : vector<642x8xi1>, vector<642x8xf32>
    %cst_15 = arith.constant dense<0.000000e+00> : vector<8xf32>
    %28 = vector.multi_reduction <add>, %27, %cst_15 [0] : vector<642x8xf32> to vector<8xf32>
    %29 = vector.shape_cast %28 : vector<8xf32> to vector<1x8xf32>
    %30 = arith.mulf %27, %27 : vector<642x8xf32>
    %cst_16 = arith.constant dense<0.000000e+00> : vector<8xf32>
    %31 = vector.multi_reduction <add>, %30, %cst_16 [0] : vector<642x8xf32> to vector<8xf32>
    %32 = vector.shape_cast %31 : vector<8xf32> to vector<1x8xf32>
    %33 = tpu.iota {dimensions = array<i32: 0>} : vector<8x8xi32>
    %c0_i32 = arith.constant 0 : i32
    %34 = vector.broadcast %c0_i32 : i32 to vector<8x8xi32>
    %35 = arith.cmpi eq, %33, %34 : vector<8x8xi32>
    %c1_i32 = arith.constant 1 : i32
    %36 = vector.broadcast %c1_i32 : i32 to vector<8x8xi32>
    %37 = arith.cmpi eq, %33, %36 : vector<8x8xi32>
    %cst_17 = arith.constant 0.000000e+00 : f32
    %38 = vector.shape_cast %32 : vector<1x8xf32> to vector<1x8xf32>
    %39 = vector.broadcast %38 : vector<1x8xf32> to vector<8x8xf32>
    %40 = vector.broadcast %cst_17 : f32 to vector<8x8xf32>
    %41 = arith.select %37, %39, %40 : vector<8x8xi1>, vector<8x8xf32>
    %42 = vector.shape_cast %29 : vector<1x8xf32> to vector<1x8xf32>
    %43 = vector.broadcast %42 : vector<1x8xf32> to vector<8x8xf32>
    %44 = arith.select %35, %43, %41 : vector<8x8xi1>, vector<8x8xf32>
    %45 = vector.shape_cast %44 : vector<8x8xf32> to vector<1x8x8xf32>
    %c0_18 = arith.constant 0 : index
    %c0_19 = arith.constant 0 : index
    %c0_20 = arith.constant 0 : index
    %46 = vector.load %arg7[%c0_18, %c0_19, %c0_20] : memref<1x8x8xf32, #tpu.memory_space<vmem>>, vector<1x8x8xf32>
    tpu.vector_store %arg7[%c0_18, %c0_19, %c0_20], %45 {strides = array<i32>} : memref<1x8x8xf32, #tpu.memory_space<vmem>>, vector<1x8x8xf32>,
    return
  }
  func.func @transform_0(%arg0: i32) -> (i32, i32) {
    %c0_i32 = arith.constant 0 : i32
    %c0_i32_0 = arith.constant 0 : i32
    return %arg0, %c0_i32 : i32, i32
  }
  func.func @transform_1(%arg0: i32) -> (i32, i32) {
    %c0_i32 = arith.constant 0 : i32
    %c0_i32_0 = arith.constant 0 : i32
    %c0_i32_1 = arith.constant 0 : i32
    return %c0_i32, %c0_i32_0 : i32, i32
  }
  func.func @transform_2(%arg0: i32) -> (i32, i32) {
    %c0_i32 = arith.constant 0 : i32
    %c0_i32_0 = arith.constant 0 : i32
    %c0_i32_1 = arith.constant 0 : i32
    return %c0_i32, %c0_i32_0 : i32, i32
  }
  func.func @transform_3(%arg0: i32) -> (i32, i32) {
    %c0_i32 = arith.constant 0 : i32
    %c0_i32_0 = arith.constant 0 : i32
    %c0_i32_1 = arith.constant 0 : i32
    return %c0_i32, %c0_i32_0 : i32, i32
  }
  func.func @transform_4(%arg0: i32) -> (i32, i32) {
    %c0_i32 = arith.constant 0 : i32
    %c0_i32_0 = arith.constant 0 : i32
    %c0_i32_1 = arith.constant 0 : i32
    return %c0_i32, %c0_i32_0 : i32, i32
  }
  func.func @transform_5(%arg0: i32) -> (i32, i32) {
    %c0_i32 = arith.constant 0 : i32
    %c0_i32_0 = arith.constant 0 : i32
    return %arg0, %c0_i32 : i32, i32
  }
  func.func @transform_6(%arg0: i32) -> (i32, i32, i32) {
    %c0_i32 = arith.constant 0 : i32
    %c0_i32_0 = arith.constant 0 : i32
    %c0_i32_1 = arith.constant 0 : i32
    return %arg0, %c0_i32, %c0_i32_0 : i32, i32, i32
  }
}

module attributes {stable_mosaic.version = 11 : i64} {
  func.func @_bn_lrelu_conv_kernel(%arg0: i32, %arg1: memref<642x56xf32, #tpu.memory_space<vmem>>, %arg2: memref<1x56xf32, #tpu.memory_space<vmem>>, %arg3: memref<1x56xf32, #tpu.memory_space<vmem>>, %arg4: memref<56x2xf32, #tpu.memory_space<vmem>>, %arg5: memref<1x2xf32, #tpu.memory_space<vmem>>, %arg6: memref<642x2xf32, #tpu.memory_space<vmem>>, %arg7: memref<1x8x2xf32, #tpu.memory_space<vmem>>) attributes {dimension_semantics = [#tpu.dimension_semantics<parallel>], iteration_bounds = array<i64: 1>, scalar_prefetch = 0 : i64, scratch_operands = 0 : i64, tpu.core_type = #tpu.core_type<tc>, window_params = [{transform_indices = @transform_0, window_bounds = array<i64: 642, 56>}, {pipeline_mode = #tpu.pipeline_mode<synchronous>, transform_indices = @transform_1, window_bounds = array<i64: 1, 56>}, {pipeline_mode = #tpu.pipeline_mode<synchronous>, transform_indices = @transform_2, window_bounds = array<i64: 1, 56>}, {pipeline_mode = #tpu.pipeline_mode<synchronous>, transform_indices = @transform_3, window_bounds = array<i64: 56, 2>}, {pipeline_mode = #tpu.pipeline_mode<synchronous>, transform_indices = @transform_4, window_bounds = array<i64: 1, 2>}, {transform_indices = @transform_5, window_bounds = array<i64: 642, 2>}, {transform_indices = @transform_6, window_bounds = array<i64: 1, 8, 2>}]} {
    %c0 = arith.constant 0 : index
    %c0_0 = arith.constant 0 : index
    %0 = vector.load %arg1[%c0, %c0_0] : memref<642x56xf32, #tpu.memory_space<vmem>>, vector<642x56xf32>
    %c0_1 = arith.constant 0 : index
    %c0_2 = arith.constant 0 : index
    %1 = vector.load %arg2[%c0_1, %c0_2] : memref<1x56xf32, #tpu.memory_space<vmem>>, vector<1x56xf32>
    %2 = vector.broadcast %1 : vector<1x56xf32> to vector<642x56xf32>
    %3 = arith.mulf %0, %2 : vector<642x56xf32>
    %c0_3 = arith.constant 0 : index
    %c0_4 = arith.constant 0 : index
    %4 = vector.load %arg3[%c0_3, %c0_4] : memref<1x56xf32, #tpu.memory_space<vmem>>, vector<1x56xf32>
    %5 = vector.broadcast %4 : vector<1x56xf32> to vector<642x56xf32>
    %6 = arith.addf %3, %5 : vector<642x56xf32>
    %cst = arith.constant 0.000000e+00 : f32
    %7 = vector.broadcast %cst : f32 to vector<642x56xf32>
    %8 = arith.cmpf oge, %6, %7 : vector<642x56xf32>
    %cst_5 = arith.constant 2.000000e-01 : f32
    %9 = vector.broadcast %cst_5 : f32 to vector<642x56xf32>
    %10 = arith.mulf %9, %6 : vector<642x56xf32>
    %11 = arith.select %8, %6, %10 : vector<642x56xi1>, vector<642x56xf32>
    %c0_6 = arith.constant 0 : index
    %c0_7 = arith.constant 0 : index
    %12 = vector.load %arg4[%c0_6, %c0_7] : memref<56x2xf32, #tpu.memory_space<vmem>>, vector<56x2xf32>
    %cst_8 = arith.constant dense<0.000000e+00> : vector<642x2xf32>
    %13 = tpu.matmul %11, %12, %cst_8 {dimension_numbers = #tpu.dot_dimension_numbers<[1], [0], [0], [1], [0, 0, 1, 1], [], []>} : vector<642x56xf32>, vector<56x2xf32>, vector<642x2xf32> -> vector<642x2xf32>
    %c0_9 = arith.constant 0 : index
    %c0_10 = arith.constant 0 : index
    %14 = vector.load %arg5[%c0_9, %c0_10] : memref<1x2xf32, #tpu.memory_space<vmem>>, vector<1x2xf32>
    %15 = vector.broadcast %14 : vector<1x2xf32> to vector<642x2xf32>
    %16 = arith.addf %13, %15 : vector<642x2xf32>
    %c0_11 = arith.constant 0 : index
    %c0_12 = arith.constant 0 : index
    %17 = vector.load %arg6[%c0_11, %c0_12] : memref<642x2xf32, #tpu.memory_space<vmem>>, vector<642x2xf32>
    tpu.vector_store %arg6[%c0_11, %c0_12], %16 {strides = array<i32>} : memref<642x2xf32, #tpu.memory_space<vmem>>, vector<642x2xf32>,
    %c642_i32 = arith.constant 642 : i32
    %18 = arith.muli %arg0, %c642_i32 : i32
    %19 = tpu.iota {dimensions = array<i32: 0>} : vector<642x1xi32>
    %20 = vector.broadcast %18 : i32 to vector<642x1xi32>
    %21 = arith.addi %20, %19 : vector<642x1xi32>
    %c642_i32_13 = arith.constant 642 : i32
    %22 = vector.broadcast %c642_i32_13 : i32 to vector<642x1xi32>
    %23 = arith.cmpi slt, %21, %22 : vector<642x1xi32>
    %cst_14 = arith.constant 0.000000e+00 : f32
    %24 = vector.shape_cast %23 : vector<642x1xi1> to vector<642x1xi1>
    %25 = vector.broadcast %24 : vector<642x1xi1> to vector<642x2xi1>
    %26 = vector.broadcast %cst_14 : f32 to vector<642x2xf32>
    %27 = arith.select %25, %16, %26 : vector<642x2xi1>, vector<642x2xf32>
    %cst_15 = arith.constant dense<0.000000e+00> : vector<2xf32>
    %28 = vector.multi_reduction <add>, %27, %cst_15 [0] : vector<642x2xf32> to vector<2xf32>
    %29 = vector.shape_cast %28 : vector<2xf32> to vector<1x2xf32>
    %30 = arith.mulf %27, %27 : vector<642x2xf32>
    %cst_16 = arith.constant dense<0.000000e+00> : vector<2xf32>
    %31 = vector.multi_reduction <add>, %30, %cst_16 [0] : vector<642x2xf32> to vector<2xf32>
    %32 = vector.shape_cast %31 : vector<2xf32> to vector<1x2xf32>
    %33 = tpu.iota {dimensions = array<i32: 0>} : vector<8x2xi32>
    %c0_i32 = arith.constant 0 : i32
    %34 = vector.broadcast %c0_i32 : i32 to vector<8x2xi32>
    %35 = arith.cmpi eq, %33, %34 : vector<8x2xi32>
    %c1_i32 = arith.constant 1 : i32
    %36 = vector.broadcast %c1_i32 : i32 to vector<8x2xi32>
    %37 = arith.cmpi eq, %33, %36 : vector<8x2xi32>
    %cst_17 = arith.constant 0.000000e+00 : f32
    %38 = vector.shape_cast %32 : vector<1x2xf32> to vector<1x2xf32>
    %39 = vector.broadcast %38 : vector<1x2xf32> to vector<8x2xf32>
    %40 = vector.broadcast %cst_17 : f32 to vector<8x2xf32>
    %41 = arith.select %37, %39, %40 : vector<8x2xi1>, vector<8x2xf32>
    %42 = vector.shape_cast %29 : vector<1x2xf32> to vector<1x2xf32>
    %43 = vector.broadcast %42 : vector<1x2xf32> to vector<8x2xf32>
    %44 = arith.select %35, %43, %41 : vector<8x2xi1>, vector<8x2xf32>
    %45 = vector.shape_cast %44 : vector<8x2xf32> to vector<1x8x2xf32>
    %c0_18 = arith.constant 0 : index
    %c0_19 = arith.constant 0 : index
    %c0_20 = arith.constant 0 : index
    %46 = vector.load %arg7[%c0_18, %c0_19, %c0_20] : memref<1x8x2xf32, #tpu.memory_space<vmem>>, vector<1x8x2xf32>
    tpu.vector_store %arg7[%c0_18, %c0_19, %c0_20], %45 {strides = array<i32>} : memref<1x8x2xf32, #tpu.memory_space<vmem>>, vector<1x8x2xf32>,
    return
  }
  func.func @transform_0(%arg0: i32) -> (i32, i32) {
    %c0_i32 = arith.constant 0 : i32
    %c0_i32_0 = arith.constant 0 : i32
    return %arg0, %c0_i32 : i32, i32
  }
  func.func @transform_1(%arg0: i32) -> (i32, i32) {
    %c0_i32 = arith.constant 0 : i32
    %c0_i32_0 = arith.constant 0 : i32
    %c0_i32_1 = arith.constant 0 : i32
    return %c0_i32, %c0_i32_0 : i32, i32
  }
  func.func @transform_2(%arg0: i32) -> (i32, i32) {
    %c0_i32 = arith.constant 0 : i32
    %c0_i32_0 = arith.constant 0 : i32
    %c0_i32_1 = arith.constant 0 : i32
    return %c0_i32, %c0_i32_0 : i32, i32
  }
  func.func @transform_3(%arg0: i32) -> (i32, i32) {
    %c0_i32 = arith.constant 0 : i32
    %c0_i32_0 = arith.constant 0 : i32
    %c0_i32_1 = arith.constant 0 : i32
    return %c0_i32, %c0_i32_0 : i32, i32
  }
  func.func @transform_4(%arg0: i32) -> (i32, i32) {
    %c0_i32 = arith.constant 0 : i32
    %c0_i32_0 = arith.constant 0 : i32
    %c0_i32_1 = arith.constant 0 : i32
    return %c0_i32, %c0_i32_0 : i32, i32
  }
  func.func @transform_5(%arg0: i32) -> (i32, i32) {
    %c0_i32 = arith.constant 0 : i32
    %c0_i32_0 = arith.constant 0 : i32
    return %arg0, %c0_i32 : i32, i32
  }
  func.func @transform_6(%arg0: i32) -> (i32, i32, i32) {
    %c0_i32 = arith.constant 0 : i32
    %c0_i32_0 = arith.constant 0 : i32
    %c0_i32_1 = arith.constant 0 : i32
    return %arg0, %c0_i32, %c0_i32_0 : i32, i32, i32
  }
}

</mosaic_0001>

<bundles_post_ra>
// kernel: gen_phi_forward.4
= control target key start
LH: loop header
LB: loop body
LE: loop exit
PB: predicated region body
PF: predicated region fallthrough
CT: control target
= control target key end

     0   :  { %v1403_v2 = vmov 0.0   ;;  %vm35_vm0 = vcmask 64512   ;;  %s3052_s1 = inlined_call_operand.vmem [shape: f32[8,256], index: 1, kind: input, shape index: {}]   ;;  %s3053_s0 = inlined_call_operand.vmem [shape: f32[1,8], index: 0, kind: input, shape index: {}]   ;;  %s3054_s3 = inlined_call_operand.vmem [shape: f32[256,1926], index: 3, kind: input, shape index: {}]   ;;  %s3055_s2 = inlined_call_operand.vmem [shape: f32[1,256], index: 2, kind: input, shape index: {}]   ;;  %s3056_s4 = inlined_call_operand.vmem [shape: f32[1,1926], index: 4, kind: input, shape index: {}]   ;;  %s3057_s5 = inlined_call_operand.vmem [shape: f32[1,1926], index: 5, kind: output, shape index: {}]  }
   0x1   :  { %v22_v0 = vld [vmem:[%s3052_s1 + $0x8] sm:$0xff]  ;;  %v21_v1 = vld [vmem:[%s3052_s1] sm:$0xff]  ;;  %103 = vmatprep.mubr.f32.mxu0 %v1403_v2  ;;  %v353_v5 = vld [vmem:[%s3054_s3 + $0x798] sm:$0xff] }
   0x2   :  { %v20_v3 = vld [vmem:[%s3053_s0] sm:$0x1]  ;;  %69 = vmatprep.subr.mxu0 %v22_v0  ;;  %v351_v4 = vld [vmem:[%s3054_s3 + $0x788] sm:$0xff]  ;;  %v352_v7 = vld [vmem:[%s3054_s3 + $0x790] sm:$0xff] }
   0x3   :  { %v350_v6 = vld [vmem:[%s3054_s3 + $0x780] sm:$0xff]  ;;  %70 = vmatpush1.msra.mxu0 %v21_v1  ;;  %706 = vmatprep.subr.mxu1 %v351_v4  ;;  %v335_v8 = vld [vmem:[%s3054_s3 + $0x708] sm:$0xff]  ;;  %v337_v9 = vld [vmem:[%s3054_s3 + $0x718] sm:$0xff] }
   0x4   :  { %1400 = vmatmul.mubr.msk.f32.vlgmr.msra.gmra.mxu0 %vm35_vm0, %v20_v3  ;;  %777 = vmatprep.subr.mxu0 %v353_v5  ;;  %v334_v10 = vld [vmem:[%s3054_s3 + $0x700] sm:$0xff]  ;;  %v336_v11 = vld [vmem:[%s3054_s3 + $0x710] sm:$0xff]  ;;  %v319_v12 = vld [vmem:[%s3054_s3 + $0x688] sm:$0xff] }
   0x5   :  { %707 = vmatpush1.msra.mxu1 %v350_v6  ;;  %778 = vmatpush1.msra.mxu0 %v352_v7  ;;  %v321_v13 = vld [vmem:[%s3054_s3 + $0x698] sm:$0xff]  ;;  %v318_v14 = vld [vmem:[%s3054_s3 + $0x680] sm:$0xff]  ;;  %v320_v15 = vld [vmem:[%s3054_s3 + $0x690] sm:$0xff] }
   0x6   :  { %708 = vmatprep.subr.mxu1 %v335_v8  ;;  %779 = vmatprep.subr.mxu0 %v337_v9  ;;  %v303_v16 = vld [vmem:[%s3054_s3 + $0x608] sm:$0xff]  ;;  %v305_v17 = vld [vmem:[%s3054_s3 + $0x618] sm:$0xff]  ;;  %v302_v18 = vld [vmem:[%s3054_s3 + $0x600] sm:$0xff] }
   0x7   :  { %709 = vmatpush1.msra.mxu1 %v334_v10  ;;  %780 = vmatpush1.msra.mxu0 %v336_v11  ;;  %v304_v19 = vld [vmem:[%s3054_s3 + $0x610] sm:$0xff]  ;;  %v287_v20 = vld [vmem:[%s3054_s3 + $0x588] sm:$0xff]  ;;  %v289_v21 = vld [vmem:[%s3054_s3 + $0x598] sm:$0xff] }
   0x8   :  { %710 = vmatprep.subr.mxu1 %v319_v12  ;;  %781 = vmatprep.subr.mxu0 %v321_v13  ;;  %v286_v22 = vld [vmem:[%s3054_s3 + $0x580] sm:$0xff]  ;;  %v288_v23 = vld [vmem:[%s3054_s3 + $0x590] sm:$0xff]  ;;  %v271_v24 = vld [vmem:[%s3054_s3 + $0x508] sm:$0xff] }
   0x9   :  { %711 = vmatpush1.msra.mxu1 %v318_v14  ;;  %782 = vmatpush1.msra.mxu0 %v320_v15  ;;  %v273_v25 = vld [vmem:[%s3054_s3 + $0x518] sm:$0xff]  ;;  %v270_v26 = vld [vmem:[%s3054_s3 + $0x500] sm:$0xff]  ;;  %v272_v27 = vld [vmem:[%s3054_s3 + $0x510] sm:$0xff] }
   0xa   :  { %712 = vmatprep.subr.mxu1 %v303_v16  ;;  %783 = vmatprep.subr.mxu0 %v305_v17  ;;  %v255_v28 = vld [vmem:[%s3054_s3 + $0x488] sm:$0xff]  ;;  %v257_v29 = vld [vmem:[%s3054_s3 + $0x498] sm:$0xff]  ;;  %v254_v30 = vld [vmem:[%s3054_s3 + $0x480] sm:$0xff] }
   0xb   :  { %713 = vmatpush1.msra.mxu1 %v302_v18  ;;  %784 = vmatpush1.msra.mxu0 %v304_v19  ;;  %v256_v31 = vld [vmem:[%s3054_s3 + $0x490] sm:$0xff]  ;;  %v239_v32 = vld [vmem:[%s3054_s3 + $0x408] sm:$0xff]  ;;  %v241_v33 = vld [vmem:[%s3054_s3 + $0x418] sm:$0xff] }
   0xc   :  { %714 = vmatprep.subr.mxu1 %v287_v20  ;;  %785 = vmatprep.subr.mxu0 %v289_v21  ;;  %v238_v34 = vld [vmem:[%s3054_s3 + $0x400] sm:$0xff]  ;;  %v240_v35 = vld [vmem:[%s3054_s3 + $0x410] sm:$0xff]  ;;  %v223_v36 = vld [vmem:[%s3054_s3 + $0x388] sm:$0xff] }
   0xd   :  { %715 = vmatpush1.msra.mxu1 %v286_v22  ;;  %786 = vmatpush1.msra.mxu0 %v288_v23  ;;  %v225_v37 = vld [vmem:[%s3054_s3 + $0x398] sm:$0xff]  ;;  %v222_v38 = vld [vmem:[%s3054_s3 + $0x380] sm:$0xff]  ;;  %v224_v39 = vld [vmem:[%s3054_s3 + $0x390] sm:$0xff] }
   0xe   :  { %716 = vmatprep.subr.mxu1 %v271_v24  ;;  %787 = vmatprep.subr.mxu0 %v273_v25  ;;  %v207_v40 = vld [vmem:[%s3054_s3 + $0x308] sm:$0xff]  ;;  %v209_v41 = vld [vmem:[%s3054_s3 + $0x318] sm:$0xff]  ;;  %v206_v42 = vld [vmem:[%s3054_s3 + $0x300] sm:$0xff] }
   0xf   :  { %717 = vmatpush1.msra.mxu1 %v270_v26  ;;  %788 = vmatpush1.msra.mxu0 %v272_v27  ;;  %v208_v43 = vld [vmem:[%s3054_s3 + $0x310] sm:$0xff]  ;;  %v191_v44 = vld [vmem:[%s3054_s3 + $0x288] sm:$0xff]  ;;  %v193_v45 = vld [vmem:[%s3054_s3 + $0x298] sm:$0xff] }
  0x10   :  { %718 = vmatprep.subr.mxu1 %v255_v28  ;;  %789 = vmatprep.subr.mxu0 %v257_v29  ;;  %v190_v46 = vld [vmem:[%s3054_s3 + $0x280] sm:$0xff]  ;;  %v192_v47 = vld [vmem:[%s3054_s3 + $0x290] sm:$0xff]  ;;  %v175_v48 = vld [vmem:[%s3054_s3 + $0x208] sm:$0xff] }
  0x11   :  { %719 = vmatpush1.msra.mxu1 %v254_v30  ;;  %790 = vmatpush1.msra.mxu0 %v256_v31  ;;  %v177_v49 = vld [vmem:[%s3054_s3 + $0x218] sm:$0xff]  ;;  %v174_v50 = vld [vmem:[%s3054_s3 + $0x200] sm:$0xff]  ;;  %v176_v51 = vld [vmem:[%s3054_s3 + $0x210] sm:$0xff] }
  0x12   :  { %720 = vmatprep.subr.mxu1 %v239_v32  ;;  %791 = vmatprep.subr.mxu0 %v241_v33  ;;  %v159_v52 = vld [vmem:[%s3054_s3 + $0x188] sm:$0xff]  ;;  %v161_v53 = vld [vmem:[%s3054_s3 + $0x198] sm:$0xff]  ;;  %v158_v54 = vld [vmem:[%s3054_s3 + $0x180] sm:$0xff] }
  0x13   :  { %721 = vmatpush1.msra.mxu1 %v238_v34  ;;  %792 = vmatpush1.msra.mxu0 %v240_v35  ;;  %v160_v55 = vld [vmem:[%s3054_s3 + $0x190] sm:$0xff]  ;;  %v143_v56 = vld [vmem:[%s3054_s3 + $0x108] sm:$0xff]  ;;  %v145_v57 = vld [vmem:[%s3054_s3 + $0x118] sm:$0xff] }
  0x14   :  { %722 = vmatprep.subr.mxu1 %v223_v36  ;;  %793 = vmatprep.subr.mxu0 %v225_v37  ;;  %v142_v58 = vld [vmem:[%s3054_s3 + $0x100] sm:$0xff]  ;;  %v144_v59 = vld [vmem:[%s3054_s3 + $0x110] sm:$0xff]  ;;  %v127_v60 = vld [vmem:[%s3054_s3 + $0x88] sm:$0xff] }
  0x15   :  { %723 = vmatpush1.msra.mxu1 %v222_v38  ;;  %794 = vmatpush1.msra.mxu0 %v224_v39  ;;  %v129_v61 = vld [vmem:[%s3054_s3 + $0x98] sm:$0xff]  ;;  %v126_v62 = vld [vmem:[%s3054_s3 + $0x80] sm:$0xff]  ;;  %v128_v63 = vld [vmem:[%s3054_s3 + $0x90] sm:$0xff] }
  0x16   :  { %724 = vmatprep.subr.mxu1 %v207_v40  ;;  %795 = vmatprep.subr.mxu0 %v209_v41  ;;  %v111_v0 = vld [vmem:[%s3054_s3 + $0x8] sm:$0xff]  ;;  %v113_v1 = vld [vmem:[%s3054_s3 + $0x18] sm:$0xff]  ;;  %v110_v2 = vld [vmem:[%s3054_s3] sm:$0xff] }
  0x17   :  { %725 = vmatpush1.msra.mxu1 %v206_v42  ;;  %796 = vmatpush1.msra.mxu0 %v208_v43  ;;  %v112_v3 = vld [vmem:[%s3054_s3 + $0x10] sm:$0xff]  ;;  %v607_v4 = vld [vmem:[%s3054_s3 + $0xf88] sm:$0xff]  ;;  %v609_v5 = vld [vmem:[%s3054_s3 + $0xf98] sm:$0xff] }
  0x18   :  { %726 = vmatprep.subr.mxu1 %v191_v44  ;;  %797 = vmatprep.subr.mxu0 %v193_v45  ;;  %v606_v6 = vld [vmem:[%s3054_s3 + $0xf80] sm:$0xff]  ;;  %v608_v7 = vld [vmem:[%s3054_s3 + $0xf90] sm:$0xff]  ;;  %v591_v8 = vld [vmem:[%s3054_s3 + $0xf08] sm:$0xff] }
  0x19   :  { %727 = vmatpush1.msra.mxu1 %v190_v46  ;;  %798 = vmatpush1.msra.mxu0 %v192_v47  ;;  %v593_v9 = vld [vmem:[%s3054_s3 + $0xf18] sm:$0xff]  ;;  %v590_v10 = vld [vmem:[%s3054_s3 + $0xf00] sm:$0xff]  ;;  %v592_v11 = vld [vmem:[%s3054_s3 + $0xf10] sm:$0xff] }
  0x1a   :  { %728 = vmatprep.subr.mxu1 %v175_v48  ;;  %799 = vmatprep.subr.mxu0 %v177_v49  ;;  %v575_v12 = vld [vmem:[%s3054_s3 + $0xe88] sm:$0xff]  ;;  %v577_v13 = vld [vmem:[%s3054_s3 + $0xe98] sm:$0xff]  ;;  %v574_v14 = vld [vmem:[%s3054_s3 + $0xe80] sm:$0xff] }
  0x1b   :  { %729 = vmatpush1.msra.mxu1 %v174_v50  ;;  %800 = vmatpush1.msra.mxu0 %v176_v51  ;;  %v576_v15 = vld [vmem:[%s3054_s3 + $0xe90] sm:$0xff]  ;;  %v559_v16 = vld [vmem:[%s3054_s3 + $0xe08] sm:$0xff]  ;;  %v561_v17 = vld [vmem:[%s3054_s3 + $0xe18] sm:$0xff] }
  0x1c   :  { %730 = vmatprep.subr.mxu1 %v159_v52  ;;  %801 = vmatprep.subr.mxu0 %v161_v53  ;;  %v558_v18 = vld [vmem:[%s3054_s3 + $0xe00] sm:$0xff]  ;;  %v560_v19 = vld [vmem:[%s3054_s3 + $0xe10] sm:$0xff]  ;;  %v543_v20 = vld [vmem:[%s3054_s3 + $0xd88] sm:$0xff] }
  0x1d   :  { %731 = vmatpush1.msra.mxu1 %v158_v54  ;;  %802 = vmatpush1.msra.mxu0 %v160_v55  ;;  %v545_v21 = vld [vmem:[%s3054_s3 + $0xd98] sm:$0xff]  ;;  %v542_v22 = vld [vmem:[%s3054_s3 + $0xd80] sm:$0xff]  ;;  %v544_v23 = vld [vmem:[%s3054_s3 + $0xd90] sm:$0xff] }
  0x1e   :  { %732 = vmatprep.subr.mxu1 %v143_v56  ;;  %803 = vmatprep.subr.mxu0 %v145_v57  ;;  %v527_v24 = vld [vmem:[%s3054_s3 + $0xd08] sm:$0xff]  ;;  %v529_v25 = vld [vmem:[%s3054_s3 + $0xd18] sm:$0xff]  ;;  %v526_v26 = vld [vmem:[%s3054_s3 + $0xd00] sm:$0xff] }
  0x1f   :  { %733 = vmatpush1.msra.mxu1 %v142_v58  ;;  %804 = vmatpush1.msra.mxu0 %v144_v59  ;;  %v528_v27 = vld [vmem:[%s3054_s3 + $0xd10] sm:$0xff]  ;;  %v511_v28 = vld [vmem:[%s3054_s3 + $0xc88] sm:$0xff]  ;;  %v513_v29 = vld [vmem:[%s3054_s3 + $0xc98] sm:$0xff] }
  0x20   :  { %734 = vmatprep.subr.mxu1 %v127_v60  ;;  %805 = vmatprep.subr.mxu0 %v129_v61  ;;  %v510_v30 = vld [vmem:[%s3054_s3 + $0xc80] sm:$0xff]  ;;  %v512_v31 = vld [vmem:[%s3054_s3 + $0xc90] sm:$0xff]  ;;  %v495_v32 = vld [vmem:[%s3054_s3 + $0xc08] sm:$0xff] }
  0x21   :  { %735 = vmatpush1.msra.mxu1 %v126_v62  ;;  %806 = vmatpush1.msra.mxu0 %v128_v63  ;;  %v497_v33 = vld [vmem:[%s3054_s3 + $0xc18] sm:$0xff]  ;;  %v494_v34 = vld [vmem:[%s3054_s3 + $0xc00] sm:$0xff]  ;;  %v496_v35 = vld [vmem:[%s3054_s3 + $0xc10] sm:$0xff] }
  0x22   :  { %736 = vmatprep.subr.mxu1 %v111_v0  ;;  %807 = vmatprep.subr.mxu0 %v113_v1  ;;  %v479_v36 = vld [vmem:[%s3054_s3 + $0xb88] sm:$0xff]  ;;  %v481_v37 = vld [vmem:[%s3054_s3 + $0xb98] sm:$0xff]  ;;  %v478_v38 = vld [vmem:[%s3054_s3 + $0xb80] sm:$0xff] }
  0x23   :  { %737 = vmatpush1.msra.mxu1 %v110_v2  ;;  %808 = vmatpush1.msra.mxu0 %v112_v3  ;;  %v480_v39 = vld [vmem:[%s3054_s3 + $0xb90] sm:$0xff]  ;;  %v463_v40 = vld [vmem:[%s3054_s3 + $0xb08] sm:$0xff]  ;;  %v465_v41 = vld [vmem:[%s3054_s3 + $0xb18] sm:$0xff] }
  0x24   :  { %738 = vmatprep.subr.mxu1 %v607_v4  ;;  %809 = vmatprep.subr.mxu0 %v609_v5  ;;  %v462_v42 = vld [vmem:[%s3054_s3 + $0xb00] sm:$0xff]  ;;  %v464_v43 = vld [vmem:[%s3054_s3 + $0xb10] sm:$0xff]  ;;  %v447_v44 = vld [vmem:[%s3054_s3 + $0xa88] sm:$0xff] }
  0x25   :  { %739 = vmatpush2.msra.mxu1 %v606_v6  ;;  %810 = vmatpush2.msra.mxu0 %v608_v7  ;;  %v449_v45 = vld [vmem:[%s3054_s3 + $0xa98] sm:$0xff]  ;;  %v446_v46 = vld [vmem:[%s3054_s3 + $0xa80] sm:$0xff]  ;;  %v448_v47 = vld [vmem:[%s3054_s3 + $0xa90] sm:$0xff]  ;;  %v25_v6 = vlaneseq }
  0x26   :  { %740 = vmatprep.subr.mxu1 %v591_v8  ;;  %811 = vmatprep.subr.mxu0 %v593_v9  ;;  %v431_v48 = vld [vmem:[%s3054_s3 + $0xa08] sm:$0xff]  ;;  %v433_v49 = vld [vmem:[%s3054_s3 + $0xa18] sm:$0xff]  ;;  %v430_v50 = vld [vmem:[%s3054_s3 + $0xa00] sm:$0xff] }
  0x27   :  { %741 = vmatpush2.msra.mxu1 %v590_v10  ;;  %812 = vmatpush2.msra.mxu0 %v592_v11  ;;  %v432_v51 = vld [vmem:[%s3054_s3 + $0xa10] sm:$0xff]  ;;  %v415_v52 = vld [vmem:[%s3054_s3 + $0x988] sm:$0xff]  ;;  %v417_v53 = vld [vmem:[%s3054_s3 + $0x998] sm:$0xff]  ;;  %v1835_v7 = vshrl.u32 %v25_v6, 7  ;;  %vm1393_vm1 = vcmp.lt.s32.totalorder %v25_v6, 902 }
  0x28   :  { %742 = vmatprep.subr.mxu1 %v575_v12  ;;  %813 = vmatprep.subr.mxu0 %v577_v13  ;;  %v414_v54 = vld [vmem:[%s3054_s3 + $0x980] sm:$0xff]  ;;  %v416_v55 = vld [vmem:[%s3054_s3 + $0x990] sm:$0xff]  ;;  %v399_v56 = vld [vmem:[%s3054_s3 + $0x908] sm:$0xff] }
  0x29   :  { %743 = vmatpush2.msra.mxu1 %v574_v14  ;;  %814 = vmatpush2.msra.mxu0 %v576_v15  ;;  %v401_v57 = vld [vmem:[%s3054_s3 + $0x918] sm:$0xff]  ;;  %v398_v58 = vld [vmem:[%s3054_s3 + $0x900] sm:$0xff]  ;;  %v400_v59 = vld [vmem:[%s3054_s3 + $0x910] sm:$0xff]  ;;  %v1838_v8 = vsub.s32 1, %v1835_v7  ;;  %v1841_v9 = vsub.s32 0, %v1835_v7 }
  0x2a   :  { %744 = vmatprep.subr.mxu1 %v559_v16  ;;  %815 = vmatprep.subr.mxu0 %v561_v17  ;;  %v383_v60 = vld [vmem:[%s3054_s3 + $0x888] sm:$0xff]  ;;  %v385_v61 = vld [vmem:[%s3054_s3 + $0x898] sm:$0xff]  ;;  %v382_v62 = vld [vmem:[%s3054_s3 + $0x880] sm:$0xff] }
  0x2b   :  { %745 = vmatpush2.msra.mxu1 %v558_v18  ;;  %816 = vmatpush2.msra.mxu0 %v560_v19  ;;  %v384_v63 = vld [vmem:[%s3054_s3 + $0x890] sm:$0xff]  ;;  %v367_v0 = vld [vmem:[%s3054_s3 + $0x808] sm:$0xff]  ;;  %v369_v1 = vld [vmem:[%s3054_s3 + $0x818] sm:$0xff] }
  0x2c   :  { %746 = vmatprep.subr.mxu1 %v543_v20  ;;  %817 = vmatprep.subr.mxu0 %v545_v21  ;;  %v366_v2 = vld [vmem:[%s3054_s3 + $0x800] sm:$0xff]  ;;  %v368_v3 = vld [vmem:[%s3054_s3 + $0x810] sm:$0xff]  ;;  %v355_v4 = vld [vmem:[%s3054_s3 + $0x7a8] sm:$0xff] }
  0x2d   :  { %747 = vmatpush2.msra.mxu1 %v542_v22  ;;  %818 = vmatpush2.msra.mxu0 %v544_v23  ;;  %v357_v5 = vld [vmem:[%s3054_s3 + $0x7b8] sm:$0xff]  ;;  %v23_v10 = vld [vmem:[%s3055_s2] sm:$0x3]  ;;  %v356_v18 = vld [vmem:[%s3054_s3 + $0x7b0] sm:$0xff] }
  0x2e   :  { %748 = vmatprep.subr.mxu1 %v527_v24  ;;  %819 = vmatprep.subr.mxu0 %v529_v25  ;;  %v32_v11 = vrot.slane %v23_v10, %v1838_v8  ;;  %v28_v12 = vrot.slane %v23_v10, %v1841_v9  ;;  %v354_v17 = vld [vmem:[%s3054_s3 + $0x7a0] sm:$0xff]  ;;  %v339_v19 = vld [vmem:[%s3054_s3 + $0x728] sm:$0xff]  ;;  %v341_v20 = vld [vmem:[%s3054_s3 + $0x738] sm:$0xff] }
  0x2f   :  { %749 = vmatpush2.msra.mxu1 %v526_v26  ;;  %820 = vmatpush2.msra.mxu0 %v528_v27  ;;  %v338_v21 = vld [vmem:[%s3054_s3 + $0x720] sm:$0xff]  ;;  %v340_v22 = vld [vmem:[%s3054_s3 + $0x730] sm:$0xff]  ;;  %v323_v23 = vld [vmem:[%s3054_s3 + $0x6a8] sm:$0xff] }
  0x30   :  { %750 = vmatprep.subr.mxu1 %v511_v28  ;;  %821 = vmatprep.subr.mxu0 %v513_v29  ;;  %v325_v24 = vld [vmem:[%s3054_s3 + $0x6b8] sm:$0xff]  ;;  %v322_v25 = vld [vmem:[%s3054_s3 + $0x6a0] sm:$0xff]  ;;  %v324_v26 = vld [vmem:[%s3054_s3 + $0x6b0] sm:$0xff] }
  0x31   :  { %751 = vmatpush2.msra.mxu1 %v510_v30  ;;  %822 = vmatpush2.msra.mxu0 %v512_v31  ;;  %v307_v27 = vld [vmem:[%s3054_s3 + $0x628] sm:$0xff]  ;;  %v309_v28 = vld [vmem:[%s3054_s3 + $0x638] sm:$0xff]  ;;  %v306_v29 = vld [vmem:[%s3054_s3 + $0x620] sm:$0xff] }
  0x32   :  { %752 = vmatprep.subr.mxu1 %v495_v32  ;;  %823 = vmatprep.subr.mxu0 %v497_v33  ;;  %v308_v30 = vld [vmem:[%s3054_s3 + $0x630] sm:$0xff]  ;;  %v291_v31 = vld [vmem:[%s3054_s3 + $0x5a8] sm:$0xff]  ;;  %v293_v32 = vld [vmem:[%s3054_s3 + $0x5b8] sm:$0xff] }
  0x33   :  { %753 = vmatpush2.msra.mxu1 %v494_v34  ;;  %824 = vmatpush2.msra.mxu0 %v496_v35  ;;  %v290_v33 = vld [vmem:[%s3054_s3 + $0x5a0] sm:$0xff]  ;;  %v292_v34 = vld [vmem:[%s3054_s3 + $0x5b0] sm:$0xff]  ;;  %v275_v35 = vld [vmem:[%s3054_s3 + $0x528] sm:$0xff] }
  0x34   :  { %754 = vmatprep.subr.mxu1 %v479_v36  ;;  %825 = vmatprep.subr.mxu0 %v481_v37  ;;  %v277_v36 = vld [vmem:[%s3054_s3 + $0x538] sm:$0xff]  ;;  %v274_v37 = vld [vmem:[%s3054_s3 + $0x520] sm:$0xff]  ;;  %v148_v10 = vld [vmem:[%s3054_s3 + $0x130] sm:$0xff] }
  0x35   :  { %755 = vmatpush2.msra.mxu1 %v478_v38  ;;  %826 = vmatpush2.msra.mxu0 %v480_v39  ;;  %v276_v38 = vld [vmem:[%s3054_s3 + $0x530] sm:$0xff]  ;;  %v259_v39 = vld [vmem:[%s3054_s3 + $0x4a8] sm:$0xff] }
  0x36   :  { %756 = vmatprep.subr.mxu1 %v463_v40  ;;  %827 = vmatprep.subr.mxu0 %v465_v41  ;;  %v261_v40 = vld [vmem:[%s3054_s3 + $0x4b8] sm:$0xff]  ;;  %v258_v41 = vld [vmem:[%s3054_s3 + $0x4a0] sm:$0xff] }
  0x37   :  { %757 = vmatpush2.msra.mxu1 %v462_v42  ;;  %828 = vmatpush2.msra.mxu0 %v464_v43  ;;  %v260_v42 = vld [vmem:[%s3054_s3 + $0x4b0] sm:$0xff]  ;;  %v243_v43 = vld [vmem:[%s3054_s3 + $0x428] sm:$0xff] }
  0x38   :  { %758 = vmatprep.subr.mxu1 %v447_v44  ;;  %829 = vmatprep.subr.mxu0 %v449_v45  ;;  %v245_v44 = vld [vmem:[%s3054_s3 + $0x438] sm:$0xff]  ;;  %v242_v45 = vld [vmem:[%s3054_s3 + $0x420] sm:$0xff] }
  0x39   :  { %759 = vmatpush2.msra.mxu1 %v446_v46  ;;  %830 = vmatpush2.msra.mxu0 %v448_v47  ;;  %v244_v46 = vld [vmem:[%s3054_s3 + $0x430] sm:$0xff]  ;;  %v227_v47 = vld [vmem:[%s3054_s3 + $0x3a8] sm:$0xff] }
  0x3a   :  { %760 = vmatprep.subr.mxu1 %v431_v48  ;;  %831 = vmatprep.subr.mxu0 %v433_v49  ;;  %v229_v48 = vld [vmem:[%s3054_s3 + $0x3b8] sm:$0xff]  ;;  %v226_v49 = vld [vmem:[%s3054_s3 + $0x3a0] sm:$0xff] }
  0x3b   :  { %761 = vmatpush2.msra.mxu1 %v430_v50  ;;  %832 = vmatpush2.msra.mxu0 %v432_v51  ;;  %v228_v50 = vld [vmem:[%s3054_s3 + $0x3b0] sm:$0xff]  ;;  %v211_v51 = vld [vmem:[%s3054_s3 + $0x328] sm:$0xff] }
  0x3c   :  { %762 = vmatprep.subr.mxu1 %v415_v52  ;;  %833 = vmatprep.subr.mxu0 %v417_v53  ;;  %v213_v52 = vld [vmem:[%s3054_s3 + $0x338] sm:$0xff]  ;;  %v210_v53 = vld [vmem:[%s3054_s3 + $0x320] sm:$0xff] }
  0x3d   :  { %763 = vmatpush2.msra.mxu1 %v414_v54  ;;  %834 = vmatpush2.msra.mxu0 %v416_v55  ;;  %v212_v54 = vld [vmem:[%s3054_s3 + $0x330] sm:$0xff]  ;;  %v195_v55 = vld [vmem:[%s3054_s3 + $0x2a8] sm:$0xff] }
  0x3e   :  { %764 = vmatprep.subr.mxu1 %v399_v56  ;;  %835 = vmatprep.subr.mxu0 %v401_v57  ;;  %v197_v56 = vld [vmem:[%s3054_s3 + $0x2b8] sm:$0xff]  ;;  %v194_v57 = vld [vmem:[%s3054_s3 + $0x2a0] sm:$0xff] }
  0x3f   :  { %765 = vmatpush2.msra.mxu1 %v398_v58  ;;  %836 = vmatpush2.msra.mxu0 %v400_v59  ;;  %v196_v58 = vld [vmem:[%s3054_s3 + $0x2b0] sm:$0xff]  ;;  %v179_v59 = vld [vmem:[%s3054_s3 + $0x228] sm:$0xff] }
  0x40   :  { %766 = vmatprep.subr.mxu1 %v383_v60  ;;  %837 = vmatprep.subr.mxu0 %v385_v61  ;;  %v181_v60 = vld [vmem:[%s3054_s3 + $0x238] sm:$0xff]  ;;  %v178_v61 = vld [vmem:[%s3054_s3 + $0x220] sm:$0xff] }
  0x41   :  { %767 = vmatpush2.msra.mxu1 %v382_v62  ;;  %838 = vmatpush2.msra.mxu0 %v384_v63  ;;  %v180_v62 = vld [vmem:[%s3054_s3 + $0x230] sm:$0xff]  ;;  %v163_v63 = vld [vmem:[%s3054_s3 + $0x1a8] sm:$0xff] }
  0x42   :  { %768 = vmatprep.subr.mxu1 %v367_v0  ;;  %839 = vmatprep.subr.mxu0 %v369_v1  ;;  %v165_v0 = vld [vmem:[%s3054_s3 + $0x1b8] sm:$0xff]  ;;  %v162_v1 = vld [vmem:[%s3054_s3 + $0x1a0] sm:$0xff] }
  0x43   :  { %769 = vmatpush2.msra.mxu1 %v366_v2  ;;  %840 = vmatpush2.msra.mxu0 %v368_v3  ;;  %v164_v2 = vld [vmem:[%s3054_s3 + $0x1b0] sm:$0xff]  ;;  %v147_v3 = vld [vmem:[%s3054_s3 + $0x128] sm:$0xff] }
  0x44   :  { %848 = vmatprep.subr.mxu1 %v355_v4  ;;  %919 = vmatprep.subr.mxu0 %v357_v5  ;;  %v149_v4 = vld [vmem:[%s3054_s3 + $0x138] sm:$0xff]  ;;  %v146_v5 = vld [vmem:[%s3054_s3 + $0x120] sm:$0xff] }
  0xc4   :  { %v105_v13 = vpop.f32.mrf.mxu0 }
  0xc5   :  { %v1850_v16 = vadd.f32 %v105_v13, %v28_v12  ;;  %v133_v12 = vld [vmem:[%s3054_s3 + $0xb8] sm:$0xff]  ;;  %v130_v13 = vld [vmem:[%s3054_s3 + $0xa0] sm:$0xff] }
  0xc6   :  { %v107_v14 = vpop.f32.mrf.mxu0 }
  0xc7   :  { %v1848_v15 = vadd.f32 %v107_v14, %v32_v11  ;;  %v131_v11 = vld [vmem:[%s3054_s3 + $0xa8] sm:$0xff]  ;;  %v132_v14 = vld [vmem:[%s3054_s3 + $0xb0] sm:$0xff] }
  0xc9   :  { %770 = vmatprep.mubr.f32.mxu1 %v1848_v15  ;;  %841 = vmatprep.mubr.f32.mxu0 %v1848_v15 }
  0xca   :  { %771 = vmatmul.mubr.f32.vlgmr.msra.gmra.mxu1 %v1850_v16  ;;  %842 = vmatmul.mubr.f32.vlgmr.msra.gmra.mxu0 %v1850_v16 }
  0xcb   :  { %849 = vmatpush1.msra.mxu1 %v354_v17  ;;  %920 = vmatpush1.msra.mxu0 %v356_v18  ;;  %v115_v17 = vld [vmem:[%s3054_s3 + $0x28] sm:$0xff]  ;;  %v117_v18 = vld [vmem:[%s3054_s3 + $0x38] sm:$0xff] }
  0xcc   :  { %850 = vmatprep.subr.mxu1 %v339_v19  ;;  %912 = vmatprep.mubr.f32.mxu1 %v1848_v15  ;;  %v114_v19 = vld [vmem:[%s3054_s3 + $0x20] sm:$0xff] }
  0xcd   :  { %921 = vmatprep.subr.mxu0 %v341_v20  ;;  %983 = vmatprep.mubr.f32.mxu0 %v1848_v15  ;;  %v116_v20 = vld [vmem:[%s3054_s3 + $0x30] sm:$0xff] }
  0xce   :  { %851 = vmatpush1.msra.mxu1 %v338_v21  ;;  %922 = vmatpush1.msra.mxu0 %v340_v22  ;;  %v611_v21 = vld [vmem:[%s3054_s3 + $0xfa8] sm:$0xff]  ;;  %v613_v22 = vld [vmem:[%s3054_s3 + $0xfb8] sm:$0xff] }
  0xcf   :  { %852 = vmatprep.subr.mxu1 %v323_v23  ;;  %923 = vmatprep.subr.mxu0 %v325_v24  ;;  %v610_v23 = vld [vmem:[%s3054_s3 + $0xfa0] sm:$0xff]  ;;  %v612_v24 = vld [vmem:[%s3054_s3 + $0xfb0] sm:$0xff] }
  0xd0   :  { %853 = vmatpush1.msra.mxu1 %v322_v25  ;;  %924 = vmatpush1.msra.mxu0 %v324_v26  ;;  %v595_v25 = vld [vmem:[%s3054_s3 + $0xf28] sm:$0xff]  ;;  %v597_v26 = vld [vmem:[%s3054_s3 + $0xf38] sm:$0xff] }
  0xd1   :  { %854 = vmatprep.subr.mxu1 %v307_v27  ;;  %925 = vmatprep.subr.mxu0 %v309_v28  ;;  %v594_v27 = vld [vmem:[%s3054_s3 + $0xf20] sm:$0xff]  ;;  %v596_v28 = vld [vmem:[%s3054_s3 + $0xf30] sm:$0xff] }
  0xd2   :  { %855 = vmatpush1.msra.mxu1 %v306_v29  ;;  %926 = vmatpush1.msra.mxu0 %v308_v30  ;;  %v579_v29 = vld [vmem:[%s3054_s3 + $0xea8] sm:$0xff]  ;;  %v581_v30 = vld [vmem:[%s3054_s3 + $0xeb8] sm:$0xff] }
  0xd3   :  { %856 = vmatprep.subr.mxu1 %v291_v31  ;;  %927 = vmatprep.subr.mxu0 %v293_v32  ;;  %v578_v31 = vld [vmem:[%s3054_s3 + $0xea0] sm:$0xff]  ;;  %v580_v32 = vld [vmem:[%s3054_s3 + $0xeb0] sm:$0xff] }
  0xd4   :  { %857 = vmatpush1.msra.mxu1 %v290_v33  ;;  %928 = vmatpush1.msra.mxu0 %v292_v34  ;;  %v563_v33 = vld [vmem:[%s3054_s3 + $0xe28] sm:$0xff]  ;;  %v565_v34 = vld [vmem:[%s3054_s3 + $0xe38] sm:$0xff] }
  0xd5   :  { %858 = vmatprep.subr.mxu1 %v275_v35  ;;  %929 = vmatprep.subr.mxu0 %v277_v36  ;;  %v562_v35 = vld [vmem:[%s3054_s3 + $0xe20] sm:$0xff]  ;;  %v564_v36 = vld [vmem:[%s3054_s3 + $0xe30] sm:$0xff] }
  0xd6   :  { %859 = vmatpush1.msra.mxu1 %v274_v37  ;;  %930 = vmatpush1.msra.mxu0 %v276_v38  ;;  %v547_v37 = vld [vmem:[%s3054_s3 + $0xda8] sm:$0xff]  ;;  %v549_v38 = vld [vmem:[%s3054_s3 + $0xdb8] sm:$0xff] }
  0xd7   :  { %860 = vmatprep.subr.mxu1 %v259_v39  ;;  %931 = vmatprep.subr.mxu0 %v261_v40  ;;  %v546_v39 = vld [vmem:[%s3054_s3 + $0xda0] sm:$0xff]  ;;  %v548_v40 = vld [vmem:[%s3054_s3 + $0xdb0] sm:$0xff] }
  0xd8   :  { %861 = vmatpush1.msra.mxu1 %v258_v41  ;;  %932 = vmatpush1.msra.mxu0 %v260_v42  ;;  %v531_v41 = vld [vmem:[%s3054_s3 + $0xd28] sm:$0xff]  ;;  %v533_v42 = vld [vmem:[%s3054_s3 + $0xd38] sm:$0xff] }
  0xd9   :  { %862 = vmatprep.subr.mxu1 %v243_v43  ;;  %933 = vmatprep.subr.mxu0 %v245_v44  ;;  %v530_v43 = vld [vmem:[%s3054_s3 + $0xd20] sm:$0xff]  ;;  %v532_v44 = vld [vmem:[%s3054_s3 + $0xd30] sm:$0xff] }
  0xda   :  { %863 = vmatpush1.msra.mxu1 %v242_v45  ;;  %934 = vmatpush1.msra.mxu0 %v244_v46  ;;  %v515_v45 = vld [vmem:[%s3054_s3 + $0xca8] sm:$0xff]  ;;  %v517_v46 = vld [vmem:[%s3054_s3 + $0xcb8] sm:$0xff] }
  0xdb   :  { %864 = vmatprep.subr.mxu1 %v227_v47  ;;  %935 = vmatprep.subr.mxu0 %v229_v48  ;;  %v514_v47 = vld [vmem:[%s3054_s3 + $0xca0] sm:$0xff]  ;;  %v516_v48 = vld [vmem:[%s3054_s3 + $0xcb0] sm:$0xff] }
  0xdc   :  { %865 = vmatpush1.msra.mxu1 %v226_v49  ;;  %936 = vmatpush1.msra.mxu0 %v228_v50  ;;  %v499_v49 = vld [vmem:[%s3054_s3 + $0xc28] sm:$0xff]  ;;  %v501_v50 = vld [vmem:[%s3054_s3 + $0xc38] sm:$0xff] }
  0xdd   :  { %866 = vmatprep.subr.mxu1 %v211_v51  ;;  %937 = vmatprep.subr.mxu0 %v213_v52  ;;  %v498_v51 = vld [vmem:[%s3054_s3 + $0xc20] sm:$0xff]  ;;  %v500_v52 = vld [vmem:[%s3054_s3 + $0xc30] sm:$0xff] }
  0xde   :  { %867 = vmatpush1.msra.mxu1 %v210_v53  ;;  %938 = vmatpush1.msra.mxu0 %v212_v54  ;;  %v483_v53 = vld [vmem:[%s3054_s3 + $0xba8] sm:$0xff]  ;;  %v485_v54 = vld [vmem:[%s3054_s3 + $0xbb8] sm:$0xff] }
  0xdf   :  { %868 = vmatprep.subr.mxu1 %v195_v55  ;;  %939 = vmatprep.subr.mxu0 %v197_v56  ;;  %v482_v55 = vld [vmem:[%s3054_s3 + $0xba0] sm:$0xff]  ;;  %v484_v56 = vld [vmem:[%s3054_s3 + $0xbb0] sm:$0xff] }
  0xe0   :  { %869 = vmatpush1.msra.mxu1 %v194_v57  ;;  %940 = vmatpush1.msra.mxu0 %v196_v58  ;;  %v467_v57 = vld [vmem:[%s3054_s3 + $0xb28] sm:$0xff]  ;;  %v469_v58 = vld [vmem:[%s3054_s3 + $0xb38] sm:$0xff] }
  0xe1   :  { %870 = vmatprep.subr.mxu1 %v179_v59  ;;  %941 = vmatprep.subr.mxu0 %v181_v60  ;;  %v466_v59 = vld [vmem:[%s3054_s3 + $0xb20] sm:$0xff]  ;;  %v468_v60 = vld [vmem:[%s3054_s3 + $0xb30] sm:$0xff] }
  0xe2   :  { %871 = vmatpush1.msra.mxu1 %v178_v61  ;;  %942 = vmatpush1.msra.mxu0 %v180_v62  ;;  %v451_v61 = vld [vmem:[%s3054_s3 + $0xaa8] sm:$0xff]  ;;  %v453_v62 = vld [vmem:[%s3054_s3 + $0xab8] sm:$0xff] }
  0xe3   :  { %872 = vmatprep.subr.mxu1 %v163_v63  ;;  %943 = vmatprep.subr.mxu0 %v165_v0  ;;  %v450_v63 = vld [vmem:[%s3054_s3 + $0xaa0] sm:$0xff]  ;;  %v452_v0 = vld [vmem:[%s3054_s3 + $0xab0] sm:$0xff] }
  0xe4   :  { %873 = vmatpush1.msra.mxu1 %v162_v1  ;;  %944 = vmatpush1.msra.mxu0 %v164_v2  ;;  %v435_v1 = vld [vmem:[%s3054_s3 + $0xa28] sm:$0xff]  ;;  %v437_v2 = vld [vmem:[%s3054_s3 + $0xa38] sm:$0xff] }
  0xe5   :  { %874 = vmatprep.subr.mxu1 %v147_v3  ;;  %945 = vmatprep.subr.mxu0 %v149_v4  ;;  %v434_v3 = vld [vmem:[%s3054_s3 + $0xa20] sm:$0xff]  ;;  %v436_v4 = vld [vmem:[%s3054_s3 + $0xa30] sm:$0xff] }
  0xe6   :  { %875 = vmatpush1.msra.mxu1 %v146_v5  ;;  %946 = vmatpush1.msra.mxu0 %v148_v10  ;;  %v419_v5 = vld [vmem:[%s3054_s3 + $0x9a8] sm:$0xff]  ;;  %v421_v10 = vld [vmem:[%s3054_s3 + $0x9b8] sm:$0xff] }
  0xe7   :  { %876 = vmatprep.subr.mxu1 %v131_v11  ;;  %947 = vmatprep.subr.mxu0 %v133_v12  ;;  %v418_v11 = vld [vmem:[%s3054_s3 + $0x9a0] sm:$0xff]  ;;  %v420_v12 = vld [vmem:[%s3054_s3 + $0x9b0] sm:$0xff] }
  0xe8   :  { %877 = vmatpush1.msra.mxu1 %v130_v13  ;;  %948 = vmatpush1.msra.mxu0 %v132_v14  ;;  %v403_v13 = vld [vmem:[%s3054_s3 + $0x928] sm:$0xff]  ;;  %v405_v14 = vld [vmem:[%s3054_s3 + $0x938] sm:$0xff] }
  0xe9   :  { %878 = vmatprep.subr.mxu1 %v115_v17  ;;  %949 = vmatprep.subr.mxu0 %v117_v18  ;;  %v402_v17 = vld [vmem:[%s3054_s3 + $0x920] sm:$0xff]  ;;  %v404_v18 = vld [vmem:[%s3054_s3 + $0x930] sm:$0xff] }
  0xea   :  { %879 = vmatpush1.msra.mxu1 %v114_v19  ;;  %950 = vmatpush1.msra.mxu0 %v116_v20  ;;  %v387_v19 = vld [vmem:[%s3054_s3 + $0x8a8] sm:$0xff]  ;;  %v389_v20 = vld [vmem:[%s3054_s3 + $0x8b8] sm:$0xff] }
  0xeb   :  { %880 = vmatprep.subr.mxu1 %v611_v21  ;;  %951 = vmatprep.subr.mxu0 %v613_v22  ;;  %v386_v21 = vld [vmem:[%s3054_s3 + $0x8a0] sm:$0xff]  ;;  %v388_v22 = vld [vmem:[%s3054_s3 + $0x8b0] sm:$0xff] }
  0xec   :  { %881 = vmatpush2.msra.mxu1 %v610_v23  ;;  %952 = vmatpush2.msra.mxu0 %v612_v24  ;;  %v371_v23 = vld [vmem:[%s3054_s3 + $0x828] sm:$0xff]  ;;  %v373_v24 = vld [vmem:[%s3054_s3 + $0x838] sm:$0xff] }
  0xed   :  { %882 = vmatprep.subr.mxu1 %v595_v25  ;;  %953 = vmatprep.subr.mxu0 %v597_v26  ;;  %v370_v25 = vld [vmem:[%s3054_s3 + $0x820] sm:$0xff]  ;;  %v372_v26 = vld [vmem:[%s3054_s3 + $0x830] sm:$0xff] }
  0xee   :  { %883 = vmatpush2.msra.mxu1 %v594_v27  ;;  %954 = vmatpush2.msra.mxu0 %v596_v28  ;;  %v359_v27 = vld [vmem:[%s3054_s3 + $0x7c8] sm:$0xff]  ;;  %v361_v28 = vld [vmem:[%s3054_s3 + $0x7d8] sm:$0xff] }
  0xef   :  { %884 = vmatprep.subr.mxu1 %v579_v29  ;;  %955 = vmatprep.subr.mxu0 %v581_v30  ;;  %v358_v29 = vld [vmem:[%s3054_s3 + $0x7c0] sm:$0xff]  ;;  %v360_v30 = vld [vmem:[%s3054_s3 + $0x7d0] sm:$0xff] }
  0xf0   :  { %885 = vmatpush2.msra.mxu1 %v578_v31  ;;  %956 = vmatpush2.msra.mxu0 %v580_v32  ;;  %v343_v31 = vld [vmem:[%s3054_s3 + $0x748] sm:$0xff]  ;;  %v345_v32 = vld [vmem:[%s3054_s3 + $0x758] sm:$0xff] }
  0xf1   :  { %886 = vmatprep.subr.mxu1 %v563_v33  ;;  %957 = vmatprep.subr.mxu0 %v565_v34  ;;  %v342_v33 = vld [vmem:[%s3054_s3 + $0x740] sm:$0xff]  ;;  %v344_v34 = vld [vmem:[%s3054_s3 + $0x750] sm:$0xff] }
  0xf2   :  { %887 = vmatpush2.msra.mxu1 %v562_v35  ;;  %958 = vmatpush2.msra.mxu0 %v564_v36  ;;  %v327_v35 = vld [vmem:[%s3054_s3 + $0x6c8] sm:$0xff]  ;;  %v329_v36 = vld [vmem:[%s3054_s3 + $0x6d8] sm:$0xff] }
  0xf3   :  { %888 = vmatprep.subr.mxu1 %v547_v37  ;;  %959 = vmatprep.subr.mxu0 %v549_v38  ;;  %v326_v37 = vld [vmem:[%s3054_s3 + $0x6c0] sm:$0xff]  ;;  %v328_v38 = vld [vmem:[%s3054_s3 + $0x6d0] sm:$0xff] }
  0xf4   :  { %889 = vmatpush2.msra.mxu1 %v546_v39  ;;  %960 = vmatpush2.msra.mxu0 %v548_v40  ;;  %v311_v39 = vld [vmem:[%s3054_s3 + $0x648] sm:$0xff]  ;;  %v313_v40 = vld [vmem:[%s3054_s3 + $0x658] sm:$0xff] }
  0xf5   :  { %890 = vmatprep.subr.mxu1 %v531_v41  ;;  %961 = vmatprep.subr.mxu0 %v533_v42  ;;  %v310_v41 = vld [vmem:[%s3054_s3 + $0x640] sm:$0xff]  ;;  %v312_v42 = vld [vmem:[%s3054_s3 + $0x650] sm:$0xff] }
  0xf6   :  { %891 = vmatpush2.msra.mxu1 %v530_v43  ;;  %962 = vmatpush2.msra.mxu0 %v532_v44  ;;  %v295_v43 = vld [vmem:[%s3054_s3 + $0x5c8] sm:$0xff]  ;;  %v297_v44 = vld [vmem:[%s3054_s3 + $0x5d8] sm:$0xff] }
  0xf7   :  { %892 = vmatprep.subr.mxu1 %v515_v45  ;;  %963 = vmatprep.subr.mxu0 %v517_v46  ;;  %v294_v45 = vld [vmem:[%s3054_s3 + $0x5c0] sm:$0xff]  ;;  %v296_v46 = vld [vmem:[%s3054_s3 + $0x5d0] sm:$0xff] }
  0xf8   :  { %893 = vmatpush2.msra.mxu1 %v514_v47  ;;  %964 = vmatpush2.msra.mxu0 %v516_v48  ;;  %v279_v47 = vld [vmem:[%s3054_s3 + $0x548] sm:$0xff]  ;;  %v281_v48 = vld [vmem:[%s3054_s3 + $0x558] sm:$0xff] }
  0xf9   :  { %894 = vmatprep.subr.mxu1 %v499_v49  ;;  %965 = vmatprep.subr.mxu0 %v501_v50  ;;  %v278_v49 = vld [vmem:[%s3054_s3 + $0x540] sm:$0xff]  ;;  %v280_v50 = vld [vmem:[%s3054_s3 + $0x550] sm:$0xff] }
  0xfa   :  { %895 = vmatpush2.msra.mxu1 %v498_v51  ;;  %966 = vmatpush2.msra.mxu0 %v500_v52  ;;  %v263_v51 = vld [vmem:[%s3054_s3 + $0x4c8] sm:$0xff]  ;;  %v265_v52 = vld [vmem:[%s3054_s3 + $0x4d8] sm:$0xff] }
  0xfb   :  { %896 = vmatprep.subr.mxu1 %v483_v53  ;;  %967 = vmatprep.subr.mxu0 %v485_v54  ;;  %v262_v53 = vld [vmem:[%s3054_s3 + $0x4c0] sm:$0xff]  ;;  %v264_v54 = vld [vmem:[%s3054_s3 + $0x4d0] sm:$0xff] }
  0xfc   :  { %897 = vmatpush2.msra.mxu1 %v482_v55  ;;  %968 = vmatpush2.msra.mxu0 %v484_v56  ;;  %v247_v55 = vld [vmem:[%s3054_s3 + $0x448] sm:$0xff]  ;;  %v249_v56 = vld [vmem:[%s3054_s3 + $0x458] sm:$0xff] }
  0xfd   :  { %898 = vmatprep.subr.mxu1 %v467_v57  ;;  %969 = vmatprep.subr.mxu0 %v469_v58  ;;  %v246_v57 = vld [vmem:[%s3054_s3 + $0x440] sm:$0xff]  ;;  %v248_v58 = vld [vmem:[%s3054_s3 + $0x450] sm:$0xff] }
  0xfe   :  { %899 = vmatpush2.msra.mxu1 %v466_v59  ;;  %970 = vmatpush2.msra.mxu0 %v468_v60  ;;  %v231_v59 = vld [vmem:[%s3054_s3 + $0x3c8] sm:$0xff]  ;;  %v233_v60 = vld [vmem:[%s3054_s3 + $0x3d8] sm:$0xff] }
  0xff   :  { %900 = vmatprep.subr.mxu1 %v451_v61  ;;  %971 = vmatprep.subr.mxu0 %v453_v62  ;;  %v230_v61 = vld [vmem:[%s3054_s3 + $0x3c0] sm:$0xff]  ;;  %v232_v62 = vld [vmem:[%s3054_s3 + $0x3d0] sm:$0xff] }
 0x100   :  { %901 = vmatpush2.msra.mxu1 %v450_v63  ;;  %972 = vmatpush2.msra.mxu0 %v452_v0  ;;  %v215_v63 = vld [vmem:[%s3054_s3 + $0x348] sm:$0xff]  ;;  %v217_v0 = vld [vmem:[%s3054_s3 + $0x358] sm:$0xff] }
 0x101   :  { %902 = vmatprep.subr.mxu1 %v435_v1  ;;  %973 = vmatprep.subr.mxu0 %v437_v2  ;;  %v214_v1 = vld [vmem:[%s3054_s3 + $0x340] sm:$0xff]  ;;  %v216_v2 = vld [vmem:[%s3054_s3 + $0x350] sm:$0xff] }
 0x102   :  { %903 = vmatpush2.msra.mxu1 %v434_v3  ;;  %974 = vmatpush2.msra.mxu0 %v436_v4  ;;  %v199_v3 = vld [vmem:[%s3054_s3 + $0x2c8] sm:$0xff]  ;;  %v201_v4 = vld [vmem:[%s3054_s3 + $0x2d8] sm:$0xff] }
 0x103   :  { %904 = vmatprep.subr.mxu1 %v419_v5  ;;  %975 = vmatprep.subr.mxu0 %v421_v10  ;;  %v198_v5 = vld [vmem:[%s3054_s3 + $0x2c0] sm:$0xff]  ;;  %v200_v10 = vld [vmem:[%s3054_s3 + $0x2d0] sm:$0xff] }
 0x104   :  { %905 = vmatpush2.msra.mxu1 %v418_v11  ;;  %976 = vmatpush2.msra.mxu0 %v420_v12  ;;  %v183_v11 = vld [vmem:[%s3054_s3 + $0x248] sm:$0xff]  ;;  %v185_v12 = vld [vmem:[%s3054_s3 + $0x258] sm:$0xff] }
 0x105   :  { %906 = vmatprep.subr.mxu1 %v403_v13  ;;  %977 = vmatprep.subr.mxu0 %v405_v14  ;;  %v182_v13 = vld [vmem:[%s3054_s3 + $0x240] sm:$0xff]  ;;  %v184_v14 = vld [vmem:[%s3054_s3 + $0x250] sm:$0xff] }
 0x106   :  { %907 = vmatpush2.msra.mxu1 %v402_v17  ;;  %978 = vmatpush2.msra.mxu0 %v404_v18  ;;  %v167_v17 = vld [vmem:[%s3054_s3 + $0x1c8] sm:$0xff]  ;;  %v169_v18 = vld [vmem:[%s3054_s3 + $0x1d8] sm:$0xff] }
 0x107   :  { %908 = vmatprep.subr.mxu1 %v387_v19  ;;  %979 = vmatprep.subr.mxu0 %v389_v20  ;;  %v166_v19 = vld [vmem:[%s3054_s3 + $0x1c0] sm:$0xff]  ;;  %v168_v20 = vld [vmem:[%s3054_s3 + $0x1d0] sm:$0xff] }
 0x108   :  { %909 = vmatpush2.msra.mxu1 %v386_v21  ;;  %980 = vmatpush2.msra.mxu0 %v388_v22  ;;  %v151_v21 = vld [vmem:[%s3054_s3 + $0x148] sm:$0xff]  ;;  %v153_v22 = vld [vmem:[%s3054_s3 + $0x158] sm:$0xff] }
 0x109   :  { %910 = vmatprep.subr.mxu1 %v371_v23  ;;  %981 = vmatprep.subr.mxu0 %v373_v24  ;;  %v150_v23 = vld [vmem:[%s3054_s3 + $0x140] sm:$0xff]  ;;  %v152_v24 = vld [vmem:[%s3054_s3 + $0x150] sm:$0xff] }
 0x10a   :  { %911 = vmatpush2.msra.mxu1 %v370_v25  ;;  %982 = vmatpush2.msra.mxu0 %v372_v26  ;;  %v135_v25 = vld [vmem:[%s3054_s3 + $0xc8] sm:$0xff]  ;;  %v137_v26 = vld [vmem:[%s3054_s3 + $0xd8] sm:$0xff] }
 0x10b   :  { %913 = vmatmul.mubr.f32.vlgmr.msra.gmra.mxu1 %v1850_v16  ;;  %984 = vmatmul.mubr.f32.vlgmr.msra.gmra.mxu0 %v1850_v16 }
 0x10c   :  { %990 = vmatprep.subr.mxu1 %v359_v27  ;;  %1061 = vmatprep.subr.mxu0 %v361_v28  ;;  %v134_v27 = vld [vmem:[%s3054_s3 + $0xc0] sm:$0xff]  ;;  %v136_v28 = vld [vmem:[%s3054_s3 + $0xd0] sm:$0xff] }
 0x10d   :  { %991 = vmatpush1.msra.mxu1 %v358_v29  ;;  %1054 = vmatprep.mubr.f32.mxu1 %v1848_v15  ;;  %v119_v29 = vld [vmem:[%s3054_s3 + $0x48] sm:$0xff] }
 0x10e   :  { %1062 = vmatpush1.msra.mxu0 %v360_v30  ;;  %1125 = vmatprep.mubr.f32.mxu0 %v1848_v15  ;;  %v121_v30 = vld [vmem:[%s3054_s3 + $0x58] sm:$0xff] }
 0x10f   :  { %992 = vmatprep.subr.mxu1 %v343_v31  ;;  %1063 = vmatprep.subr.mxu0 %v345_v32  ;;  %v118_v31 = vld [vmem:[%s3054_s3 + $0x40] sm:$0xff]  ;;  %v120_v32 = vld [vmem:[%s3054_s3 + $0x50] sm:$0xff] }
 0x110   :  { %993 = vmatpush1.msra.mxu1 %v342_v33  ;;  %1064 = vmatpush1.msra.mxu0 %v344_v34  ;;  %v615_v33 = vld [vmem:[%s3054_s3 + $0xfc8] sm:$0xff]  ;;  %v617_v34 = vld [vmem:[%s3054_s3 + $0xfd8] sm:$0xff] }
 0x111   :  { %994 = vmatprep.subr.mxu1 %v327_v35  ;;  %1065 = vmatprep.subr.mxu0 %v329_v36  ;;  %v614_v35 = vld [vmem:[%s3054_s3 + $0xfc0] sm:$0xff]  ;;  %v616_v36 = vld [vmem:[%s3054_s3 + $0xfd0] sm:$0xff] }
 0x112   :  { %995 = vmatpush1.msra.mxu1 %v326_v37  ;;  %1066 = vmatpush1.msra.mxu0 %v328_v38  ;;  %v599_v37 = vld [vmem:[%s3054_s3 + $0xf48] sm:$0xff]  ;;  %v601_v38 = vld [vmem:[%s3054_s3 + $0xf58] sm:$0xff] }
 0x113   :  { %996 = vmatprep.subr.mxu1 %v311_v39  ;;  %1067 = vmatprep.subr.mxu0 %v313_v40  ;;  %v598_v39 = vld [vmem:[%s3054_s3 + $0xf40] sm:$0xff]  ;;  %v600_v40 = vld [vmem:[%s3054_s3 + $0xf50] sm:$0xff] }
 0x114   :  { %997 = vmatpush1.msra.mxu1 %v310_v41  ;;  %1068 = vmatpush1.msra.mxu0 %v312_v42  ;;  %v583_v41 = vld [vmem:[%s3054_s3 + $0xec8] sm:$0xff]  ;;  %v585_v42 = vld [vmem:[%s3054_s3 + $0xed8] sm:$0xff] }
 0x115   :  { %998 = vmatprep.subr.mxu1 %v295_v43  ;;  %1069 = vmatprep.subr.mxu0 %v297_v44  ;;  %v582_v43 = vld [vmem:[%s3054_s3 + $0xec0] sm:$0xff]  ;;  %v584_v44 = vld [vmem:[%s3054_s3 + $0xed0] sm:$0xff] }
 0x116   :  { %999 = vmatpush1.msra.mxu1 %v294_v45  ;;  %1070 = vmatpush1.msra.mxu0 %v296_v46  ;;  %v567_v45 = vld [vmem:[%s3054_s3 + $0xe48] sm:$0xff]  ;;  %v569_v46 = vld [vmem:[%s3054_s3 + $0xe58] sm:$0xff] }
 0x117   :  { %1000 = vmatprep.subr.mxu1 %v279_v47  ;;  %1071 = vmatprep.subr.mxu0 %v281_v48  ;;  %v566_v47 = vld [vmem:[%s3054_s3 + $0xe40] sm:$0xff]  ;;  %v568_v48 = vld [vmem:[%s3054_s3 + $0xe50] sm:$0xff] }
 0x118   :  { %1001 = vmatpush1.msra.mxu1 %v278_v49  ;;  %1072 = vmatpush1.msra.mxu0 %v280_v50  ;;  %v551_v49 = vld [vmem:[%s3054_s3 + $0xdc8] sm:$0xff]  ;;  %v553_v50 = vld [vmem:[%s3054_s3 + $0xdd8] sm:$0xff] }
 0x119   :  { %1002 = vmatprep.subr.mxu1 %v263_v51  ;;  %1073 = vmatprep.subr.mxu0 %v265_v52  ;;  %v550_v51 = vld [vmem:[%s3054_s3 + $0xdc0] sm:$0xff]  ;;  %v552_v52 = vld [vmem:[%s3054_s3 + $0xdd0] sm:$0xff] }
 0x11a   :  { %1003 = vmatpush1.msra.mxu1 %v262_v53  ;;  %1074 = vmatpush1.msra.mxu0 %v264_v54  ;;  %v535_v53 = vld [vmem:[%s3054_s3 + $0xd48] sm:$0xff]  ;;  %v537_v54 = vld [vmem:[%s3054_s3 + $0xd58] sm:$0xff] }
 0x11b   :  { %1004 = vmatprep.subr.mxu1 %v247_v55  ;;  %1075 = vmatprep.subr.mxu0 %v249_v56  ;;  %v534_v55 = vld [vmem:[%s3054_s3 + $0xd40] sm:$0xff]  ;;  %v536_v56 = vld [vmem:[%s3054_s3 + $0xd50] sm:$0xff] }
 0x11c   :  { %1005 = vmatpush1.msra.mxu1 %v246_v57  ;;  %1076 = vmatpush1.msra.mxu0 %v248_v58  ;;  %v519_v57 = vld [vmem:[%s3054_s3 + $0xcc8] sm:$0xff]  ;;  %v521_v58 = vld [vmem:[%s3054_s3 + $0xcd8] sm:$0xff] }
 0x11d   :  { %1006 = vmatprep.subr.mxu1 %v231_v59  ;;  %1077 = vmatprep.subr.mxu0 %v233_v60  ;;  %v518_v59 = vld [vmem:[%s3054_s3 + $0xcc0] sm:$0xff]  ;;  %v520_v60 = vld [vmem:[%s3054_s3 + $0xcd0] sm:$0xff] }
 0x11e   :  { %1007 = vmatpush1.msra.mxu1 %v230_v61  ;;  %1078 = vmatpush1.msra.mxu0 %v232_v62  ;;  %v503_v61 = vld [vmem:[%s3054_s3 + $0xc48] sm:$0xff]  ;;  %v505_v62 = vld [vmem:[%s3054_s3 + $0xc58] sm:$0xff] }
 0x11f   :  { %1008 = vmatprep.subr.mxu1 %v215_v63  ;;  %1079 = vmatprep.subr.mxu0 %v217_v0  ;;  %v502_v63 = vld [vmem:[%s3054_s3 + $0xc40] sm:$0xff]  ;;  %v504_v0 = vld [vmem:[%s3054_s3 + $0xc50] sm:$0xff] }
 0x120   :  { %1009 = vmatpush1.msra.mxu1 %v214_v1  ;;  %1080 = vmatpush1.msra.mxu0 %v216_v2  ;;  %v487_v1 = vld [vmem:[%s3054_s3 + $0xbc8] sm:$0xff]  ;;  %v489_v2 = vld [vmem:[%s3054_s3 + $0xbd8] sm:$0xff] }
 0x121   :  { %1010 = vmatprep.subr.mxu1 %v199_v3  ;;  %1081 = vmatprep.subr.mxu0 %v201_v4  ;;  %v486_v3 = vld [vmem:[%s3054_s3 + $0xbc0] sm:$0xff]  ;;  %v488_v4 = vld [vmem:[%s3054_s3 + $0xbd0] sm:$0xff] }
 0x122   :  { %1011 = vmatpush1.msra.mxu1 %v198_v5  ;;  %1082 = vmatpush1.msra.mxu0 %v200_v10  ;;  %v471_v5 = vld [vmem:[%s3054_s3 + $0xb48] sm:$0xff]  ;;  %v473_v10 = vld [vmem:[%s3054_s3 + $0xb58] sm:$0xff] }
 0x123   :  { %1012 = vmatprep.subr.mxu1 %v183_v11  ;;  %1083 = vmatprep.subr.mxu0 %v185_v12  ;;  %v470_v11 = vld [vmem:[%s3054_s3 + $0xb40] sm:$0xff]  ;;  %v472_v12 = vld [vmem:[%s3054_s3 + $0xb50] sm:$0xff] }
 0x124   :  { %1013 = vmatpush1.msra.mxu1 %v182_v13  ;;  %1084 = vmatpush1.msra.mxu0 %v184_v14  ;;  %v455_v13 = vld [vmem:[%s3054_s3 + $0xac8] sm:$0xff]  ;;  %v457_v14 = vld [vmem:[%s3054_s3 + $0xad8] sm:$0xff] }
 0x125   :  { %1014 = vmatprep.subr.mxu1 %v167_v17  ;;  %1085 = vmatprep.subr.mxu0 %v169_v18  ;;  %v454_v17 = vld [vmem:[%s3054_s3 + $0xac0] sm:$0xff]  ;;  %v456_v18 = vld [vmem:[%s3054_s3 + $0xad0] sm:$0xff] }
 0x126   :  { %1015 = vmatpush1.msra.mxu1 %v166_v19  ;;  %1086 = vmatpush1.msra.mxu0 %v168_v20  ;;  %v439_v19 = vld [vmem:[%s3054_s3 + $0xa48] sm:$0xff]  ;;  %v441_v20 = vld [vmem:[%s3054_s3 + $0xa58] sm:$0xff] }
 0x127   :  { %1016 = vmatprep.subr.mxu1 %v151_v21  ;;  %1087 = vmatprep.subr.mxu0 %v153_v22  ;;  %v438_v21 = vld [vmem:[%s3054_s3 + $0xa40] sm:$0xff]  ;;  %v440_v22 = vld [vmem:[%s3054_s3 + $0xa50] sm:$0xff] }
 0x128   :  { %1017 = vmatpush1.msra.mxu1 %v150_v23  ;;  %1088 = vmatpush1.msra.mxu0 %v152_v24  ;;  %v423_v23 = vld [vmem:[%s3054_s3 + $0x9c8] sm:$0xff]  ;;  %v425_v24 = vld [vmem:[%s3054_s3 + $0x9d8] sm:$0xff] }
 0x129   :  { %1018 = vmatprep.subr.mxu1 %v135_v25  ;;  %1089 = vmatprep.subr.mxu0 %v137_v26  ;;  %v422_v25 = vld [vmem:[%s3054_s3 + $0x9c0] sm:$0xff]  ;;  %v424_v26 = vld [vmem:[%s3054_s3 + $0x9d0] sm:$0xff] }
 0x12a   :  { %1019 = vmatpush1.msra.mxu1 %v134_v27  ;;  %1090 = vmatpush1.msra.mxu0 %v136_v28  ;;  %v407_v27 = vld [vmem:[%s3054_s3 + $0x948] sm:$0xff]  ;;  %v409_v28 = vld [vmem:[%s3054_s3 + $0x958] sm:$0xff] }
 0x12b   :  { %1020 = vmatprep.subr.mxu1 %v119_v29  ;;  %1091 = vmatprep.subr.mxu0 %v121_v30  ;;  %v406_v29 = vld [vmem:[%s3054_s3 + $0x940] sm:$0xff]  ;;  %v408_v30 = vld [vmem:[%s3054_s3 + $0x950] sm:$0xff] }
 0x12c   :  { %1021 = vmatpush1.msra.mxu1 %v118_v31  ;;  %1092 = vmatpush1.msra.mxu0 %v120_v32  ;;  %v391_v31 = vld [vmem:[%s3054_s3 + $0x8c8] sm:$0xff]  ;;  %v393_v32 = vld [vmem:[%s3054_s3 + $0x8d8] sm:$0xff] }
 0x12d   :  { %1022 = vmatprep.subr.mxu1 %v615_v33  ;;  %1093 = vmatprep.subr.mxu0 %v617_v34  ;;  %v390_v33 = vld [vmem:[%s3054_s3 + $0x8c0] sm:$0xff]  ;;  %v392_v34 = vld [vmem:[%s3054_s3 + $0x8d0] sm:$0xff] }
 0x12e   :  { %1023 = vmatpush2.msra.mxu1 %v614_v35  ;;  %1094 = vmatpush2.msra.mxu0 %v616_v36  ;;  %v375_v35 = vld [vmem:[%s3054_s3 + $0x848] sm:$0xff]  ;;  %v377_v36 = vld [vmem:[%s3054_s3 + $0x858] sm:$0xff] }
 0x12f   :  { %1024 = vmatprep.subr.mxu1 %v599_v37  ;;  %1095 = vmatprep.subr.mxu0 %v601_v38  ;;  %v374_v37 = vld [vmem:[%s3054_s3 + $0x840] sm:$0xff]  ;;  %v376_v38 = vld [vmem:[%s3054_s3 + $0x850] sm:$0xff] }
 0x130   :  { %1025 = vmatpush2.msra.mxu1 %v598_v39  ;;  %1096 = vmatpush2.msra.mxu0 %v600_v40  ;;  %v363_v39 = vld [vmem:[%s3054_s3 + $0x7e8] sm:$0xff]  ;;  %v365_v40 = vld [vmem:[%s3054_s3 + $0x7f8] sm:$0xff] }
 0x131   :  { %1026 = vmatprep.subr.mxu1 %v583_v41  ;;  %1097 = vmatprep.subr.mxu0 %v585_v42  ;;  %v362_v41 = vld [vmem:[%s3054_s3 + $0x7e0] sm:$0xff]  ;;  %v364_v42 = vld [vmem:[%s3054_s3 + $0x7f0] sm:$0xff] }
 0x132   :  { %1027 = vmatpush2.msra.mxu1 %v582_v43  ;;  %1098 = vmatpush2.msra.mxu0 %v584_v44  ;;  %v347_v43 = vld [vmem:[%s3054_s3 + $0x768] sm:$0xff]  ;;  %v349_v44 = vld [vmem:[%s3054_s3 + $0x778] sm:$0xff] }
 0x133   :  { %1028 = vmatprep.subr.mxu1 %v567_v45  ;;  %1099 = vmatprep.subr.mxu0 %v569_v46  ;;  %v346_v45 = vld [vmem:[%s3054_s3 + $0x760] sm:$0xff]  ;;  %v348_v46 = vld [vmem:[%s3054_s3 + $0x770] sm:$0xff] }
 0x134   :  { %1029 = vmatpush2.msra.mxu1 %v566_v47  ;;  %1100 = vmatpush2.msra.mxu0 %v568_v48  ;;  %v331_v47 = vld [vmem:[%s3054_s3 + $0x6e8] sm:$0xff]  ;;  %v333_v48 = vld [vmem:[%s3054_s3 + $0x6f8] sm:$0xff] }
 0x135   :  { %1030 = vmatprep.subr.mxu1 %v551_v49  ;;  %1101 = vmatprep.subr.mxu0 %v553_v50  ;;  %v330_v49 = vld [vmem:[%s3054_s3 + $0x6e0] sm:$0xff]  ;;  %v332_v50 = vld [vmem:[%s3054_s3 + $0x6f0] sm:$0xff] }
 0x136   :  { %1031 = vmatpush2.msra.mxu1 %v550_v51  ;;  %1102 = vmatpush2.msra.mxu0 %v552_v52  ;;  %v317_v51 = vld [vmem:[%s3054_s3 + $0x678] sm:$0xff]  ;;  %v314_v52 = vld [vmem:[%s3054_s3 + $0x660] sm:$0xff] }
 0x137   :  { %1032 = vmatprep.subr.mxu1 %v535_v53  ;;  %1103 = vmatprep.subr.mxu0 %v537_v54  ;;  %v316_v53 = vld [vmem:[%s3054_s3 + $0x670] sm:$0xff]  ;;  %v299_v54 = vld [vmem:[%s3054_s3 + $0x5e8] sm:$0xff] }
 0x138   :  { %1033 = vmatpush2.msra.mxu1 %v534_v55  ;;  %1104 = vmatpush2.msra.mxu0 %v536_v56  ;;  %v301_v55 = vld [vmem:[%s3054_s3 + $0x5f8] sm:$0xff]  ;;  %v298_v56 = vld [vmem:[%s3054_s3 + $0x5e0] sm:$0xff] }
 0x139   :  { %1034 = vmatprep.subr.mxu1 %v519_v57  ;;  %1105 = vmatprep.subr.mxu0 %v521_v58  ;;  %v300_v57 = vld [vmem:[%s3054_s3 + $0x5f0] sm:$0xff]  ;;  %v283_v58 = vld [vmem:[%s3054_s3 + $0x568] sm:$0xff] }
 0x13a   :  { %1035 = vmatpush2.msra.mxu1 %v518_v59  ;;  %1106 = vmatpush2.msra.mxu0 %v520_v60  ;;  %v285_v59 = vld [vmem:[%s3054_s3 + $0x578] sm:$0xff]  ;;  %v282_v60 = vld [vmem:[%s3054_s3 + $0x560] sm:$0xff] }
 0x13b   :  { %1036 = vmatprep.subr.mxu1 %v503_v61  ;;  %1107 = vmatprep.subr.mxu0 %v505_v62  ;;  %v284_v61 = vld [vmem:[%s3054_s3 + $0x570] sm:$0xff]  ;;  %v267_v62 = vld [vmem:[%s3054_s3 + $0x4e8] sm:$0xff] }
 0x13c   :  { %1037 = vmatpush2.msra.mxu1 %v502_v63  ;;  %1108 = vmatpush2.msra.mxu0 %v504_v0  ;;  %v269_v63 = vld [vmem:[%s3054_s3 + $0x4f8] sm:$0xff]  ;;  %v266_v0 = vld [vmem:[%s3054_s3 + $0x4e0] sm:$0xff] }
 0x13d   :  { %1038 = vmatprep.subr.mxu1 %v487_v1  ;;  %1109 = vmatprep.subr.mxu0 %v489_v2  ;;  %v268_v1 = vld [vmem:[%s3054_s3 + $0x4f0] sm:$0xff]  ;;  %v251_v2 = vld [vmem:[%s3054_s3 + $0x468] sm:$0xff] }
 0x13e   :  { %1039 = vmatpush2.msra.mxu1 %v486_v3  ;;  %1110 = vmatpush2.msra.mxu0 %v488_v4  ;;  %v253_v3 = vld [vmem:[%s3054_s3 + $0x478] sm:$0xff]  ;;  %v250_v4 = vld [vmem:[%s3054_s3 + $0x460] sm:$0xff] }
 0x13f   :  { %1040 = vmatprep.subr.mxu1 %v471_v5  ;;  %1111 = vmatprep.subr.mxu0 %v473_v10  ;;  %v252_v5 = vld [vmem:[%s3054_s3 + $0x470] sm:$0xff]  ;;  %v235_v10 = vld [vmem:[%s3054_s3 + $0x3e8] sm:$0xff] }
 0x140   :  { %1041 = vmatpush2.msra.mxu1 %v470_v11  ;;  %1112 = vmatpush2.msra.mxu0 %v472_v12  ;;  %v237_v11 = vld [vmem:[%s3054_s3 + $0x3f8] sm:$0xff]  ;;  %v234_v12 = vld [vmem:[%s3054_s3 + $0x3e0] sm:$0xff] }
 0x141   :  { %1042 = vmatprep.subr.mxu1 %v455_v13  ;;  %1113 = vmatprep.subr.mxu0 %v457_v14  ;;  %v236_v13 = vld [vmem:[%s3054_s3 + $0x3f0] sm:$0xff]  ;;  %v219_v14 = vld [vmem:[%s3054_s3 + $0x368] sm:$0xff] }
 0x142   :  { %1043 = vmatpush2.msra.mxu1 %v454_v17  ;;  %1114 = vmatpush2.msra.mxu0 %v456_v18  ;;  %v221_v17 = vld [vmem:[%s3054_s3 + $0x378] sm:$0xff]  ;;  %v218_v18 = vld [vmem:[%s3054_s3 + $0x360] sm:$0xff] }
 0x143   :  { %1044 = vmatprep.subr.mxu1 %v439_v19  ;;  %1115 = vmatprep.subr.mxu0 %v441_v20  ;;  %v220_v19 = vld [vmem:[%s3054_s3 + $0x370] sm:$0xff]  ;;  %v203_v20 = vld [vmem:[%s3054_s3 + $0x2e8] sm:$0xff] }
 0x144   :  { %1045 = vmatpush2.msra.mxu1 %v438_v21  ;;  %1116 = vmatpush2.msra.mxu0 %v440_v22  ;;  %v205_v21 = vld [vmem:[%s3054_s3 + $0x2f8] sm:$0xff]  ;;  %v202_v22 = vld [vmem:[%s3054_s3 + $0x2e0] sm:$0xff] }
 0x145   :  { %1046 = vmatprep.subr.mxu1 %v423_v23  ;;  %1117 = vmatprep.subr.mxu0 %v425_v24  ;;  %v204_v23 = vld [vmem:[%s3054_s3 + $0x2f0] sm:$0xff]  ;;  %v187_v24 = vld [vmem:[%s3054_s3 + $0x268] sm:$0xff] }
 0x146   :  { %1047 = vmatpush2.msra.mxu1 %v422_v25  ;;  %1118 = vmatpush2.msra.mxu0 %v424_v26  ;;  %v189_v25 = vld [vmem:[%s3054_s3 + $0x278] sm:$0xff]  ;;  %v186_v26 = vld [vmem:[%s3054_s3 + $0x260] sm:$0xff] }
 0x147   :  { %1048 = vmatprep.subr.mxu1 %v407_v27  ;;  %1119 = vmatprep.subr.mxu0 %v409_v28  ;;  %v188_v27 = vld [vmem:[%s3054_s3 + $0x270] sm:$0xff]  ;;  %v171_v28 = vld [vmem:[%s3054_s3 + $0x1e8] sm:$0xff] }
 0x148   :  { %1049 = vmatpush2.msra.mxu1 %v406_v29  ;;  %1120 = vmatpush2.msra.mxu0 %v408_v30  ;;  %v173_v29 = vld [vmem:[%s3054_s3 + $0x1f8] sm:$0xff]  ;;  %v170_v30 = vld [vmem:[%s3054_s3 + $0x1e0] sm:$0xff] }
 0x149   :  { %1050 = vmatprep.subr.mxu1 %v391_v31  ;;  %1121 = vmatprep.subr.mxu0 %v393_v32  ;;  %v172_v31 = vld [vmem:[%s3054_s3 + $0x1f0] sm:$0xff]  ;;  %v155_v32 = vld [vmem:[%s3054_s3 + $0x168] sm:$0xff] }
 0x14a   :  { %1051 = vmatpush2.msra.mxu1 %v390_v33  ;;  %1122 = vmatpush2.msra.mxu0 %v392_v34  ;;  %v157_v33 = vld [vmem:[%s3054_s3 + $0x178] sm:$0xff]  ;;  %v154_v34 = vld [vmem:[%s3054_s3 + $0x160] sm:$0xff] }
 0x14b   :  { %1052 = vmatprep.subr.mxu1 %v375_v35  ;;  %1123 = vmatprep.subr.mxu0 %v377_v36  ;;  %v156_v35 = vld [vmem:[%s3054_s3 + $0x170] sm:$0xff]  ;;  %v139_v36 = vld [vmem:[%s3054_s3 + $0xe8] sm:$0xff] }
 0x14c   :  { %1053 = vmatpush2.msra.mxu1 %v374_v37  ;;  %1124 = vmatpush2.msra.mxu0 %v376_v38  ;;  %v141_v37 = vld [vmem:[%s3054_s3 + $0xf8] sm:$0xff]  ;;  %v138_v38 = vld [vmem:[%s3054_s3 + $0xe0] sm:$0xff] }
 0x14d   :  { %1055 = vmatmul.mubr.f32.vlgmr.msra.gmra.mxu1 %v1850_v16  ;;  %1126 = vmatmul.mubr.f32.vlgmr.msra.gmra.mxu0 %v1850_v16 }
 0x14e   :  { %1132 = vmatprep.subr.mxu1 %v363_v39  ;;  %1203 = vmatprep.subr.mxu0 %v365_v40  ;;  %v140_v39 = vld [vmem:[%s3054_s3 + $0xf0] sm:$0xff]  ;;  %v123_v40 = vld [vmem:[%s3054_s3 + $0x68] sm:$0xff] }
 0x14f   :  { %1133 = vmatpush1.msra.mxu1 %v362_v41  ;;  %1196 = vmatprep.mubr.f32.mxu1 %v1848_v15  ;;  %v125_v41 = vld [vmem:[%s3054_s3 + $0x78] sm:$0xff] }
 0x150   :  { %1204 = vmatpush1.msra.mxu0 %v364_v42  ;;  %1267 = vmatprep.mubr.f32.mxu0 %v1848_v15  ;;  %v315_v15 = vld [vmem:[%s3054_s3 + $0x668] sm:$0xff]  ;;  %v122_v42 = vld [vmem:[%s3054_s3 + $0x60] sm:$0xff] }
 0x151   :  { %1134 = vmatprep.subr.mxu1 %v347_v43  ;;  %1205 = vmatprep.subr.mxu0 %v349_v44  ;;  %v124_v43 = vld [vmem:[%s3054_s3 + $0x70] sm:$0xff]  ;;  %v619_v44 = vld [vmem:[%s3054_s3 + $0xfe8] sm:$0xff] }
 0x152   :  { %1135 = vmatpush1.msra.mxu1 %v346_v45  ;;  %1206 = vmatpush1.msra.mxu0 %v348_v46  ;;  %v621_v45 = vld [vmem:[%s3054_s3 + $0xff8] sm:$0xff]  ;;  %v618_v46 = vld [vmem:[%s3054_s3 + $0xfe0] sm:$0xff] }
 0x153   :  { %1136 = vmatprep.subr.mxu1 %v331_v47  ;;  %1207 = vmatprep.subr.mxu0 %v333_v48  ;;  %v620_v47 = vld [vmem:[%s3054_s3 + $0xff0] sm:$0xff]  ;;  %v603_v48 = vld [vmem:[%s3054_s3 + $0xf68] sm:$0xff] }
 0x154   :  { %1137 = vmatpush1.msra.mxu1 %v330_v49  ;;  %1208 = vmatpush1.msra.mxu0 %v332_v50  ;;  %v605_v49 = vld [vmem:[%s3054_s3 + $0xf78] sm:$0xff]  ;;  %v602_v50 = vld [vmem:[%s3054_s3 + $0xf60] sm:$0xff] }
 0x155   :  { %1138 = vmatprep.subr.mxu1 %v315_v15  ;;  %1209 = vmatprep.subr.mxu0 %v317_v51  ;;  %v604_v15 = vld [vmem:[%s3054_s3 + $0xf70] sm:$0xff]  ;;  %v587_v51 = vld [vmem:[%s3054_s3 + $0xee8] sm:$0xff] }
 0x156   :  { %1139 = vmatpush1.msra.mxu1 %v314_v52  ;;  %1210 = vmatpush1.msra.mxu0 %v316_v53  ;;  %v589_v52 = vld [vmem:[%s3054_s3 + $0xef8] sm:$0xff]  ;;  %v586_v53 = vld [vmem:[%s3054_s3 + $0xee0] sm:$0xff] }
 0x157   :  { %1140 = vmatprep.subr.mxu1 %v299_v54  ;;  %1211 = vmatprep.subr.mxu0 %v301_v55  ;;  %v588_v54 = vld [vmem:[%s3054_s3 + $0xef0] sm:$0xff]  ;;  %v571_v55 = vld [vmem:[%s3054_s3 + $0xe68] sm:$0xff] }
 0x158   :  { %1141 = vmatpush1.msra.mxu1 %v298_v56  ;;  %1212 = vmatpush1.msra.mxu0 %v300_v57  ;;  %v573_v56 = vld [vmem:[%s3054_s3 + $0xe78] sm:$0xff]  ;;  %v570_v57 = vld [vmem:[%s3054_s3 + $0xe60] sm:$0xff] }
 0x159   :  { %1142 = vmatprep.subr.mxu1 %v283_v58  ;;  %1213 = vmatprep.subr.mxu0 %v285_v59  ;;  %v572_v58 = vld [vmem:[%s3054_s3 + $0xe70] sm:$0xff]  ;;  %v555_v59 = vld [vmem:[%s3054_s3 + $0xde8] sm:$0xff] }
 0x15a   :  { %1143 = vmatpush1.msra.mxu1 %v282_v60  ;;  %1214 = vmatpush1.msra.mxu0 %v284_v61  ;;  %v557_v60 = vld [vmem:[%s3054_s3 + $0xdf8] sm:$0xff]  ;;  %v554_v61 = vld [vmem:[%s3054_s3 + $0xde0] sm:$0xff] }
 0x15b   :  { %1144 = vmatprep.subr.mxu1 %v267_v62  ;;  %1215 = vmatprep.subr.mxu0 %v269_v63  ;;  %v556_v62 = vld [vmem:[%s3054_s3 + $0xdf0] sm:$0xff]  ;;  %v539_v63 = vld [vmem:[%s3054_s3 + $0xd68] sm:$0xff] }
 0x15c   :  { %1145 = vmatpush1.msra.mxu1 %v266_v0  ;;  %1216 = vmatpush1.msra.mxu0 %v268_v1  ;;  %v541_v0 = vld [vmem:[%s3054_s3 + $0xd78] sm:$0xff]  ;;  %v538_v1 = vld [vmem:[%s3054_s3 + $0xd60] sm:$0xff] }
 0x15d   :  { %1146 = vmatprep.subr.mxu1 %v251_v2  ;;  %1217 = vmatprep.subr.mxu0 %v253_v3  ;;  %v540_v2 = vld [vmem:[%s3054_s3 + $0xd70] sm:$0xff]  ;;  %v523_v3 = vld [vmem:[%s3054_s3 + $0xce8] sm:$0xff] }
 0x15e   :  { %1147 = vmatpush1.msra.mxu1 %v250_v4  ;;  %1218 = vmatpush1.msra.mxu0 %v252_v5  ;;  %v525_v4 = vld [vmem:[%s3054_s3 + $0xcf8] sm:$0xff]  ;;  %v522_v5 = vld [vmem:[%s3054_s3 + $0xce0] sm:$0xff] }
 0x15f   :  { %1148 = vmatprep.subr.mxu1 %v235_v10  ;;  %1219 = vmatprep.subr.mxu0 %v237_v11  ;;  %v524_v10 = vld [vmem:[%s3054_s3 + $0xcf0] sm:$0xff]  ;;  %v507_v11 = vld [vmem:[%s3054_s3 + $0xc68] sm:$0xff] }
 0x160   :  { %1149 = vmatpush1.msra.mxu1 %v234_v12  ;;  %1220 = vmatpush1.msra.mxu0 %v236_v13  ;;  %v509_v12 = vld [vmem:[%s3054_s3 + $0xc78] sm:$0xff]  ;;  %v506_v13 = vld [vmem:[%s3054_s3 + $0xc60] sm:$0xff] }
 0x161   :  { %1150 = vmatprep.subr.mxu1 %v219_v14  ;;  %1221 = vmatprep.subr.mxu0 %v221_v17  ;;  %v508_v14 = vld [vmem:[%s3054_s3 + $0xc70] sm:$0xff]  ;;  %v491_v17 = vld [vmem:[%s3054_s3 + $0xbe8] sm:$0xff] }
 0x162   :  { %1151 = vmatpush1.msra.mxu1 %v218_v18  ;;  %1222 = vmatpush1.msra.mxu0 %v220_v19  ;;  %v493_v18 = vld [vmem:[%s3054_s3 + $0xbf8] sm:$0xff]  ;;  %v490_v19 = vld [vmem:[%s3054_s3 + $0xbe0] sm:$0xff] }
 0x163   :  { %1152 = vmatprep.subr.mxu1 %v203_v20  ;;  %1223 = vmatprep.subr.mxu0 %v205_v21  ;;  %v492_v20 = vld [vmem:[%s3054_s3 + $0xbf0] sm:$0xff]  ;;  %v475_v21 = vld [vmem:[%s3054_s3 + $0xb68] sm:$0xff] }
 0x164   :  { %1153 = vmatpush1.msra.mxu1 %v202_v22  ;;  %1224 = vmatpush1.msra.mxu0 %v204_v23  ;;  %v477_v22 = vld [vmem:[%s3054_s3 + $0xb78] sm:$0xff]  ;;  %v474_v23 = vld [vmem:[%s3054_s3 + $0xb60] sm:$0xff] }
 0x165   :  { %1154 = vmatprep.subr.mxu1 %v187_v24  ;;  %1225 = vmatprep.subr.mxu0 %v189_v25  ;;  %v476_v24 = vld [vmem:[%s3054_s3 + $0xb70] sm:$0xff]  ;;  %v459_v25 = vld [vmem:[%s3054_s3 + $0xae8] sm:$0xff] }
 0x166   :  { %1155 = vmatpush1.msra.mxu1 %v186_v26  ;;  %1226 = vmatpush1.msra.mxu0 %v188_v27  ;;  %v461_v26 = vld [vmem:[%s3054_s3 + $0xaf8] sm:$0xff]  ;;  %v458_v27 = vld [vmem:[%s3054_s3 + $0xae0] sm:$0xff] }
 0x167   :  { %1156 = vmatprep.subr.mxu1 %v171_v28  ;;  %1227 = vmatprep.subr.mxu0 %v173_v29  ;;  %v460_v28 = vld [vmem:[%s3054_s3 + $0xaf0] sm:$0xff]  ;;  %v443_v29 = vld [vmem:[%s3054_s3 + $0xa68] sm:$0xff] }
 0x168   :  { %1157 = vmatpush1.msra.mxu1 %v170_v30  ;;  %1228 = vmatpush1.msra.mxu0 %v172_v31  ;;  %v445_v30 = vld [vmem:[%s3054_s3 + $0xa78] sm:$0xff]  ;;  %v442_v31 = vld [vmem:[%s3054_s3 + $0xa60] sm:$0xff] }
 0x169   :  { %1158 = vmatprep.subr.mxu1 %v155_v32  ;;  %1229 = vmatprep.subr.mxu0 %v157_v33  ;;  %v444_v32 = vld [vmem:[%s3054_s3 + $0xa70] sm:$0xff]  ;;  %v427_v33 = vld [vmem:[%s3054_s3 + $0x9e8] sm:$0xff] }
 0x16a   :  { %1159 = vmatpush1.msra.mxu1 %v154_v34  ;;  %1230 = vmatpush1.msra.mxu0 %v156_v35  ;;  %v429_v34 = vld [vmem:[%s3054_s3 + $0x9f8] sm:$0xff]  ;;  %v426_v35 = vld [vmem:[%s3054_s3 + $0x9e0] sm:$0xff] }
 0x16b   :  { %1160 = vmatprep.subr.mxu1 %v139_v36  ;;  %1231 = vmatprep.subr.mxu0 %v141_v37  ;;  %v428_v36 = vld [vmem:[%s3054_s3 + $0x9f0] sm:$0xff]  ;;  %v411_v37 = vld [vmem:[%s3054_s3 + $0x968] sm:$0xff] }
 0x16c   :  { %1161 = vmatpush1.msra.mxu1 %v138_v38  ;;  %1232 = vmatpush1.msra.mxu0 %v140_v39  ;;  %v413_v38 = vld [vmem:[%s3054_s3 + $0x978] sm:$0xff]  ;;  %v410_v39 = vld [vmem:[%s3054_s3 + $0x960] sm:$0xff] }
 0x16d   :  { %1162 = vmatprep.subr.mxu1 %v123_v40  ;;  %1233 = vmatprep.subr.mxu0 %v125_v41  ;;  %v412_v40 = vld [vmem:[%s3054_s3 + $0x970] sm:$0xff]  ;;  %v395_v41 = vld [vmem:[%s3054_s3 + $0x8e8] sm:$0xff] }
 0x16e   :  { %1163 = vmatpush1.msra.mxu1 %v122_v42  ;;  %1234 = vmatpush1.msra.mxu0 %v124_v43  ;;  %v397_v42 = vld [vmem:[%s3054_s3 + $0x8f8] sm:$0xff]  ;;  %v394_v43 = vld [vmem:[%s3054_s3 + $0x8e0] sm:$0xff] }
 0x16f   :  { %1164 = vmatprep.subr.mxu1 %v619_v44  ;;  %1235 = vmatprep.subr.mxu0 %v621_v45  ;;  %v396_v44 = vld [vmem:[%s3054_s3 + $0x8f0] sm:$0xff]  ;;  %v379_v45 = vld [vmem:[%s3054_s3 + $0x868] sm:$0xff] }
 0x170   :  { %1165 = vmatpush2.msra.mxu1 %v618_v46  ;;  %1236 = vmatpush2.msra.mxu0 %v620_v47  ;;  %v381_v46 = vld [vmem:[%s3054_s3 + $0x878] sm:$0xff]  ;;  %v378_v47 = vld [vmem:[%s3054_s3 + $0x860] sm:$0xff] }
 0x171   :  { %1166 = vmatprep.subr.mxu1 %v603_v48  ;;  %1237 = vmatprep.subr.mxu0 %v605_v49  ;;  %v380_v48 = vld [vmem:[%s3054_s3 + $0x870] sm:$0xff]  ;;  %v640_v49 = vsub.s32 3, %v1835_v7 }
 0x172   :  { %1167 = vmatpush2.msra.mxu1 %v602_v50  ;;  %1238 = vmatpush2.msra.mxu0 %v604_v15 }
 0x173   :  { %1168 = vmatprep.subr.mxu1 %v587_v51  ;;  %1239 = vmatprep.subr.mxu0 %v589_v52  ;;  %v636_v51 = vsub.s32 2, %v1835_v7  ;;  %v622_v52 = vld [vmem:[%s3056_s4] sm:$0xff] }
 0x174   :  { %1169 = vmatpush2.msra.mxu1 %v586_v53  ;;  %1240 = vmatpush2.msra.mxu0 %v588_v54  ;;  %v633_v53 = vrot.slane %v622_v52, %v1838_v8  ;;  %v1404_v54 = vmov 1966171168  }
 0x175   :  { %1170 = vmatprep.subr.mxu1 %v571_v55  ;;  %1241 = vmatprep.subr.mxu0 %v573_v56  ;;  %v1295_v55 = vunpack.c.l.s4 %v1404_v54  ;;  %v641_v56 = vrot.slane %v622_v52, %v640_v49 }
 0x176   :  { %1171 = vmatpush2.msra.mxu1 %v570_v57  ;;  %1242 = vmatpush2.msra.mxu0 %v572_v58 }
 0x177   :  { %1172 = vmatprep.subr.mxu1 %v555_v59  ;;  %1243 = vmatprep.subr.mxu0 %v557_v60  ;;  %v629_v59 = vrot.slane %v622_v52, %v1841_v9 }
 0x178   :  { %1173 = vmatpush2.msra.mxu1 %v554_v61  ;;  %1244 = vmatpush2.msra.mxu0 %v556_v62  ;;  %v1296_v61 = vunpack.c.0.s8 %v1295_v55 }
 0x179   :  { %1174 = vmatprep.subr.mxu1 %v539_v63  ;;  %1245 = vmatprep.subr.mxu0 %v541_v0  ;;  %v644_v63 = vsub.s32 4, %v1835_v7  ;;  %v652_v0 = vsub.s32 6, %v1835_v7 }
 0x17a   :  { %1175 = vmatpush2.msra.mxu1 %v538_v1  ;;  %1246 = vmatpush2.msra.mxu0 %v540_v2  ;;  %v648_v1 = vsub.s32 5, %v1835_v7  ;;  %v656_v2 = vsub.s32 7, %v1835_v7 }
 0x17b   :  { %1176 = vmatprep.subr.mxu1 %v523_v3  ;;  %1247 = vmatprep.subr.mxu0 %v525_v4 }
 0x17c   :  { %1177 = vmatpush2.msra.mxu1 %v522_v5  ;;  %1248 = vmatpush2.msra.mxu0 %v524_v10  ;;  %v3026_v10 = vsub.s32 %v1296_v61, %v1835_v7 }
 0x17d   :  { %1178 = vmatprep.subr.mxu1 %v507_v11  ;;  %1249 = vmatprep.subr.mxu0 %v509_v12  ;;  %v645_v12 = vrot.slane %v622_v52, %v644_v63 }
 0x17e   :  { %1179 = vmatpush2.msra.mxu1 %v506_v13  ;;  %1250 = vmatpush2.msra.mxu0 %v508_v14  ;;  %v653_v13 = vrot.slane %v622_v52, %v652_v0  ;;  %v649_v14 = vrot.slane %v622_v52, %v648_v1 }
 0x17f   :  { %1180 = vmatprep.subr.mxu1 %v491_v17  ;;  %1251 = vmatprep.subr.mxu0 %v493_v18  ;;  %v657_v17 = vrot.slane %v622_v52, %v656_v2 }
 0x180   :  { %1181 = vmatpush2.msra.mxu1 %v490_v19  ;;  %1252 = vmatpush2.msra.mxu0 %v492_v20 }
 0x181   :  { %1182 = vmatprep.subr.mxu1 %v475_v21  ;;  %1253 = vmatprep.subr.mxu0 %v477_v22 }
 0x182   :  { %1183 = vmatpush2.msra.mxu1 %v474_v23  ;;  %1254 = vmatpush2.msra.mxu0 %v476_v24 }
 0x183   :  { %1184 = vmatprep.subr.mxu1 %v459_v25  ;;  %1255 = vmatprep.subr.mxu0 %v461_v26 }
 0x184   :  { %1185 = vmatpush2.msra.mxu1 %v458_v27  ;;  %1256 = vmatpush2.msra.mxu0 %v460_v28 }
 0x185   :  { %1186 = vmatprep.subr.mxu1 %v443_v29  ;;  %1257 = vmatprep.subr.mxu0 %v445_v30 }
 0x186   :  { %1187 = vmatpush2.msra.mxu1 %v442_v31  ;;  %1258 = vmatpush2.msra.mxu0 %v444_v32 }
 0x187   :  { %1188 = vmatprep.subr.mxu1 %v427_v33  ;;  %1259 = vmatprep.subr.mxu0 %v429_v34 }
 0x188   :  { %1189 = vmatpush2.msra.mxu1 %v426_v35  ;;  %1260 = vmatpush2.msra.mxu0 %v428_v36 }
 0x189   :  { %1190 = vmatprep.subr.mxu1 %v411_v37  ;;  %1261 = vmatprep.subr.mxu0 %v413_v38  ;;  %v623_v38 = vld [vmem:[%s3056_s4 + $0x8] sm:$0xff] }
 0x18a   :  { %1191 = vmatpush2.msra.mxu1 %v410_v39  ;;  %1262 = vmatpush2.msra.mxu0 %v412_v40  ;;  %v772_v50 = vpop.f32.mrf.mxu1  ;;  %v843_v15 = vpop.f32.mrf.mxu0  ;;  %v665_v39 = vrot.slane %v623_v38, %v1838_v8  ;;  %v673_v40 = vrot.slane %v623_v38, %v640_v49  ;;  %v681_v54 = vrot.slane %v623_v38, %v648_v1 }
 0x18b   :  { %1192 = vmatprep.subr.mxu1 %v395_v41  ;;  %1263 = vmatprep.subr.mxu0 %v397_v42  ;;  %v773_v3 = vadd.f32 %v772_v50, %v629_v59  ;;  %v689_v55 = vrot.slane %v623_v38, %v656_v2 }
 0x18c   :  { %1193 = vmatpush2.msra.mxu1 %v394_v43  ;;  %1264 = vmatpush2.msra.mxu0 %v396_v44  ;;  %v774_v57 = vpop.f32.mrf.mxu1  ;;  %v845_v58 = vpop.f32.mrf.mxu0  ;;  %v661_v43 = vrot.slane %v623_v38, %v1841_v9  ;;  %v669_v44 = vrot.slane %v623_v38, %v636_v51 }
 0x18d   :  { %1194 = vmatprep.subr.mxu1 %v379_v45  ;;  %1265 = vmatprep.subr.mxu0 %v381_v46  ;;  %v775_v60 = vadd.f32 %v774_v57, %v633_v53  ;;  %v846_v62 = vadd.f32 %v845_v58, %v641_v56  ;;  %v685_v53 = vrot.slane %v623_v38, %v652_v0 }
 0x18e   :  { %1195 = vmatpush2.msra.mxu1 %v378_v47  ;;  %1266 = vmatpush2.msra.mxu0 %v380_v48 }
 0x18f   :  { %1197 = vmatmul.mubr.f32.vlgmr.msra.gmra.mxu1 %v1850_v16  ;;  %1268 = vmatmul.mubr.f32.vlgmr.msra.gmra.mxu0 %v1850_v16  ;;  %v637_v16 = vrot.slane %v622_v52, %v636_v51  ;;  %v1290_v5 = vcombine.low %v773_v3, %v775_v60  ;;  %v677_v52 = vrot.slane %v623_v38, %v644_v63 }
 0x191   :  { %v844_v4 = vadd.f32 %v843_v15, %v637_v16  ;;  %v1300_v20 = vrot.slane %v1290_v5, %v3026_v10 }
 0x193   :  { %v1291_v11 = vcombine.low %v844_v4, %v846_v62 }
 0x195   :  { %v1307_v21 = vrot.slane %v1291_v11, %v3026_v10 }
 0x197   :  { %v1322_v29 = vcombine.low %v1300_v20, %v1307_v21 }
 0x199   :  { %v1330_v33 = vrot.slane %v1322_v29, %v3026_v10 }
 0x1cb   :  { %v914_v18 = vpop.f32.mrf.mxu1  ;;  %v985_v19 = vpop.f32.mrf.mxu0 }
 0x1cc   :  { %v915_v24 = vadd.f32 %v914_v18, %v645_v12  ;;  %v986_v25 = vadd.f32 %v985_v19, %v653_v13 }
 0x1cd   :  { %v916_v22 = vpop.f32.mrf.mxu1  ;;  %v987_v23 = vpop.f32.mrf.mxu0 }
 0x1ce   :  { %v917_v26 = vadd.f32 %v916_v22, %v649_v14  ;;  %v988_v27 = vadd.f32 %v987_v23, %v657_v17 }
 0x1d0   :  { %v1292_v28 = vcombine.low %v915_v24, %v917_v26  ;;  %v1293_v7 = vcombine.low %v986_v25, %v988_v27 }
 0x1d2   :  { %v1314_v30 = vrot.slane %v1292_v28, %v3026_v10  ;;  %v1321_v31 = vrot.slane %v1293_v7, %v3026_v10 }
 0x1d4   :  { %v1323_v32 = vcombine.low %v1314_v30, %v1321_v31 }
 0x1d6   :  { %v1337_v34 = vrot.slane %v1323_v32, %v3026_v10 }
 0x1d8   :  { %v1338_v35 = vcombine.low %v1330_v33, %v1337_v34 }
 0x1da   :  { %1390 = vst [vmem:[%s3057_s5] sm:$0xff] %v1338_v35 }
 0x20d   :  { %v1056_v36 = vpop.f32.mrf.mxu1  ;;  %v1127_v37 = vpop.f32.mrf.mxu0 }
 0x20e   :  { %v1057_v47 = vadd.f32 %v1056_v36, %v661_v43  ;;  %v1128_v48 = vadd.f32 %v1127_v37, %v669_v44 }
 0x20f   :  { %v1058_v41 = vpop.f32.mrf.mxu1  ;;  %v1129_v42 = vpop.f32.mrf.mxu0 }
 0x210   :  { %v1059_v45 = vadd.f32 %v1058_v41, %v665_v39  ;;  %v1130_v46 = vadd.f32 %v1129_v42, %v673_v40 }
 0x212   :  { %v1339_v50 = vcombine.low %v1057_v47, %v1059_v45  ;;  %v1340_v15 = vcombine.low %v1128_v48, %v1130_v46 }
 0x214   :  { %v1349_v8 = vrot.slane %v1339_v50, %v3026_v10  ;;  %v1356_v49 = vrot.slane %v1340_v15, %v3026_v10 }
 0x216   :  { %v1371_v3 = vcombine.low %v1349_v8, %v1356_v49 }
 0x218   :  { %v1379_v2 = vrot.slane %v1371_v3, %v3026_v10 }
 0x24f   :  { %v1198_v56 = vpop.f32.mrf.mxu1  ;;  %v1269_v57 = vpop.f32.mrf.mxu0 }
 0x250   :  { %v1199_v9 = vadd.f32 %v1198_v56, %v677_v52  ;;  %v1270_v51 = vadd.f32 %v1269_v57, %v685_v53 }
 0x251   :  { %v1200_v58 = vpop.f32.mrf.mxu1  ;;  %v1271_v59 = vpop.f32.mrf.mxu0 }
 0x252   :  { %v1201_v16 = vadd.f32 %v1200_v58, %v681_v54  ;;  %v1272_v60 = vadd.f32 %v1271_v59, %v689_v55 }
 0x254   :  { %v1341_v61 = vcombine.low %v1199_v9, %v1201_v16  ;;  %v1342_v62 = vcombine.low %v1270_v51, %v1272_v60 }
 0x256   :  { %v1363_v63 = vrot.slane %v1341_v61, %v3026_v10  ;;  %v1370_v0 = vrot.slane %v1342_v62, %v3026_v10 }
 0x258   :  { %v1372_v1 = vcombine.low %v1363_v63, %v1370_v0 }
 0x25a   :  { %v1386_v4 = vrot.slane %v1372_v1, %v3026_v10 }
 0x25c   :  { %v1387_v5 = vcombine.low %v1379_v2, %v1386_v4 }
 0x25e   :  { %1395 = vst.msk [vmem:[%s3057_s5 + $0x8] sm:$0xff] %vm1393_vm1, %v1387_v5 }

// kernel: gen_phi_forward.5
= control target key start
LH: loop header
LB: loop body
LE: loop exit
PB: predicated region body
PF: predicated region fallthrough
CT: control target
= control target key end

     0   :  { %vm776_vm0 = vcmask 1044480   ;;  %v2679_v0 = vmov 0.0   ;;  %vm2680_vm1 = vmmov 0   ;;  %vm532_vm2 = vcmask 171008   ;;  %s4374_s3 = inlined_call_operand.vmem [shape: f32[21,8], index: 3, kind: input, shape index: {}]   ;;  %s4375_s0 = inlined_call_operand.vmem [shape: f32[642,21], index: 0, kind: input, shape index: {}]   ;;  %s4376_s1 = inlined_call_operand.vmem [shape: f32[1,21], index: 1, kind: input, shape index: {}]   ;;  %s4377_s2 = inlined_call_operand.vmem [shape: f32[1,21], index: 2, kind: input, shape index: {}]   ;;  %s4378_s4 = inlined_call_operand.vmem [shape: f32[1,8], index: 4, kind: input, shape index: {}]   ;;  %s4379_s5 = inlined_call_operand.vmem [shape: f32[642,8], index: 5, kind: output, shape index: {0}]   ;;  %s4380_s6 = inlined_call_operand.vmem [shape: f32[1,8,8], index: 6, kind: output, shape index: {1}]  }
   0x1   :  { %2419 = vmatprep.subr.mxu0 %v2679_v0  ;;  %v524_v1 = vld [vmem:[%s4374_s3 + $0x10] sm:$0x1f]  ;;  %v523_v2 = vld [vmem:[%s4374_s3 + $0x8] sm:$0xff]  ;;  %2425 = vmatprep.mubr.msk.f32.mxu0 %vm2680_vm1, %v2679_v0  ;;  %v22_v3 = vld [vmem:[%s4375_s0] sm:$0xff] }
   0x2   :  { %2420 = vmatpush3.msk.msra.mxu0 %vm776_vm0, %v524_v1  ;;  %v2732_v4 = vld [vmem:[%s4376_s1] ss:$0 sm:$0xff]  ;;  %2668 = vmatprep.subr.mxu1 %v2679_v0  ;;  %v23_v8 = vld [vmem:[%s4375_s0 + $0x8] sm:$0xff]  ;;  %v24_v9 = vld [vmem:[%s4375_s0 + $0x10] sm:$0xff] }
   0x3   :  { %v2737_v5 = vld [vmem:[%s4377_s2] ss:$0 sm:$0xff]  ;;  %2421 = vmatprep.subr.mxu0 %v2679_v0  ;;  %v110_v7 = vmul.f32 %v2732_v4, %v22_v3  ;;  %2671 = vmatpush3.msk.msra.mxu1 %vm776_vm0, %v524_v1  ;;  %v111_v10 = vmul.f32 %v2732_v4, %v23_v8  ;;  %v112_v11 = vmul.f32 %v2732_v4, %v24_v9  ;;  %v25_v12 = vld [vmem:[%s4375_s0 + $0x18] sm:$0xff]  ;;  %v27_v25 = vld [vmem:[%s4375_s0 + $0x28] sm:$0xff] }
   0x4   :  { %v522_v6 = vld [vmem:[%s4374_s3] sm:$0xff]  ;;  %2422 = vmatpush3.msra.mxu0 %v523_v2  ;;  %2669 = vmatprep.subr.mxu1 %v2679_v0  ;;  %v113_v17 = vmul.f32 %v2732_v4, %v25_v12  ;;  %v115_v29 = vmul.f32 %v2732_v4, %v27_v25  ;;  %v28_v30 = vld [vmem:[%s4375_s0 + $0x30] sm:$0xff]  ;;  %v29_v35 = vld [vmem:[%s4375_s0 + $0x38] sm:$0xff] }
   0x5   :  { %2423 = vmatprep.subr.mxu0 %v2679_v0  ;;  %v198_v13 = vadd.f32 %v2737_v5, %v110_v7  ;;  %v199_v14 = vadd.f32 %v2737_v5, %v111_v10  ;;  %v200_v16 = vadd.f32 %v2737_v5, %v112_v11  ;;  %2672 = vmatpush3.msra.mxu1 %v523_v2  ;;  %v26_v19 = vld [vmem:[%s4375_s0 + $0x20] sm:$0xff]  ;;  %v63_v41 = vld [vmem:[%s4375_s0 + $0x148] sm:$0xff]  ;;  %v64_v47 = vld [vmem:[%s4375_s0 + $0x150] sm:$0xff] }
   0x6   :  { %2424 = vmatpush3.msra.mxu0 %v522_v6  ;;  %2548 = vmatprep.mubr.msk.f32.mxu1 %vm2680_vm1, %v2679_v0  ;;  %v201_v23 = vadd.f32 %v2737_v5, %v113_v17  ;;  %v114_v24 = vmul.f32 %v2732_v4, %v26_v19  ;;  %v203_v33 = vadd.f32 %v2737_v5, %v115_v29  ;;  %v30_v40 = vld [vmem:[%s4375_s0 + $0x40] sm:$0xff]  ;;  %v31_v46 = vld [vmem:[%s4375_s0 + $0x48] sm:$0xff]  ;;  %v65_v49 = vld [vmem:[%s4375_s0 + $0x158] sm:$0xff] }
   0x7   :  { %vm279_vm3 = vcmp.ge.f32.partialorder %v198_v13, 0.0  ;;  %v360_v15 = vmul.f32 0.2, %v198_v13  ;;  %vm280_vm4 = vcmp.ge.f32.partialorder %v199_v14, 0.0  ;;  %v361_v18 = vmul.f32 0.2, %v199_v14  ;;  %2670 = vmatprep.subr.mxu1 %v2679_v0 }
   0x8   :  { %2673 = vmatpush3.msra.mxu1 %v522_v6  ;;  %v362_v22 = vmul.f32 0.2, %v200_v16  ;;  %vm281_vm5 = vcmp.ge.f32.partialorder %v200_v16, 0.0  ;;  %v363_v27 = vmul.f32 0.2, %v201_v23  ;;  %v202_v28 = vadd.f32 %v2737_v5, %v114_v24  ;;  %v32_v56 = vld [vmem:[%s4375_s0 + $0x50] sm:$0xff] }
   0x9   :  { %v441_v20 = vsel %vm279_vm3, %v198_v13, %v360_v15  ;;  %v442_v21 = vsel %vm280_vm4, %v199_v14, %v361_v18  ;;  %vm282_vm6 = vcmp.ge.f32.partialorder %v201_v23, 0.0  ;;  %v116_v34 = vmul.f32 %v2732_v4, %v28_v30  ;;  %v66_v58 = vld [vmem:[%s4375_s0 + $0x160] sm:$0xff]  ;;  %v67_v8 = vld [vmem:[%s4375_s0 + $0x168] sm:$0xff]  ;;  %v33_v9 = vld [vmem:[%s4375_s0 + $0x58] sm:$0xff] }
   0xa   :  { %2426 = vmatmul.mubr.msk.f32.vlgmr.msra.gmra.mxu0 %vm532_vm2, %v441_v20  ;;  %v443_v26 = vsel %vm281_vm5, %v200_v16, %v362_v22  ;;  %v444_v31 = vsel %vm282_vm6, %v201_v23, %v363_v27  ;;  %v364_v32 = vmul.f32 0.2, %v202_v28  ;;  %vm283_vm7 = vcmp.ge.f32.partialorder %v202_v28, 0.0  ;;  %v68_v13 = vld [vmem:[%s4375_s0 + $0x170] sm:$0xff]  ;;  %v34_v19 = vld [vmem:[%s4375_s0 + $0x60] sm:$0xff]  ;;  %v69_v24 = vld [vmem:[%s4375_s0 + $0x178] sm:$0xff] }
   0xb   :  { %2428 = vmatprep.mubr.msk.f32.mxu0 %vm2680_vm1, %v2679_v0  ;;  %v365_v37 = vmul.f32 0.2, %v203_v33  ;;  %v204_v38 = vadd.f32 %v2737_v5, %v116_v34  ;;  %v117_v39 = vmul.f32 %v2732_v4, %v29_v35  ;;  %vm284_vm8 = vcmp.ge.f32.partialorder %v203_v33, 0.0  ;;  %v35_v29 = vld [vmem:[%s4375_s0 + $0x68] sm:$0xff]  ;;  %v70_v34 = vld [vmem:[%s4375_s0 + $0x180] sm:$0xff] }
   0xc   :  { %v445_v36 = vsel %vm283_vm7, %v202_v28, %v364_v32  ;;  %v118_v45 = vmul.f32 %v2732_v4, %v30_v40  ;;  %v151_v48 = vmul.f32 %v2732_v4, %v63_v41  ;;  %v119_v50 = vmul.f32 %v2732_v4, %v31_v46 }
   0xd   :  { %v446_v42 = vsel %vm284_vm8, %v203_v33, %v365_v37  ;;  %v366_v43 = vmul.f32 0.2, %v204_v38  ;;  %v205_v44 = vadd.f32 %v2737_v5, %v117_v39  ;;  %vm285_vm9 = vcmp.ge.f32.partialorder %v204_v38, 0.0  ;;  %v36_v39 = vld [vmem:[%s4375_s0 + $0x70] sm:$0xff] }
   0xe   :  { %2429 = vmatmul.mubr.msk.f32.gmra.mxu0 %vm532_vm2, %v442_v21  ;;  %v239_v51 = vadd.f32 %v2737_v5, %v151_v48  ;;  %v152_v52 = vmul.f32 %v2732_v4, %v64_v47  ;;  %v206_v55 = vadd.f32 %v2737_v5, %v118_v45  ;;  %v153_v57 = vmul.f32 %v2732_v4, %v65_v49  ;;  %v37_v49 = vld [vmem:[%s4375_s0 + $0x78] sm:$0xff] }
   0xf   :  { %2431 = vmatprep.mubr.msk.f32.mxu0 %vm2680_vm1, %v2679_v0  ;;  %v447_v53 = vsel %vm285_vm9, %v204_v38, %v366_v43  ;;  %v367_v54 = vmul.f32 0.2, %v205_v44  ;;  %vm286_vm10 = vcmp.ge.f32.partialorder %v205_v44, 0.0  ;;  %v207_v62 = vadd.f32 %v2737_v5, %v119_v50 }
  0x10   :  { %vm320_vm11 = vcmp.ge.f32.partialorder %v239_v51, 0.0  ;;  %v401_v59 = vmul.f32 0.2, %v239_v51  ;;  %v240_v60 = vadd.f32 %v2737_v5, %v152_v52  ;;  %v241_v61 = vadd.f32 %v2737_v5, %v153_v57 }
  0x11   :  { %v120_v63 = vmul.f32 %v2732_v4, %v32_v56  ;;  %v154_v2 = vmul.f32 %v2732_v4, %v66_v58  ;;  %v448_v3 = vsel %vm286_vm10, %v205_v44, %v367_v54  ;;  %v368_v6 = vmul.f32 0.2, %v206_v55  ;;  %v71_v44 = vld [vmem:[%s4375_s0 + $0x188] sm:$0xff]  ;;  %v72_v54 = vld [vmem:[%s4375_s0 + $0x190] sm:$0xff] }
  0x12   :  { %2432 = vmatmul.mubr.msk.f32.gmra.mxu0 %vm532_vm2, %v443_v26  ;;  %v482_v1 = vsel %vm320_vm11, %v239_v51, %v401_v59  ;;  %vm321_vm12 = vcmp.ge.f32.partialorder %v240_v60, 0.0  ;;  %v402_v7 = vmul.f32 0.2, %v240_v60  ;;  %vm287_vm13 = vcmp.ge.f32.partialorder %v206_v55, 0.0  ;;  %v38_v59 = vld [vmem:[%s4375_s0 + $0x80] sm:$0xff] }
  0x13   :  { %2434 = vmatprep.mubr.msk.f32.mxu0 %vm2680_vm1, %v2679_v0  ;;  %2549 = vmatmul.mubr.msk.f32.vlgmr.msra.gmra.mxu1 %vm532_vm2, %v482_v1  ;;  %v403_v10 = vmul.f32 0.2, %v241_v61  ;;  %vm322_vm14 = vcmp.ge.f32.partialorder %v241_v61, 0.0  ;;  %v242_v12 = vadd.f32 %v2737_v5, %v154_v2  ;;  %v208_v14 = vadd.f32 %v2737_v5, %v120_v63  ;;  %v73_v1 = vld [vmem:[%s4375_s0 + $0x198] sm:$0xff] }
  0x14   :  { %2551 = vmatprep.mubr.msk.f32.mxu1 %vm2680_vm1, %v2679_v0  ;;  %v483_v11 = vsel %vm321_vm12, %v240_v60, %v402_v7  ;;  %v155_v15 = vmul.f32 %v2732_v4, %v67_v8  ;;  %v449_v16 = vsel %vm287_vm13, %v206_v55, %v368_v6  ;;  %vm288_vm15 = vcmp.ge.f32.partialorder %v207_v62, 0.0  ;;  %v39_v8 = vld [vmem:[%s4375_s0 + $0x88] sm:$0xff] }
  0x15   :  { %v369_v17 = vmul.f32 0.2, %v207_v62  ;;  %v121_v18 = vmul.f32 %v2732_v4, %v33_v9  ;;  %v484_v20 = vsel %vm322_vm14, %v241_v61, %v403_v10  ;;  %v404_v21 = vmul.f32 0.2, %v242_v12 }
  0x16   :  { %2435 = vmatmul.mubr.msk.f32.gmra.mxu0 %vm532_vm2, %v444_v31  ;;  %v243_v22 = vadd.f32 %v2737_v5, %v155_v15  ;;  %v156_v23 = vmul.f32 %v2732_v4, %v68_v13  ;;  %vm323_vm0 = vcmp.ge.f32.partialorder %v242_v12, 0.0  ;;  %v122_v25 = vmul.f32 %v2732_v4, %v34_v19  ;;  %v74_v13 = vld [vmem:[%s4375_s0 + $0x1a0] sm:$0xff] }
  0x17   :  { %2437 = vmatprep.mubr.msk.f32.mxu0 %vm2680_vm1, %v2679_v0  ;;  %2552 = vmatmul.mubr.msk.f32.gmra.mxu1 %vm532_vm2, %v483_v11  ;;  %v450_v26 = vsel %vm288_vm15, %v207_v62, %v369_v17  ;;  %vm289_vm3 = vcmp.ge.f32.partialorder %v208_v14, 0.0  ;;  %v370_v27 = vmul.f32 0.2, %v208_v14  ;;  %v209_v28 = vadd.f32 %v2737_v5, %v121_v18  ;;  %v40_v18 = vld [vmem:[%s4375_s0 + $0x90] sm:$0xff] }
  0x18   :  { %2554 = vmatprep.mubr.msk.f32.mxu1 %vm2680_vm1, %v2679_v0  ;;  %v485_v30 = vsel %vm323_vm0, %v242_v12, %v404_v21  ;;  %v405_v31 = vmul.f32 0.2, %v243_v22  ;;  %v244_v32 = vadd.f32 %v2737_v5, %v156_v23  ;;  %v157_v33 = vmul.f32 %v2732_v4, %v69_v24  ;;  %v75_v23 = vld [vmem:[%s4375_s0 + $0x1a8] sm:$0xff] }
  0x19   :  { %vm324_vm4 = vcmp.ge.f32.partialorder %v243_v22, 0.0  ;;  %v123_v35 = vmul.f32 %v2732_v4, %v35_v29  ;;  %vm290_vm5 = vcmp.ge.f32.partialorder %v209_v28, 0.0  ;;  %v371_v37 = vmul.f32 0.2, %v209_v28 }
  0x1a   :  { %2438 = vmatmul.mubr.msk.f32.gmra.mxu0 %vm532_vm2, %v445_v36  ;;  %v451_v36 = vsel %vm289_vm3, %v208_v14, %v370_v27  ;;  %v210_v38 = vadd.f32 %v2737_v5, %v122_v25  ;;  %v486_v40 = vsel %vm324_vm4, %v243_v22, %v405_v31  ;;  %v406_v41 = vmul.f32 0.2, %v244_v32 }
  0x1b   :  { %2440 = vmatprep.mubr.msk.f32.mxu0 %vm2680_vm1, %v2679_v0  ;;  %2555 = vmatmul.mubr.msk.f32.gmra.mxu1 %vm532_vm2, %v484_v20  ;;  %v158_v43 = vmul.f32 %v2732_v4, %v70_v34  ;;  %vm325_vm6 = vcmp.ge.f32.partialorder %v244_v32, 0.0  ;;  %v211_v45 = vadd.f32 %v2737_v5, %v123_v35  ;;  %v452_v46 = vsel %vm290_vm5, %v209_v28, %v371_v37  ;;  %v41_v28 = vld [vmem:[%s4375_s0 + $0x98] sm:$0xff] }
  0x1c   :  { %2557 = vmatprep.mubr.msk.f32.mxu1 %vm2680_vm1, %v2679_v0  ;;  %vm291_vm7 = vcmp.ge.f32.partialorder %v210_v38, 0.0  ;;  %v372_v47 = vmul.f32 0.2, %v210_v38  ;;  %v124_v48 = vmul.f32 %v2732_v4, %v36_v39  ;;  %v487_v50 = vsel %vm325_vm6, %v244_v32, %v406_v41 }
  0x1d   :  { %v246_v52 = vadd.f32 %v2737_v5, %v158_v43  ;;  %vm292_vm9 = vcmp.ge.f32.partialorder %v211_v45, 0.0  ;;  %v373_v56 = vmul.f32 0.2, %v211_v45  ;;  %v125_v58 = vmul.f32 %v2732_v4, %v37_v49  ;;  %v77_v43 = vld [vmem:[%s4375_s0 + $0x1b8] sm:$0xff] }
  0x1e   :  { %2441 = vmatmul.mubr.msk.f32.gmra.mxu0 %vm532_vm2, %v446_v42  ;;  %v245_v42 = vadd.f32 %v2737_v5, %v157_v33  ;;  %v453_v55 = vsel %vm291_vm7, %v210_v38, %v372_v47  ;;  %v212_v57 = vadd.f32 %v2737_v5, %v124_v48  ;;  %v160_v63 = vmul.f32 %v2732_v4, %v72_v54  ;;  %v76_v33 = vld [vmem:[%s4375_s0 + $0x1b0] sm:$0xff]  ;;  %v42_v38 = vld [vmem:[%s4375_s0 + $0xa0] sm:$0xff]  ;;  %v43_v48 = vld [vmem:[%s4375_s0 + $0xa8] sm:$0xff] }
  0x1f   :  { %2443 = vmatprep.mubr.msk.f32.mxu0 %vm2680_vm1, %v2679_v0  ;;  %2558 = vmatmul.mubr.msk.f32.gmra.mxu1 %vm532_vm2, %v485_v30  ;;  %v408_v61 = vmul.f32 0.2, %v246_v52  ;;  %vm327_vm10 = vcmp.ge.f32.partialorder %v246_v52, 0.0  ;;  %v126_v2 = vmul.f32 %v2732_v4, %v38_v59  ;;  %v213_v7 = vadd.f32 %v2737_v5, %v125_v58  ;;  %v44_v58 = vld [vmem:[%s4375_s0 + $0xb0] sm:$0xff] }
  0x20   :  { %2560 = vmatprep.mubr.msk.f32.mxu1 %vm2680_vm1, %v2679_v0  ;;  %v407_v51 = vmul.f32 0.2, %v245_v42  ;;  %vm326_vm8 = vcmp.ge.f32.partialorder %v245_v42, 0.0  ;;  %vm293_vm11 = vcmp.ge.f32.partialorder %v212_v57, 0.0  ;;  %v374_v6 = vmul.f32 0.2, %v212_v57 }
  0x21   :  { %v489_v9 = vsel %vm327_vm10, %v246_v52, %v408_v61  ;;  %v248_v11 = vadd.f32 %v2737_v5, %v160_v63  ;;  %v161_v12 = vmul.f32 %v2732_v4, %v73_v1  ;;  %v127_v14 = vmul.f32 %v2732_v4, %v39_v8  ;;  %v79_v63 = vld [vmem:[%s4375_s0 + $0x1c8] sm:$0xff] }
  0x22   :  { %2444 = vmatmul.mubr.msk.f32.gmra.mxu0 %vm532_vm2, %v447_v53  ;;  %v159_v53 = vmul.f32 %v2732_v4, %v71_v44  ;;  %v488_v60 = vsel %vm326_vm8, %v245_v42, %v407_v51  ;;  %v455_v15 = vsel %vm293_vm11, %v212_v57, %v374_v6  ;;  %vm294_vm13 = vcmp.ge.f32.partialorder %v213_v7, 0.0 }
  0x23   :  { %2446 = vmatprep.mubr.msk.f32.mxu0 %vm2680_vm1, %v2679_v0  ;;  %2561 = vmatmul.mubr.msk.f32.gmra.mxu1 %vm532_vm2, %v486_v40  ;;  %v214_v17 = vadd.f32 %v2737_v5, %v126_v2  ;;  %v410_v20 = vmul.f32 0.2, %v248_v11  ;;  %v249_v21 = vadd.f32 %v2737_v5, %v161_v12  ;;  %v162_v22 = vmul.f32 %v2732_v4, %v74_v13  ;;  %v80_v12 = vld [vmem:[%s4375_s0 + $0x1d0] sm:$0xff] }
  0x24   :  { %2563 = vmatprep.mubr.msk.f32.mxu1 %vm2680_vm1, %v2679_v0  ;;  %v247_v62 = vadd.f32 %v2737_v5, %v159_v53  ;;  %vm329_vm14 = vcmp.ge.f32.partialorder %v248_v11, 0.0  ;;  %v128_v24 = vmul.f32 %v2732_v4, %v40_v18  ;;  %v215_v27 = vadd.f32 %v2737_v5, %v127_v14  ;;  %v78_v53 = vld [vmem:[%s4375_s0 + $0x1c0] sm:$0xff] }
  0x25   :  { %vm295_vm15 = vcmp.ge.f32.partialorder %v214_v17, 0.0  ;;  %v491_v29 = vsel %vm329_vm14, %v248_v11, %v410_v20  ;;  %v411_v30 = vmul.f32 0.2, %v249_v21  ;;  %v250_v31 = vadd.f32 %v2737_v5, %v162_v22  ;;  %v81_v22 = vld [vmem:[%s4375_s0 + $0x1d8] sm:$0xff] }
  0x26   :  { %2447 = vmatmul.mubr.msk.f32.gmra.mxu0 %vm532_vm2, %v448_v3  ;;  %v454_v3 = vsel %vm292_vm9, %v211_v45, %v373_v56  ;;  %v409_v10 = vmul.f32 0.2, %v247_v62  ;;  %vm328_vm12 = vcmp.ge.f32.partialorder %v247_v62, 0.0  ;;  %v163_v32 = vmul.f32 %v2732_v4, %v75_v23 }
  0x27   :  { %2449 = vmatprep.mubr.msk.f32.mxu0 %vm2680_vm1, %v2679_v0  ;;  %2564 = vmatmul.mubr.msk.f32.gmra.mxu1 %vm532_vm2, %v487_v50  ;;  %vm330_vm0 = vcmp.ge.f32.partialorder %v249_v21, 0.0  ;;  %v216_v34 = vadd.f32 %v2737_v5, %v128_v24  ;;  %vm296_vm3 = vcmp.ge.f32.partialorder %v215_v27, 0.0  ;;  %v129_v37 = vmul.f32 %v2732_v4, %v41_v28 }
  0x28   :  { %2566 = vmatprep.mubr.msk.f32.mxu1 %vm2680_vm1, %v2679_v0  ;;  %v490_v19 = vsel %vm328_vm12, %v247_v62, %v409_v10  ;;  %v492_v39 = vsel %vm330_vm0, %v249_v21, %v411_v30  ;;  %v412_v40 = vmul.f32 0.2, %v250_v31  ;;  %v251_v41 = vadd.f32 %v2737_v5, %v163_v32  ;;  %v82_v32 = vld [vmem:[%s4375_s0 + $0x1e0] sm:$0xff] }
  0x29   :  { %v164_v42 = vmul.f32 %v2732_v4, %v76_v33  ;;  %vm331_vm4 = vcmp.ge.f32.partialorder %v250_v31, 0.0  ;;  %v130_v44 = vmul.f32 %v2732_v4, %v42_v38  ;;  %vm297_vm5 = vcmp.ge.f32.partialorder %v216_v34, 0.0 }
  0x2a   :  { %2450 = vmatmul.mubr.msk.f32.gmra.mxu0 %vm532_vm2, %v449_v16  ;;  %v375_v16 = vmul.f32 0.2, %v213_v7  ;;  %v217_v47 = vadd.f32 %v2737_v5, %v129_v37  ;;  %v493_v49 = vsel %vm331_vm4, %v250_v31, %v412_v40  ;;  %v413_v50 = vmul.f32 0.2, %v251_v41  ;;  %v48_v37 = vld [vmem:[%s4375_s0 + $0xd0] sm:$0xff] }
  0x2b   :  { %2452 = vmatprep.mubr.msk.f32.mxu0 %vm2680_vm1, %v2679_v0  ;;  %2567 = vmatmul.mubr.msk.f32.gmra.mxu1 %vm532_vm2, %v488_v60  ;;  %v252_v51 = vadd.f32 %v2737_v5, %v164_v42  ;;  %v165_v52 = vmul.f32 %v2732_v4, %v77_v43  ;;  %vm332_vm6 = vcmp.ge.f32.partialorder %v251_v41, 0.0  ;;  %v218_v54 = vadd.f32 %v2737_v5, %v130_v44  ;;  %v83_v42 = vld [vmem:[%s4375_s0 + $0x1e8] sm:$0xff] }
  0x2c   :  { %2569 = vmatprep.mubr.msk.f32.mxu1 %vm2680_vm1, %v2679_v0  ;;  %v456_v25 = vsel %vm294_vm13, %v213_v7, %v375_v16  ;;  %vm298_vm7 = vcmp.ge.f32.partialorder %v217_v47, 0.0  ;;  %v379_v56 = vmul.f32 0.2, %v217_v47  ;;  %v131_v57 = vmul.f32 %v2732_v4, %v43_v48  ;;  %v45_v7 = vld [vmem:[%s4375_s0 + $0xb8] sm:$0xff] }
  0x2d   :  { %v494_v59 = vsel %vm332_vm6, %v251_v41, %v413_v50  ;;  %v414_v60 = vmul.f32 0.2, %v252_v51  ;;  %v253_v61 = vadd.f32 %v2737_v5, %v165_v52  ;;  %v166_v62 = vmul.f32 %v2732_v4, %v78_v53  ;;  %v84_v52 = vld [vmem:[%s4375_s0 + $0x1f0] sm:$0xff] }
  0x2e   :  { %2453 = vmatmul.mubr.msk.f32.gmra.mxu0 %vm532_vm2, %v450_v26  ;;  %v376_v26 = vmul.f32 0.2, %v214_v17  ;;  %vm333_vm8 = vcmp.ge.f32.partialorder %v252_v51, 0.0  ;;  %vm299_vm9 = vcmp.ge.f32.partialorder %v218_v54, 0.0  ;;  %v460_v1 = vsel %vm298_vm7, %v217_v47, %v379_v56  ;;  %v49_v47 = vld [vmem:[%s4375_s0 + $0xd8] sm:$0xff] }
  0x2f   :  { %2455 = vmatprep.mubr.msk.f32.mxu0 %vm2680_vm1, %v2679_v0  ;;  %2570 = vmatmul.mubr.msk.f32.gmra.mxu1 %vm532_vm2, %v489_v9  ;;  %v380_v2 = vmul.f32 0.2, %v218_v54  ;;  %v132_v6 = vmul.f32 %v2732_v4, %v44_v58  ;;  %v495_v8 = vsel %vm333_vm8, %v252_v51, %v414_v60  ;;  %v415_v9 = vmul.f32 0.2, %v253_v61 }
  0x30   :  { %2572 = vmatprep.mubr.msk.f32.mxu1 %vm2680_vm1, %v2679_v0  ;;  %v457_v35 = vsel %vm295_vm15, %v214_v17, %v376_v26  ;;  %v254_v10 = vadd.f32 %v2737_v5, %v166_v62  ;;  %v167_v11 = vmul.f32 %v2732_v4, %v79_v63  ;;  %vm334_vm10 = vcmp.ge.f32.partialorder %v253_v61, 0.0  ;;  %v46_v17 = vld [vmem:[%s4375_s0 + $0xc0] sm:$0xff]  ;;  %v85_v62 = vld [vmem:[%s4375_s0 + $0x1f8] sm:$0xff] }
  0x31   :  { %v133_v13 = vmul.f32 %v2732_v4, %v45_v7  ;;  %v461_v14 = vsel %vm299_vm9, %v218_v54, %v380_v2  ;;  %v220_v16 = vadd.f32 %v2737_v5, %v132_v6  ;;  %v496_v18 = vsel %vm334_vm10, %v253_v61, %v415_v9  ;;  %v51_v6 = vld [vmem:[%s4375_s0 + $0xe8] sm:$0xff] }
  0x32   :  { %2456 = vmatmul.mubr.msk.f32.gmra.mxu0 %vm532_vm2, %v451_v36  ;;  %v377_v36 = vmul.f32 0.2, %v215_v27  ;;  %v255_v20 = vadd.f32 %v2737_v5, %v167_v11  ;;  %v168_v21 = vmul.f32 %v2732_v4, %v80_v12  ;;  %vm335_vm12 = vcmp.ge.f32.partialorder %v254_v10, 0.0  ;;  %v86_v11 = vld [vmem:[%s4375_s0 + $0x200] sm:$0xff] }
  0x33   :  { %2458 = vmatprep.mubr.msk.f32.mxu0 %vm2680_vm1, %v2679_v0  ;;  %2573 = vmatmul.mubr.msk.f32.gmra.mxu1 %vm532_vm2, %v490_v19  ;;  %v416_v19 = vmul.f32 0.2, %v254_v10  ;;  %v221_v23 = vadd.f32 %v2737_v5, %v133_v13  ;;  %vm301_vm13 = vcmp.ge.f32.partialorder %v220_v16, 0.0  ;;  %v134_v26 = vmul.f32 %v2732_v4, %v46_v17 }
  0x34   :  { %2575 = vmatprep.mubr.msk.f32.mxu1 %vm2680_vm1, %v2679_v0  ;;  %v458_v45 = vsel %vm296_vm3, %v215_v27, %v377_v36  ;;  %v47_v27 = vld [vmem:[%s4375_s0 + $0xc8] sm:$0xff]  ;;  %v256_v30 = vadd.f32 %v2737_v5, %v168_v21  ;;  %v169_v31 = vmul.f32 %v2732_v4, %v81_v22  ;;  %vm336_vm14 = vcmp.ge.f32.partialorder %v255_v20, 0.0 }
  0x35   :  { %v497_v28 = vsel %vm335_vm12, %v254_v10, %v416_v19  ;;  %v383_v33 = vmul.f32 0.2, %v221_v23  ;;  %vm302_vm15 = vcmp.ge.f32.partialorder %v221_v23, 0.0  ;;  %v135_v36 = vmul.f32 %v2732_v4, %v47_v27  ;;  %v87_v21 = vld [vmem:[%s4375_s0 + $0x208] sm:$0xff] }
  0x36   :  { %2459 = vmatmul.mubr.msk.f32.gmra.mxu0 %vm532_vm2, %v452_v46  ;;  %v378_v46 = vmul.f32 0.2, %v216_v34  ;;  %v257_v40 = vadd.f32 %v2737_v5, %v169_v31  ;;  %v170_v41 = vmul.f32 %v2732_v4, %v82_v32  ;;  %vm337_vm0 = vcmp.ge.f32.partialorder %v256_v30, 0.0  ;;  %v88_v31 = vld [vmem:[%s4375_s0 + $0x210] sm:$0xff] }
  0x37   :  { %2461 = vmatprep.mubr.msk.f32.mxu0 %vm2680_vm1, %v2679_v0  ;;  %2576 = vmatmul.mubr.msk.f32.gmra.mxu1 %vm532_vm2, %v491_v29  ;;  %v417_v29 = vmul.f32 0.2, %v255_v20  ;;  %v464_v43 = vsel %vm302_vm15, %v221_v23, %v383_v33  ;;  %v171_v51 = vmul.f32 %v2732_v4, %v83_v42  ;;  %v137_v53 = vmul.f32 %v2732_v4, %v49_v47 }
  0x38   :  { %2578 = vmatprep.mubr.msk.f32.mxu1 %vm2680_vm1, %v2679_v0  ;;  %v258_v50 = vadd.f32 %v2737_v5, %v170_v41  ;;  %vm338_vm4 = vcmp.ge.f32.partialorder %v257_v40, 0.0  ;;  %v172_v61 = vmul.f32 %v2732_v4, %v84_v52  ;;  %v173_v10 = vmul.f32 %v2732_v4, %v85_v62  ;;  %v89_v41 = vld [vmem:[%s4375_s0 + $0x218] sm:$0xff] }
  0x39   :  { %v498_v38 = vsel %vm336_vm14, %v255_v20, %v417_v29  ;;  %v259_v60 = vadd.f32 %v2737_v5, %v171_v51  ;;  %v174_v20 = vmul.f32 %v2732_v4, %v86_v11  ;;  %v90_v51 = vld [vmem:[%s4375_s0 + $0x220] sm:$0xff] }
  0x3a   :  { %2462 = vmatmul.mubr.msk.f32.gmra.mxu0 %vm532_vm2, %v453_v55  ;;  %v459_v55 = vsel %vm297_vm5, %v216_v34, %v378_v46  ;;  %v136_v46 = vmul.f32 %v2732_v4, %v48_v37  ;;  %vm339_vm6 = vcmp.ge.f32.partialorder %v258_v50, 0.0  ;;  %v260_v9 = vadd.f32 %v2737_v5, %v172_v61  ;;  %v91_v61 = vld [vmem:[%s4375_s0 + $0x228] sm:$0xff] }
  0x3b   :  { %2464 = vmatprep.mubr.msk.f32.mxu0 %vm2680_vm1, %v2679_v0  ;;  %2579 = vmatmul.mubr.msk.f32.gmra.mxu1 %vm532_vm2, %v492_v39  ;;  %v418_v39 = vmul.f32 0.2, %v256_v30  ;;  %vm340_vm8 = vcmp.ge.f32.partialorder %v259_v60, 0.0  ;;  %v261_v19 = vadd.f32 %v2737_v5, %v173_v10  ;;  %v262_v29 = vadd.f32 %v2737_v5, %v174_v20  ;;  %v92_v10 = vld [vmem:[%s4375_s0 + $0x230] sm:$0xff]  ;;  %v93_v20 = vld [vmem:[%s4375_s0 + $0x238] sm:$0xff] }
  0x3c   :  { %2581 = vmatprep.mubr.msk.f32.mxu1 %vm2680_vm1, %v2679_v0  ;;  %v224_v56 = vadd.f32 %v2737_v5, %v136_v46  ;;  %vm341_vm10 = vcmp.ge.f32.partialorder %v260_v9, 0.0  ;;  %v55_v46 = vld [vmem:[%s4375_s0 + $0x108] sm:$0xff] }
  0x3d   :  { %v499_v48 = vsel %vm337_vm0, %v256_v30, %v418_v39  ;;  %v175_v30 = vmul.f32 %v2732_v4, %v87_v21  ;;  %vm342_vm12 = vcmp.ge.f32.partialorder %v261_v19, 0.0  ;;  %vm343_vm14 = vcmp.ge.f32.partialorder %v262_v29, 0.0 }
  0x3e   :  { %2465 = vmatmul.mubr.msk.f32.gmra.mxu0 %vm532_vm2, %v454_v3  ;;  %v219_v3 = vadd.f32 %v2737_v5, %v131_v57  ;;  %v50_v57 = vld [vmem:[%s4375_s0 + $0xe0] sm:$0xff]  ;;  %vm305_vm7 = vcmp.ge.f32.partialorder %v224_v56, 0.0  ;;  %v386_v2 = vmul.f32 0.2, %v224_v56 }
  0x3f   :  { %2467 = vmatprep.mubr.msk.f32.mxu0 %vm2680_vm1, %v2679_v0  ;;  %2582 = vmatmul.mubr.msk.f32.gmra.mxu1 %vm532_vm2, %v493_v49  ;;  %v419_v49 = vmul.f32 0.2, %v257_v40  ;;  %v138_v63 = vmul.f32 %v2732_v4, %v50_v57  ;;  %v263_v39 = vadd.f32 %v2737_v5, %v175_v30  ;;  %v94_v30 = vld [vmem:[%s4375_s0 + $0x240] sm:$0xff] }
  0x40   :  { %2584 = vmatprep.mubr.msk.f32.mxu1 %vm2680_vm1, %v2679_v0  ;;  %vm300_vm11 = vcmp.ge.f32.partialorder %v219_v3, 0.0  ;;  %v467_v13 = vsel %vm305_vm7, %v224_v56, %v386_v2  ;;  %v56_v56 = vld [vmem:[%s4375_s0 + $0x110] sm:$0xff] }
  0x41   :  { %v500_v58 = vsel %vm338_vm4, %v257_v40, %v419_v49  ;;  %v226_v12 = vadd.f32 %v2737_v5, %v138_v63  ;;  %v176_v40 = vmul.f32 %v2732_v4, %v88_v31  ;;  %vm344_vm0 = vcmp.ge.f32.partialorder %v263_v39, 0.0 }
  0x42   :  { %2468 = vmatmul.mubr.msk.f32.gmra.mxu0 %vm532_vm2, %v455_v15  ;;  %v381_v15 = vmul.f32 0.2, %v219_v3  ;;  %v144_v62 = vmul.f32 %v2732_v4, %v56_v56 }
  0x43   :  { %2470 = vmatprep.mubr.msk.f32.mxu0 %vm2680_vm1, %v2679_v0  ;;  %2585 = vmatmul.mubr.msk.f32.gmra.mxu1 %vm532_vm2, %v494_v59  ;;  %v420_v59 = vmul.f32 0.2, %v258_v50  ;;  %v388_v22 = vmul.f32 0.2, %v226_v12  ;;  %v264_v49 = vadd.f32 %v2737_v5, %v176_v40  ;;  %v95_v40 = vld [vmem:[%s4375_s0 + $0x248] sm:$0xff] }
  0x44   :  { %2587 = vmatprep.mubr.msk.f32.mxu1 %vm2680_vm1, %v2679_v0  ;;  %v462_v24 = vsel %vm300_vm11, %v219_v3, %v381_v15  ;;  %v225_v3 = vadd.f32 %v2737_v5, %v137_v53  ;;  %v139_v15 = vmul.f32 %v2732_v4, %v51_v6  ;;  %vm307_vm11 = vcmp.ge.f32.partialorder %v226_v12, 0.0 }
  0x45   :  { %v501_v7 = vsel %vm339_vm6, %v258_v50, %v420_v59  ;;  %v469_v32 = vsel %vm307_vm11, %v226_v12, %v388_v22  ;;  %v177_v50 = vmul.f32 %v2732_v4, %v89_v41  ;;  %vm345_vm4 = vcmp.ge.f32.partialorder %v264_v49, 0.0 }
  0x46   :  { %2471 = vmatmul.mubr.msk.f32.gmra.mxu0 %vm532_vm2, %v456_v25  ;;  %v382_v25 = vmul.f32 0.2, %v220_v16  ;;  %vm306_vm9 = vcmp.ge.f32.partialorder %v225_v3, 0.0  ;;  %v232_v11 = vadd.f32 %v2737_v5, %v144_v62 }
  0x47   :  { %2473 = vmatprep.mubr.msk.f32.mxu0 %vm2680_vm1, %v2679_v0  ;;  %2588 = vmatmul.mubr.msk.f32.gmra.mxu1 %vm532_vm2, %v495_v8  ;;  %v421_v8 = vmul.f32 0.2, %v259_v60  ;;  %v265_v59 = vadd.f32 %v2737_v5, %v177_v50  ;;  %v96_v50 = vld [vmem:[%s4375_s0 + $0x250] sm:$0xff] }
  0x48   :  { %2590 = vmatprep.mubr.msk.f32.mxu1 %vm2680_vm1, %v2679_v0  ;;  %v463_v34 = vsel %vm301_vm13, %v220_v16, %v382_v25  ;;  %v52_v16 = vld [vmem:[%s4375_s0 + $0xf0] sm:$0xff]  ;;  %v394_v21 = vmul.f32 0.2, %v232_v11 }
  0x49   :  { %v502_v17 = vsel %vm340_vm8, %v259_v60, %v421_v8  ;;  %v140_v25 = vmul.f32 %v2732_v4, %v52_v16  ;;  %v178_v60 = vmul.f32 %v2732_v4, %v90_v51  ;;  %vm346_vm6 = vcmp.ge.f32.partialorder %v265_v59, 0.0 }
  0x4a   :  { %2474 = vmatmul.mubr.msk.f32.gmra.mxu0 %vm532_vm2, %v457_v35  ;;  %v222_v35 = vadd.f32 %v2737_v5, %v134_v26  ;;  %v53_v26 = vld [vmem:[%s4375_s0 + $0xf8] sm:$0xff] }
  0x4b   :  { %2476 = vmatprep.mubr.msk.f32.mxu0 %vm2680_vm1, %v2679_v0  ;;  %2591 = vmatmul.mubr.msk.f32.gmra.mxu1 %vm532_vm2, %v496_v18  ;;  %v422_v18 = vmul.f32 0.2, %v260_v9  ;;  %v266_v8 = vadd.f32 %v2737_v5, %v178_v60  ;;  %v97_v60 = vld [vmem:[%s4375_s0 + $0x258] sm:$0xff] }
  0x4c   :  { %2593 = vmatprep.mubr.msk.f32.mxu1 %vm2680_vm1, %v2679_v0  ;;  %vm303_vm3 = vcmp.ge.f32.partialorder %v222_v35, 0.0  ;;  %v384_v44 = vmul.f32 0.2, %v222_v35 }
  0x4d   :  { %v503_v27 = vsel %vm341_vm10, %v260_v9, %v422_v18  ;;  %v179_v9 = vmul.f32 %v2732_v4, %v91_v61  ;;  %vm347_vm8 = vcmp.ge.f32.partialorder %v266_v8, 0.0 }
  0x4e   :  { %2477 = vmatmul.mubr.msk.f32.gmra.mxu0 %vm532_vm2, %v458_v45  ;;  %v223_v45 = vadd.f32 %v2737_v5, %v135_v36  ;;  %v465_v54 = vsel %vm303_vm3, %v222_v35, %v384_v44  ;;  %v141_v35 = vmul.f32 %v2732_v4, %v53_v26  ;;  %v54_v36 = vld [vmem:[%s4375_s0 + $0x100] sm:$0xff] }
  0x4f   :  { %2479 = vmatprep.mubr.msk.f32.mxu0 %vm2680_vm1, %v2679_v0  ;;  %2594 = vmatmul.mubr.msk.f32.gmra.mxu1 %vm532_vm2, %v497_v28  ;;  %v423_v28 = vmul.f32 0.2, %v261_v19  ;;  %v142_v42 = vmul.f32 %v2732_v4, %v54_v36  ;;  %v267_v18 = vadd.f32 %v2737_v5, %v179_v9 }
  0x50   :  { %2596 = vmatprep.mubr.msk.f32.mxu1 %vm2680_vm1, %v2679_v0  ;;  %vm304_vm5 = vcmp.ge.f32.partialorder %v223_v45, 0.0 }
  0x51   :  { %v504_v37 = vsel %vm342_vm12, %v261_v19, %v423_v28  ;;  %v230_v52 = vadd.f32 %v2737_v5, %v142_v42  ;;  %v180_v19 = vmul.f32 %v2732_v4, %v92_v10  ;;  %vm348_vm10 = vcmp.ge.f32.partialorder %v267_v18, 0.0 }
  0x52   :  { %2480 = vmatmul.mubr.msk.f32.gmra.mxu0 %vm532_vm2, %v459_v55  ;;  %v385_v55 = vmul.f32 0.2, %v223_v45 }
  0x53   :  { %2482 = vmatprep.mubr.msk.f32.mxu0 %vm2680_vm1, %v2679_v0  ;;  %2597 = vmatmul.mubr.msk.f32.gmra.mxu1 %vm532_vm2, %v498_v38  ;;  %v424_v38 = vmul.f32 0.2, %v262_v29 }
  0x54   :  { %2599 = vmatprep.mubr.msk.f32.mxu1 %vm2680_vm1, %v2679_v0 }
  0x55   :  { %v505_v47 = vsel %vm343_vm14, %v262_v29, %v424_v38 }
  0x56   :  { %2483 = vmatmul.mubr.msk.f32.gmra.mxu0 %vm532_vm2, %v460_v1  ;;  %v466_v1 = vsel %vm304_vm5, %v223_v45, %v385_v55  ;;  %v229_v45 = vadd.f32 %v2737_v5, %v141_v35  ;;  %v143_v55 = vmul.f32 %v2732_v4, %v55_v46  ;;  %vm311_vm5 = vcmp.ge.f32.partialorder %v230_v52, 0.0  ;;  %v60_v35 = vld [vmem:[%s4375_s0 + $0x130] sm:$0xff] }
  0x57   :  { %2485 = vmatprep.mubr.msk.f32.mxu0 %vm2680_vm1, %v2679_v0  ;;  %2600 = vmatmul.mubr.msk.f32.gmra.mxu1 %vm532_vm2, %v499_v48  ;;  %v425_v48 = vmul.f32 0.2, %v263_v39 }
  0x58   :  { %2602 = vmatprep.mubr.msk.f32.mxu1 %vm2680_vm1, %v2679_v0  ;;  %vm310_vm3 = vcmp.ge.f32.partialorder %v229_v45, 0.0  ;;  %v231_v2 = vadd.f32 %v2737_v5, %v143_v55  ;;  %v62_v55 = vld [vmem:[%s4375_s0 + $0x140] sm:$0xff] }
  0x59   :  { %v506_v57 = vsel %vm344_vm0, %v263_v39, %v425_v48 }
  0x5a   :  { %2486 = vmatmul.mubr.msk.f32.gmra.mxu0 %vm532_vm2, %v461_v14  ;;  %v387_v14 = vmul.f32 0.2, %v225_v3  ;;  %vm312_vm7 = vcmp.ge.f32.partialorder %v231_v2, 0.0 }
  0x5b   :  { %2488 = vmatprep.mubr.msk.f32.mxu0 %vm2680_vm1, %v2679_v0  ;;  %2603 = vmatmul.mubr.msk.f32.gmra.mxu1 %vm532_vm2, %v500_v58  ;;  %v426_v58 = vmul.f32 0.2, %v264_v49 }
  0x5c   :  { %2605 = vmatprep.mubr.msk.f32.mxu1 %vm2680_vm1, %v2679_v0  ;;  %v468_v23 = vsel %vm306_vm9, %v225_v3, %v387_v14  ;;  %v57_v3 = vld [vmem:[%s4375_s0 + $0x118] sm:$0xff]  ;;  %vm313_vm9 = vcmp.ge.f32.partialorder %v232_v11, 0.0 }
  0x5d   :  { %v507_v6 = vsel %vm345_vm4, %v264_v49, %v426_v58  ;;  %v145_v14 = vmul.f32 %v2732_v4, %v57_v3  ;;  %v475_v31 = vsel %vm313_vm9, %v232_v11, %v394_v21 }
  0x5e   :  { %2489 = vmatmul.mubr.msk.f32.gmra.mxu0 %vm532_vm2, %v462_v24  ;;  %v227_v24 = vadd.f32 %v2737_v5, %v139_v15  ;;  %v58_v15 = vld [vmem:[%s4375_s0 + $0x120] sm:$0xff] }
  0x5f   :  { %2491 = vmatprep.mubr.msk.f32.mxu0 %vm2680_vm1, %v2679_v0  ;;  %2606 = vmatmul.mubr.msk.f32.gmra.mxu1 %vm532_vm2, %v501_v7  ;;  %v427_v7 = vmul.f32 0.2, %v265_v59 }
  0x60   :  { %2608 = vmatprep.mubr.msk.f32.mxu1 %vm2680_vm1, %v2679_v0  ;;  %vm308_vm13 = vcmp.ge.f32.partialorder %v227_v24, 0.0  ;;  %v389_v33 = vmul.f32 0.2, %v227_v24 }
  0x61   :  { %v508_v16 = vsel %vm346_vm6, %v265_v59, %v427_v7 }
  0x62   :  { %2492 = vmatmul.mubr.msk.f32.gmra.mxu0 %vm532_vm2, %v463_v34  ;;  %v228_v34 = vadd.f32 %v2737_v5, %v140_v25  ;;  %v3271_v5 = vld [vmem:[%s4376_s1] ss:$0 sm:$0xff]  ;;  %v59_v25 = vld [vmem:[%s4375_s0 + $0x128] sm:$0xff] }
  0x63   :  { %2494 = vmatprep.mubr.msk.f32.mxu0 %vm2680_vm1, %v2679_v0  ;;  %2609 = vmatmul.mubr.msk.f32.gmra.mxu1 %vm532_vm2, %v502_v17  ;;  %v428_v17 = vmul.f32 0.2, %v266_v8  ;;  %v181_v29 = vmul.f32 %v3271_v5, %v93_v20  ;;  %v182_v39 = vmul.f32 %v3271_v5, %v94_v30  ;;  %v148_v41 = vmul.f32 %v3271_v5, %v60_v35 }
  0x64   :  { %2611 = vmatprep.mubr.msk.f32.mxu1 %vm2680_vm1, %v2679_v0  ;;  %vm309_vm15 = vcmp.ge.f32.partialorder %v228_v34, 0.0  ;;  %v390_v44 = vmul.f32 0.2, %v228_v34  ;;  %v183_v49 = vmul.f32 %v3271_v5, %v95_v40  ;;  %v184_v59 = vmul.f32 %v3271_v5, %v96_v50 }
  0x65   :  { %v509_v26 = vsel %vm347_vm8, %v266_v8, %v428_v17  ;;  %v185_v7 = vmul.f32 %v3271_v5, %v97_v60  ;;  %v98_v8 = vld [vmem:[%s4375_s0 + $0x260] sm:$0xff] }
  0x66   :  { %2495 = vmatmul.mubr.msk.f32.gmra.mxu0 %vm532_vm2, %v464_v43  ;;  %v470_v43 = vsel %vm308_vm13, %v227_v24, %v389_v33  ;;  %v471_v53 = vsel %vm309_vm15, %v228_v34, %v390_v44  ;;  %v146_v24 = vmul.f32 %v3271_v5, %v58_v15  ;;  %v147_v34 = vmul.f32 %v3271_v5, %v59_v25 }
  0x67   :  { %2497 = vmatprep.mubr.msk.f32.mxu0 %vm2680_vm1, %v2679_v0  ;;  %2612 = vmatmul.mubr.msk.f32.gmra.mxu1 %vm532_vm2, %v503_v27  ;;  %v429_v27 = vmul.f32 0.2, %v267_v18  ;;  %v186_v15 = vmul.f32 %v3271_v5, %v98_v8 }
  0x68   :  { %2614 = vmatprep.mubr.msk.f32.mxu1 %vm2680_vm1, %v2679_v0 }
  0x69   :  { %v510_v36 = vsel %vm348_vm10, %v267_v18, %v429_v27 }
  0x6a   :  { %2498 = vmatmul.mubr.msk.f32.gmra.mxu0 %vm532_vm2, %v465_v54  ;;  %v391_v54 = vmul.f32 0.2, %v229_v45 }
  0x6b   :  { %2500 = vmatprep.mubr.msk.f32.mxu0 %vm2680_vm1, %v2679_v0  ;;  %2615 = vmatmul.mubr.msk.f32.gmra.mxu1 %vm532_vm2, %v504_v37 }
  0x6c   :  { %2617 = vmatprep.mubr.msk.f32.mxu1 %vm2680_vm1, %v2679_v0  ;;  %v472_v63 = vsel %vm310_vm3, %v229_v45, %v391_v54  ;;  %v61_v45 = vld [vmem:[%s4375_s0 + $0x138] sm:$0xff] }
  0x6d   :  { %v149_v54 = vmul.f32 %v3271_v5, %v61_v45 }
  0x6e   :  { %2501 = vmatmul.mubr.msk.f32.gmra.mxu0 %vm532_vm2, %v466_v1  ;;  %v392_v1 = vmul.f32 0.2, %v230_v52 }
  0x6f   :  { %2503 = vmatprep.mubr.msk.f32.mxu0 %vm2680_vm1, %v2679_v0  ;;  %2618 = vmatmul.mubr.msk.f32.gmra.mxu1 %vm532_vm2, %v505_v47 }
  0x70   :  { %2620 = vmatprep.mubr.msk.f32.mxu1 %vm2680_vm1, %v2679_v0  ;;  %v473_v12 = vsel %vm311_vm5, %v230_v52, %v392_v1  ;;  %v150_v1 = vmul.f32 %v3271_v5, %v62_v55 }
  0x72   :  { %2504 = vmatmul.mubr.msk.f32.gmra.mxu0 %vm532_vm2, %v467_v13  ;;  %v393_v13 = vmul.f32 0.2, %v231_v2 }
  0x73   :  { %2506 = vmatprep.mubr.msk.f32.mxu0 %vm2680_vm1, %v2679_v0  ;;  %2621 = vmatmul.mubr.msk.f32.gmra.mxu1 %vm532_vm2, %v506_v57 }
  0x74   :  { %2623 = vmatprep.mubr.msk.f32.mxu1 %vm2680_vm1, %v2679_v0  ;;  %v474_v22 = vsel %vm312_vm7, %v231_v2, %v393_v13 }
  0x76   :  { %2507 = vmatmul.mubr.msk.f32.gmra.mxu0 %vm532_vm2, %v468_v23  ;;  %v3265_v23 = vld [vmem:[%s4377_s2] ss:$0 sm:$0xff] }
  0x77   :  { %2509 = vmatprep.mubr.msk.f32.mxu0 %vm2680_vm1, %v2679_v0  ;;  %2624 = vmatmul.mubr.msk.f32.gmra.mxu1 %vm532_vm2, %v507_v6  ;;  %v233_v4 = vadd.f32 %v3265_v23, %v145_v14  ;;  %v268_v28 = vadd.f32 %v3265_v23, %v180_v19  ;;  %v234_v33 = vadd.f32 %v3265_v23, %v146_v24 }
  0x78   :  { %2626 = vmatprep.mubr.msk.f32.mxu1 %vm2680_vm1, %v2679_v0  ;;  %v269_v38 = vadd.f32 %v3265_v23, %v181_v29  ;;  %v235_v44 = vadd.f32 %v3265_v23, %v147_v34  ;;  %v270_v48 = vadd.f32 %v3265_v23, %v182_v39  ;;  %v236_v51 = vadd.f32 %v3265_v23, %v148_v41  ;;  %v101_v29 = vld [vmem:[%s4375_s0 + $0x278] sm:$0xff]  ;;  %v102_v34 = vld [vmem:[%s4375_s0 + $0x280] sm:$0x3] }
  0x79   :  { %vm314_vm11 = vcmp.ge.f32.partialorder %v233_v4, 0.0  ;;  %v430_v37 = vmul.f32 0.2, %v268_v28  ;;  %vm349_vm12 = vcmp.ge.f32.partialorder %v268_v28, 0.0  ;;  %vm315_vm13 = vcmp.ge.f32.partialorder %v234_v33, 0.0 }
  0x7a   :  { %2510 = vmatmul.mubr.msk.f32.gmra.mxu0 %vm532_vm2, %v469_v32  ;;  %v395_v32 = vmul.f32 0.2, %v233_v4  ;;  %v431_v47 = vmul.f32 0.2, %v269_v38  ;;  %vm350_vm14 = vcmp.ge.f32.partialorder %v269_v38, 0.0  ;;  %vm316_vm15 = vcmp.ge.f32.partialorder %v235_v44, 0.0 }
  0x7b   :  { %2512 = vmatprep.mubr.msk.f32.mxu0 %vm2680_vm1, %v2679_v0  ;;  %2627 = vmatmul.mubr.msk.f32.gmra.mxu1 %vm532_vm2, %v508_v16  ;;  %v511_v46 = vsel %vm349_vm12, %v268_v28, %v430_v37  ;;  %v432_v57 = vmul.f32 0.2, %v270_v48  ;;  %v271_v58 = vadd.f32 %v3265_v23, %v183_v49  ;;  %vm351_vm0 = vcmp.ge.f32.partialorder %v270_v48, 0.0  ;;  %v99_v16 = vld [vmem:[%s4375_s0 + $0x268] sm:$0xff] }
  0x7c   :  { %2629 = vmatprep.mubr.msk.f32.mxu1 %vm2680_vm1, %v2679_v0  ;;  %v476_v42 = vsel %vm314_vm11, %v233_v4, %v395_v32  ;;  %v512_v56 = vsel %vm350_vm14, %v269_v38, %v431_v47  ;;  %vm317_vm3 = vcmp.ge.f32.partialorder %v236_v51, 0.0  ;;  %v398_v62 = vmul.f32 0.2, %v236_v51  ;;  %v100_v4 = vld [vmem:[%s4375_s0 + $0x270] sm:$0xff] }
  0x7d   :  { %v513_v2 = vsel %vm351_vm0, %v270_v48, %v432_v57  ;;  %v433_v3 = vmul.f32 0.2, %v271_v58  ;;  %v272_v6 = vadd.f32 %v3265_v23, %v184_v59  ;;  %vm352_vm4 = vcmp.ge.f32.partialorder %v271_v58, 0.0 }
  0x7e   :  { %2513 = vmatmul.mubr.msk.f32.gmra.mxu0 %vm532_vm2, %v470_v43  ;;  %v396_v43 = vmul.f32 0.2, %v234_v33  ;;  %v479_v9 = vsel %vm317_vm3, %v236_v51, %v398_v62  ;;  %v238_v11 = vadd.f32 %v3265_v23, %v150_v1  ;;  %v273_v14 = vadd.f32 %v3265_v23, %v185_v7 }
  0x7f   :  { %2515 = vmatprep.mubr.msk.f32.mxu0 %vm2680_vm1, %v2679_v0  ;;  %2630 = vmatmul.mubr.msk.f32.gmra.mxu1 %vm532_vm2, %v509_v26  ;;  %v434_v13 = vmul.f32 0.2, %v272_v6  ;;  %vm353_vm6 = vcmp.ge.f32.partialorder %v272_v6, 0.0  ;;  %v274_v21 = vadd.f32 %v3265_v23, %v186_v15  ;;  %v188_v28 = vmul.f32 %v3271_v5, %v100_v4 }
  0x80   :  { %2632 = vmatprep.mubr.msk.f32.mxu1 %vm2680_vm1, %v2679_v0  ;;  %v477_v52 = vsel %vm315_vm13, %v234_v33, %v396_v43  ;;  %vm319_vm7 = vcmp.ge.f32.partialorder %v238_v11, 0.0  ;;  %v400_v18 = vmul.f32 0.2, %v238_v11  ;;  %v435_v20 = vmul.f32 0.2, %v273_v14 }
  0x81   :  { %v515_v19 = vsel %vm353_vm6, %v272_v6, %v434_v13  ;;  %vm354_vm8 = vcmp.ge.f32.partialorder %v273_v14, 0.0  ;;  %v436_v26 = vmul.f32 0.2, %v274_v21  ;;  %vm355_vm9 = vcmp.ge.f32.partialorder %v274_v21, 0.0 }
  0x82   :  { %2516 = vmatmul.mubr.msk.f32.gmra.mxu0 %vm532_vm2, %v471_v53  ;;  %v397_v53 = vmul.f32 0.2, %v235_v44  ;;  %v481_v24 = vsel %vm319_vm7, %v238_v11, %v400_v18  ;;  %v516_v25 = vsel %vm354_vm8, %v273_v14, %v435_v20  ;;  %v276_v32 = vadd.f32 %v3265_v23, %v188_v28 }
  0x83   :  { %2518 = vmatprep.mubr.msk.f32.mxu0 %vm2680_vm1, %v2679_v0  ;;  %2633 = vmatmul.mubr.msk.f32.gmra.mxu1 %vm532_vm2, %v510_v36  ;;  %v517_v30 = vsel %vm355_vm9, %v274_v21, %v436_v26  ;;  %v189_v33 = vmul.f32 %v3271_v5, %v101_v29  ;;  %v190_v38 = vmul.f32 %v3271_v5, %v102_v34  ;;  %vm1250_vm14 = vcmask 64512  }
  0x84   :  { %2635 = vmatprep.mubr.msk.f32.mxu1 %vm2680_vm1, %v2679_v0  ;;  %v478_v61 = vsel %vm316_vm15, %v235_v44, %v397_v53  ;;  %v438_v36 = vmul.f32 0.2, %v276_v32  ;;  %vm357_vm11 = vcmp.ge.f32.partialorder %v276_v32, 0.0 }
  0x85   :  { %v277_v37 = vadd.f32 %v3265_v23, %v189_v33  ;;  %v278_v41 = vadd.f32 %v3265_v23, %v190_v38 }
  0x86   :  { %2519 = vmatmul.mubr.msk.f32.gmra.mxu0 %vm532_vm2, %v472_v63  ;;  %v237_v63 = vadd.f32 %v3265_v23, %v149_v54  ;;  %v519_v39 = vsel %vm357_vm11, %v276_v32, %v438_v36 }
  0x87   :  { %2521 = vmatprep.mubr.msk.f32.mxu0 %vm2680_vm1, %v2679_v0  ;;  %2636 = vmatmul.mubr.msk.f32.gmra.mxu1 %vm532_vm2, %v511_v46  ;;  %v439_v40 = vmul.f32 0.2, %v277_v37  ;;  %vm358_vm12 = vcmp.ge.f32.partialorder %v277_v37, 0.0  ;;  %v440_v43 = vmul.f32 0.2, %v278_v41  ;;  %vm359_vm13 = vcmp.ge.f32.partialorder %v278_v41, 0.0 }
  0x88   :  { %2638 = vmatprep.mubr.msk.f32.mxu1 %vm2680_vm1, %v2679_v0  ;;  %vm318_vm5 = vcmp.ge.f32.partialorder %v237_v63, 0.0  ;;  %v399_v10 = vmul.f32 0.2, %v237_v63 }
  0x8a   :  { %2522 = vmatmul.mubr.msk.f32.gmra.mxu0 %vm532_vm2, %v473_v12  ;;  %v514_v12 = vsel %vm352_vm4, %v271_v58, %v433_v3  ;;  %v480_v17 = vsel %vm318_vm5, %v237_v63, %v399_v10 }
  0x8b   :  { %2524 = vmatprep.mubr.msk.f32.mxu0 %vm2680_vm1, %v2679_v0  ;;  %2639 = vmatmul.mubr.msk.f32.gmra.mxu1 %vm532_vm2, %v512_v56 }
  0x8c   :  { %2641 = vmatprep.mubr.msk.f32.mxu1 %vm2680_vm1, %v2679_v0 }
  0x8e   :  { %2525 = vmatmul.mubr.msk.f32.gmra.mxu0 %vm532_vm2, %v474_v22  ;;  %v187_v22 = vmul.f32 %v3271_v5, %v99_v16  ;;  %v521_v5 = vsel %vm359_vm13, %v278_v41, %v440_v43 }
  0x8f   :  { %2527 = vmatprep.mubr.msk.f32.mxu0 %vm2680_vm1, %v2679_v0  ;;  %2642 = vmatmul.mubr.msk.f32.gmra.mxu1 %vm532_vm2, %v513_v2 }
  0x90   :  { %2644 = vmatprep.mubr.msk.f32.mxu1 %vm2680_vm1, %v2679_v0  ;;  %v275_v27 = vadd.f32 %v3265_v23, %v187_v22  ;;  %v3410_v23 = vld [vmem:[%s4378_s4] ss:$0 sm:$0xff] }
  0x92   :  { %2528 = vmatmul.mubr.msk.f32.gmra.mxu0 %vm532_vm2, %v475_v31  ;;  %v437_v31 = vmul.f32 0.2, %v275_v27  ;;  %vm356_vm10 = vcmp.ge.f32.partialorder %v275_v27, 0.0 }
  0x93   :  { %2530 = vmatprep.mubr.msk.f32.mxu0 %vm2680_vm1, %v2679_v0  ;;  %2645 = vmatmul.mubr.msk.f32.gmra.mxu1 %vm532_vm2, %v514_v12 }
  0x94   :  { %2647 = vmatprep.mubr.msk.f32.mxu1 %vm2680_vm1, %v2679_v0  ;;  %v518_v35 = vsel %vm356_vm10, %v275_v27, %v437_v31 }
  0x96   :  { %2531 = vmatmul.mubr.msk.f32.gmra.mxu0 %vm532_vm2, %v476_v42  ;;  %v520_v42 = vsel %vm358_vm12, %v277_v37, %v439_v40 }
  0x97   :  { %2533 = vmatprep.mubr.msk.f32.mxu0 %vm2680_vm1, %v2679_v0  ;;  %2648 = vmatmul.mubr.msk.f32.gmra.mxu1 %vm532_vm2, %v515_v19 }
  0x98   :  { %2650 = vmatprep.mubr.msk.f32.mxu1 %vm2680_vm1, %v2679_v0 }
  0x9a   :  { %2534 = vmatmul.mubr.msk.f32.gmra.mxu0 %vm532_vm2, %v477_v52 }
  0x9b   :  { %2536 = vmatprep.mubr.msk.f32.mxu0 %vm2680_vm1, %v2679_v0  ;;  %2651 = vmatmul.mubr.msk.f32.gmra.mxu1 %vm532_vm2, %v516_v25 }
  0x9c   :  { %2653 = vmatprep.mubr.msk.f32.mxu1 %vm2680_vm1, %v2679_v0 }
  0x9e   :  { %2537 = vmatmul.mubr.msk.f32.gmra.mxu0 %vm532_vm2, %v478_v61 }
  0x9f   :  { %2539 = vmatprep.mubr.msk.f32.mxu0 %vm2680_vm1, %v2679_v0  ;;  %2654 = vmatmul.mubr.msk.f32.gmra.mxu1 %vm532_vm2, %v517_v30 }
  0xa0   :  { %2656 = vmatprep.mubr.msk.f32.mxu1 %vm2680_vm1, %v2679_v0 }
  0xa2   :  { %2540 = vmatmul.mubr.msk.f32.gmra.mxu0 %vm532_vm2, %v479_v9 }
  0xa3   :  { %2542 = vmatprep.mubr.msk.f32.mxu0 %vm2680_vm1, %v2679_v0  ;;  %2657 = vmatmul.mubr.msk.f32.gmra.mxu1 %vm532_vm2, %v518_v35 }
  0xa4   :  { %2659 = vmatprep.mubr.msk.f32.mxu1 %vm2680_vm1, %v2679_v0 }
  0xa6   :  { %2543 = vmatmul.mubr.msk.f32.gmra.mxu0 %vm532_vm2, %v480_v17 }
  0xa7   :  { %2545 = vmatprep.mubr.msk.f32.mxu0 %vm2680_vm1, %v2679_v0  ;;  %2660 = vmatmul.mubr.msk.f32.gmra.mxu1 %vm532_vm2, %v519_v39 }
  0xa8   :  { %2662 = vmatprep.mubr.msk.f32.mxu1 %vm2680_vm1, %v2679_v0 }
  0xaa   :  { %2546 = vmatmul.mubr.msk.f32.gmra.mxu0 %vm532_vm2, %v481_v24 }
  0xab   :  { %2663 = vmatmul.mubr.msk.f32.gmra.mxu1 %vm532_vm2, %v520_v42 }
  0xac   :  { %2665 = vmatprep.mubr.msk.f32.mxu1 %vm2680_vm1, %v2679_v0  ;;  %vm1331_vm1 = vcmask 58368  }
  0xaf   :  { %2666 = vmatmul.mubr.msk.f32.gmra.mxu1 %vm532_vm2, %v521_v5 }
  0xca   :  { %v846_v44 = vpop.f32.mrf.mxu0 }
  0xcb   :  { %v847_v45 = vadd.f32 %v3410_v23, %v846_v44 }
  0xcc   :  { %v2427_v46 = vpop.f32.mrf.mxu0 }
  0xcd   :  { %1251 = vst.msk [vmem:[%s4379_s5] sm:$0xff] %vm1250_vm14, %v847_v45  ;;  %v1989_v0 = vmul.f32 %v847_v45, %v847_v45  ;;  %v1822_v50 = vsel %vm1250_vm14, %v847_v45, 0.0 }
  0xce   :  { %v851_v47 = vpop.f32.mrf.mxu0 }
  0xcf   :  { %v852_v48 = vadd.f32 %v3410_v23, %v851_v47  ;;  %v2070_v55 = vsel %vm1250_vm14, %v1989_v0, 0.0 }
  0xd0   :  { %v2430_v49 = vpop.f32.mrf.mxu0 }
  0xd1   :  { %1252 = vst.msk [vmem:[%s4379_s5 + $0x8] sm:$0xff] %vm1250_vm14, %v852_v48  ;;  %v1823_v51 = vsel %vm1250_vm14, %v852_v48, 0.0  ;;  %v1990_v52 = vmul.f32 %v852_v48, %v852_v48 }
  0xd2   :  { %v1824_v53 = vadd.f32 %v1823_v51, %v1822_v50  ;;  %v856_v54 = vpop.f32.mrf.mxu0 }
  0xd3   :  { %v2071_v56 = vsel %vm1250_vm14, %v1990_v52, 0.0  ;;  %v857_v57 = vadd.f32 %v3410_v23, %v856_v54  ;;  %v1051_v29 = vpop.f32.mrf.mxu1 }
  0xd4   :  { %v2072_v58 = vadd.f32 %v2071_v56, %v2070_v55  ;;  %v2433_v59 = vpop.f32.mrf.mxu0  ;;  %v3456_v32 = vadd.f32 %v3410_v23, %v1051_v29 }
  0xd5   :  { %1253 = vst.msk [vmem:[%s4379_s5 + $0x10] sm:$0xff] %vm1250_vm14, %v857_v57  ;;  %v1825_v60 = vsel %vm1250_vm14, %v857_v57, 0.0  ;;  %v1991_v61 = vmul.f32 %v857_v57, %v857_v57  ;;  %v2550_v35 = vpop.f32.mrf.mxu1 }
  0xd6   :  { %v1826_v62 = vadd.f32 %v1825_v60, %v1824_v53  ;;  %v861_v63 = vpop.f32.mrf.mxu0  ;;  %1292 = vst.msk [vmem:[%s4379_s5 + $0x148] sm:$0xff] %vm1250_vm14, %v3456_v32 }
  0xd7   :  { %v2073_v1 = vsel %vm1250_vm14, %v1991_v61, 0.0  ;;  %v862_v2 = vadd.f32 %v3410_v23, %v861_v63  ;;  %v1056_v40 = vpop.f32.mrf.mxu1 }
  0xd8   :  { %v2074_v3 = vadd.f32 %v2073_v1, %v2072_v58  ;;  %v2436_v6 = vpop.f32.mrf.mxu0  ;;  %v3471_v43 = vadd.f32 %v3410_v23, %v1056_v40 }
  0xd9   :  { %1254 = vst.msk [vmem:[%s4379_s5 + $0x18] sm:$0xff] %vm1250_vm14, %v862_v2  ;;  %v1827_v7 = vsel %vm1250_vm14, %v862_v2, 0.0  ;;  %v1992_v8 = vmul.f32 %v862_v2, %v862_v2  ;;  %v2553_v45 = vpop.f32.mrf.mxu1 }
  0xda   :  { %v1828_v9 = vadd.f32 %v1827_v7, %v1826_v62  ;;  %v866_v10 = vpop.f32.mrf.mxu0  ;;  %1293 = vst.msk [vmem:[%s4379_s5 + $0x150] sm:$0xff] %vm1250_vm14, %v3471_v43 }
  0xdb   :  { %v2075_v11 = vsel %vm1250_vm14, %v1992_v8, 0.0  ;;  %v867_v12 = vadd.f32 %v3410_v23, %v866_v10  ;;  %v1061_v49 = vpop.f32.mrf.mxu1 }
  0xdc   :  { %v2076_v13 = vadd.f32 %v2075_v11, %v2074_v3  ;;  %v2439_v14 = vpop.f32.mrf.mxu0  ;;  %v3486_v52 = vadd.f32 %v3410_v23, %v1061_v49 }
  0xdd   :  { %1255 = vst.msk [vmem:[%s4379_s5 + $0x20] sm:$0xff] %vm1250_vm14, %v867_v12  ;;  %v1829_v15 = vsel %vm1250_vm14, %v867_v12, 0.0  ;;  %v1993_v16 = vmul.f32 %v867_v12, %v867_v12  ;;  %v2556_v55 = vpop.f32.mrf.mxu1 }
  0xde   :  { %v1830_v17 = vadd.f32 %v1829_v15, %v1828_v9  ;;  %v871_v18 = vpop.f32.mrf.mxu0  ;;  %1294 = vst.msk [vmem:[%s4379_s5 + $0x158] sm:$0xff] %vm1250_vm14, %v3486_v52 }
  0xdf   :  { %v2077_v19 = vsel %vm1250_vm14, %v1993_v16, 0.0  ;;  %v872_v20 = vadd.f32 %v3410_v23, %v871_v18  ;;  %v1066_v60 = vpop.f32.mrf.mxu1 }
  0xe0   :  { %v2078_v21 = vadd.f32 %v2077_v19, %v2076_v13  ;;  %v2442_v22 = vpop.f32.mrf.mxu0  ;;  %v3505_v63 = vadd.f32 %v3410_v23, %v1066_v60 }
  0xe1   :  { %1256 = vst.msk [vmem:[%s4379_s5 + $0x28] sm:$0xff] %vm1250_vm14, %v872_v20  ;;  %v1831_v4 = vsel %vm1250_vm14, %v872_v20, 0.0  ;;  %v1994_v24 = vmul.f32 %v872_v20, %v872_v20  ;;  %v2559_v2 = vpop.f32.mrf.mxu1 }
  0xe2   :  { %v1832_v25 = vadd.f32 %v1831_v4, %v1830_v17  ;;  %v876_v26 = vpop.f32.mrf.mxu0  ;;  %1295 = vst.msk [vmem:[%s4379_s5 + $0x160] sm:$0xff] %vm1250_vm14, %v3505_v63 }
  0xe3   :  { %v2079_v27 = vsel %vm1250_vm14, %v1994_v24, 0.0  ;;  %v877_v28 = vadd.f32 %v3410_v23, %v876_v26  ;;  %v1071_v8 = vpop.f32.mrf.mxu1 }
  0xe4   :  { %v2080_v30 = vadd.f32 %v2079_v27, %v2078_v21  ;;  %v2445_v31 = vpop.f32.mrf.mxu0  ;;  %v3523_v10 = vadd.f32 %v3410_v23, %v1071_v8 }
  0xe5   :  { %1257 = vst.msk [vmem:[%s4379_s5 + $0x30] sm:$0xff] %vm1250_vm14, %v877_v28  ;;  %v1833_v33 = vsel %vm1250_vm14, %v877_v28, 0.0  ;;  %v1995_v34 = vmul.f32 %v877_v28, %v877_v28  ;;  %v2562_v12 = vpop.f32.mrf.mxu1 }
  0xe6   :  { %v1834_v36 = vadd.f32 %v1833_v33, %v1832_v25  ;;  %v881_v37 = vpop.f32.mrf.mxu0  ;;  %1296 = vst.msk [vmem:[%s4379_s5 + $0x168] sm:$0xff] %vm1250_vm14, %v3523_v10 }
  0xe7   :  { %v2081_v38 = vsel %vm1250_vm14, %v1995_v34, 0.0  ;;  %v882_v39 = vadd.f32 %v3410_v23, %v881_v37  ;;  %v1076_v16 = vpop.f32.mrf.mxu1 }
  0xe8   :  { %v2082_v41 = vadd.f32 %v2081_v38, %v2080_v30  ;;  %v2448_v42 = vpop.f32.mrf.mxu0  ;;  %v3543_v18 = vadd.f32 %v3410_v23, %v1076_v16 }
  0xe9   :  { %1258 = vst.msk [vmem:[%s4379_s5 + $0x38] sm:$0xff] %vm1250_vm14, %v882_v39  ;;  %v1835_v5 = vsel %vm1250_vm14, %v882_v39, 0.0  ;;  %v1996_v44 = vmul.f32 %v882_v39, %v882_v39  ;;  %v2565_v19 = vpop.f32.mrf.mxu1 }
  0xea   :  { %v1836_v46 = vadd.f32 %v1835_v5, %v1834_v36  ;;  %v886_v47 = vpop.f32.mrf.mxu0  ;;  %1297 = vst.msk [vmem:[%s4379_s5 + $0x170] sm:$0xff] %vm1250_vm14, %v3543_v18 }
  0xeb   :  { %v2083_v0 = vsel %vm1250_vm14, %v1996_v44, 0.0  ;;  %v887_v48 = vadd.f32 %v3410_v23, %v886_v47  ;;  %v1081_v22 = vpop.f32.mrf.mxu1 }
  0xec   :  { %v2084_v50 = vadd.f32 %v2083_v0, %v2082_v41  ;;  %v2451_v51 = vpop.f32.mrf.mxu0  ;;  %v3559_v24 = vadd.f32 %v3410_v23, %v1081_v22 }
  0xed   :  { %1259 = vst.msk [vmem:[%s4379_s5 + $0x40] sm:$0xff] %vm1250_vm14, %v887_v48  ;;  %v1837_v53 = vsel %vm1250_vm14, %v887_v48, 0.0  ;;  %v1997_v54 = vmul.f32 %v887_v48, %v887_v48  ;;  %v2568_v25 = vpop.f32.mrf.mxu1 }
  0xee   :  { %v1838_v56 = vadd.f32 %v1837_v53, %v1836_v46  ;;  %v891_v57 = vpop.f32.mrf.mxu0  ;;  %1298 = vst.msk [vmem:[%s4379_s5 + $0x178] sm:$0xff] %vm1250_vm14, %v3559_v24 }
  0xef   :  { %v2085_v58 = vsel %vm1250_vm14, %v1997_v54, 0.0  ;;  %v3500_v59 = vadd.f32 %v3410_v23, %v891_v57  ;;  %v1086_v28 = vpop.f32.mrf.mxu1 }
  0xf0   :  { %v3502_v61 = vadd.f32 %v2085_v58, %v2084_v50  ;;  %v2454_v62 = vpop.f32.mrf.mxu0  ;;  %v3575_v30 = vadd.f32 %v3410_v23, %v1086_v28 }
  0xf1   :  { %1260 = vst.msk [vmem:[%s4379_s5 + $0x48] sm:$0xff] %vm1250_vm14, %v3500_v59  ;;  %v1839_v1 = vsel %vm1250_vm14, %v3500_v59, 0.0  ;;  %v2571_v31 = vpop.f32.mrf.mxu1 }
  0xf2   :  { %v1840_v3 = vadd.f32 %v1839_v1, %v1838_v56  ;;  %v896_v6 = vpop.f32.mrf.mxu0  ;;  %1299 = vst.msk [vmem:[%s4379_s5 + $0x180] sm:$0xff] %vm1250_vm14, %v3575_v30 }
  0xf3   :  { %v3520_v7 = vadd.f32 %v3410_v23, %v896_v6  ;;  %v1091_v35 = vpop.f32.mrf.mxu1 }
  0xf4   :  { %v2457_v9 = vpop.f32.mrf.mxu0  ;;  %v3591_v37 = vadd.f32 %v3410_v23, %v1091_v35 }
  0xf5   :  { %1261 = vst.msk [vmem:[%s4379_s5 + $0x50] sm:$0xff] %vm1250_vm14, %v3520_v7  ;;  %v1841_v11 = vsel %vm1250_vm14, %v3520_v7, 0.0  ;;  %v2574_v38 = vpop.f32.mrf.mxu1 }
  0xf6   :  { %v3532_v13 = vadd.f32 %v1841_v11, %v1840_v3  ;;  %v901_v14 = vpop.f32.mrf.mxu0  ;;  %1300 = vst.msk [vmem:[%s4379_s5 + $0x188] sm:$0xff] %vm1250_vm14, %v3591_v37 }
  0xf7   :  { %v3540_v15 = vadd.f32 %v3410_v23, %v901_v14  ;;  %v1096_v41 = vpop.f32.mrf.mxu1 }
  0xf8   :  { %v2460_v17 = vpop.f32.mrf.mxu0  ;;  %v3607_v5 = vadd.f32 %v3410_v23, %v1096_v41 }
  0xf9   :  { %1262 = vst.msk [vmem:[%s4379_s5 + $0x58] sm:$0xff] %vm1250_vm14, %v3540_v15  ;;  %v2577_v44 = vpop.f32.mrf.mxu1 }
  0xfa   :  { %v906_v20 = vpop.f32.mrf.mxu0  ;;  %1301 = vst.msk [vmem:[%s4379_s5 + $0x190] sm:$0xff] %vm1250_vm14, %v3607_v5 }
  0xfb   :  { %v3556_v21 = vadd.f32 %v3410_v23, %v906_v20  ;;  %v1101_v47 = vpop.f32.mrf.mxu1 }
  0xfc   :  { %v2463_v4 = vpop.f32.mrf.mxu0  ;;  %v3623_v48 = vadd.f32 %v3410_v23, %v1101_v47 }
  0xfd   :  { %1263 = vst.msk [vmem:[%s4379_s5 + $0x60] sm:$0xff] %vm1250_vm14, %v3556_v21  ;;  %v2580_v49 = vpop.f32.mrf.mxu1 }
  0xfe   :  { %v911_v26 = vpop.f32.mrf.mxu0  ;;  %1302 = vst.msk [vmem:[%s4379_s5 + $0x198] sm:$0xff] %vm1250_vm14, %v3623_v48 }
  0xff   :  { %v3572_v27 = vadd.f32 %v3410_v23, %v911_v26  ;;  %v1106_v53 = vpop.f32.mrf.mxu1 }
 0x100   :  { %v2466_v29 = vpop.f32.mrf.mxu0  ;;  %v3639_v55 = vadd.f32 %v3410_v23, %v1106_v53  ;;  %v1998_v53 = vmul.f32 %v3500_v59, %v3500_v59 }
 0x101   :  { %1264 = vst.msk [vmem:[%s4379_s5 + $0x68] sm:$0xff] %vm1250_vm14, %v3572_v27  ;;  %v2583_v56 = vpop.f32.mrf.mxu1 }
 0x102   :  { %v916_v33 = vpop.f32.mrf.mxu0  ;;  %1303 = vst.msk [vmem:[%s4379_s5 + $0x1a0] sm:$0xff] %vm1250_vm14, %v3639_v55  ;;  %v2087_v59 = vsel %vm1250_vm14, %v1998_v53, 0.0 }
 0x103   :  { %v3588_v34 = vadd.f32 %v3410_v23, %v916_v33  ;;  %v1111_v60 = vpop.f32.mrf.mxu1 }
 0x104   :  { %v2469_v36 = vpop.f32.mrf.mxu0  ;;  %v3655_v1 = vadd.f32 %v3410_v23, %v1111_v60 }
 0x105   :  { %1265 = vst.msk [vmem:[%s4379_s5 + $0x70] sm:$0xff] %vm1250_vm14, %v3588_v34  ;;  %v2586_v2 = vpop.f32.mrf.mxu1 }
 0x106   :  { %v921_v39 = vpop.f32.mrf.mxu0  ;;  %1304 = vst.msk [vmem:[%s4379_s5 + $0x1a8] sm:$0xff] %vm1250_vm14, %v3655_v1 }
 0x107   :  { %v3604_v40 = vadd.f32 %v3410_v23, %v921_v39  ;;  %v1116_v8 = vpop.f32.mrf.mxu1 }
 0x108   :  { %v2472_v42 = vpop.f32.mrf.mxu0  ;;  %v3671_v11 = vadd.f32 %v3410_v23, %v1116_v8  ;;  %v2000_v8 = vmul.f32 %v3540_v15, %v3540_v15 }
 0x109   :  { %1266 = vst.msk [vmem:[%s4379_s5 + $0x78] sm:$0xff] %vm1250_vm14, %v3604_v40  ;;  %v2589_v12 = vpop.f32.mrf.mxu1 }
 0x10a   :  { %v926_v45 = vpop.f32.mrf.mxu0  ;;  %1305 = vst.msk [vmem:[%s4379_s5 + $0x1b0] sm:$0xff] %vm1250_vm14, %v3671_v11 }
 0x10b   :  { %v3620_v46 = vadd.f32 %v3410_v23, %v926_v45  ;;  %v1121_v17 = vpop.f32.mrf.mxu1 }
 0x10c   :  { %v2475_v0 = vpop.f32.mrf.mxu0  ;;  %v3687_v20 = vadd.f32 %v3410_v23, %v1121_v17 }
 0x10d   :  { %1267 = vst.msk [vmem:[%s4379_s5 + $0x80] sm:$0xff] %vm1250_vm14, %v3620_v46  ;;  %v2592_v22 = vpop.f32.mrf.mxu1 }
 0x10e   :  { %v931_v50 = vpop.f32.mrf.mxu0  ;;  %1306 = vst.msk [vmem:[%s4379_s5 + $0x1b8] sm:$0xff] %vm1250_vm14, %v3687_v20  ;;  %v2001_v22 = vmul.f32 %v3556_v21, %v3556_v21 }
 0x10f   :  { %v3636_v51 = vadd.f32 %v3410_v23, %v931_v50  ;;  %v1126_v26 = vpop.f32.mrf.mxu1 }
 0x110   :  { %v2478_v54 = vpop.f32.mrf.mxu0  ;;  %v3703_v29 = vadd.f32 %v3410_v23, %v1126_v26  ;;  %v2088_v26 = vadd.f32 %v2087_v59, %v3502_v61 }
 0x111   :  { %1268 = vst.msk [vmem:[%s4379_s5 + $0x88] sm:$0xff] %vm1250_vm14, %v3636_v51  ;;  %v2595_v31 = vpop.f32.mrf.mxu1 }
 0x112   :  { %v936_v57 = vpop.f32.mrf.mxu0  ;;  %1307 = vst.msk [vmem:[%s4379_s5 + $0x1c0] sm:$0xff] %vm1250_vm14, %v3703_v29  ;;  %v1845_v31 = vsel %vm1250_vm14, %v3556_v21, 0.0  ;;  %v2003_v21 = vmul.f32 %v3588_v34, %v3588_v34 }
 0x113   :  { %v3652_v58 = vadd.f32 %v3410_v23, %v936_v57  ;;  %v1131_v36 = vpop.f32.mrf.mxu1 }
 0x114   :  { %v2481_v62 = vpop.f32.mrf.mxu0  ;;  %v3719_v39 = vadd.f32 %v3410_v23, %v1131_v36 }
 0x115   :  { %1269 = vst.msk [vmem:[%s4379_s5 + $0x90] sm:$0xff] %vm1250_vm14, %v3652_v58  ;;  %v2598_v41 = vpop.f32.mrf.mxu1  ;;  %v1999_v62 = vmul.f32 %v3520_v7, %v3520_v7 }
 0x116   :  { %v941_v3 = vpop.f32.mrf.mxu0  ;;  %1308 = vst.msk [vmem:[%s4379_s5 + $0x1c8] sm:$0xff] %vm1250_vm14, %v3719_v39 }
 0x117   :  { %v3668_v6 = vadd.f32 %v3410_v23, %v941_v3  ;;  %v1136_v45 = vpop.f32.mrf.mxu1  ;;  %v2089_v17 = vsel %vm1250_vm14, %v1999_v62, 0.0  ;;  %v2004_v62 = vmul.f32 %v3604_v40, %v3604_v40 }
 0x118   :  { %v2484_v9 = vpop.f32.mrf.mxu0  ;;  %v3735_v0 = vadd.f32 %v3410_v23, %v1136_v45  ;;  %v2090_v61 = vadd.f32 %v2089_v17, %v2088_v26  ;;  %v2097_v17 = vsel %vm1250_vm14, %v2003_v21, 0.0  ;;  %v1855_v21 = vsel %vm1250_vm14, %v3636_v51, 0.0 }
 0x119   :  { %1270 = vst.msk [vmem:[%s4379_s5 + $0x98] sm:$0xff] %vm1250_vm14, %v3668_v6  ;;  %v2601_v49 = vpop.f32.mrf.mxu1 }
 0x11a   :  { %v946_v14 = vpop.f32.mrf.mxu0  ;;  %1309 = vst.msk [vmem:[%s4379_s5 + $0x1d0] sm:$0xff] %vm1250_vm14, %v3735_v0  ;;  %v1847_v49 = vsel %vm1250_vm14, %v3572_v27, 0.0 }
 0x11b   :  { %v3684_v16 = vadd.f32 %v3410_v23, %v946_v14  ;;  %v1141_v56 = vpop.f32.mrf.mxu1 }
 0x11c   :  { %v2487_v19 = vpop.f32.mrf.mxu0  ;;  %v3753_v60 = vadd.f32 %v3410_v23, %v1141_v56 }
 0x11d   :  { %1271 = vst.msk [vmem:[%s4379_s5 + $0xa0] sm:$0xff] %vm1250_vm14, %v3684_v16  ;;  %v2604_v2 = vpop.f32.mrf.mxu1  ;;  %v1843_v19 = vsel %vm1250_vm14, %v3540_v15, 0.0  ;;  %v2091_v15 = vsel %vm1250_vm14, %v2000_v8, 0.0 }
 0x11e   :  { %v951_v4 = vpop.f32.mrf.mxu0  ;;  %1310 = vst.msk [vmem:[%s4379_s5 + $0x1d8] sm:$0xff] %vm1250_vm14, %v3753_v60  ;;  %v1844_v41 = vadd.f32 %v1843_v19, %v3532_v13  ;;  %v2092_v13 = vadd.f32 %v2091_v15, %v2090_v61  ;;  %v1851_v19 = vsel %vm1250_vm14, %v3604_v40, 0.0  ;;  %v2099_v40 = vsel %vm1250_vm14, %v2004_v62, 0.0 }
 0x11f   :  { %v3700_v25 = vadd.f32 %v3410_v23, %v951_v4  ;;  %v1146_v9 = vpop.f32.mrf.mxu1  ;;  %v1853_v15 = vsel %vm1250_vm14, %v3620_v46, 0.0 }
 0x120   :  { %v2490_v28 = vpop.f32.mrf.mxu0  ;;  %v3774_v14 = vadd.f32 %v3410_v23, %v1146_v9  ;;  %v1846_v53 = vadd.f32 %v1845_v31, %v1844_v41  ;;  %v2006_v31 = vmul.f32 %v3636_v51, %v3636_v51 }
 0x121   :  { %1272 = vst.msk [vmem:[%s4379_s5 + $0xa8] sm:$0xff] %vm1250_vm14, %v3700_v25  ;;  %v2607_v4 = vpop.f32.mrf.mxu1 }
 0x122   :  { %v956_v33 = vpop.f32.mrf.mxu0  ;;  %1311 = vst.msk [vmem:[%s4379_s5 + $0x1e0] sm:$0xff] %vm1250_vm14, %v3774_v14  ;;  %v1848_v8 = vadd.f32 %v1847_v49, %v1846_v53  ;;  %v2103_v51 = vsel %vm1250_vm14, %v2006_v31, 0.0 }
 0x123   :  { %v3716_v35 = vadd.f32 %v3410_v23, %v956_v33  ;;  %v2002_v33 = vmul.f32 %v3572_v27, %v3572_v27 }
 0x124   :  { %v2493_v38 = vpop.f32.mrf.mxu0 }
 0x125   :  { %1273 = vst.msk [vmem:[%s4379_s5 + $0xb0] sm:$0xff] %vm1250_vm14, %v3716_v35  ;;  %v1151_v38 = vpop.f32.mrf.mxu1  ;;  %v2095_v27 = vsel %vm1250_vm14, %v2002_v33, 0.0 }
 0x126   :  { %v961_v42 = vpop.f32.mrf.mxu0  ;;  %v3802_v45 = vadd.f32 %v3410_v23, %v1151_v38 }
 0x127   :  { %v3732_v44 = vadd.f32 %v3410_v23, %v961_v42 }
 0x128   :  { %v2496_v47 = vpop.f32.mrf.mxu0  ;;  %1312 = vst.msk [vmem:[%s4379_s5 + $0x1e8] sm:$0xff] %vm1250_vm14, %v3802_v45 }
 0x129   :  { %1274 = vst.msk [vmem:[%s4379_s5 + $0xb8] sm:$0xff] %vm1250_vm14, %v3732_v44  ;;  %v2093_v47 = vsel %vm1250_vm14, %v2001_v22, 0.0 }
 0x12a   :  { %v966_v50 = vpop.f32.mrf.mxu0  ;;  %v2094_v59 = vadd.f32 %v2093_v47, %v2092_v13 }
 0x12b   :  { %v3750_v54 = vadd.f32 %v3410_v23, %v966_v50  ;;  %v2610_v50 = vpop.f32.mrf.mxu1 }
 0x12c   :  { %v2499_v57 = vpop.f32.mrf.mxu0  ;;  %v2096_v4 = vadd.f32 %v2095_v27, %v2094_v59  ;;  %v1857_v27 = vsel %vm1250_vm14, %v3652_v58, 0.0 }
 0x12d   :  { %1275 = vst.msk [vmem:[%s4379_s5 + $0xc0] sm:$0xff] %vm1250_vm14, %v3750_v54  ;;  %v1849_v57 = vsel %vm1250_vm14, %v3588_v34, 0.0  ;;  %v2005_v34 = vmul.f32 %v3620_v46, %v3620_v46  ;;  %v2007_v46 = vmul.f32 %v3652_v58, %v3652_v58  ;;  %v2009_v58 = vmul.f32 %v3684_v16, %v3684_v16 }
 0x12e   :  { %v971_v3 = vpop.f32.mrf.mxu0  ;;  %v1850_v26 = vadd.f32 %v1849_v57, %v1848_v8  ;;  %v2098_v61 = vadd.f32 %v2097_v17, %v2096_v4  ;;  %v2008_v57 = vmul.f32 %v3668_v6, %v3668_v6 }
 0x12f   :  { %v3771_v7 = vadd.f32 %v3410_v23, %v971_v3  ;;  %v1156_v3 = vpop.f32.mrf.mxu1  ;;  %v2101_v49 = vsel %vm1250_vm14, %v2005_v34, 0.0  ;;  %v1859_v34 = vsel %vm1250_vm14, %v3668_v6, 0.0 }
 0x130   :  { %v2502_v12 = vpop.f32.mrf.mxu0  ;;  %v1852_v41 = vadd.f32 %v1851_v19, %v1850_v26  ;;  %v2100_v13 = vadd.f32 %v2099_v40, %v2098_v61  ;;  %v2105_v19 = vsel %vm1250_vm14, %v2007_v46, 0.0  ;;  %v2107_v6 = vsel %vm1250_vm14, %v2008_v57, 0.0 }
 0x131   :  { %1276 = vst.msk [vmem:[%s4379_s5 + $0xc8] sm:$0xff] %vm1250_vm14, %v3771_v7  ;;  %v3828_v12 = vadd.f32 %v3410_v23, %v1156_v3  ;;  %v2613_v22 = vpop.f32.mrf.mxu1  ;;  %v1861_v40 = vsel %vm1250_vm14, %v3684_v16, 0.0  ;;  %v1863_v46 = vsel %vm1250_vm14, %v3700_v25, 0.0  ;;  %v2011_v16 = vmul.f32 %v3716_v35, %v3716_v35 }
 0x132   :  { %v976_v28 = vpop.f32.mrf.mxu0  ;;  %v1854_v53 = vadd.f32 %v1853_v15, %v1852_v41  ;;  %v2102_v59 = vadd.f32 %v2101_v49, %v2100_v13  ;;  %v2010_v15 = vmul.f32 %v3700_v25, %v3700_v25 }
 0x133   :  { %v3798_v36 = vadd.f32 %v3410_v23, %v976_v28  ;;  %1313 = vst.msk [vmem:[%s4379_s5 + $0x1f0] sm:$0xff] %vm1250_vm14, %v3828_v12  ;;  %v1161_v38 = vpop.f32.mrf.mxu1 }
 0x134   :  { %v2505_v42 = vpop.f32.mrf.mxu0  ;;  %v3854_v47 = vadd.f32 %v3410_v23, %v1161_v38  ;;  %v1856_v8 = vadd.f32 %v1855_v21, %v1854_v53  ;;  %v2104_v4 = vadd.f32 %v2103_v51, %v2102_v59  ;;  %v2109_v21 = vsel %vm1250_vm14, %v2009_v58, 0.0 }
 0x135   :  { %1277 = vst.msk [vmem:[%s4379_s5 + $0xd0] sm:$0xff] %vm1250_vm14, %v3798_v36  ;;  %v2616_v50 = vpop.f32.mrf.mxu1  ;;  %v2111_v25 = vsel %vm1250_vm14, %v2010_v15, 0.0  ;;  %v1865_v51 = vsel %vm1250_vm14, %v3716_v35, 0.0  ;;  %v1867_v58 = vsel %vm1250_vm14, %v3732_v44, 0.0  ;;  %v2013_v35 = vmul.f32 %v3750_v54, %v3750_v54 }
 0x136   :  { %v981_v56 = vpop.f32.mrf.mxu0  ;;  %1314 = vst.msk [vmem:[%s4379_s5 + $0x1f8] sm:$0xff] %vm1250_vm14, %v3854_v47  ;;  %v1858_v26 = vadd.f32 %v1857_v27, %v1856_v8  ;;  %v2106_v61 = vadd.f32 %v2105_v19, %v2104_v4  ;;  %v2012_v27 = vmul.f32 %v3732_v44, %v3732_v44 }
 0x137   :  { %v3825_v2 = vadd.f32 %v3410_v23, %v981_v56  ;;  %v1166_v3 = vpop.f32.mrf.mxu1 }
 0x138   :  { %v2508_v9 = vpop.f32.mrf.mxu0  ;;  %v3880_v17 = vadd.f32 %v3410_v23, %v1166_v3  ;;  %v1860_v41 = vadd.f32 %v1859_v34, %v1858_v26  ;;  %v2108_v13 = vadd.f32 %v2107_v6, %v2106_v61  ;;  %v2113_v34 = vsel %vm1250_vm14, %v2011_v16, 0.0 }
 0x139   :  { %1278 = vst.msk [vmem:[%s4379_s5 + $0xd8] sm:$0xff] %vm1250_vm14, %v3825_v2  ;;  %v2619_v22 = vpop.f32.mrf.mxu1  ;;  %v2115_v44 = vsel %vm1250_vm14, %v2012_v27, 0.0  ;;  %v1869_v6 = vsel %vm1250_vm14, %v3750_v54, 0.0  ;;  %v1871_v16 = vsel %vm1250_vm14, %v3771_v7, 0.0  ;;  %v2015_v54 = vmul.f32 %v3798_v36, %v3798_v36 }
 0x13a   :  { %v986_v28 = vpop.f32.mrf.mxu0  ;;  %1315 = vst.msk [vmem:[%s4379_s5 + $0x200] sm:$0xff] %vm1250_vm14, %v3880_v17  ;;  %v1862_v53 = vadd.f32 %v1861_v40, %v1860_v41  ;;  %v2110_v59 = vadd.f32 %v2109_v21, %v2108_v13  ;;  %v2014_v40 = vmul.f32 %v3771_v7, %v3771_v7 }
 0x13b   :  { %v3851_v33 = vadd.f32 %v3410_v23, %v986_v28  ;;  %v1171_v38 = vpop.f32.mrf.mxu1 }
 0x13c   :  { %v2511_v42 = vpop.f32.mrf.mxu0  ;;  %v3906_v49 = vadd.f32 %v3410_v23, %v1171_v38  ;;  %v1864_v8 = vadd.f32 %v1863_v46, %v1862_v53  ;;  %v2112_v4 = vadd.f32 %v2111_v25, %v2110_v59  ;;  %v2117_v46 = vsel %vm1250_vm14, %v2013_v35, 0.0 }
 0x13d   :  { %1279 = vst.msk [vmem:[%s4379_s5 + $0xe0] sm:$0xff] %vm1250_vm14, %v3851_v33  ;;  %v2622_v50 = vpop.f32.mrf.mxu1  ;;  %v2119_v7 = vsel %vm1250_vm14, %v2014_v40, 0.0  ;;  %v1873_v25 = vsel %vm1250_vm14, %v3798_v36, 0.0  ;;  %v1875_v35 = vsel %vm1250_vm14, %v3825_v2, 0.0  ;;  %v2017_v36 = vmul.f32 %v3851_v33, %v3851_v33 }
 0x13e   :  { %v991_v56 = vpop.f32.mrf.mxu0  ;;  %1316 = vst.msk [vmem:[%s4379_s5 + $0x208] sm:$0xff] %vm1250_vm14, %v3906_v49  ;;  %v1866_v26 = vadd.f32 %v1865_v51, %v1864_v8  ;;  %v2114_v61 = vadd.f32 %v2113_v34, %v2112_v4  ;;  %v2016_v51 = vmul.f32 %v3825_v2, %v3825_v2 }
 0x13f   :  { %v3877_v62 = vadd.f32 %v3410_v23, %v991_v56  ;;  %v1176_v3 = vpop.f32.mrf.mxu1 }
 0x140   :  { %v2514_v9 = vpop.f32.mrf.mxu0  ;;  %v3932_v19 = vadd.f32 %v3410_v23, %v1176_v3  ;;  %v1868_v41 = vadd.f32 %v1867_v58, %v1866_v26  ;;  %v2116_v13 = vadd.f32 %v2115_v44, %v2114_v61  ;;  %v2121_v58 = vsel %vm1250_vm14, %v2015_v54, 0.0 }
 0x141   :  { %1280 = vst.msk [vmem:[%s4379_s5 + $0xe8] sm:$0xff] %vm1250_vm14, %v3877_v62  ;;  %v2625_v22 = vpop.f32.mrf.mxu1  ;;  %v2123_v2 = vsel %vm1250_vm14, %v2016_v51, 0.0  ;;  %v1877_v44 = vsel %vm1250_vm14, %v3851_v33, 0.0  ;;  %v1879_v54 = vsel %vm1250_vm14, %v3877_v62, 0.0 }
 0x142   :  { %v996_v28 = vpop.f32.mrf.mxu0  ;;  %1317 = vst.msk [vmem:[%s4379_s5 + $0x210] sm:$0xff] %vm1250_vm14, %v3932_v19  ;;  %v1870_v53 = vadd.f32 %v1869_v6, %v1868_v41  ;;  %v2118_v59 = vadd.f32 %v2117_v46, %v2116_v13  ;;  %v2018_v6 = vmul.f32 %v3877_v62, %v3877_v62 }
 0x143   :  { %v3903_v31 = vadd.f32 %v3410_v23, %v996_v28  ;;  %v1181_v38 = vpop.f32.mrf.mxu1 }
 0x144   :  { %v2517_v42 = vpop.f32.mrf.mxu0  ;;  %v3958_v21 = vadd.f32 %v3410_v23, %v1181_v38  ;;  %v1872_v8 = vadd.f32 %v1871_v16, %v1870_v53  ;;  %v2120_v4 = vadd.f32 %v2119_v7, %v2118_v59  ;;  %v2125_v16 = vsel %vm1250_vm14, %v2017_v36, 0.0 }
 0x145   :  { %1281 = vst.msk [vmem:[%s4379_s5 + $0xf0] sm:$0xff] %vm1250_vm14, %v3903_v31  ;;  %v2628_v50 = vpop.f32.mrf.mxu1  ;;  %v2019_v33 = vmul.f32 %v3903_v31, %v3903_v31  ;;  %v2127_v62 = vsel %vm1250_vm14, %v2018_v6, 0.0  ;;  %v1881_v7 = vsel %vm1250_vm14, %v3903_v31, 0.0 }
 0x146   :  { %v1001_v56 = vpop.f32.mrf.mxu0  ;;  %1318 = vst.msk [vmem:[%s4379_s5 + $0x218] sm:$0xff] %vm1250_vm14, %v3958_v21  ;;  %v1874_v26 = vadd.f32 %v1873_v25, %v1872_v8  ;;  %v2122_v61 = vadd.f32 %v2121_v58, %v2120_v4 }
 0x147   :  { %v3929_v57 = vadd.f32 %v3410_v23, %v1001_v56  ;;  %v1186_v3 = vpop.f32.mrf.mxu1 }
 0x148   :  { %v2520_v9 = vpop.f32.mrf.mxu0  ;;  %v3982_v34 = vadd.f32 %v3410_v23, %v1186_v3  ;;  %v1876_v41 = vadd.f32 %v1875_v35, %v1874_v26  ;;  %v2124_v13 = vadd.f32 %v2123_v2, %v2122_v61  ;;  %v2129_v35 = vsel %vm1250_vm14, %v2019_v33, 0.0 }
 0x149   :  { %1282 = vst.msk [vmem:[%s4379_s5 + $0xf8] sm:$0xff] %vm1250_vm14, %v3929_v57  ;;  %v2631_v22 = vpop.f32.mrf.mxu1  ;;  %v2020_v25 = vmul.f32 %v3929_v57, %v3929_v57  ;;  %v1883_v36 = vsel %vm1250_vm14, %v3929_v57, 0.0 }
 0x14a   :  { %v1006_v28 = vpop.f32.mrf.mxu0  ;;  %1319 = vst.msk [vmem:[%s4379_s5 + $0x220] sm:$0xff] %vm1250_vm14, %v3982_v34  ;;  %v1878_v53 = vadd.f32 %v1877_v44, %v1876_v41  ;;  %v2126_v59 = vadd.f32 %v2125_v16, %v2124_v13 }
 0x14b   :  { %v3955_v15 = vadd.f32 %v3410_v23, %v1006_v28  ;;  %v1191_v38 = vpop.f32.mrf.mxu1  ;;  %v2131_v57 = vsel %vm1250_vm14, %v2020_v25, 0.0 }
 0x14c   :  { %v2523_v42 = vpop.f32.mrf.mxu0  ;;  %v4005_v46 = vadd.f32 %v3410_v23, %v1191_v38  ;;  %v1880_v8 = vadd.f32 %v1879_v54, %v1878_v53  ;;  %v2128_v4 = vadd.f32 %v2127_v62, %v2126_v59 }
 0x14d   :  { %1283 = vst.msk [vmem:[%s4379_s5 + $0x100] sm:$0xff] %vm1250_vm14, %v3955_v15  ;;  %v2634_v50 = vpop.f32.mrf.mxu1  ;;  %v2021_v31 = vmul.f32 %v3955_v15, %v3955_v15  ;;  %v1885_v2 = vsel %vm1250_vm14, %v3955_v15, 0.0 }
 0x14e   :  { %v1011_v56 = vpop.f32.mrf.mxu0  ;;  %1320 = vst.msk [vmem:[%s4379_s5 + $0x228] sm:$0xff] %vm1250_vm14, %v4005_v46  ;;  %v1882_v26 = vadd.f32 %v1881_v7, %v1880_v8  ;;  %v2130_v61 = vadd.f32 %v2129_v35, %v2128_v4 }
 0x14f   :  { %v1012_v27 = vadd.f32 %v3410_v23, %v1011_v56  ;;  %v1196_v3 = vpop.f32.mrf.mxu1  ;;  %v2133_v54 = vsel %vm1250_vm14, %v2021_v31, 0.0 }
 0x150   :  { %v2526_v9 = vpop.f32.mrf.mxu0  ;;  %v4028_v58 = vadd.f32 %v3410_v23, %v1196_v3  ;;  %v1884_v41 = vadd.f32 %v1883_v36, %v1882_v26  ;;  %v2132_v13 = vadd.f32 %v2131_v57, %v2130_v61 }
 0x151   :  { %1284 = vst.msk [vmem:[%s4379_s5 + $0x108] sm:$0xff] %vm1250_vm14, %v1012_v27  ;;  %v2637_v22 = vpop.f32.mrf.mxu1  ;;  %v2022_v44 = vmul.f32 %v1012_v27, %v1012_v27  ;;  %v1887_v33 = vsel %vm1250_vm14, %v1012_v27, 0.0 }
 0x152   :  { %v1016_v28 = vpop.f32.mrf.mxu0  ;;  %1321 = vst.msk [vmem:[%s4379_s5 + $0x230] sm:$0xff] %vm1250_vm14, %v4028_v58  ;;  %v1886_v53 = vadd.f32 %v1885_v2, %v1884_v41  ;;  %v2134_v59 = vadd.f32 %v2133_v54, %v2132_v13 }
 0x153   :  { %v1017_v40 = vadd.f32 %v3410_v23, %v1016_v28  ;;  %v1201_v38 = vpop.f32.mrf.mxu1  ;;  %v2135_v62 = vsel %vm1250_vm14, %v2022_v44, 0.0 }
 0x154   :  { %v2529_v42 = vpop.f32.mrf.mxu0  ;;  %v4049_v16 = vadd.f32 %v3410_v23, %v1201_v38  ;;  %v1888_v8 = vadd.f32 %v1887_v33, %v1886_v53  ;;  %v2136_v4 = vadd.f32 %v2135_v62, %v2134_v59 }
 0x155   :  { %1285 = vst.msk [vmem:[%s4379_s5 + $0x110] sm:$0xff] %vm1250_vm14, %v1017_v40  ;;  %v2023_v50 = vmul.f32 %v1017_v40, %v1017_v40  ;;  %v2640_v15 = vpop.f32.mrf.mxu1  ;;  %v1889_v27 = vsel %vm1250_vm14, %v1017_v40, 0.0 }
 0x156   :  { %v1021_v56 = vpop.f32.mrf.mxu0  ;;  %1322 = vst.msk [vmem:[%s4379_s5 + $0x238] sm:$0xff] %vm1250_vm14, %v4049_v16  ;;  %v1890_v26 = vadd.f32 %v1889_v27, %v1888_v8 }
 0x157   :  { %v1022_v51 = vadd.f32 %v3410_v23, %v1021_v56  ;;  %v1206_v3 = vpop.f32.mrf.mxu1  ;;  %v2137_v36 = vsel %vm1250_vm14, %v2023_v50, 0.0 }
 0x158   :  { %v2532_v9 = vpop.f32.mrf.mxu0  ;;  %v4066_v35 = vadd.f32 %v3410_v23, %v1206_v3  ;;  %v2138_v61 = vadd.f32 %v2137_v36, %v2136_v4 }
 0x159   :  { %1286 = vst.msk [vmem:[%s4379_s5 + $0x118] sm:$0xff] %vm1250_vm14, %v1022_v51  ;;  %v2024_v7 = vmul.f32 %v1022_v51, %v1022_v51  ;;  %v1891_v31 = vsel %vm1250_vm14, %v1022_v51, 0.0  ;;  %v2643_v40 = vpop.f32.mrf.mxu1 }
 0x15a   :  { %v1026_v28 = vpop.f32.mrf.mxu0  ;;  %1323 = vst.msk [vmem:[%s4379_s5 + $0x240] sm:$0xff] %vm1250_vm14, %v4066_v35  ;;  %v1892_v41 = vadd.f32 %v1891_v31, %v1890_v26 }
 0x15b   :  { %v1027_v6 = vadd.f32 %v3410_v23, %v1026_v28  ;;  %v2139_v57 = vsel %vm1250_vm14, %v2024_v7, 0.0  ;;  %v1211_v38 = vpop.f32.mrf.mxu1 }
 0x15c   :  { %v2535_v42 = vpop.f32.mrf.mxu0  ;;  %v4083_v54 = vadd.f32 %v3410_v23, %v1211_v38  ;;  %v2140_v13 = vadd.f32 %v2139_v57, %v2138_v61 }
 0x15d   :  { %1287 = vst.msk [vmem:[%s4379_s5 + $0x120] sm:$0xff] %vm1250_vm14, %v1027_v6  ;;  %v2025_v22 = vmul.f32 %v1027_v6, %v1027_v6  ;;  %v1893_v51 = vsel %vm1250_vm14, %v1027_v6, 0.0  ;;  %v2646_v15 = vpop.f32.mrf.mxu1 }
 0x15e   :  { %v1031_v56 = vpop.f32.mrf.mxu0  ;;  %v1894_v53 = vadd.f32 %v1893_v51, %v1892_v41  ;;  %1324 = vst.msk [vmem:[%s4379_s5 + $0x248] sm:$0xff] %vm1250_vm14, %v4083_v54 }
 0x15f   :  { %v1032_v25 = vadd.f32 %v3410_v23, %v1031_v56  ;;  %v2141_v33 = vsel %vm1250_vm14, %v2025_v22, 0.0 }
 0x160   :  { %v2538_v9 = vpop.f32.mrf.mxu0  ;;  %v2142_v3 = vadd.f32 %v2141_v33, %v2140_v13 }
 0x161   :  { %1288 = vst.msk [vmem:[%s4379_s5 + $0x128] sm:$0xff] %vm1250_vm14, %v1032_v25  ;;  %v2026_v2 = vmul.f32 %v1032_v25, %v1032_v25  ;;  %v1895_v50 = vsel %vm1250_vm14, %v1032_v25, 0.0  ;;  %v1216_v25 = vpop.f32.mrf.mxu1 }
 0x162   :  { %v1036_v28 = vpop.f32.mrf.mxu0  ;;  %v1896_v59 = vadd.f32 %v1895_v50, %v1894_v53  ;;  %v4100_v9 = vadd.f32 %v3410_v23, %v1216_v25  ;;  %v2031_v53 = vmul.f32 %v3471_v43, %v3471_v43  ;;  %v2678_v25 = vld [vmem:[%s4378_s4] ss:$0 sm:$0xff] }
 0x163   :  { %v1037_v44 = vadd.f32 %v3410_v23, %v1036_v28  ;;  %v2143_v62 = vsel %vm1250_vm14, %v2026_v2, 0.0  ;;  %v2649_v40 = vpop.f32.mrf.mxu1 }
 0x164   :  { %v2541_v42 = vpop.f32.mrf.mxu0  ;;  %v2144_v4 = vadd.f32 %v2143_v62, %v2142_v3  ;;  %1325 = vst.msk [vmem:[%s4379_s5 + $0x250] sm:$0xff] %vm1250_vm14, %v4100_v9  ;;  %v2153_v40 = vsel %vm1250_vm14, %v2031_v53, 0.0 }
 0x165   :  { %1289 = vst.msk [vmem:[%s4379_s5 + $0x130] sm:$0xff] %vm1250_vm14, %v1037_v44  ;;  %v2027_v6 = vmul.f32 %v1037_v44, %v1037_v44  ;;  %v1897_v27 = vsel %vm1250_vm14, %v1037_v44, 0.0  ;;  %v1221_v2 = vpop.f32.mrf.mxu1  ;;  %v2030_v42 = vmul.f32 %v3456_v32, %v3456_v32 }
 0x166   :  { %v1041_v56 = vpop.f32.mrf.mxu0  ;;  %v1898_v26 = vadd.f32 %v1897_v27, %v1896_v59  ;;  %v4116_v41 = vadd.f32 %v3410_v23, %v1221_v2 }
 0x167   :  { %v1042_v7 = vadd.f32 %v3410_v23, %v1041_v56  ;;  %v2145_v36 = vsel %vm1250_vm14, %v2027_v6, 0.0  ;;  %v2652_v6 = vpop.f32.mrf.mxu1  ;;  %v2151_v59 = vsel %vm1250_vm14, %v2030_v42, 0.0 }
 0x168   :  { %v2544_v8 = vpop.f32.mrf.mxu0  ;;  %v2146_v44 = vadd.f32 %v2145_v36, %v2144_v4  ;;  %1326 = vst.msk [vmem:[%s4379_s5 + $0x258] sm:$0xff] %vm1250_vm14, %v4116_v41  ;;  %v1907_v4 = vsel %vm1250_vm14, %v3486_v52, 0.0 }
 0x169   :  { %1290 = vst.msk [vmem:[%s4379_s5 + $0x138] sm:$0xff] %vm1250_vm14, %v1042_v7  ;;  %v1899_v31 = vsel %vm1250_vm14, %v1042_v7, 0.0  ;;  %v2028_v22 = vmul.f32 %v1042_v7, %v1042_v7  ;;  %v1226_v62 = vpop.f32.mrf.mxu1  ;;  %v1905_v8 = vsel %vm1250_vm14, %v3471_v43, 0.0  ;;  %v2033_v43 = vmul.f32 %v3505_v63, %v3505_v63 }
 0x16a   :  { %v1046_v28 = vpop.f32.mrf.mxu0  ;;  %v1900_v38 = vadd.f32 %v1899_v31, %v1898_v26  ;;  %v4138_v3 = vadd.f32 %v2678_v25, %v1226_v62  ;;  %v2036_v62 = vmul.f32 %v3559_v24, %v3559_v24 }
 0x16b   :  { %v2147_v57 = vsel %vm1250_vm14, %v2028_v22, 0.0  ;;  %v1047_v51 = vadd.f32 %v3410_v23, %v1046_v28  ;;  %v1903_v23 = vsel %vm1250_vm14, %v3456_v32, 0.0  ;;  %v2032_v32 = vmul.f32 %v3486_v52, %v3486_v52  ;;  %v2655_v36 = vpop.f32.mrf.mxu1 }
 0x16c   :  { %v2547_v61 = vpop.f32.mrf.mxu0  ;;  %v2148_v15 = vadd.f32 %v2147_v57, %v2146_v44  ;;  %1327 = vst.msk [vmem:[%s4379_s5 + $0x260] sm:$0xff] %vm1250_vm14, %v4138_v3  ;;  %v1909_v44 = vsel %vm1250_vm14, %v3505_v63, 0.0  ;;  %v2157_v52 = vsel %vm1250_vm14, %v2033_v43, 0.0  ;;  %v2035_v63 = vmul.f32 %v3543_v18, %v3543_v18 }
 0x16d   :  { %1291 = vst.msk [vmem:[%s4379_s5 + $0x140] sm:$0xff] %vm1250_vm14, %v1047_v51  ;;  %v1901_v33 = vsel %vm1250_vm14, %v1047_v51, 0.0  ;;  %v2029_v50 = vmul.f32 %v1047_v51, %v1047_v51  ;;  %v1231_v26 = vpop.f32.mrf.mxu1  ;;  %v2155_v2 = vsel %vm1250_vm14, %v2032_v32, 0.0  ;;  %v2038_v43 = vmul.f32 %v3591_v37, %v3591_v37 }
 0x16e   :  { %v1902_v13 = vadd.f32 %v1901_v33, %v1900_v38  ;;  %v4155_v51 = vadd.f32 %v2678_v25, %v1231_v26  ;;  %v2034_v38 = vmul.f32 %v3523_v10, %v3523_v10 }
 0x16f   :  { %v2149_v56 = vsel %vm1250_vm14, %v2029_v50, 0.0  ;;  %v2658_v61 = vpop.f32.mrf.mxu1  ;;  %v1911_v50 = vsel %vm1250_vm14, %v3523_v10, 0.0  ;;  %v2161_v10 = vsel %vm1250_vm14, %v2035_v63, 0.0 }
 0x170   :  { %v1904_v27 = vadd.f32 %v1903_v23, %v1902_v13  ;;  %v2150_v7 = vadd.f32 %v2149_v56, %v2148_v15  ;;  %1328 = vst.msk [vmem:[%s4379_s5 + $0x268] sm:$0xff] %vm1250_vm14, %v4155_v51  ;;  %v2159_v53 = vsel %vm1250_vm14, %v2034_v38, 0.0  ;;  %v1913_v56 = vsel %vm1250_vm14, %v3543_v18, 0.0 }
 0x171   :  { %v1236_v6 = vpop.f32.mrf.mxu1  ;;  %v2037_v18 = vmul.f32 %v3575_v30, %v3575_v30 }
 0x172   :  { %v1906_v31 = vadd.f32 %v1905_v8, %v1904_v27  ;;  %v2152_v22 = vadd.f32 %v2151_v59, %v2150_v7  ;;  %v4172_v23 = vadd.f32 %v2678_v25, %v1236_v6  ;;  %v1915_v8 = vsel %vm1250_vm14, %v3559_v24, 0.0 }
 0x173   :  { %v2661_v27 = vpop.f32.mrf.mxu1  ;;  %v2165_v24 = vsel %vm1250_vm14, %v2037_v18, 0.0 }
 0x174   :  { %v1908_v28 = vadd.f32 %v1907_v4, %v1906_v31  ;;  %v2154_v57 = vadd.f32 %v2153_v40, %v2152_v22  ;;  %1329 = vst.msk [vmem:[%s4379_s5 + $0x270] sm:$0xff] %vm1250_vm14, %v4172_v23  ;;  %v2163_v40 = vsel %vm1250_vm14, %v2036_v62, 0.0  ;;  %v1917_v4 = vsel %vm1250_vm14, %v3575_v30, 0.0 }
 0x175   :  { %v1241_v32 = vpop.f32.mrf.mxu1  ;;  %v2039_v30 = vmul.f32 %v3607_v5, %v3607_v5  ;;  %v1925_v62 = vsel %vm1250_vm14, %v3639_v55, 0.0  ;;  %v2042_v27 = vmul.f32 %v3655_v1, %v3655_v1 }
 0x176   :  { %v1910_v42 = vadd.f32 %v1909_v44, %v1908_v28  ;;  %v2156_v33 = vadd.f32 %v2155_v2, %v2154_v57  ;;  %v4189_v22 = vadd.f32 %v2678_v25, %v1241_v32  ;;  %v1919_v2 = vsel %vm1250_vm14, %v3591_v37, 0.0 }
 0x177   :  { %v2664_v26 = vpop.f32.mrf.mxu1 }
 0x178   :  { %v1912_v15 = vadd.f32 %v1911_v50, %v1910_v42  ;;  %v2158_v13 = vadd.f32 %v2157_v52, %v2156_v33  ;;  %1330 = vst.msk [vmem:[%s4379_s5 + $0x278] sm:$0xff] %vm1250_vm14, %v4189_v22  ;;  %v2167_v33 = vsel %vm1250_vm14, %v2038_v43, 0.0  ;;  %v1921_v52 = vsel %vm1250_vm14, %v3607_v5, 0.0 }
 0x179   :  { %v1246_v44 = vpop.f32.mrf.mxu1  ;;  %v2040_v50 = vmul.f32 %v3623_v48, %v3623_v48  ;;  %v2041_v5 = vmul.f32 %v3639_v55, %v3639_v55  ;;  %v1929_v55 = vsel %vm1250_vm14, %v3671_v11, 0.0  ;;  %v2045_v26 = vmul.f32 %v3703_v29, %v3703_v29 }
 0x17a   :  { %v1914_v7 = vadd.f32 %v1913_v56, %v1912_v15  ;;  %v2160_v59 = vadd.f32 %v2159_v53, %v2158_v13  ;;  %v4206_v42 = vadd.f32 %v2678_v25, %v1246_v44  ;;  %v2169_v25 = vsel %vm1250_vm14, %v2039_v30, 0.0 }
 0x17b   :  { %v2667_v63 = vpop.f32.mrf.mxu1  ;;  %v1923_v15 = vsel %vm1250_vm14, %v3623_v48, 0.0  ;;  %v2171_v56 = vsel %vm1250_vm14, %v2040_v50, 0.0  ;;  %v1927_v48 = vsel %vm1250_vm14, %v3655_v1, 0.0  ;;  %v1931_v1 = vsel %vm1250_vm14, %v3687_v20, 0.0 }
 0x17c   :  { %v1916_v36 = vadd.f32 %v1915_v8, %v1914_v7  ;;  %v2162_v31 = vadd.f32 %v2161_v10, %v2160_v59  ;;  %1332 = vst.msk [vmem:[%s4379_s5 + $0x280] sm:$0x3] %vm1331_vm1, %v4206_v42  ;;  %v2173_v10 = vsel %vm1250_vm14, %v2041_v5, 0.0  ;;  %v2043_v8 = vmul.f32 %v3671_v11, %v3671_v11 }
 0x17d   :  { %v1933_v11 = vsel %vm1250_vm14, %v3703_v29, 0.0  ;;  %v1937_v29 = vsel %vm1250_vm14, %v3735_v0, 0.0  ;;  %v2048_v63 = vmul.f32 %v3753_v60, %v3753_v60 }
 0x17e   :  { %v1918_v28 = vadd.f32 %v1917_v4, %v1916_v36  ;;  %v2164_v57 = vadd.f32 %v2163_v40, %v2162_v31  ;;  %v2175_v36 = vsel %vm1250_vm14, %v2042_v27, 0.0  ;;  %v2044_v31 = vmul.f32 %v3687_v20, %v3687_v20 }
 0x17f   :  { %v2177_v43 = vsel %vm1250_vm14, %v2043_v8, 0.0  ;;  %v1935_v20 = vsel %vm1250_vm14, %v3719_v39, 0.0 }
 0x180   :  { %v1920_v38 = vadd.f32 %v1919_v2, %v1918_v28  ;;  %v2166_v61 = vadd.f32 %v2165_v24, %v2164_v57  ;;  %v2179_v24 = vsel %vm1250_vm14, %v2044_v31, 0.0  ;;  %v2046_v2 = vmul.f32 %v3719_v39, %v3719_v39 }
 0x181   :  { %v1939_v39 = vsel %vm1250_vm14, %v3753_v60, 0.0  ;;  %v1943_v60 = vsel %vm1250_vm14, %v3802_v45, 0.0  ;;  %v2053_v31 = vmul.f32 %v3880_v17, %v3880_v17 }
 0x182   :  { %v1922_v6 = vadd.f32 %v1921_v52, %v1920_v38  ;;  %v2168_v37 = vadd.f32 %v2167_v33, %v2166_v61  ;;  %v2181_v38 = vsel %vm1250_vm14, %v2045_v26, 0.0  ;;  %v2047_v61 = vmul.f32 %v3735_v0, %v3735_v0 }
 0x183   :  { %v2183_v50 = vsel %vm1250_vm14, %v2046_v2, 0.0  ;;  %v1941_v0 = vsel %vm1250_vm14, %v3774_v14, 0.0 }
 0x184   :  { %v2170_v13 = vadd.f32 %v2169_v25, %v2168_v37  ;;  %v1924_v53 = vadd.f32 %v1923_v15, %v1922_v6  ;;  %v2185_v25 = vsel %vm1250_vm14, %v2047_v61, 0.0  ;;  %v2049_v15 = vmul.f32 %v3774_v14, %v3774_v14 }
 0x185   :  { %v1945_v14 = vsel %vm1250_vm14, %v3828_v12, 0.0 }
 0x186   :  { %v1926_v7 = vadd.f32 %v1925_v62, %v1924_v53  ;;  %v2172_v59 = vadd.f32 %v2171_v56, %v2170_v13  ;;  %v2187_v53 = vsel %vm1250_vm14, %v2048_v63, 0.0  ;;  %v2050_v56 = vmul.f32 %v3802_v45, %v3802_v45 }
 0x187   :  { %v1947_v45 = vsel %vm1250_vm14, %v3854_v47, 0.0  ;;  %v2058_v63 = vmul.f32 %v4005_v46, %v4005_v46 }
 0x188   :  { %v1928_v18 = vadd.f32 %v1927_v48, %v1926_v7  ;;  %v2174_v32 = vadd.f32 %v2173_v10, %v2172_v59  ;;  %v2189_v7 = vsel %vm1250_vm14, %v2049_v15, 0.0  ;;  %v2051_v59 = vmul.f32 %v3828_v12, %v3828_v12 }
 0x189   :  { %v2191_v8 = vsel %vm1250_vm14, %v2050_v56, 0.0  ;;  %v1949_v12 = vsel %vm1250_vm14, %v3880_v17, 0.0  ;;  %v1953_v17 = vsel %vm1250_vm14, %v3932_v19, 0.0  ;;  %v1334_v15 = vlaneseq }
 0x18a   :  { %v1930_v40 = vadd.f32 %v1929_v55, %v1928_v18  ;;  %v2176_v4 = vadd.f32 %v2175_v36, %v2174_v32  ;;  %v2052_v18 = vmul.f32 %v3854_v47, %v3854_v47  ;;  %v2193_v55 = vsel %vm1250_vm14, %v2051_v59, 0.0 }
 0x18b   :  { %v1951_v47 = vsel %vm1250_vm14, %v3906_v49, 0.0 }
 0x18c   :  { %v1932_v28 = vadd.f32 %v1931_v1, %v1930_v40  ;;  %v2178_v57 = vadd.f32 %v2177_v43, %v2176_v4  ;;  %v2195_v43 = vsel %vm1250_vm14, %v2052_v18, 0.0  ;;  %v2054_v1 = vmul.f32 %v3906_v49, %v3906_v49 }
 0x18d   :  { %v1955_v49 = vsel %vm1250_vm14, %v3958_v21, 0.0 }
 0x18e   :  { %v1934_v30 = vadd.f32 %v1933_v11, %v1932_v28  ;;  %v2180_v44 = vadd.f32 %v2179_v24, %v2178_v57  ;;  %v2197_v57 = vsel %vm1250_vm14, %v2053_v31, 0.0  ;;  %v2055_v24 = vmul.f32 %v3932_v19, %v3932_v19 }
 0x18f   :  { %v1957_v19 = vsel %vm1250_vm14, %v3982_v34, 0.0 }
 0x190   :  { %v1936_v33 = vadd.f32 %v1935_v20, %v1934_v30  ;;  %v2182_v52 = vadd.f32 %v2181_v38, %v2180_v44  ;;  %v2199_v30 = vsel %vm1250_vm14, %v2054_v1, 0.0  ;;  %v2056_v44 = vmul.f32 %v3958_v21, %v3958_v21 }
 0x191   :  { %v2201_v61 = vsel %vm1250_vm14, %v2055_v24, 0.0  ;;  %v1959_v21 = vsel %vm1250_vm14, %v4005_v46, 0.0  ;;  %v1963_v46 = vsel %vm1250_vm14, %v4049_v16, 0.0  ;;  %v2066_v24 = vmul.f32 %v4155_v51, %v4155_v51 }
 0x192   :  { %v1938_v6 = vadd.f32 %v1937_v29, %v1936_v33  ;;  %v2184_v37 = vadd.f32 %v2183_v50, %v2182_v52  ;;  %v2057_v33 = vmul.f32 %v3982_v34, %v3982_v34  ;;  %v2203_v29 = vsel %vm1250_vm14, %v2056_v44, 0.0 }
 0x193   :  { %v1961_v34 = vsel %vm1250_vm14, %v4028_v58, 0.0  ;;  %v2067_v44 = vmul.f32 %v4172_v23, %v4172_v23 }
 0x194   :  { %v1940_v5 = vadd.f32 %v1939_v39, %v1938_v6  ;;  %v2186_v13 = vadd.f32 %v2185_v25, %v2184_v37  ;;  %v2205_v25 = vsel %vm1250_vm14, %v2057_v33, 0.0  ;;  %v2059_v39 = vmul.f32 %v4028_v58, %v4028_v58 }
 0x195   :  { %v1965_v58 = vsel %vm1250_vm14, %v4066_v35, 0.0 }
 0x196   :  { %v1942_v62 = vadd.f32 %v1941_v0, %v1940_v5  ;;  %v2188_v27 = vadd.f32 %v2187_v53, %v2186_v13  ;;  %v2207_v53 = vsel %vm1250_vm14, %v2058_v63, 0.0  ;;  %v2060_v0 = vmul.f32 %v4049_v16, %v4049_v16 }
 0x197   :  { %v1967_v16 = vsel %vm1250_vm14, %v4083_v54, 0.0 }
 0x198   :  { %v1944_v10 = vadd.f32 %v1943_v60, %v1942_v62  ;;  %v2190_v48 = vadd.f32 %v2189_v7, %v2188_v27  ;;  %v2209_v27 = vsel %vm1250_vm14, %v2059_v39, 0.0  ;;  %v2061_v7 = vmul.f32 %v4066_v35, %v4066_v35 }
 0x199   :  { %v4323_v60 = vshrl.u32 %v1334_v15, 7  ;;  %v1969_v35 = vsel %vm1250_vm14, %v4100_v9, 0.0 }
 0x19a   :  { %v2192_v32 = vadd.f32 %v2191_v8, %v2190_v48  ;;  %v1946_v36 = vadd.f32 %v1945_v14, %v1944_v10  ;;  %v2211_v48 = vsel %vm1250_vm14, %v2060_v0, 0.0  ;;  %v2062_v8 = vmul.f32 %v4083_v54, %v4083_v54 }
 0x19b   :  { %v1971_v54 = vsel %vm1250_vm14, %v4116_v41, 0.0  ;;  %vm2238_vm15 = vcmp.eq.s32.totalorder %v4323_v60, 1  ;;  %vm2237_vm0 = vcmp.eq.s32.totalorder %v4323_v60, 0 }
 0x19c   :  { %v2194_v40 = vadd.f32 %v2193_v55, %v2192_v32  ;;  %v1948_v4 = vadd.f32 %v1947_v45, %v1946_v36  ;;  %v2213_v32 = vsel %vm1250_vm14, %v2061_v7, 0.0  ;;  %v2063_v36 = vmul.f32 %v4100_v9, %v4100_v9 }
 0x19d   :  { %v1415_v55 = vadd.s32 640, %v4323_v60  ;;  %v1973_v9 = vsel %vm1250_vm14, %v4138_v3, 0.0 }
 0x19e   :  { %v2196_v26 = vadd.f32 %v2195_v43, %v2194_v40  ;;  %v1950_v28 = vadd.f32 %v1949_v12, %v1948_v4  ;;  %v2215_v40 = vsel %vm1250_vm14, %v2062_v8, 0.0  ;;  %v2064_v4 = vmul.f32 %v4116_v41, %v4116_v41 }
 0x19f   :  { %v2217_v1 = vsel %vm1250_vm14, %v2063_v36, 0.0  ;;  %vm1578_vm2 = vcmp.lt.s32.totalorder %v1415_v55, 642 }
 0x1a0   :  { %v2198_v11 = vadd.f32 %v2197_v57, %v2196_v26  ;;  %v1952_v2 = vadd.f32 %v1951_v47, %v1950_v28  ;;  %v2065_v26 = vmul.f32 %v4138_v3, %v4138_v3  ;;  %v2219_v47 = vsel %vm1250_vm14, %v2064_v4, 0.0 }
 0x1a1   :  { %v1977_v3 = vsel %vm1250_vm14, %v4172_v23, 0.0 }
 0x1a2   :  { %v2200_v38 = vadd.f32 %v2199_v30, %v2198_v11  ;;  %v1954_v20 = vadd.f32 %v1953_v17, %v1952_v2  ;;  %v1821_v30 = vsel %vm1578_vm2, %v4206_v42, 0.0  ;;  %v2221_v41 = vsel %vm1250_vm14, %v2065_v26, 0.0 }
 0x1a3   :  { %v1975_v17 = vsel %vm1250_vm14, %v4155_v51, 0.0  ;;  %v2069_v33 = vmul.f32 %v1821_v30, %v1821_v30  ;;  %v1979_v51 = vsel %vm1250_vm14, %v4189_v22, 0.0 }
 0x1a4   :  { %v2202_v52 = vadd.f32 %v2201_v61, %v2200_v38  ;;  %v1956_v50 = vadd.f32 %v1955_v49, %v1954_v20  ;;  %v2223_v61 = vsel %vm1250_vm14, %v2066_v24, 0.0  ;;  %v2068_v49 = vmul.f32 %v4189_v22, %v4189_v22 }
 0x1a6   :  { %v2204_v6 = vadd.f32 %v2203_v29, %v2202_v52  ;;  %v1958_v37 = vadd.f32 %v1957_v19, %v1956_v50  ;;  %v2225_v50 = vsel %vm1250_vm14, %v2067_v44, 0.0  ;;  %v1981_v29 = vsel %vm1331_vm1, %v1821_v30, 0.0 }
 0x1a8   :  { %v2206_v5 = vadd.f32 %v2205_v25, %v2204_v6  ;;  %v1960_v13 = vadd.f32 %v1959_v21, %v1958_v37  ;;  %v2227_v6 = vsel %vm1250_vm14, %v2068_v49, 0.0  ;;  %v2229_v37 = vsel %vm1331_vm1, %v2069_v33, 0.0 }
 0x1aa   :  { %v2208_v56 = vadd.f32 %v2207_v53, %v2206_v5  ;;  %v1962_v62 = vadd.f32 %v1961_v34, %v1960_v13 }
 0x1ac   :  { %v2210_v59 = vadd.f32 %v2209_v27, %v2208_v56  ;;  %v1964_v10 = vadd.f32 %v1963_v46, %v1962_v62 }
 0x1ae   :  { %v2212_v14 = vadd.f32 %v2211_v48, %v2210_v59  ;;  %v1966_v18 = vadd.f32 %v1965_v58, %v1964_v10 }
 0x1b0   :  { %v2214_v45 = vadd.f32 %v2213_v32, %v2212_v14  ;;  %v1968_v31 = vadd.f32 %v1967_v16, %v1966_v18 }
 0x1b2   :  { %v2216_v43 = vadd.f32 %v2215_v40, %v2214_v45  ;;  %v1970_v12 = vadd.f32 %v1969_v35, %v1968_v31 }
 0x1b4   :  { %v2218_v28 = vadd.f32 %v2217_v1, %v2216_v43  ;;  %v1972_v57 = vadd.f32 %v1971_v54, %v1970_v12 }
 0x1b6   :  { %v2220_v11 = vadd.f32 %v2219_v47, %v2218_v28  ;;  %v1974_v2 = vadd.f32 %v1973_v9, %v1972_v57 }
 0x1b8   :  { %v2222_v38 = vadd.f32 %v2221_v41, %v2220_v11  ;;  %v1976_v20 = vadd.f32 %v1975_v17, %v1974_v2 }
 0x1ba   :  { %v2224_v42 = vadd.f32 %v2223_v61, %v2222_v38  ;;  %v1978_v52 = vadd.f32 %v1977_v3, %v1976_v20 }
 0x1bc   :  { %v2226_v19 = vadd.f32 %v2225_v50, %v2224_v42  ;;  %v1980_v63 = vadd.f32 %v1979_v51, %v1978_v52 }
 0x1be   :  { %v2228_v23 = vadd.f32 %v2227_v6, %v2226_v19  ;;  %v1982_v25 = vadd.f32 %v1981_v29, %v1980_v63 }
 0x1c0   :  { %v1983_v21 = vrot.slane %v1982_v25, 4  ;;  %v2230_v39 = vadd.f32 %v2229_v37, %v2228_v23 }
 0x1c2   :  { %v1984_v15 = vadd.f32 %v1983_v21, %v1982_v25  ;;  %v2231_v5 = vrot.slane %v2230_v39, 4 }
 0x1c4   :  { %v1985_v13 = vrot.slane %v1984_v15, 2  ;;  %v2232_v53 = vadd.f32 %v2231_v5, %v2230_v39 }
 0x1c6   :  { %v1986_v34 = vadd.f32 %v1985_v13, %v1984_v15  ;;  %v2233_v0 = vrot.slane %v2232_v53, 2 }
 0x1c8   :  { %v2234_v56 = vadd.f32 %v2233_v0, %v2232_v53  ;;  %v1987_v22 = vrot.slane %v1986_v34, 1 }
 0x1ca   :  { %v2235_v62 = vrot.slane %v2234_v56, 1  ;;  %v1988_v46 = vadd.f32 %v1987_v22, %v1986_v34 }
 0x1cc   :  { %v2236_v27 = vadd.f32 %v2235_v62, %v2234_v56 }
 0x1ce   :  { %v2239_v7 = vsel %vm2238_vm15, %v2236_v27, 0.0 }
 0x1cf   :  { %v2240_v59 = vsel %vm2237_vm0, %v1988_v46, %v2239_v7 }
 0x1d0   :  { %2241 = vst.msk [vmem:[%s4380_s6] sm:$0xff] %vm1250_vm14, %v2240_v59 }

// kernel: gen_phi_forward.7
= control target key start
LH: loop header
LB: loop body
LE: loop exit
PB: predicated region body
PF: predicated region fallthrough
CT: control target
= control target key end

     0   :  { %v2732_v1 = vmov 0.0   ;;  %vm2733_vm0 = vmmov 0   ;;  %vm537_vm2 = vcmask 457728   ;;  %s4449_s0 = inlined_call_operand.vmem [shape: f32[642,56], index: 0, kind: input, shape index: {}]   ;;  %s4450_s1 = inlined_call_operand.vmem [shape: f32[1,56], index: 1, kind: input, shape index: {}]   ;;  %s4451_s2 = inlined_call_operand.vmem [shape: f32[1,56], index: 2, kind: input, shape index: {}]   ;;  %s4452_s3 = inlined_call_operand.vmem [shape: f32[56,2], index: 3, kind: input, shape index: {}]   ;;  %s4453_s4 = inlined_call_operand.vmem [shape: f32[1,2], index: 4, kind: input, shape index: {}]   ;;  %s4454_s5 = inlined_call_operand.vmem [shape: f32[642,2], index: 5, kind: output, shape index: {0}]   ;;  %s4455_s6 = inlined_call_operand.hbm [shape: f32[1,8,2], index: 6, kind: output, shape index: {1}]  }
   0x1   :  { %v529_v0 = vld [vmem:[%s4452_s3 + $0x30] sm:$0xff]  ;;  %2433 = vmatprep.subr.mxu0 %v2732_v1  ;;  %v528_v2 = vld [vmem:[%s4452_s3 + $0x28] sm:$0xff]  ;;  %2447 = vmatprep.mubr.msk.f32.mxu0 %vm2733_vm0, %v2732_v1  ;;  %v23_v3 = vld [vmem:[%s4449_s0] sm:$0xff] }
   0x2   :  { %2434 = vmatpush3.msra.mxu0 %v529_v0  ;;  %v2785_v4 = vld [vmem:[%s4450_s1] ss:$0 sm:$0xff]  ;;  %2690 = vmatprep.subr.mxu1 %v2732_v1  ;;  %v24_v8 = vld [vmem:[%s4449_s0 + $0x8] sm:$0xff]  ;;  %v526_v10 = vld [vmem:[%s4452_s3 + $0x18] sm:$0xff] }
   0x3   :  { %2435 = vmatprep.subr.mxu0 %v2732_v1  ;;  %v527_v5 = vld [vmem:[%s4452_s3 + $0x20] sm:$0xff]  ;;  %v111_v6 = vmul.f32 %v2785_v4, %v23_v3  ;;  %2697 = vmatpush3.msra.mxu1 %v529_v0  ;;  %v112_v9 = vmul.f32 %v2785_v4, %v24_v8  ;;  %v25_v12 = vld [vmem:[%s4449_s0 + $0x10] sm:$0xff]  ;;  %v524_v17 = vld [vmem:[%s4452_s3 + $0x8] sm:$0xff] }
   0x4   :  { %v2796_v7 = vld [vmem:[%s4451_s2] ss:$0 sm:$0xff]  ;;  %2436 = vmatpush3.msra.mxu0 %v528_v2  ;;  %2691 = vmatprep.subr.mxu1 %v2732_v1  ;;  %v525_v13 = vld [vmem:[%s4452_s3 + $0x10] sm:$0xff]  ;;  %v113_v16 = vmul.f32 %v2785_v4, %v25_v12  ;;  %v26_v18 = vld [vmem:[%s4449_s0 + $0x18] sm:$0xff] }
   0x5   :  { %2437 = vmatprep.subr.mxu0 %v2732_v1  ;;  %v199_v11 = vadd.f32 %v2796_v7, %v111_v6  ;;  %2698 = vmatpush3.msra.mxu1 %v528_v2  ;;  %v200_v15 = vadd.f32 %v2796_v7, %v112_v9  ;;  %v523_v19 = vld [vmem:[%s4452_s3] sm:$0xff]  ;;  %v114_v23 = vmul.f32 %v2785_v4, %v26_v18  ;;  %v28_v29 = vld [vmem:[%s4449_s0 + $0x28] sm:$0xff]  ;;  %v29_v34 = vld [vmem:[%s4449_s0 + $0x30] sm:$0xff] }
   0x6   :  { %2438 = vmatpush3.msra.mxu0 %v527_v5  ;;  %2692 = vmatprep.subr.mxu1 %v2732_v1  ;;  %v201_v22 = vadd.f32 %v2796_v7, %v113_v16  ;;  %v27_v24 = vld [vmem:[%s4449_s0 + $0x20] sm:$0xff]  ;;  %v116_v33 = vmul.f32 %v2785_v4, %v28_v29  ;;  %v117_v38 = vmul.f32 %v2785_v4, %v29_v34  ;;  %v30_v39 = vld [vmem:[%s4449_s0 + $0x38] sm:$0xff]  ;;  %v64_v40 = vld [vmem:[%s4449_s0 + $0x148] sm:$0xff] }
   0x7   :  { %2439 = vmatprep.subr.mxu0 %v2732_v1  ;;  %v361_v14 = vmul.f32 0.2, %v199_v11  ;;  %vm280_vm1 = vcmp.ge.f32.partialorder %v199_v11, 0.0  ;;  %2699 = vmatpush3.msra.mxu1 %v527_v5  ;;  %v362_v21 = vmul.f32 0.2, %v200_v15  ;;  %vm281_vm3 = vcmp.ge.f32.partialorder %v200_v15, 0.0 }
   0x8   :  { %2440 = vmatpush3.msra.mxu0 %v526_v10  ;;  %2693 = vmatprep.subr.mxu1 %v2732_v1  ;;  %v363_v26 = vmul.f32 0.2, %v201_v22  ;;  %v202_v27 = vadd.f32 %v2796_v7, %v114_v23  ;;  %v115_v28 = vmul.f32 %v2785_v4, %v27_v24  ;;  %vm282_vm4 = vcmp.ge.f32.partialorder %v201_v22, 0.0  ;;  %v65_v41 = vld [vmem:[%s4449_s0 + $0x150] sm:$0xff] }
   0x9   :  { %2441 = vmatprep.subr.mxu0 %v2732_v1  ;;  %v442_v20 = vsel %vm280_vm1, %v199_v11, %v361_v14  ;;  %2700 = vmatpush3.msra.mxu1 %v526_v10  ;;  %v443_v25 = vsel %vm281_vm3, %v200_v15, %v362_v21  ;;  %v204_v37 = vadd.f32 %v2796_v7, %v116_v33 }
   0xa   :  { %2442 = vmatpush3.msra.mxu0 %v525_v13  ;;  %2694 = vmatprep.subr.mxu1 %v2732_v1  ;;  %v444_v30 = vsel %vm282_vm4, %v201_v22, %v363_v26  ;;  %v364_v31 = vmul.f32 0.2, %v202_v27  ;;  %v203_v32 = vadd.f32 %v2796_v7, %v115_v28  ;;  %vm283_vm5 = vcmp.ge.f32.partialorder %v202_v27, 0.0 }
   0xb   :  { %2443 = vmatprep.subr.mxu0 %v2732_v1  ;;  %2701 = vmatpush3.msra.mxu1 %v525_v13 }
   0xc   :  { %2444 = vmatpush3.msra.mxu0 %v524_v17  ;;  %2695 = vmatprep.subr.mxu1 %v2732_v1  ;;  %v445_v35 = vsel %vm283_vm5, %v202_v27, %v364_v31  ;;  %v365_v36 = vmul.f32 0.2, %v203_v32  ;;  %vm284_vm6 = vcmp.ge.f32.partialorder %v203_v32, 0.0 }
   0xd   :  { %2445 = vmatprep.subr.mxu0 %v2732_v1  ;;  %2702 = vmatpush3.msra.mxu1 %v524_v17 }
   0xe   :  { %2446 = vmatpush3.msra.mxu0 %v523_v19  ;;  %2696 = vmatprep.subr.mxu1 %v2732_v1 }
   0xf   :  { %2448 = vmatmul.mubr.msk.f32.vlgmr.msra.gmra.mxu0 %vm537_vm2, %v442_v20  ;;  %2703 = vmatpush3.msra.mxu1 %v523_v19 }
  0x10   :  { %2450 = vmatprep.mubr.msk.f32.mxu0 %vm2733_vm0, %v2732_v1  ;;  %2570 = vmatprep.mubr.msk.f32.mxu1 %vm2733_vm0, %v2732_v1 }
  0x13   :  { %2451 = vmatmul.mubr.msk.f32.gmra.mxu0 %vm537_vm2, %v443_v25 }
  0x14   :  { %2453 = vmatprep.mubr.msk.f32.mxu0 %vm2733_vm0, %v2732_v1 }
  0x17   :  { %2454 = vmatmul.mubr.msk.f32.gmra.mxu0 %vm537_vm2, %v444_v30 }
  0x18   :  { %2456 = vmatprep.mubr.msk.f32.mxu0 %vm2733_vm0, %v2732_v1 }
  0x19   :  { %12 = vsyncpa [#allocation3], 0  ;;  %v118_v42 = vmul.f32 %v2785_v4, %v30_v39  ;;  %v152_v43 = vmul.f32 %v2785_v4, %v64_v40  ;;  %v153_v44 = vmul.f32 %v2785_v4, %v65_v41  ;;  %v446_v45 = vsel %vm284_vm6, %v203_v32, %v365_v36  ;;  %v31_v48 = vld [vmem:[%s4449_s0 + $0x40] sm:$0xff]  ;;  %v66_v51 = vld [vmem:[%s4449_s0 + $0x158] sm:$0xff] }
  0x1a   :  { %v366_v46 = vmul.f32 0.2, %v204_v37  ;;  %v205_v47 = vadd.f32 %v2796_v7, %v117_v38  ;;  %vm285_vm7 = vcmp.ge.f32.partialorder %v204_v37, 0.0  ;;  %v119_v53 = vmul.f32 %v2785_v4, %v31_v48  ;;  %v67_v54 = vld [vmem:[%s4449_s0 + $0x160] sm:$0xff]  ;;  %v32_v57 = vld [vmem:[%s4449_s0 + $0x48] sm:$0xff]  ;;  %v33_v6 = vld [vmem:[%s4449_s0 + $0x50] sm:$0xff] }
  0x1b   :  { %2457 = vmatmul.mubr.msk.f32.gmra.mxu0 %vm537_vm2, %v445_v35  ;;  %v240_v49 = vadd.f32 %v2796_v7, %v152_v43  ;;  %v241_v50 = vadd.f32 %v2796_v7, %v153_v44  ;;  %v206_v52 = vadd.f32 %v2796_v7, %v118_v42  ;;  %v154_v60 = vmul.f32 %v2785_v4, %v66_v51  ;;  %v68_v11 = vld [vmem:[%s4449_s0 + $0x168] sm:$0xff]  ;;  %v69_v12 = vld [vmem:[%s4449_s0 + $0x170] sm:$0xff]  ;;  %v34_v17 = vld [vmem:[%s4449_s0 + $0x58] sm:$0xff] }
  0x1c   :  { %2459 = vmatprep.mubr.msk.f32.mxu0 %vm2733_vm0, %v2732_v1  ;;  %v447_v55 = vsel %vm285_vm7, %v204_v37, %v366_v46  ;;  %v367_v56 = vmul.f32 0.2, %v205_v47  ;;  %vm286_vm9 = vcmp.ge.f32.partialorder %v205_v47, 0.0  ;;  %v155_v62 = vmul.f32 %v2785_v4, %v67_v54  ;;  %v70_v22 = vld [vmem:[%s4449_s0 + $0x178] sm:$0xff]  ;;  %v35_v28 = vld [vmem:[%s4449_s0 + $0x60] sm:$0xff]  ;;  %v36_v38 = vld [vmem:[%s4449_s0 + $0x68] sm:$0xff] }
  0x1d   :  { %vm321_vm8 = vcmp.ge.f32.partialorder %v240_v49, 0.0  ;;  %v402_v58 = vmul.f32 0.2, %v240_v49  ;;  %vm322_vm10 = vcmp.ge.f32.partialorder %v241_v50, 0.0  ;;  %v403_v59 = vmul.f32 0.2, %v241_v50 }
  0x1e   :  { %v368_v63 = vmul.f32 0.2, %v206_v52  ;;  %v207_v0 = vadd.f32 %v2796_v7, %v119_v53  ;;  %v120_v2 = vmul.f32 %v2785_v4, %v32_v57  ;;  %v242_v3 = vadd.f32 %v2796_v7, %v154_v60  ;;  %v71_v33 = vld [vmem:[%s4449_s0 + $0x180] sm:$0xff]  ;;  %v72_v43 = vld [vmem:[%s4449_s0 + $0x188] sm:$0xff]  ;;  %v37_v48 = vld [vmem:[%s4449_s0 + $0x70] sm:$0xff] }
  0x1f   :  { %2460 = vmatmul.mubr.msk.f32.gmra.mxu0 %vm537_vm2, %v446_v45  ;;  %v483_v61 = vsel %vm321_vm8, %v240_v49, %v402_v58  ;;  %v448_v5 = vsel %vm286_vm9, %v205_v47, %v367_v56  ;;  %vm287_vm11 = vcmp.ge.f32.partialorder %v206_v52, 0.0  ;;  %v484_v8 = vsel %vm322_vm10, %v241_v50, %v403_v59  ;;  %v73_v53 = vld [vmem:[%s4449_s0 + $0x190] sm:$0xff]  ;;  %v38_v58 = vld [vmem:[%s4449_s0 + $0x78] sm:$0xff] }
  0x20   :  { %2462 = vmatprep.mubr.msk.f32.mxu0 %vm2733_vm0, %v2732_v1  ;;  %2571 = vmatmul.mubr.msk.f32.vlgmr.msra.gmra.mxu1 %vm537_vm2, %v483_v61  ;;  %v243_v9 = vadd.f32 %v2796_v7, %v155_v62  ;;  %vm323_vm12 = vcmp.ge.f32.partialorder %v242_v3, 0.0  ;;  %v404_v10 = vmul.f32 0.2, %v242_v3  ;;  %v449_v13 = vsel %vm287_vm11, %v206_v52, %v368_v63  ;;  %v74_v63 = vld [vmem:[%s4449_s0 + $0x198] sm:$0xff] }
  0x21   :  { %2573 = vmatprep.mubr.msk.f32.mxu1 %vm2733_vm0, %v2732_v1  ;;  %v369_v14 = vmul.f32 0.2, %v207_v0  ;;  %v208_v15 = vadd.f32 %v2796_v7, %v120_v2  ;;  %v121_v16 = vmul.f32 %v2785_v4, %v33_v6  ;;  %vm288_vm13 = vcmp.ge.f32.partialorder %v207_v0, 0.0  ;;  %v39_v6 = vld [vmem:[%s4449_s0 + $0x80] sm:$0xff] }
  0x22   :  { %v485_v18 = vsel %vm323_vm12, %v242_v3, %v404_v10  ;;  %v405_v19 = vmul.f32 0.2, %v243_v9  ;;  %v156_v20 = vmul.f32 %v2785_v4, %v68_v11  ;;  %vm324_vm14 = vcmp.ge.f32.partialorder %v243_v9, 0.0 }
  0x23   :  { %2463 = vmatmul.mubr.msk.f32.gmra.mxu0 %vm537_vm2, %v447_v55  ;;  %v157_v21 = vmul.f32 %v2785_v4, %v69_v12  ;;  %v122_v23 = vmul.f32 %v2785_v4, %v34_v17  ;;  %v450_v25 = vsel %vm288_vm13, %v207_v0, %v369_v14  ;;  %vm289_vm15 = vcmp.ge.f32.partialorder %v208_v15, 0.0  ;;  %v75_v12 = vld [vmem:[%s4449_s0 + $0x1a0] sm:$0xff]  ;;  %v40_v17 = vld [vmem:[%s4449_s0 + $0x88] sm:$0xff] }
  0x24   :  { %2465 = vmatprep.mubr.msk.f32.mxu0 %vm2733_vm0, %v2732_v1  ;;  %2574 = vmatmul.mubr.msk.f32.gmra.mxu1 %vm537_vm2, %v484_v8  ;;  %v244_v24 = vadd.f32 %v2796_v7, %v156_v20  ;;  %v370_v26 = vmul.f32 0.2, %v208_v15  ;;  %v209_v27 = vadd.f32 %v2796_v7, %v121_v16  ;;  %v486_v29 = vsel %vm324_vm14, %v243_v9, %v405_v19 }
  0x25   :  { %2576 = vmatprep.mubr.msk.f32.mxu1 %vm2733_vm0, %v2732_v1  ;;  %v245_v31 = vadd.f32 %v2796_v7, %v157_v21  ;;  %v158_v32 = vmul.f32 %v2785_v4, %v70_v22  ;;  %v123_v34 = vmul.f32 %v2785_v4, %v35_v28  ;;  %v210_v37 = vadd.f32 %v2796_v7, %v122_v23  ;;  %v76_v22 = vld [vmem:[%s4449_s0 + $0x1a8] sm:$0xff] }
  0x26   :  { %v406_v30 = vmul.f32 0.2, %v244_v24  ;;  %vm325_vm1 = vcmp.ge.f32.partialorder %v244_v24, 0.0  ;;  %v451_v35 = vsel %vm289_vm15, %v208_v15, %v370_v26  ;;  %vm290_vm3 = vcmp.ge.f32.partialorder %v209_v27, 0.0 }
  0x27   :  { %2466 = vmatmul.mubr.msk.f32.gmra.mxu0 %vm537_vm2, %v448_v5  ;;  %v371_v36 = vmul.f32 0.2, %v209_v27  ;;  %v407_v40 = vmul.f32 0.2, %v245_v31  ;;  %v246_v41 = vadd.f32 %v2796_v7, %v158_v32  ;;  %v159_v42 = vmul.f32 %v2785_v4, %v71_v33  ;;  %v77_v32 = vld [vmem:[%s4449_s0 + $0x1b0] sm:$0xff] }
  0x28   :  { %2468 = vmatprep.mubr.msk.f32.mxu0 %vm2733_vm0, %v2732_v1  ;;  %2577 = vmatmul.mubr.msk.f32.gmra.mxu1 %vm537_vm2, %v485_v18  ;;  %v487_v39 = vsel %vm325_vm1, %v244_v24, %v406_v30  ;;  %vm326_vm4 = vcmp.ge.f32.partialorder %v245_v31, 0.0  ;;  %v211_v44 = vadd.f32 %v2796_v7, %v123_v34  ;;  %vm291_vm5 = vcmp.ge.f32.partialorder %v210_v37, 0.0 }
  0x29   :  { %2579 = vmatprep.mubr.msk.f32.mxu1 %vm2733_vm0, %v2732_v1  ;;  %v452_v45 = vsel %vm290_vm3, %v209_v27, %v371_v36  ;;  %v372_v46 = vmul.f32 0.2, %v210_v37  ;;  %v124_v47 = vmul.f32 %v2785_v4, %v36_v38  ;;  %v488_v49 = vsel %vm326_vm4, %v245_v31, %v407_v40  ;;  %v41_v27 = vld [vmem:[%s4449_s0 + $0x90] sm:$0xff] }
  0x2a   :  { %v408_v50 = vmul.f32 0.2, %v246_v41  ;;  %v247_v51 = vadd.f32 %v2796_v7, %v159_v42  ;;  %v160_v52 = vmul.f32 %v2785_v4, %v72_v43  ;;  %vm327_vm6 = vcmp.ge.f32.partialorder %v246_v41, 0.0  ;;  %v78_v42 = vld [vmem:[%s4449_s0 + $0x1b8] sm:$0xff] }
  0x2b   :  { %2469 = vmatmul.mubr.msk.f32.gmra.mxu0 %vm537_vm2, %v449_v13  ;;  %v125_v54 = vmul.f32 %v2785_v4, %v37_v48  ;;  %v453_v55 = vsel %vm291_vm5, %v210_v37, %v372_v46  ;;  %vm292_vm7 = vcmp.ge.f32.partialorder %v211_v44, 0.0  ;;  %v373_v56 = vmul.f32 0.2, %v211_v44  ;;  %v42_v37 = vld [vmem:[%s4449_s0 + $0x98] sm:$0xff] }
  0x2c   :  { %2471 = vmatprep.mubr.msk.f32.mxu0 %vm2733_vm0, %v2732_v1  ;;  %2580 = vmatmul.mubr.msk.f32.gmra.mxu1 %vm537_vm2, %v486_v29  ;;  %v212_v57 = vadd.f32 %v2796_v7, %v124_v47  ;;  %v489_v59 = vsel %vm327_vm6, %v246_v41, %v408_v50  ;;  %v409_v60 = vmul.f32 0.2, %v247_v51  ;;  %v248_v61 = vadd.f32 %v2796_v7, %v160_v52  ;;  %v43_v47 = vld [vmem:[%s4449_s0 + $0xa0] sm:$0xff] }
  0x2d   :  { %2582 = vmatprep.mubr.msk.f32.mxu1 %vm2733_vm0, %v2732_v1  ;;  %v161_v62 = vmul.f32 %v2785_v4, %v73_v53  ;;  %vm328_vm8 = vcmp.ge.f32.partialorder %v247_v51, 0.0  ;;  %v126_v0 = vmul.f32 %v2785_v4, %v38_v58  ;;  %v454_v2 = vsel %vm292_vm7, %v211_v44, %v373_v56  ;;  %v79_v52 = vld [vmem:[%s4449_s0 + $0x1c0] sm:$0xff] }
  0x2e   :  { %vm293_vm9 = vcmp.ge.f32.partialorder %v212_v57, 0.0  ;;  %v374_v3 = vmul.f32 0.2, %v212_v57  ;;  %v213_v5 = vadd.f32 %v2796_v7, %v125_v54  ;;  %v490_v8 = vsel %vm328_vm8, %v247_v51, %v409_v60 }
  0x2f   :  { %2472 = vmatmul.mubr.msk.f32.gmra.mxu0 %vm537_vm2, %v450_v25  ;;  %v410_v9 = vmul.f32 0.2, %v248_v61  ;;  %v249_v10 = vadd.f32 %v2796_v7, %v161_v62  ;;  %v162_v11 = vmul.f32 %v2785_v4, %v74_v63  ;;  %vm329_vm10 = vcmp.ge.f32.partialorder %v248_v61, 0.0  ;;  %v80_v62 = vld [vmem:[%s4449_s0 + $0x1c8] sm:$0xff] }
  0x30   :  { %2474 = vmatprep.mubr.msk.f32.mxu0 %vm2733_vm0, %v2732_v1  ;;  %2583 = vmatmul.mubr.msk.f32.gmra.mxu1 %vm537_vm2, %v487_v39  ;;  %v214_v13 = vadd.f32 %v2796_v7, %v126_v0  ;;  %v455_v14 = vsel %vm293_vm9, %v212_v57, %v374_v3  ;;  %vm294_vm11 = vcmp.ge.f32.partialorder %v213_v5, 0.0  ;;  %v375_v15 = vmul.f32 0.2, %v213_v5  ;;  %v44_v57 = vld [vmem:[%s4449_s0 + $0xa8] sm:$0xff] }
  0x31   :  { %2585 = vmatprep.mubr.msk.f32.mxu1 %vm2733_vm0, %v2732_v1  ;;  %v127_v16 = vmul.f32 %v2785_v4, %v39_v6  ;;  %v491_v18 = vsel %vm329_vm10, %v248_v61, %v410_v9  ;;  %v411_v19 = vmul.f32 0.2, %v249_v10  ;;  %v250_v20 = vadd.f32 %v2796_v7, %v162_v11  ;;  %v81_v11 = vld [vmem:[%s4449_s0 + $0x1d0] sm:$0xff] }
  0x32   :  { %v163_v21 = vmul.f32 %v2785_v4, %v75_v12  ;;  %vm330_vm12 = vcmp.ge.f32.partialorder %v249_v10, 0.0  ;;  %vm295_vm13 = vcmp.ge.f32.partialorder %v214_v13, 0.0  ;;  %v456_v23 = vsel %vm294_vm11, %v213_v5, %v375_v15  ;;  %v45_v5 = vld [vmem:[%s4449_s0 + $0xb0] sm:$0xff] }
  0x33   :  { %2475 = vmatmul.mubr.msk.f32.gmra.mxu0 %vm537_vm2, %v451_v35  ;;  %v376_v24 = vmul.f32 0.2, %v214_v13  ;;  %v215_v25 = vadd.f32 %v2796_v7, %v127_v16  ;;  %v128_v26 = vmul.f32 %v2785_v4, %v40_v17  ;;  %v492_v28 = vsel %vm330_vm12, %v249_v10, %v411_v19  ;;  %v46_v16 = vld [vmem:[%s4449_s0 + $0xb8] sm:$0xff] }
  0x34   :  { %2477 = vmatprep.mubr.msk.f32.mxu0 %vm2733_vm0, %v2732_v1  ;;  %2586 = vmatmul.mubr.msk.f32.gmra.mxu1 %vm537_vm2, %v488_v49  ;;  %v412_v29 = vmul.f32 0.2, %v250_v20  ;;  %v251_v30 = vadd.f32 %v2796_v7, %v163_v21  ;;  %v164_v31 = vmul.f32 %v2785_v4, %v76_v22  ;;  %vm331_vm14 = vcmp.ge.f32.partialorder %v250_v20, 0.0  ;;  %v82_v21 = vld [vmem:[%s4449_s0 + $0x1d8] sm:$0xff] }
  0x35   :  { %2588 = vmatprep.mubr.msk.f32.mxu1 %vm2733_vm0, %v2732_v1  ;;  %v129_v33 = vmul.f32 %v2785_v4, %v41_v27  ;;  %v457_v34 = vsel %vm295_vm13, %v214_v13, %v376_v24  ;;  %vm296_vm15 = vcmp.ge.f32.partialorder %v215_v25, 0.0  ;;  %v377_v35 = vmul.f32 0.2, %v215_v25 }
  0x36   :  { %v216_v36 = vadd.f32 %v2796_v7, %v128_v26  ;;  %v493_v38 = vsel %vm331_vm14, %v250_v20, %v412_v29  ;;  %v413_v39 = vmul.f32 0.2, %v251_v30  ;;  %v252_v40 = vadd.f32 %v2796_v7, %v164_v31  ;;  %v47_v26 = vld [vmem:[%s4449_s0 + $0xc0] sm:$0xff] }
  0x37   :  { %2478 = vmatmul.mubr.msk.f32.gmra.mxu0 %vm537_vm2, %v452_v45  ;;  %v165_v41 = vmul.f32 %v2785_v4, %v77_v32  ;;  %vm332_vm1 = vcmp.ge.f32.partialorder %v251_v30, 0.0  ;;  %v130_v43 = vmul.f32 %v2785_v4, %v42_v37  ;;  %v458_v44 = vsel %vm296_vm15, %v215_v25, %v377_v35  ;;  %v83_v31 = vld [vmem:[%s4449_s0 + $0x1e0] sm:$0xff] }
  0x38   :  { %2480 = vmatprep.mubr.msk.f32.mxu0 %vm2733_vm0, %v2732_v1  ;;  %2589 = vmatmul.mubr.msk.f32.gmra.mxu1 %vm537_vm2, %v489_v59  ;;  %vm297_vm3 = vcmp.ge.f32.partialorder %v216_v36, 0.0  ;;  %v378_v45 = vmul.f32 0.2, %v216_v36  ;;  %v217_v46 = vadd.f32 %v2796_v7, %v129_v33  ;;  %v494_v48 = vsel %vm332_vm1, %v251_v30, %v413_v39 }
  0x39   :  { %2591 = vmatprep.mubr.msk.f32.mxu1 %vm2733_vm0, %v2732_v1  ;;  %v414_v49 = vmul.f32 0.2, %v252_v40  ;;  %v253_v50 = vadd.f32 %v2796_v7, %v165_v41  ;;  %v166_v51 = vmul.f32 %v2785_v4, %v78_v42  ;;  %vm333_vm4 = vcmp.ge.f32.partialorder %v252_v40, 0.0  ;;  %v84_v41 = vld [vmem:[%s4449_s0 + $0x1e8] sm:$0xff] }
  0x3a   :  { %v218_v53 = vadd.f32 %v2796_v7, %v130_v43  ;;  %v459_v54 = vsel %vm297_vm3, %v216_v36, %v378_v45  ;;  %vm298_vm5 = vcmp.ge.f32.partialorder %v217_v46, 0.0  ;;  %v131_v56 = vmul.f32 %v2785_v4, %v43_v47  ;;  %v48_v36 = vld [vmem:[%s4449_s0 + $0xc8] sm:$0xff] }
  0x3b   :  { %2481 = vmatmul.mubr.msk.f32.gmra.mxu0 %vm537_vm2, %v453_v55  ;;  %v379_v55 = vmul.f32 0.2, %v217_v46  ;;  %v495_v58 = vsel %vm333_vm4, %v252_v40, %v414_v49  ;;  %v415_v59 = vmul.f32 0.2, %v253_v50  ;;  %v254_v60 = vadd.f32 %v2796_v7, %v166_v51  ;;  %v85_v51 = vld [vmem:[%s4449_s0 + $0x1f0] sm:$0xff] }
  0x3c   :  { %2483 = vmatprep.mubr.msk.f32.mxu0 %vm2733_vm0, %v2732_v1  ;;  %2592 = vmatmul.mubr.msk.f32.gmra.mxu1 %vm537_vm2, %v490_v8  ;;  %v167_v61 = vmul.f32 %v2785_v4, %v79_v52  ;;  %vm334_vm6 = vcmp.ge.f32.partialorder %v253_v50, 0.0  ;;  %v132_v63 = vmul.f32 %v2785_v4, %v44_v57  ;;  %vm299_vm7 = vcmp.ge.f32.partialorder %v218_v53, 0.0 }
  0x3d   :  { %2594 = vmatprep.mubr.msk.f32.mxu1 %vm2733_vm0, %v2732_v1  ;;  %v460_v0 = vsel %vm298_vm5, %v217_v46, %v379_v55  ;;  %v219_v3 = vadd.f32 %v2796_v7, %v131_v56  ;;  %v496_v6 = vsel %vm334_vm6, %v253_v50, %v415_v59  ;;  %v416_v8 = vmul.f32 0.2, %v254_v60  ;;  %v49_v46 = vld [vmem:[%s4449_s0 + $0xd0] sm:$0xff]  ;;  %v50_v56 = vld [vmem:[%s4449_s0 + $0xd8] sm:$0xff] }
  0x3e   :  { %v255_v9 = vadd.f32 %v2796_v7, %v167_v61  ;;  %v168_v10 = vmul.f32 %v2785_v4, %v80_v62  ;;  %vm335_vm8 = vcmp.ge.f32.partialorder %v254_v60, 0.0  ;;  %v220_v12 = vadd.f32 %v2796_v7, %v132_v63  ;;  %v86_v61 = vld [vmem:[%s4449_s0 + $0x1f8] sm:$0xff] }
  0x3f   :  { %2484 = vmatmul.mubr.msk.f32.gmra.mxu0 %vm537_vm2, %v454_v2  ;;  %v380_v2 = vmul.f32 0.2, %v218_v53  ;;  %vm300_vm9 = vcmp.ge.f32.partialorder %v219_v3, 0.0  ;;  %v133_v15 = vmul.f32 %v2785_v4, %v45_v5  ;;  %v497_v17 = vsel %vm335_vm8, %v254_v60, %v416_v8 }
  0x40   :  { %2486 = vmatprep.mubr.msk.f32.mxu0 %vm2733_vm0, %v2732_v1  ;;  %2595 = vmatmul.mubr.msk.f32.gmra.mxu1 %vm537_vm2, %v491_v18  ;;  %v417_v18 = vmul.f32 0.2, %v255_v9  ;;  %v256_v19 = vadd.f32 %v2796_v7, %v168_v10  ;;  %v169_v20 = vmul.f32 %v2785_v4, %v81_v11  ;;  %vm336_vm10 = vcmp.ge.f32.partialorder %v255_v9, 0.0  ;;  %v87_v10 = vld [vmem:[%s4449_s0 + $0x200] sm:$0xff] }
  0x41   :  { %2597 = vmatprep.mubr.msk.f32.mxu1 %vm2733_vm0, %v2732_v1  ;;  %v461_v13 = vsel %vm299_vm7, %v218_v53, %v380_v2  ;;  %v134_v22 = vmul.f32 %v2785_v4, %v46_v16  ;;  %vm301_vm11 = vcmp.ge.f32.partialorder %v220_v12, 0.0  ;;  %v382_v24 = vmul.f32 0.2, %v220_v12 }
  0x42   :  { %v221_v25 = vadd.f32 %v2796_v7, %v133_v15  ;;  %v498_v27 = vsel %vm336_vm10, %v255_v9, %v417_v18  ;;  %v257_v29 = vadd.f32 %v2796_v7, %v169_v20  ;;  %v170_v30 = vmul.f32 %v2785_v4, %v82_v21  ;;  %v52_v15 = vld [vmem:[%s4449_s0 + $0xe8] sm:$0xff] }
  0x43   :  { %2487 = vmatmul.mubr.msk.f32.gmra.mxu0 %vm537_vm2, %v455_v14  ;;  %v381_v14 = vmul.f32 0.2, %v219_v3  ;;  %vm337_vm12 = vcmp.ge.f32.partialorder %v256_v19, 0.0  ;;  %v222_v32 = vadd.f32 %v2796_v7, %v134_v22  ;;  %v463_v33 = vsel %vm301_vm11, %v220_v12, %v382_v24  ;;  %v88_v20 = vld [vmem:[%s4449_s0 + $0x208] sm:$0xff] }
  0x44   :  { %2489 = vmatprep.mubr.msk.f32.mxu0 %vm2733_vm0, %v2732_v1  ;;  %2598 = vmatmul.mubr.msk.f32.gmra.mxu1 %vm537_vm2, %v492_v28  ;;  %v418_v28 = vmul.f32 0.2, %v256_v19  ;;  %vm302_vm13 = vcmp.ge.f32.partialorder %v221_v25, 0.0  ;;  %v135_v35 = vmul.f32 %v2785_v4, %v47_v26  ;;  %v258_v39 = vadd.f32 %v2796_v7, %v170_v30  ;;  %v89_v30 = vld [vmem:[%s4449_s0 + $0x210] sm:$0xff] }
  0x45   :  { %2600 = vmatprep.mubr.msk.f32.mxu1 %vm2733_vm0, %v2732_v1  ;;  %v171_v40 = vmul.f32 %v2785_v4, %v83_v31  ;;  %vm338_vm14 = vcmp.ge.f32.partialorder %v257_v29, 0.0  ;;  %v384_v42 = vmul.f32 0.2, %v222_v32  ;;  %vm303_vm15 = vcmp.ge.f32.partialorder %v222_v32, 0.0 }
  0x46   :  { %v499_v37 = vsel %vm337_vm12, %v256_v19, %v418_v28  ;;  %v136_v45 = vmul.f32 %v2785_v4, %v48_v36  ;;  %v172_v50 = vmul.f32 %v2785_v4, %v84_v41  ;;  %vm339_vm1 = vcmp.ge.f32.partialorder %v258_v39, 0.0 }
  0x47   :  { %2490 = vmatmul.mubr.msk.f32.gmra.mxu0 %vm537_vm2, %v456_v23  ;;  %v462_v23 = vsel %vm300_vm9, %v219_v3, %v381_v14  ;;  %v259_v49 = vadd.f32 %v2796_v7, %v171_v40  ;;  %v465_v52 = vsel %vm303_vm15, %v222_v32, %v384_v42  ;;  %v137_v55 = vmul.f32 %v2785_v4, %v49_v46  ;;  %v51_v3 = vld [vmem:[%s4449_s0 + $0xe0] sm:$0xff]  ;;  %v90_v40 = vld [vmem:[%s4449_s0 + $0x218] sm:$0xff] }
  0x48   :  { %2492 = vmatprep.mubr.msk.f32.mxu0 %vm2733_vm0, %v2732_v1  ;;  %2601 = vmatmul.mubr.msk.f32.gmra.mxu1 %vm537_vm2, %v493_v38  ;;  %v419_v38 = vmul.f32 0.2, %v257_v29  ;;  %v260_v59 = vadd.f32 %v2796_v7, %v172_v50  ;;  %v173_v60 = vmul.f32 %v2785_v4, %v85_v51  ;;  %v138_v62 = vmul.f32 %v2785_v4, %v50_v56  ;;  %v91_v50 = vld [vmem:[%s4449_s0 + $0x220] sm:$0xff] }
  0x49   :  { %2603 = vmatprep.mubr.msk.f32.mxu1 %vm2733_vm0, %v2732_v1  ;;  %vm340_vm4 = vcmp.ge.f32.partialorder %v259_v49, 0.0  ;;  %v225_v2 = vadd.f32 %v2796_v7, %v137_v55  ;;  %v174_v9 = vmul.f32 %v2785_v4, %v86_v61  ;;  %v139_v11 = vmul.f32 %v2785_v4, %v51_v3  ;;  %v56_v55 = vld [vmem:[%s4449_s0 + $0x108] sm:$0xff] }
  0x4a   :  { %v500_v47 = vsel %vm338_vm14, %v257_v29, %v419_v38  ;;  %v261_v8 = vadd.f32 %v2796_v7, %v173_v60  ;;  %vm341_vm6 = vcmp.ge.f32.partialorder %v260_v59, 0.0  ;;  %v226_v14 = vadd.f32 %v2796_v7, %v138_v62  ;;  %v92_v60 = vld [vmem:[%s4449_s0 + $0x228] sm:$0xff] }
  0x4b   :  { %2493 = vmatmul.mubr.msk.f32.gmra.mxu0 %vm537_vm2, %v457_v34  ;;  %v383_v34 = vmul.f32 0.2, %v221_v25  ;;  %vm306_vm7 = vcmp.ge.f32.partialorder %v225_v2, 0.0  ;;  %v262_v18 = vadd.f32 %v2796_v7, %v174_v9  ;;  %v175_v19 = vmul.f32 %v2785_v4, %v87_v10  ;;  %v93_v9 = vld [vmem:[%s4449_s0 + $0x230] sm:$0xff] }
  0x4c   :  { %2495 = vmatprep.mubr.msk.f32.mxu0 %vm2733_vm0, %v2732_v1  ;;  %2604 = vmatmul.mubr.msk.f32.gmra.mxu1 %vm537_vm2, %v494_v48  ;;  %v420_v48 = vmul.f32 0.2, %v258_v39  ;;  %vm342_vm8 = vcmp.ge.f32.partialorder %v261_v8, 0.0  ;;  %v227_v21 = vadd.f32 %v2796_v7, %v139_v11  ;;  %vm307_vm9 = vcmp.ge.f32.partialorder %v226_v14, 0.0 }
  0x4d   :  { %2606 = vmatprep.mubr.msk.f32.mxu1 %vm2733_vm0, %v2732_v1  ;;  %v464_v43 = vsel %vm302_vm13, %v221_v25, %v383_v34  ;;  %v140_v24 = vmul.f32 %v2785_v4, %v52_v15  ;;  %v53_v25 = vld [vmem:[%s4449_s0 + $0xf0] sm:$0xff]  ;;  %v263_v28 = vadd.f32 %v2796_v7, %v175_v19  ;;  %v176_v29 = vmul.f32 %v2785_v4, %v88_v20  ;;  %v94_v19 = vld [vmem:[%s4449_s0 + $0x238] sm:$0xff] }
  0x4e   :  { %v501_v57 = vsel %vm339_vm1, %v258_v39, %v420_v48  ;;  %vm343_vm10 = vcmp.ge.f32.partialorder %v262_v18, 0.0  ;;  %v389_v31 = vmul.f32 0.2, %v227_v21  ;;  %vm308_vm11 = vcmp.ge.f32.partialorder %v227_v21, 0.0 }
  0x4f   :  { %2496 = vmatmul.mubr.msk.f32.gmra.mxu0 %vm537_vm2, %v458_v44  ;;  %v223_v44 = vadd.f32 %v2796_v7, %v135_v35  ;;  %v141_v34 = vmul.f32 %v2785_v4, %v53_v25  ;;  %v54_v35 = vld [vmem:[%s4449_s0 + $0xf8] sm:$0xff]  ;;  %v264_v38 = vadd.f32 %v2796_v7, %v176_v29  ;;  %v177_v39 = vmul.f32 %v2785_v4, %v89_v30  ;;  %v95_v29 = vld [vmem:[%s4449_s0 + $0x240] sm:$0xff] }
  0x50   :  { %2498 = vmatprep.mubr.msk.f32.mxu0 %vm2733_vm0, %v2732_v1  ;;  %2607 = vmatmul.mubr.msk.f32.gmra.mxu1 %vm537_vm2, %v495_v58  ;;  %v421_v58 = vmul.f32 0.2, %v259_v49  ;;  %vm344_vm12 = vcmp.ge.f32.partialorder %v263_v28, 0.0  ;;  %v470_v41 = vsel %vm308_vm11, %v227_v21, %v389_v31 }
  0x51   :  { %2609 = vmatprep.mubr.msk.f32.mxu1 %vm2733_vm0, %v2732_v1  ;;  %vm304_vm3 = vcmp.ge.f32.partialorder %v223_v44, 0.0  ;;  %v385_v53 = vmul.f32 0.2, %v223_v44  ;;  %v265_v48 = vadd.f32 %v2796_v7, %v177_v39  ;;  %vm345_vm14 = vcmp.ge.f32.partialorder %v264_v38, 0.0  ;;  %v96_v39 = vld [vmem:[%s4449_s0 + $0x248] sm:$0xff] }
  0x52   :  { %v502_v5 = vsel %vm340_vm4, %v259_v49, %v421_v58  ;;  %v178_v49 = vmul.f32 %v2785_v4, %v90_v40 }
  0x53   :  { %2499 = vmatmul.mubr.msk.f32.gmra.mxu0 %vm537_vm2, %v459_v54  ;;  %v224_v54 = vadd.f32 %v2796_v7, %v136_v45  ;;  %v466_v63 = vsel %vm304_vm3, %v223_v44, %v385_v53  ;;  %v142_v44 = vmul.f32 %v2785_v4, %v54_v35  ;;  %v55_v45 = vld [vmem:[%s4449_s0 + $0x100] sm:$0xff]  ;;  %vm346_vm1 = vcmp.ge.f32.partialorder %v265_v48, 0.0 }
  0x54   :  { %2501 = vmatprep.mubr.msk.f32.mxu0 %vm2733_vm0, %v2732_v1  ;;  %2610 = vmatmul.mubr.msk.f32.gmra.mxu1 %vm537_vm2, %v496_v6  ;;  %v422_v6 = vmul.f32 0.2, %v260_v59  ;;  %v143_v51 = vmul.f32 %v2785_v4, %v55_v45  ;;  %v266_v58 = vadd.f32 %v2796_v7, %v178_v49  ;;  %v97_v49 = vld [vmem:[%s4449_s0 + $0x250] sm:$0xff] }
  0x55   :  { %2612 = vmatprep.mubr.msk.f32.mxu1 %vm2733_vm0, %v2732_v1  ;;  %vm305_vm5 = vcmp.ge.f32.partialorder %v224_v54, 0.0 }
  0x56   :  { %v503_v16 = vsel %vm341_vm6, %v260_v59, %v422_v6  ;;  %v179_v59 = vmul.f32 %v2785_v4, %v91_v50  ;;  %v231_v61 = vadd.f32 %v2796_v7, %v143_v51  ;;  %vm347_vm4 = vcmp.ge.f32.partialorder %v266_v58, 0.0 }
  0x57   :  { %2502 = vmatmul.mubr.msk.f32.gmra.mxu0 %vm537_vm2, %v460_v0  ;;  %v386_v0 = vmul.f32 0.2, %v224_v54 }
  0x58   :  { %2504 = vmatprep.mubr.msk.f32.mxu0 %vm2733_vm0, %v2732_v1  ;;  %2613 = vmatmul.mubr.msk.f32.gmra.mxu1 %vm537_vm2, %v497_v17  ;;  %v423_v17 = vmul.f32 0.2, %v261_v8  ;;  %v267_v6 = vadd.f32 %v2796_v7, %v179_v59  ;;  %v393_v10 = vmul.f32 0.2, %v231_v61  ;;  %v98_v59 = vld [vmem:[%s4449_s0 + $0x258] sm:$0xff] }
  0x59   :  { %2615 = vmatprep.mubr.msk.f32.mxu1 %vm2733_vm0, %v2732_v1  ;;  %v467_v12 = vsel %vm305_vm5, %v224_v54, %v386_v0  ;;  %v230_v54 = vadd.f32 %v2796_v7, %v142_v44  ;;  %v144_v0 = vmul.f32 %v2785_v4, %v56_v55  ;;  %vm312_vm5 = vcmp.ge.f32.partialorder %v231_v61, 0.0  ;;  %v61_v44 = vld [vmem:[%s4449_s0 + $0x130] sm:$0xff] }
  0x5a   :  { %v504_v26 = vsel %vm342_vm8, %v261_v8, %v423_v17  ;;  %v180_v8 = vmul.f32 %v2785_v4, %v92_v60  ;;  %v58_v4 = vld [vmem:[%s4449_s0 + $0x118] sm:$0xff]  ;;  %v429_v15 = vmul.f32 0.2, %v267_v6  ;;  %vm348_vm6 = vcmp.ge.f32.partialorder %v267_v6, 0.0 }
  0x5b   :  { %2505 = vmatmul.mubr.msk.f32.gmra.mxu0 %vm537_vm2, %v461_v13  ;;  %v387_v13 = vmul.f32 0.2, %v225_v2  ;;  %vm311_vm3 = vcmp.ge.f32.partialorder %v230_v54, 0.0  ;;  %v474_v20 = vsel %vm312_vm5, %v231_v61, %v393_v10 }
  0x5c   :  { %2507 = vmatprep.mubr.msk.f32.mxu0 %vm2733_vm0, %v2732_v1  ;;  %2616 = vmatmul.mubr.msk.f32.gmra.mxu1 %vm537_vm2, %v498_v27  ;;  %v424_v27 = vmul.f32 0.2, %v262_v18  ;;  %v510_v25 = vsel %vm348_vm6, %v267_v6, %v429_v15 }
  0x5d   :  { %2618 = vmatprep.mubr.msk.f32.mxu1 %vm2733_vm0, %v2732_v1  ;;  %v468_v22 = vsel %vm306_vm7, %v225_v2, %v387_v13  ;;  %v57_v2 = vld [vmem:[%s4449_s0 + $0x110] sm:$0xff]  ;;  %v3312_v13 = vld [vmem:[%s4450_s1] ss:$0 sm:$0xff] }
  0x5e   :  { %v505_v36 = vsel %vm343_vm10, %v262_v18, %v424_v27  ;;  %v181_v18 = vmul.f32 %v3312_v13, %v93_v9  ;;  %v186_v6 = vmul.f32 %v3312_v13, %v98_v59 }
  0x5f   :  { %2508 = vmatmul.mubr.msk.f32.gmra.mxu0 %vm537_vm2, %v462_v23  ;;  %v388_v23 = vmul.f32 0.2, %v226_v14 }
  0x60   :  { %2510 = vmatprep.mubr.msk.f32.mxu0 %vm2733_vm0, %v2732_v1  ;;  %2619 = vmatmul.mubr.msk.f32.gmra.mxu1 %vm537_vm2, %v499_v37  ;;  %v425_v37 = vmul.f32 0.2, %v263_v28 }
  0x61   :  { %2621 = vmatprep.mubr.msk.f32.mxu1 %vm2733_vm0, %v2732_v1  ;;  %v469_v32 = vsel %vm307_vm9, %v226_v14, %v388_v23  ;;  %v145_v14 = vmul.f32 %v3312_v13, %v57_v2  ;;  %v146_v23 = vmul.f32 %v3312_v13, %v58_v4 }
  0x62   :  { %v506_v46 = vsel %vm344_vm12, %v263_v28, %v425_v37  ;;  %v182_v28 = vmul.f32 %v3312_v13, %v94_v19 }
  0x63   :  { %2511 = vmatmul.mubr.msk.f32.gmra.mxu0 %vm537_vm2, %v463_v33  ;;  %v228_v33 = vadd.f32 %v2796_v7, %v140_v24  ;;  %v59_v24 = vld [vmem:[%s4449_s0 + $0x120] sm:$0xff] }
  0x64   :  { %2513 = vmatprep.mubr.msk.f32.mxu0 %vm2733_vm0, %v2732_v1  ;;  %2622 = vmatmul.mubr.msk.f32.gmra.mxu1 %vm537_vm2, %v500_v47  ;;  %v426_v47 = vmul.f32 0.2, %v264_v38  ;;  %v147_v30 = vmul.f32 %v3312_v13, %v59_v24 }
  0x65   :  { %2624 = vmatprep.mubr.msk.f32.mxu1 %vm2733_vm0, %v2732_v1  ;;  %vm309_vm13 = vcmp.ge.f32.partialorder %v228_v33, 0.0  ;;  %v390_v42 = vmul.f32 0.2, %v228_v33 }
  0x66   :  { %v507_v56 = vsel %vm345_vm14, %v264_v38, %v426_v47  ;;  %v183_v38 = vmul.f32 %v3312_v13, %v95_v29 }
  0x67   :  { %2514 = vmatmul.mubr.msk.f32.gmra.mxu0 %vm537_vm2, %v464_v43  ;;  %v229_v43 = vadd.f32 %v2796_v7, %v141_v34  ;;  %v60_v34 = vld [vmem:[%s4449_s0 + $0x128] sm:$0xff] }
  0x68   :  { %2516 = vmatprep.mubr.msk.f32.mxu0 %vm2733_vm0, %v2732_v1  ;;  %2625 = vmatmul.mubr.msk.f32.gmra.mxu1 %vm537_vm2, %v501_v57  ;;  %v427_v57 = vmul.f32 0.2, %v265_v48 }
  0x69   :  { %2627 = vmatprep.mubr.msk.f32.mxu1 %vm2733_vm0, %v2732_v1  ;;  %vm310_vm15 = vcmp.ge.f32.partialorder %v229_v43, 0.0  ;;  %v391_v53 = vmul.f32 0.2, %v229_v43 }
  0x6a   :  { %v508_v3 = vsel %vm346_vm1, %v265_v48, %v427_v57  ;;  %v184_v48 = vmul.f32 %v3312_v13, %v96_v39 }
  0x6b   :  { %2517 = vmatmul.mubr.msk.f32.gmra.mxu0 %vm537_vm2, %v465_v52  ;;  %v471_v52 = vsel %vm309_vm13, %v228_v33, %v390_v42  ;;  %v472_v62 = vsel %vm310_vm15, %v229_v43, %v391_v53  ;;  %v148_v43 = vmul.f32 %v3312_v13, %v60_v34  ;;  %v149_v53 = vmul.f32 %v3312_v13, %v61_v44 }
  0x6c   :  { %2519 = vmatprep.mubr.msk.f32.mxu0 %vm2733_vm0, %v2732_v1  ;;  %2628 = vmatmul.mubr.msk.f32.gmra.mxu1 %vm537_vm2, %v502_v5  ;;  %v428_v5 = vmul.f32 0.2, %v266_v58 }
  0x6d   :  { %2630 = vmatprep.mubr.msk.f32.mxu1 %vm2733_vm0, %v2732_v1 }
  0x6f   :  { %2520 = vmatmul.mubr.msk.f32.gmra.mxu0 %vm537_vm2, %v466_v63  ;;  %v392_v63 = vmul.f32 0.2, %v230_v54 }
  0x70   :  { %2522 = vmatprep.mubr.msk.f32.mxu0 %vm2733_vm0, %v2732_v1  ;;  %2631 = vmatmul.mubr.msk.f32.gmra.mxu1 %vm537_vm2, %v503_v16  ;;  %v3326_v16 = vld [vmem:[%s4451_s2] ss:$0 sm:$0xff] }
  0x71   :  { %2633 = vmatprep.mubr.msk.f32.mxu1 %vm2733_vm0, %v2732_v1  ;;  %v473_v11 = vsel %vm311_vm3, %v230_v54, %v392_v63  ;;  %v268_v17 = vadd.f32 %v3326_v16, %v180_v8  ;;  %v269_v27 = vadd.f32 %v3326_v16, %v181_v18  ;;  %v234_v33 = vadd.f32 %v3326_v16, %v146_v23  ;;  %v62_v54 = vld [vmem:[%s4449_s0 + $0x138] sm:$0xff]  ;;  %v99_v8 = vld [vmem:[%s4449_s0 + $0x260] sm:$0xff] }
  0x72   :  { %v270_v37 = vadd.f32 %v3326_v16, %v182_v28  ;;  %v235_v40 = vadd.f32 %v3326_v16, %v147_v30  ;;  %v271_v47 = vadd.f32 %v3326_v16, %v183_v38  ;;  %v272_v57 = vadd.f32 %v3326_v16, %v184_v48  ;;  %v103_v38 = vld [vmem:[%s4449_s0 + $0x280] sm:$0x3] }
  0x73   :  { %2523 = vmatmul.mubr.msk.f32.gmra.mxu0 %vm537_vm2, %v467_v12  ;;  %v232_v12 = vadd.f32 %v2796_v7, %v144_v0  ;;  %v509_v7 = vsel %vm347_vm4, %v266_v58, %v428_v5  ;;  %vm349_vm8 = vcmp.ge.f32.partialorder %v268_v17, 0.0  ;;  %vm350_vm10 = vcmp.ge.f32.partialorder %v269_v27, 0.0  ;;  %v63_v0 = vld [vmem:[%s4449_s0 + $0x140] sm:$0xff] }
  0x74   :  { %2525 = vmatprep.mubr.msk.f32.mxu0 %vm2733_vm0, %v2732_v1  ;;  %2634 = vmatmul.mubr.msk.f32.gmra.mxu1 %vm537_vm2, %v504_v26  ;;  %v430_v26 = vmul.f32 0.2, %v268_v17  ;;  %vm315_vm11 = vcmp.ge.f32.partialorder %v234_v33, 0.0  ;;  %v396_v42 = vmul.f32 0.2, %v234_v33  ;;  %vm351_vm12 = vcmp.ge.f32.partialorder %v270_v37, 0.0 }
  0x75   :  { %2636 = vmatprep.mubr.msk.f32.mxu1 %vm2733_vm0, %v2732_v1  ;;  %vm313_vm7 = vcmp.ge.f32.partialorder %v232_v12, 0.0  ;;  %v394_v21 = vmul.f32 0.2, %v232_v12  ;;  %vm316_vm13 = vcmp.ge.f32.partialorder %v235_v40, 0.0  ;;  %v397_v51 = vmul.f32 0.2, %v235_v40 }
  0x76   :  { %v511_v35 = vsel %vm349_vm8, %v268_v17, %v430_v26  ;;  %v477_v50 = vsel %vm315_vm11, %v234_v33, %v396_v42  ;;  %v185_v58 = vmul.f32 %v3312_v13, %v97_v49  ;;  %vm352_vm14 = vcmp.ge.f32.partialorder %v271_v47, 0.0  ;;  %v100_v17 = vld [vmem:[%s4449_s0 + $0x268] sm:$0xff] }
  0x77   :  { %2526 = vmatmul.mubr.msk.f32.gmra.mxu0 %vm537_vm2, %v468_v22  ;;  %v233_v22 = vadd.f32 %v3326_v16, %v145_v14  ;;  %v475_v31 = vsel %vm313_vm7, %v232_v12, %v394_v21  ;;  %v150_v60 = vmul.f32 %v3312_v13, %v62_v54  ;;  %v478_v61 = vsel %vm316_vm13, %v235_v40, %v397_v51 }
  0x78   :  { %2528 = vmatprep.mubr.msk.f32.mxu0 %vm2733_vm0, %v2732_v1  ;;  %2637 = vmatmul.mubr.msk.f32.gmra.mxu1 %vm537_vm2, %v505_v36  ;;  %v431_v36 = vmul.f32 0.2, %v269_v27  ;;  %v237_v63 = vadd.f32 %v3326_v16, %v149_v53  ;;  %v273_v5 = vadd.f32 %v3326_v16, %v185_v58  ;;  %vm353_vm1 = vcmp.ge.f32.partialorder %v272_v57, 0.0 }
  0x79   :  { %2639 = vmatprep.mubr.msk.f32.mxu1 %vm2733_vm0, %v2732_v1  ;;  %vm314_vm9 = vcmp.ge.f32.partialorder %v233_v22, 0.0  ;;  %v238_v9 = vadd.f32 %v3326_v16, %v150_v60  ;;  %v151_v12 = vmul.f32 %v3312_v13, %v63_v0  ;;  %v187_v15 = vmul.f32 %v3312_v13, %v99_v8 }
  0x7a   :  { %v512_v45 = vsel %vm350_vm10, %v269_v27, %v431_v36  ;;  %vm318_vm3 = vcmp.ge.f32.partialorder %v237_v63, 0.0  ;;  %v435_v4 = vmul.f32 0.2, %v273_v5  ;;  %vm354_vm4 = vcmp.ge.f32.partialorder %v273_v5, 0.0 }
  0x7b   :  { %2529 = vmatmul.mubr.msk.f32.gmra.mxu0 %vm537_vm2, %v469_v32  ;;  %v395_v32 = vmul.f32 0.2, %v233_v22  ;;  %vm319_vm5 = vcmp.ge.f32.partialorder %v238_v9, 0.0  ;;  %v400_v19 = vmul.f32 0.2, %v238_v9  ;;  %v275_v23 = vadd.f32 %v3326_v16, %v187_v15 }
  0x7c   :  { %2531 = vmatprep.mubr.msk.f32.mxu0 %vm2733_vm0, %v2732_v1  ;;  %2640 = vmatmul.mubr.msk.f32.gmra.mxu1 %vm537_vm2, %v506_v46  ;;  %v432_v46 = vmul.f32 0.2, %v270_v37  ;;  %v516_v21 = vsel %vm354_vm4, %v273_v5, %v435_v4  ;;  %v188_v24 = vmul.f32 %v3312_v13, %v100_v17  ;;  %v191_v42 = vmul.f32 %v3312_v13, %v103_v38 }
  0x7d   :  { %2642 = vmatprep.mubr.msk.f32.mxu1 %vm2733_vm0, %v2732_v1  ;;  %v481_v26 = vsel %vm319_vm5, %v238_v9, %v400_v19  ;;  %v437_v29 = vmul.f32 0.2, %v275_v23  ;;  %vm356_vm8 = vcmp.ge.f32.partialorder %v275_v23, 0.0  ;;  %vm1251_vm13 = vcmask 15360  }
  0x7e   :  { %v513_v55 = vsel %vm351_vm12, %v270_v37, %v432_v46  ;;  %v276_v30 = vadd.f32 %v3326_v16, %v188_v24 }
  0x7f   :  { %2532 = vmatmul.mubr.msk.f32.gmra.mxu0 %vm537_vm2, %v470_v41  ;;  %v476_v41 = vsel %vm314_vm9, %v233_v22, %v395_v32  ;;  %v102_v32 = vld [vmem:[%s4449_s0 + $0x278] sm:$0xff]  ;;  %v518_v34 = vsel %vm356_vm8, %v275_v23, %v437_v29 }
  0x80   :  { %2534 = vmatprep.mubr.msk.f32.mxu0 %vm2733_vm0, %v2732_v1  ;;  %2643 = vmatmul.mubr.msk.f32.gmra.mxu1 %vm537_vm2, %v507_v56  ;;  %v433_v56 = vmul.f32 0.2, %v271_v47  ;;  %v190_v37 = vmul.f32 %v3312_v13, %v102_v32  ;;  %vm357_vm9 = vcmp.ge.f32.partialorder %v276_v30, 0.0 }
  0x81   :  { %2645 = vmatprep.mubr.msk.f32.mxu1 %vm2733_vm0, %v2732_v1 }
  0x82   :  { %v514_v2 = vsel %vm352_vm14, %v271_v47, %v433_v56 }
  0x83   :  { %2535 = vmatmul.mubr.msk.f32.gmra.mxu0 %vm537_vm2, %v471_v52  ;;  %v236_v52 = vadd.f32 %v3326_v16, %v148_v43 }
  0x84   :  { %2537 = vmatprep.mubr.msk.f32.mxu0 %vm2733_vm0, %v2732_v1  ;;  %2646 = vmatmul.mubr.msk.f32.gmra.mxu1 %vm537_vm2, %v508_v3  ;;  %v434_v3 = vmul.f32 0.2, %v272_v57 }
  0x85   :  { %2648 = vmatprep.mubr.msk.f32.mxu1 %vm2733_vm0, %v2732_v1  ;;  %vm317_vm15 = vcmp.ge.f32.partialorder %v236_v52, 0.0 }
  0x86   :  { %v515_v14 = vsel %vm353_vm1, %v272_v57, %v434_v3 }
  0x87   :  { %2538 = vmatmul.mubr.msk.f32.gmra.mxu0 %vm537_vm2, %v472_v62  ;;  %v398_v62 = vmul.f32 0.2, %v236_v52 }
  0x88   :  { %2540 = vmatprep.mubr.msk.f32.mxu0 %vm2733_vm0, %v2732_v1  ;;  %2649 = vmatmul.mubr.msk.f32.gmra.mxu1 %vm537_vm2, %v509_v7  ;;  %v274_v7 = vadd.f32 %v3326_v16, %v186_v6 }
  0x89   :  { %2651 = vmatprep.mubr.msk.f32.mxu1 %vm2733_vm0, %v2732_v1  ;;  %v479_v10 = vsel %vm317_vm15, %v236_v52, %v398_v62 }
  0x8a   :  { %v436_v22 = vmul.f32 0.2, %v274_v7  ;;  %vm355_vm6 = vcmp.ge.f32.partialorder %v274_v7, 0.0 }
  0x8b   :  { %2541 = vmatmul.mubr.msk.f32.gmra.mxu0 %vm537_vm2, %v473_v11  ;;  %v399_v11 = vmul.f32 0.2, %v237_v63 }
  0x8c   :  { %2543 = vmatprep.mubr.msk.f32.mxu0 %vm2733_vm0, %v2732_v1  ;;  %2652 = vmatmul.mubr.msk.f32.gmra.mxu1 %vm537_vm2, %v510_v25  ;;  %v101_v25 = vld [vmem:[%s4449_s0 + $0x270] sm:$0xff]  ;;  %v517_v28 = vsel %vm355_vm6, %v274_v7, %v436_v22 }
  0x8d   :  { %2654 = vmatprep.mubr.msk.f32.mxu1 %vm2733_vm0, %v2732_v1  ;;  %v480_v18 = vsel %vm318_vm3, %v237_v63, %v399_v11 }
  0x8f   :  { %2544 = vmatmul.mubr.msk.f32.gmra.mxu0 %vm537_vm2, %v474_v20  ;;  %v239_v20 = vadd.f32 %v3326_v16, %v151_v12 }
  0x90   :  { %2546 = vmatprep.mubr.msk.f32.mxu0 %vm2733_vm0, %v2732_v1  ;;  %2655 = vmatmul.mubr.msk.f32.gmra.mxu1 %vm537_vm2, %v511_v35  ;;  %v438_v35 = vmul.f32 0.2, %v276_v30 }
  0x91   :  { %2657 = vmatprep.mubr.msk.f32.mxu1 %vm2733_vm0, %v2732_v1  ;;  %vm320_vm7 = vcmp.ge.f32.partialorder %v239_v20, 0.0  ;;  %v401_v27 = vmul.f32 0.2, %v239_v20 }
  0x92   :  { %v519_v39 = vsel %vm357_vm9, %v276_v30, %v438_v35 }
  0x93   :  { %2547 = vmatmul.mubr.msk.f32.gmra.mxu0 %vm537_vm2, %v475_v31  ;;  %v189_v31 = vmul.f32 %v3312_v13, %v101_v25  ;;  %v482_v33 = vsel %vm320_vm7, %v239_v20, %v401_v27 }
  0x94   :  { %2549 = vmatprep.mubr.msk.f32.mxu0 %vm2733_vm0, %v2732_v1  ;;  %2658 = vmatmul.mubr.msk.f32.gmra.mxu1 %vm537_vm2, %v512_v45  ;;  %v279_v45 = vadd.f32 %v3326_v16, %v191_v42 }
  0x95   :  { %2660 = vmatprep.mubr.msk.f32.mxu1 %vm2733_vm0, %v2732_v1  ;;  %v277_v36 = vadd.f32 %v3326_v16, %v189_v31 }
  0x96   :  { %v441_v47 = vmul.f32 0.2, %v279_v45  ;;  %vm360_vm12 = vcmp.ge.f32.partialorder %v279_v45, 0.0 }
  0x97   :  { %2550 = vmatmul.mubr.msk.f32.gmra.mxu0 %vm537_vm2, %v476_v41  ;;  %v439_v40 = vmul.f32 0.2, %v277_v36  ;;  %v278_v41 = vadd.f32 %v3326_v16, %v190_v37  ;;  %vm358_vm10 = vcmp.ge.f32.partialorder %v277_v36, 0.0  ;;  %v3482_v16 = vld [vmem:[%s4453_s4] ss:$0 sm:$0xff] }
  0x98   :  { %2552 = vmatprep.mubr.msk.f32.mxu0 %vm2733_vm0, %v2732_v1  ;;  %2661 = vmatmul.mubr.msk.f32.gmra.mxu1 %vm537_vm2, %v513_v55  ;;  %v522_v13 = vsel %vm360_vm12, %v279_v45, %v441_v47 }
  0x99   :  { %2663 = vmatprep.mubr.msk.f32.mxu1 %vm2733_vm0, %v2732_v1  ;;  %v520_v43 = vsel %vm358_vm10, %v277_v36, %v439_v40  ;;  %v440_v44 = vmul.f32 0.2, %v278_v41  ;;  %vm359_vm11 = vcmp.ge.f32.partialorder %v278_v41, 0.0 }
  0x9b   :  { %2553 = vmatmul.mubr.msk.f32.gmra.mxu0 %vm537_vm2, %v477_v50  ;;  %v521_v46 = vsel %vm359_vm11, %v278_v41, %v440_v44 }
  0x9c   :  { %2555 = vmatprep.mubr.msk.f32.mxu0 %vm2733_vm0, %v2732_v1  ;;  %2664 = vmatmul.mubr.msk.f32.gmra.mxu1 %vm537_vm2, %v514_v2 }
  0x9d   :  { %2666 = vmatprep.mubr.msk.f32.mxu1 %vm2733_vm0, %v2732_v1 }
  0x9f   :  { %2556 = vmatmul.mubr.msk.f32.gmra.mxu0 %vm537_vm2, %v478_v61 }
  0xa0   :  { %2558 = vmatprep.mubr.msk.f32.mxu0 %vm2733_vm0, %v2732_v1  ;;  %2667 = vmatmul.mubr.msk.f32.gmra.mxu1 %vm537_vm2, %v515_v14 }
  0xa1   :  { %2669 = vmatprep.mubr.msk.f32.mxu1 %vm2733_vm0, %v2732_v1 }
  0xa3   :  { %2559 = vmatmul.mubr.msk.f32.gmra.mxu0 %vm537_vm2, %v479_v10 }
  0xa4   :  { %2561 = vmatprep.mubr.msk.f32.mxu0 %vm2733_vm0, %v2732_v1  ;;  %2670 = vmatmul.mubr.msk.f32.gmra.mxu1 %vm537_vm2, %v516_v21 }
  0xa5   :  { %2672 = vmatprep.mubr.msk.f32.mxu1 %vm2733_vm0, %v2732_v1 }
  0xa7   :  { %2562 = vmatmul.mubr.msk.f32.gmra.mxu0 %vm537_vm2, %v480_v18 }
  0xa8   :  { %2564 = vmatprep.mubr.msk.f32.mxu0 %vm2733_vm0, %v2732_v1  ;;  %2673 = vmatmul.mubr.msk.f32.gmra.mxu1 %vm537_vm2, %v517_v28 }
  0xa9   :  { %2675 = vmatprep.mubr.msk.f32.mxu1 %vm2733_vm0, %v2732_v1 }
  0xab   :  { %2565 = vmatmul.mubr.msk.f32.gmra.mxu0 %vm537_vm2, %v481_v26 }
  0xac   :  { %2567 = vmatprep.mubr.msk.f32.mxu0 %vm2733_vm0, %v2732_v1  ;;  %2676 = vmatmul.mubr.msk.f32.gmra.mxu1 %vm537_vm2, %v518_v34 }
  0xad   :  { %2678 = vmatprep.mubr.msk.f32.mxu1 %vm2733_vm0, %v2732_v1 }
  0xaf   :  { %2568 = vmatmul.mubr.msk.f32.gmra.mxu0 %vm537_vm2, %v482_v33 }
  0xb0   :  { %2679 = vmatmul.mubr.msk.f32.gmra.mxu1 %vm537_vm2, %v519_v39 }
  0xb1   :  { %2681 = vmatprep.mubr.msk.f32.mxu1 %vm2733_vm0, %v2732_v1 }
  0xb4   :  { %2682 = vmatmul.mubr.msk.f32.gmra.mxu1 %vm537_vm2, %v520_v43 }
  0xb5   :  { %2684 = vmatprep.mubr.msk.f32.mxu1 %vm2733_vm0, %v2732_v1 }
  0xb8   :  { %2685 = vmatmul.mubr.msk.f32.gmra.mxu1 %vm537_vm2, %v521_v46 }
  0xb9   :  { %2687 = vmatprep.mubr.msk.f32.mxu1 %vm2733_vm0, %v2732_v1  ;;  %vm1332_vm0 = vcmask 9216  }
  0xbc   :  { %2688 = vmatmul.mubr.msk.f32.gmra.mxu1 %vm537_vm2, %v522_v13 }
  0xcf   :  { %v847_v48 = vpop.f32.mrf.mxu0 }
  0xd0   :  { %v848_v49 = vadd.f32 %v3482_v16, %v847_v48 }
  0xd1   :  { %v2449_v50 = vpop.f32.mrf.mxu0 }
  0xd2   :  { %1252 = vst.msk [vmem:[%s4454_s5] sm:$0xff] %vm1251_vm13, %v848_v49  ;;  %v1990_v1 = vmul.f32 %v848_v49, %v848_v49  ;;  %v1823_v54 = vsel %vm1251_vm13, %v848_v49, 0.0 }
  0xd3   :  { %v852_v51 = vpop.f32.mrf.mxu0 }
  0xd4   :  { %v853_v52 = vadd.f32 %v3482_v16, %v852_v51  ;;  %v2071_v59 = vsel %vm1251_vm13, %v1990_v1, 0.0 }
  0xd5   :  { %v2452_v53 = vpop.f32.mrf.mxu0 }
  0xd6   :  { %1253 = vst.msk [vmem:[%s4454_s5 + $0x8] sm:$0xff] %vm1251_vm13, %v853_v52  ;;  %v1824_v55 = vsel %vm1251_vm13, %v853_v52, 0.0  ;;  %v1991_v56 = vmul.f32 %v853_v52, %v853_v52 }
  0xd7   :  { %v1825_v57 = vadd.f32 %v1824_v55, %v1823_v54  ;;  %v857_v58 = vpop.f32.mrf.mxu0 }
  0xd8   :  { %v2072_v60 = vsel %vm1251_vm13, %v1991_v56, 0.0  ;;  %v858_v61 = vadd.f32 %v3482_v16, %v857_v58 }
  0xd9   :  { %v2073_v62 = vadd.f32 %v2072_v60, %v2071_v59  ;;  %v2455_v63 = vpop.f32.mrf.mxu0 }
  0xda   :  { %1254 = vst.msk [vmem:[%s4454_s5 + $0x10] sm:$0xff] %vm1251_vm13, %v858_v61  ;;  %v1826_v0 = vsel %vm1251_vm13, %v858_v61, 0.0  ;;  %v1992_v2 = vmul.f32 %v858_v61, %v858_v61 }
  0xdb   :  { %v1827_v3 = vadd.f32 %v1826_v0, %v1825_v57  ;;  %v862_v5 = vpop.f32.mrf.mxu0 }
  0xdc   :  { %v2074_v6 = vsel %vm1251_vm13, %v1992_v2, 0.0  ;;  %v863_v8 = vadd.f32 %v3482_v16, %v862_v5 }
  0xdd   :  { %v2075_v9 = vadd.f32 %v2074_v6, %v2073_v62  ;;  %v2458_v10 = vpop.f32.mrf.mxu0 }
  0xde   :  { %1255 = vst.msk [vmem:[%s4454_s5 + $0x18] sm:$0xff] %vm1251_vm13, %v863_v8  ;;  %v1828_v11 = vsel %vm1251_vm13, %v863_v8, 0.0  ;;  %v1993_v12 = vmul.f32 %v863_v8, %v863_v8 }
  0xdf   :  { %v1829_v14 = vadd.f32 %v1828_v11, %v1827_v3  ;;  %v867_v4 = vpop.f32.mrf.mxu0 }
  0xe0   :  { %v2076_v7 = vsel %vm1251_vm13, %v1993_v12, 0.0  ;;  %v868_v15 = vadd.f32 %v3482_v16, %v867_v4  ;;  %v1052_v23 = vpop.f32.mrf.mxu1 }
  0xe1   :  { %v2077_v17 = vadd.f32 %v2076_v7, %v2075_v9  ;;  %v2461_v18 = vpop.f32.mrf.mxu0  ;;  %v3521_v26 = vadd.f32 %v3482_v16, %v1052_v23 }
  0xe2   :  { %1256 = vst.msk [vmem:[%s4454_s5 + $0x20] sm:$0xff] %vm1251_vm13, %v868_v15  ;;  %v1830_v19 = vsel %vm1251_vm13, %v868_v15, 0.0  ;;  %v1994_v20 = vmul.f32 %v868_v15, %v868_v15  ;;  %v2572_v29 = vpop.f32.mrf.mxu1 }
  0xe3   :  { %v1831_v21 = vadd.f32 %v1830_v19, %v1829_v14  ;;  %v872_v22 = vpop.f32.mrf.mxu0  ;;  %1293 = vst.msk [vmem:[%s4454_s5 + $0x148] sm:$0xff] %vm1251_vm13, %v3521_v26 }
  0xe4   :  { %v2078_v24 = vsel %vm1251_vm13, %v1994_v20, 0.0  ;;  %v873_v25 = vadd.f32 %v3482_v16, %v872_v22  ;;  %v1057_v34 = vpop.f32.mrf.mxu1 }
  0xe5   :  { %v2079_v27 = vadd.f32 %v2078_v24, %v2077_v17  ;;  %v2464_v28 = vpop.f32.mrf.mxu0  ;;  %v3536_v37 = vadd.f32 %v3482_v16, %v1057_v34 }
  0xe6   :  { %1257 = vst.msk [vmem:[%s4454_s5 + $0x28] sm:$0xff] %vm1251_vm13, %v873_v25  ;;  %v1832_v30 = vsel %vm1251_vm13, %v873_v25, 0.0  ;;  %v1995_v31 = vmul.f32 %v873_v25, %v873_v25  ;;  %v2575_v40 = vpop.f32.mrf.mxu1 }
  0xe7   :  { %v1833_v32 = vadd.f32 %v1832_v30, %v1831_v21  ;;  %v877_v33 = vpop.f32.mrf.mxu0  ;;  %1294 = vst.msk [vmem:[%s4454_s5 + $0x150] sm:$0xff] %vm1251_vm13, %v3536_v37 }
  0xe8   :  { %v2080_v35 = vsel %vm1251_vm13, %v1995_v31, 0.0  ;;  %v878_v36 = vadd.f32 %v3482_v16, %v877_v33  ;;  %v1062_v45 = vpop.f32.mrf.mxu1 }
  0xe9   :  { %v2081_v38 = vadd.f32 %v2080_v35, %v2079_v27  ;;  %v2467_v39 = vpop.f32.mrf.mxu0  ;;  %v3551_v13 = vadd.f32 %v3482_v16, %v1062_v45 }
  0xea   :  { %1258 = vst.msk [vmem:[%s4454_s5 + $0x30] sm:$0xff] %vm1251_vm13, %v878_v36  ;;  %v1834_v41 = vsel %vm1251_vm13, %v878_v36, 0.0  ;;  %v1996_v42 = vmul.f32 %v878_v36, %v878_v36  ;;  %v2578_v50 = vpop.f32.mrf.mxu1 }
  0xeb   :  { %v1835_v43 = vadd.f32 %v1834_v41, %v1833_v32  ;;  %v882_v44 = vpop.f32.mrf.mxu0  ;;  %1295 = vst.msk [vmem:[%s4454_s5 + $0x158] sm:$0xff] %vm1251_vm13, %v3551_v13 }
  0xec   :  { %v2082_v46 = vsel %vm1251_vm13, %v1996_v42, 0.0  ;;  %v883_v47 = vadd.f32 %v3482_v16, %v882_v44  ;;  %v1067_v54 = vpop.f32.mrf.mxu1 }
  0xed   :  { %v2083_v48 = vadd.f32 %v2082_v46, %v2081_v38  ;;  %v2470_v49 = vpop.f32.mrf.mxu0  ;;  %v3566_v57 = vadd.f32 %v3482_v16, %v1067_v54 }
  0xee   :  { %1259 = vst.msk [vmem:[%s4454_s5 + $0x38] sm:$0xff] %vm1251_vm13, %v883_v47  ;;  %v1836_v51 = vsel %vm1251_vm13, %v883_v47, 0.0  ;;  %v1997_v1 = vmul.f32 %v883_v47, %v883_v47  ;;  %v2581_v60 = vpop.f32.mrf.mxu1 }
  0xef   :  { %v1837_v52 = vadd.f32 %v1836_v51, %v1835_v43  ;;  %v887_v53 = vpop.f32.mrf.mxu0  ;;  %1296 = vst.msk [vmem:[%s4454_s5 + $0x160] sm:$0xff] %vm1251_vm13, %v3566_v57 }
  0xf0   :  { %v2084_v55 = vsel %vm1251_vm13, %v1997_v1, 0.0  ;;  %v888_v56 = vadd.f32 %v3482_v16, %v887_v53  ;;  %v1072_v2 = vpop.f32.mrf.mxu1 }
  0xf1   :  { %v2085_v58 = vadd.f32 %v2084_v55, %v2083_v48  ;;  %v2473_v59 = vpop.f32.mrf.mxu0  ;;  %v3583_v6 = vadd.f32 %v3482_v16, %v1072_v2 }
  0xf2   :  { %1260 = vst.msk [vmem:[%s4454_s5 + $0x40] sm:$0xff] %vm1251_vm13, %v888_v56  ;;  %v1838_v61 = vsel %vm1251_vm13, %v888_v56, 0.0  ;;  %v1998_v62 = vmul.f32 %v888_v56, %v888_v56  ;;  %v2584_v10 = vpop.f32.mrf.mxu1 }
  0xf3   :  { %v1839_v63 = vadd.f32 %v1838_v61, %v1837_v52  ;;  %v892_v0 = vpop.f32.mrf.mxu0  ;;  %1297 = vst.msk [vmem:[%s4454_s5 + $0x168] sm:$0xff] %vm1251_vm13, %v3583_v6 }
  0xf4   :  { %v2086_v3 = vsel %vm1251_vm13, %v1998_v62, 0.0  ;;  %v3580_v5 = vadd.f32 %v3482_v16, %v892_v0  ;;  %v1077_v4 = vpop.f32.mrf.mxu1 }
  0xf5   :  { %v3585_v8 = vadd.f32 %v2086_v3, %v2085_v58  ;;  %v2476_v9 = vpop.f32.mrf.mxu0  ;;  %v3603_v15 = vadd.f32 %v3482_v16, %v1077_v4 }
  0xf6   :  { %1261 = vst.msk [vmem:[%s4454_s5 + $0x48] sm:$0xff] %vm1251_vm13, %v3580_v5  ;;  %v1840_v11 = vsel %vm1251_vm13, %v3580_v5, 0.0  ;;  %v2587_v18 = vpop.f32.mrf.mxu1 }
  0xf7   :  { %v1841_v12 = vadd.f32 %v1840_v11, %v1839_v63  ;;  %v897_v14 = vpop.f32.mrf.mxu0  ;;  %1298 = vst.msk [vmem:[%s4454_s5 + $0x170] sm:$0xff] %vm1251_vm13, %v3603_v15 }
  0xf8   :  { %v3600_v7 = vadd.f32 %v3482_v16, %v897_v14  ;;  %v1082_v22 = vpop.f32.mrf.mxu1 }
  0xf9   :  { %v2479_v17 = vpop.f32.mrf.mxu0  ;;  %v3623_v24 = vadd.f32 %v3482_v16, %v1082_v22 }
  0xfa   :  { %1262 = vst.msk [vmem:[%s4454_s5 + $0x50] sm:$0xff] %vm1251_vm13, %v3600_v7  ;;  %v1842_v19 = vsel %vm1251_vm13, %v3600_v7, 0.0  ;;  %v2590_v27 = vpop.f32.mrf.mxu1 }
  0xfb   :  { %v3617_v20 = vadd.f32 %v1842_v19, %v1841_v12  ;;  %v902_v21 = vpop.f32.mrf.mxu0  ;;  %1299 = vst.msk [vmem:[%s4454_s5 + $0x178] sm:$0xff] %vm1251_vm13, %v3623_v24 }
  0xfc   :  { %v3620_v23 = vadd.f32 %v3482_v16, %v902_v21  ;;  %v1087_v29 = vpop.f32.mrf.mxu1 }
  0xfd   :  { %v2482_v25 = vpop.f32.mrf.mxu0  ;;  %v3639_v31 = vadd.f32 %v3482_v16, %v1087_v29 }
  0xfe   :  { %1263 = vst.msk [vmem:[%s4454_s5 + $0x58] sm:$0xff] %vm1251_vm13, %v3620_v23  ;;  %v2593_v33 = vpop.f32.mrf.mxu1 }
  0xff   :  { %v907_v28 = vpop.f32.mrf.mxu0  ;;  %1300 = vst.msk [vmem:[%s4454_s5 + $0x180] sm:$0xff] %vm1251_vm13, %v3639_v31 }
 0x100   :  { %v3636_v30 = vadd.f32 %v3482_v16, %v907_v28  ;;  %v1092_v35 = vpop.f32.mrf.mxu1 }
 0x101   :  { %v2485_v32 = vpop.f32.mrf.mxu0  ;;  %v3655_v38 = vadd.f32 %v3482_v16, %v1092_v35 }
 0x102   :  { %1264 = vst.msk [vmem:[%s4454_s5 + $0x60] sm:$0xff] %vm1251_vm13, %v3636_v30  ;;  %v2596_v40 = vpop.f32.mrf.mxu1 }
 0x103   :  { %v912_v34 = vpop.f32.mrf.mxu0  ;;  %1301 = vst.msk [vmem:[%s4454_s5 + $0x188] sm:$0xff] %vm1251_vm13, %v3655_v38 }
 0x104   :  { %v3652_v36 = vadd.f32 %v3482_v16, %v912_v34  ;;  %v1097_v42 = vpop.f32.mrf.mxu1 }
 0x105   :  { %v2488_v39 = vpop.f32.mrf.mxu0  ;;  %v3671_v44 = vadd.f32 %v3482_v16, %v1097_v42 }
 0x106   :  { %1265 = vst.msk [vmem:[%s4454_s5 + $0x68] sm:$0xff] %vm1251_vm13, %v3652_v36  ;;  %v2599_v46 = vpop.f32.mrf.mxu1 }
 0x107   :  { %v917_v41 = vpop.f32.mrf.mxu0  ;;  %1302 = vst.msk [vmem:[%s4454_s5 + $0x190] sm:$0xff] %vm1251_vm13, %v3671_v44 }
 0x108   :  { %v3668_v43 = vadd.f32 %v3482_v16, %v917_v41  ;;  %v1102_v48 = vpop.f32.mrf.mxu1 }
 0x109   :  { %v2491_v45 = vpop.f32.mrf.mxu0  ;;  %v3687_v50 = vadd.f32 %v3482_v16, %v1102_v48 }
 0x10a   :  { %1266 = vst.msk [vmem:[%s4454_s5 + $0x70] sm:$0xff] %vm1251_vm13, %v3668_v43  ;;  %v2602_v1 = vpop.f32.mrf.mxu1 }
 0x10b   :  { %v922_v47 = vpop.f32.mrf.mxu0  ;;  %1303 = vst.msk [vmem:[%s4454_s5 + $0x198] sm:$0xff] %vm1251_vm13, %v3687_v50 }
 0x10c   :  { %v3684_v49 = vadd.f32 %v3482_v16, %v922_v47  ;;  %v1107_v53 = vpop.f32.mrf.mxu1 }
 0x10d   :  { %v2494_v51 = vpop.f32.mrf.mxu0  ;;  %v3703_v55 = vadd.f32 %v3482_v16, %v1107_v53 }
 0x10e   :  { %1267 = vst.msk [vmem:[%s4454_s5 + $0x78] sm:$0xff] %vm1251_vm13, %v3684_v49  ;;  %v2605_v58 = vpop.f32.mrf.mxu1 }
 0x10f   :  { %v927_v52 = vpop.f32.mrf.mxu0  ;;  %1304 = vst.msk [vmem:[%s4454_s5 + $0x1a0] sm:$0xff] %vm1251_vm13, %v3703_v55 }
 0x110   :  { %v3700_v54 = vadd.f32 %v3482_v16, %v927_v52  ;;  %v1112_v60 = vpop.f32.mrf.mxu1 }
 0x111   :  { %v2497_v56 = vpop.f32.mrf.mxu0  ;;  %v3719_v62 = vadd.f32 %v3482_v16, %v1112_v60 }
 0x112   :  { %1268 = vst.msk [vmem:[%s4454_s5 + $0x80] sm:$0xff] %vm1251_vm13, %v3700_v54  ;;  %v2608_v0 = vpop.f32.mrf.mxu1 }
 0x113   :  { %v932_v59 = vpop.f32.mrf.mxu0  ;;  %1305 = vst.msk [vmem:[%s4454_s5 + $0x1a8] sm:$0xff] %vm1251_vm13, %v3719_v62  ;;  %v1999_v0 = vmul.f32 %v3580_v5, %v3580_v5  ;;  %v2001_v5 = vmul.f32 %v3620_v23, %v3620_v23 }
 0x114   :  { %v3716_v61 = vadd.f32 %v3482_v16, %v932_v59  ;;  %v1117_v3 = vpop.f32.mrf.mxu1 }
 0x115   :  { %v2500_v63 = vpop.f32.mrf.mxu0  ;;  %v3735_v10 = vadd.f32 %v3482_v16, %v1117_v3 }
 0x116   :  { %1269 = vst.msk [vmem:[%s4454_s5 + $0x88] sm:$0xff] %vm1251_vm13, %v3716_v61  ;;  %v2611_v12 = vpop.f32.mrf.mxu1 }
 0x117   :  { %v937_v2 = vpop.f32.mrf.mxu0  ;;  %1306 = vst.msk [vmem:[%s4454_s5 + $0x1b0] sm:$0xff] %vm1251_vm13, %v3735_v10 }
 0x118   :  { %v3732_v9 = vadd.f32 %v3482_v16, %v937_v2  ;;  %v1122_v4 = vpop.f32.mrf.mxu1 }
 0x119   :  { %v2503_v11 = vpop.f32.mrf.mxu0  ;;  %v3751_v18 = vadd.f32 %v3482_v16, %v1122_v4 }
 0x11a   :  { %1270 = vst.msk [vmem:[%s4454_s5 + $0x90] sm:$0xff] %vm1251_vm13, %v3732_v9  ;;  %v2614_v21 = vpop.f32.mrf.mxu1 }
 0x11b   :  { %v942_v14 = vpop.f32.mrf.mxu0  ;;  %1307 = vst.msk [vmem:[%s4454_s5 + $0x1b8] sm:$0xff] %vm1251_vm13, %v3751_v18  ;;  %v2088_v21 = vsel %vm1251_vm13, %v1999_v0, 0.0 }
 0x11c   :  { %v3748_v17 = vadd.f32 %v3482_v16, %v942_v14  ;;  %v1127_v25 = vpop.f32.mrf.mxu1  ;;  %v2000_v14 = vmul.f32 %v3600_v7, %v3600_v7 }
 0x11d   :  { %v2506_v19 = vpop.f32.mrf.mxu0  ;;  %v3767_v28 = vadd.f32 %v3482_v16, %v1127_v25 }
 0x11e   :  { %1271 = vst.msk [vmem:[%s4454_s5 + $0x98] sm:$0xff] %vm1251_vm13, %v3748_v17  ;;  %v2617_v32 = vpop.f32.mrf.mxu1 }
 0x11f   :  { %v947_v22 = vpop.f32.mrf.mxu0  ;;  %1308 = vst.msk [vmem:[%s4454_s5 + $0x1c0] sm:$0xff] %vm1251_vm13, %v3767_v28  ;;  %v2090_v32 = vsel %vm1251_vm13, %v2000_v14, 0.0 }
 0x120   :  { %v3764_v27 = vadd.f32 %v3482_v16, %v947_v22  ;;  %v1132_v34 = vpop.f32.mrf.mxu1 }
 0x121   :  { %v2509_v29 = vpop.f32.mrf.mxu0  ;;  %v3783_v39 = vadd.f32 %v3482_v16, %v1132_v34  ;;  %v2002_v34 = vmul.f32 %v3636_v30, %v3636_v30 }
 0x122   :  { %1272 = vst.msk [vmem:[%s4454_s5 + $0xa0] sm:$0xff] %vm1251_vm13, %v3764_v27  ;;  %v2620_v41 = vpop.f32.mrf.mxu1 }
 0x123   :  { %v952_v33 = vpop.f32.mrf.mxu0  ;;  %1309 = vst.msk [vmem:[%s4454_s5 + $0x1c8] sm:$0xff] %vm1251_vm13, %v3783_v39  ;;  %v2092_v41 = vsel %vm1251_vm13, %v2001_v5, 0.0  ;;  %v1850_v5 = vsel %vm1251_vm13, %v3668_v43, 0.0 }
 0x124   :  { %v3780_v35 = vadd.f32 %v3482_v16, %v952_v33  ;;  %v1137_v45 = vpop.f32.mrf.mxu1  ;;  %v1844_v33 = vsel %vm1251_vm13, %v3620_v23, 0.0 }
 0x125   :  { %v2512_v40 = vpop.f32.mrf.mxu0  ;;  %v3799_v47 = vadd.f32 %v3482_v16, %v1137_v45  ;;  %v1846_v45 = vsel %vm1251_vm13, %v3636_v30, 0.0  ;;  %v2004_v30 = vmul.f32 %v3668_v43, %v3668_v43 }
 0x126   :  { %1273 = vst.msk [vmem:[%s4454_s5 + $0xa8] sm:$0xff] %vm1251_vm13, %v3780_v35  ;;  %v2623_v51 = vpop.f32.mrf.mxu1  ;;  %v2089_v40 = vadd.f32 %v2088_v21, %v3585_v8 }
 0x127   :  { %v957_v42 = vpop.f32.mrf.mxu0  ;;  %1310 = vst.msk [vmem:[%s4454_s5 + $0x1d0] sm:$0xff] %vm1251_vm13, %v3799_v47 }
 0x128   :  { %v3796_v46 = vadd.f32 %v3482_v16, %v957_v42  ;;  %v1142_v52 = vpop.f32.mrf.mxu1 }
 0x129   :  { %v2515_v48 = vpop.f32.mrf.mxu0  ;;  %v3815_v56 = vadd.f32 %v3482_v16, %v1142_v52  ;;  %v2091_v52 = vadd.f32 %v2090_v32, %v2089_v40  ;;  %v2006_v40 = vmul.f32 %v3700_v54, %v3700_v54 }
 0x12a   :  { %1274 = vst.msk [vmem:[%s4454_s5 + $0xb0] sm:$0xff] %vm1251_vm13, %v3796_v46  ;;  %v2626_v59 = vpop.f32.mrf.mxu1  ;;  %v2003_v48 = vmul.f32 %v3652_v36, %v3652_v36 }
 0x12b   :  { %v962_v1 = vpop.f32.mrf.mxu0  ;;  %1311 = vst.msk [vmem:[%s4454_s5 + $0x1d8] sm:$0xff] %vm1251_vm13, %v3815_v56 }
 0x12c   :  { %v3812_v53 = vadd.f32 %v3482_v16, %v962_v1  ;;  %v1147_v63 = vpop.f32.mrf.mxu1  ;;  %v2096_v14 = vsel %vm1251_vm13, %v2003_v48, 0.0  ;;  %v2007_v48 = vmul.f32 %v3716_v61, %v3716_v61 }
 0x12d   :  { %v2518_v58 = vpop.f32.mrf.mxu0  ;;  %v3833_v3 = vadd.f32 %v3482_v16, %v1147_v63  ;;  %v1848_v63 = vsel %vm1251_vm13, %v3652_v36, 0.0  ;;  %v2005_v36 = vmul.f32 %v3684_v49, %v3684_v49 }
 0x12e   :  { %1275 = vst.msk [vmem:[%s4454_s5 + $0xb8] sm:$0xff] %vm1251_vm13, %v3812_v53  ;;  %v2629_v12 = vpop.f32.mrf.mxu1  ;;  %v1845_v58 = vadd.f32 %v1844_v33, %v3617_v20  ;;  %v2093_v20 = vadd.f32 %v2092_v41, %v2091_v52  ;;  %v2098_v33 = vsel %vm1251_vm13, %v2004_v30, 0.0  ;;  %v2102_v30 = vsel %vm1251_vm13, %v2006_v40, 0.0 }
 0x12f   :  { %v967_v60 = vpop.f32.mrf.mxu0  ;;  %1312 = vst.msk [vmem:[%s4454_s5 + $0x1e0] sm:$0xff] %vm1251_vm13, %v3833_v3 }
 0x130   :  { %v3830_v2 = vadd.f32 %v3482_v16, %v967_v60  ;;  %v1152_v19 = vpop.f32.mrf.mxu1  ;;  %v2094_v60 = vsel %vm1251_vm13, %v2002_v34, 0.0  ;;  %v1847_v0 = vadd.f32 %v1846_v45, %v1845_v58  ;;  %v1852_v34 = vsel %vm1251_vm13, %v3684_v49, 0.0 }
 0x131   :  { %v2521_v11 = vpop.f32.mrf.mxu0  ;;  %v3854_v22 = vadd.f32 %v3482_v16, %v1152_v19  ;;  %v2095_v21 = vadd.f32 %v2094_v60, %v2093_v20  ;;  %v1854_v45 = vsel %vm1251_vm13, %v3700_v54, 0.0  ;;  %v1856_v20 = vsel %vm1251_vm13, %v3716_v61, 0.0 }
 0x132   :  { %1276 = vst.msk [vmem:[%s4454_s5 + $0xc0] sm:$0xff] %vm1251_vm13, %v3830_v2  ;;  %v2632_v29 = vpop.f32.mrf.mxu1  ;;  %v2008_v54 = vmul.f32 %v3732_v9, %v3732_v9  ;;  %v2009_v61 = vmul.f32 %v3748_v17, %v3748_v17 }
 0x133   :  { %v972_v4 = vpop.f32.mrf.mxu0  ;;  %1313 = vst.msk [vmem:[%s4454_s5 + $0x1e8] sm:$0xff] %vm1251_vm13, %v3854_v22  ;;  %v2097_v43 = vadd.f32 %v2096_v14, %v2095_v21  ;;  %v2104_v14 = vsel %vm1251_vm13, %v2007_v48, 0.0  ;;  %v2011_v48 = vmul.f32 %v3780_v35, %v3780_v35 }
 0x134   :  { %v3851_v7 = vadd.f32 %v3482_v16, %v972_v4  ;;  %v1157_v42 = vpop.f32.mrf.mxu1  ;;  %v2106_v40 = vsel %vm1251_vm13, %v2008_v54, 0.0 }
 0x135   :  { %v2524_v25 = vpop.f32.mrf.mxu0  ;;  %v3881_v1 = vadd.f32 %v3482_v16, %v1157_v42 }
 0x136   :  { %1277 = vst.msk [vmem:[%s4454_s5 + $0xc8] sm:$0xff] %vm1251_vm13, %v3851_v7  ;;  %v2635_v59 = vpop.f32.mrf.mxu1  ;;  %v1849_v25 = vadd.f32 %v1848_v63, %v1847_v0 }
 0x137   :  { %v977_v23 = vpop.f32.mrf.mxu0  ;;  %1314 = vst.msk [vmem:[%s4454_s5 + $0x1f0] sm:$0xff] %vm1251_vm13, %v3881_v1 }
 0x138   :  { %v3878_v51 = vadd.f32 %v3482_v16, %v977_v23  ;;  %v1162_v12 = vpop.f32.mrf.mxu1  ;;  %v1851_v41 = vadd.f32 %v1850_v5, %v1849_v25  ;;  %v2100_v23 = vsel %vm1251_vm13, %v2005_v36, 0.0  ;;  %v1858_v5 = vsel %vm1251_vm13, %v3732_v9, 0.0 }
 0x139   :  { %v2527_v8 = vpop.f32.mrf.mxu0  ;;  %v3908_v19 = vadd.f32 %v3482_v16, %v1162_v12 }
 0x13a   :  { %1278 = vst.msk [vmem:[%s4454_s5 + $0xd0] sm:$0xff] %vm1251_vm13, %v3878_v51  ;;  %v2638_v32 = vpop.f32.mrf.mxu1  ;;  %v2099_v8 = vadd.f32 %v2098_v33, %v2097_v43  ;;  %v1853_v59 = vadd.f32 %v1852_v34, %v1851_v41  ;;  %v1860_v43 = vsel %vm1251_vm13, %v3748_v17, 0.0  ;;  %v2010_v41 = vmul.f32 %v3764_v27, %v3764_v27 }
 0x13b   :  { %v982_v11 = vpop.f32.mrf.mxu0  ;;  %1315 = vst.msk [vmem:[%s4454_s5 + $0x1f8] sm:$0xff] %vm1251_vm13, %v3908_v19 }
 0x13c   :  { %v3905_v4 = vadd.f32 %v3482_v16, %v982_v11  ;;  %v1167_v42 = vpop.f32.mrf.mxu1  ;;  %v2101_v0 = vadd.f32 %v2100_v23, %v2099_v8  ;;  %v1855_v36 = vadd.f32 %v1854_v45, %v1853_v59  ;;  %v1862_v45 = vsel %vm1251_vm13, %v3764_v27, 0.0 }
 0x13d   :  { %v2530_v29 = vpop.f32.mrf.mxu0  ;;  %v3934_v58 = vadd.f32 %v3482_v16, %v1167_v42  ;;  %v2110_v54 = vsel %vm1251_vm13, %v2010_v41, 0.0  ;;  %v2012_v27 = vmul.f32 %v3796_v46, %v3796_v46 }
 0x13e   :  { %1279 = vst.msk [vmem:[%s4454_s5 + $0xd8] sm:$0xff] %vm1251_vm13, %v3905_v4  ;;  %v2641_v63 = vpop.f32.mrf.mxu1  ;;  %v2103_v29 = vadd.f32 %v2102_v30, %v2101_v0  ;;  %v1857_v32 = vadd.f32 %v1856_v20, %v1855_v36  ;;  %v1864_v0 = vsel %vm1251_vm13, %v3780_v35, 0.0  ;;  %v2013_v35 = vmul.f32 %v3812_v53, %v3812_v53 }
 0x13f   :  { %v987_v49 = vpop.f32.mrf.mxu0  ;;  %1316 = vst.msk [vmem:[%s4454_s5 + $0x200] sm:$0xff] %vm1251_vm13, %v3934_v58  ;;  %v2114_v41 = vsel %vm1251_vm13, %v2012_v27, 0.0 }
 0x140   :  { %v3931_v52 = vadd.f32 %v3482_v16, %v987_v49  ;;  %v1172_v12 = vpop.f32.mrf.mxu1  ;;  %v2105_v9 = vadd.f32 %v2104_v14, %v2103_v29  ;;  %v1859_v23 = vadd.f32 %v1858_v5, %v1857_v32  ;;  %v2108_v49 = vsel %vm1251_vm13, %v2009_v61, 0.0 }
 0x141   :  { %v2533_v60 = vpop.f32.mrf.mxu0  ;;  %v3960_v25 = vadd.f32 %v3482_v16, %v1172_v12  ;;  %v2112_v14 = vsel %vm1251_vm13, %v2011_v48, 0.0  ;;  %v1866_v5 = vsel %vm1251_vm13, %v3796_v46, 0.0  ;;  %v2015_v48 = vmul.f32 %v3851_v7, %v3851_v7 }
 0x142   :  { %1280 = vst.msk [vmem:[%s4454_s5 + $0xe0] sm:$0xff] %vm1251_vm13, %v3931_v52  ;;  %v2644_v34 = vpop.f32.mrf.mxu1  ;;  %v2107_v60 = vadd.f32 %v2106_v40, %v2105_v9  ;;  %v1861_v63 = vadd.f32 %v1860_v43, %v1859_v23  ;;  %v1868_v9 = vsel %vm1251_vm13, %v3812_v53, 0.0  ;;  %v2014_v23 = vmul.f32 %v3830_v2, %v3830_v2 }
 0x143   :  { %v992_v11 = vpop.f32.mrf.mxu0  ;;  %1317 = vst.msk [vmem:[%s4454_s5 + $0x208] sm:$0xff] %vm1251_vm13, %v3960_v25 }
 0x144   :  { %v3957_v21 = vadd.f32 %v3482_v16, %v992_v11  ;;  %v1177_v42 = vpop.f32.mrf.mxu1  ;;  %v2109_v36 = vadd.f32 %v2108_v49, %v2107_v60  ;;  %v1863_v61 = vadd.f32 %v1862_v45, %v1861_v63  ;;  %v1870_v45 = vsel %vm1251_vm13, %v3830_v2, 0.0 }
 0x145   :  { %v2536_v33 = vpop.f32.mrf.mxu0  ;;  %v3986_v59 = vadd.f32 %v3482_v16, %v1177_v42  ;;  %v2118_v27 = vsel %vm1251_vm13, %v2014_v23, 0.0  ;;  %v2016_v2 = vmul.f32 %v3878_v51, %v3878_v51 }
 0x146   :  { %1281 = vst.msk [vmem:[%s4454_s5 + $0xe8] sm:$0xff] %vm1251_vm13, %v3957_v21  ;;  %v2647_v20 = vpop.f32.mrf.mxu1  ;;  %v2111_v33 = vadd.f32 %v2110_v54, %v2109_v36  ;;  %v1865_v34 = vadd.f32 %v1864_v0, %v1863_v61  ;;  %v1872_v36 = vsel %vm1251_vm13, %v3851_v7, 0.0  ;;  %v2017_v7 = vmul.f32 %v3905_v4, %v3905_v4 }
 0x147   :  { %v997_v17 = vpop.f32.mrf.mxu0  ;;  %1318 = vst.msk [vmem:[%s4454_s5 + $0x210] sm:$0xff] %vm1251_vm13, %v3986_v59  ;;  %v2122_v23 = vsel %vm1251_vm13, %v2016_v2, 0.0 }
 0x148   :  { %v3983_v8 = vadd.f32 %v3482_v16, %v997_v17  ;;  %v1182_v12 = vpop.f32.mrf.mxu1  ;;  %v2113_v46 = vadd.f32 %v2112_v14, %v2111_v33  ;;  %v1867_v49 = vadd.f32 %v1866_v5, %v1865_v34  ;;  %v2116_v17 = vsel %vm1251_vm13, %v2013_v35, 0.0 }
 0x149   :  { %v2539_v30 = vpop.f32.mrf.mxu0  ;;  %v4012_v32 = vadd.f32 %v3482_v16, %v1182_v12  ;;  %v2120_v14 = vsel %vm1251_vm13, %v2015_v48, 0.0  ;;  %v1874_v5 = vsel %vm1251_vm13, %v3878_v51, 0.0  ;;  %v2019_v48 = vmul.f32 %v3957_v21, %v3957_v21 }
 0x14a   :  { %1282 = vst.msk [vmem:[%s4454_s5 + $0xf0] sm:$0xff] %vm1251_vm13, %v3983_v8  ;;  %v2650_v43 = vpop.f32.mrf.mxu1  ;;  %v2115_v30 = vadd.f32 %v2114_v41, %v2113_v46  ;;  %v1869_v20 = vadd.f32 %v1868_v9, %v1867_v49  ;;  %v1876_v46 = vsel %vm1251_vm13, %v3905_v4, 0.0  ;;  %v2018_v49 = vmul.f32 %v3931_v52, %v3931_v52 }
 0x14b   :  { %v1002_v11 = vpop.f32.mrf.mxu0  ;;  %1319 = vst.msk [vmem:[%s4454_s5 + $0x218] sm:$0xff] %vm1251_vm13, %v4012_v32 }
 0x14c   :  { %v4009_v29 = vadd.f32 %v3482_v16, %v1002_v11  ;;  %v1187_v42 = vpop.f32.mrf.mxu1  ;;  %v2117_v61 = vadd.f32 %v2116_v17, %v2115_v30  ;;  %v1871_v35 = vadd.f32 %v1870_v45, %v1869_v20  ;;  %v1878_v45 = vsel %vm1251_vm13, %v3931_v52, 0.0 }
 0x14d   :  { %v2542_v40 = vpop.f32.mrf.mxu0  ;;  %v4038_v63 = vadd.f32 %v3482_v16, %v1187_v42  ;;  %v2126_v2 = vsel %vm1251_vm13, %v2018_v49, 0.0  ;;  %v2020_v52 = vmul.f32 %v3983_v8, %v3983_v8 }
 0x14e   :  { %1283 = vst.msk [vmem:[%s4454_s5 + $0xf8] sm:$0xff] %vm1251_vm13, %v4009_v29  ;;  %v2653_v0 = vpop.f32.mrf.mxu1  ;;  %v2119_v40 = vadd.f32 %v2118_v27, %v2117_v61  ;;  %v1873_v43 = vadd.f32 %v1872_v36, %v1871_v35  ;;  %v1880_v61 = vsel %vm1251_vm13, %v3957_v21, 0.0 }
 0x14f   :  { %v1007_v53 = vpop.f32.mrf.mxu0  ;;  %1320 = vst.msk [vmem:[%s4454_s5 + $0x220] sm:$0xff] %vm1251_vm13, %v4038_v63  ;;  %v2130_v49 = vsel %vm1251_vm13, %v2020_v52, 0.0 }
 0x150   :  { %v4035_v60 = vadd.f32 %v3482_v16, %v1007_v53  ;;  %v1192_v12 = vpop.f32.mrf.mxu1  ;;  %v2121_v51 = vadd.f32 %v2120_v14, %v2119_v40  ;;  %v1875_v17 = vadd.f32 %v1874_v5, %v1873_v43  ;;  %v2124_v53 = vsel %vm1251_vm13, %v2017_v7, 0.0 }
 0x151   :  { %v2545_v54 = vpop.f32.mrf.mxu0  ;;  %v4062_v34 = vadd.f32 %v3482_v16, %v1192_v12  ;;  %v2128_v14 = vsel %vm1251_vm13, %v2019_v48, 0.0  ;;  %v1882_v5 = vsel %vm1251_vm13, %v3983_v8, 0.0 }
 0x152   :  { %1284 = vst.msk [vmem:[%s4454_s5 + $0x100] sm:$0xff] %vm1251_vm13, %v4035_v60  ;;  %v2656_v9 = vpop.f32.mrf.mxu1  ;;  %v2123_v54 = vadd.f32 %v2122_v23, %v2121_v51  ;;  %v1877_v0 = vadd.f32 %v1876_v46, %v1875_v17  ;;  %v1884_v51 = vsel %vm1251_vm13, %v4009_v29, 0.0  ;;  %v2022_v17 = vmul.f32 %v4035_v60, %v4035_v60 }
 0x153   :  { %v1012_v11 = vpop.f32.mrf.mxu0  ;;  %1321 = vst.msk [vmem:[%s4454_s5 + $0x228] sm:$0xff] %vm1251_vm13, %v4062_v34 }
 0x154   :  { %v1013_v33 = vadd.f32 %v3482_v16, %v1012_v11  ;;  %v1197_v4 = vpop.f32.mrf.mxu1  ;;  %v2125_v35 = vadd.f32 %v2124_v53, %v2123_v54  ;;  %v1879_v7 = vadd.f32 %v1878_v45, %v1877_v0  ;;  %v2021_v11 = vmul.f32 %v4009_v29, %v4009_v29 }
 0x155   :  { %v2548_v41 = vpop.f32.mrf.mxu0  ;;  %v4085_v20 = vadd.f32 %v3482_v16, %v1197_v4  ;;  %v1886_v45 = vsel %vm1251_vm13, %v4035_v60, 0.0  ;;  %v2134_v52 = vsel %vm1251_vm13, %v2022_v17, 0.0 }
 0x156   :  { %1285 = vst.msk [vmem:[%s4454_s5 + $0x108] sm:$0xff] %vm1251_vm13, %v1013_v33  ;;  %v2659_v36 = vpop.f32.mrf.mxu1  ;;  %v2127_v41 = vadd.f32 %v2126_v2, %v2125_v35  ;;  %v1881_v9 = vadd.f32 %v1880_v61, %v1879_v7  ;;  %v2023_v48 = vmul.f32 %v1013_v33, %v1013_v33  ;;  %v1888_v35 = vsel %vm1251_vm13, %v1013_v33, 0.0 }
 0x157   :  { %v1017_v42 = vpop.f32.mrf.mxu0  ;;  %1322 = vst.msk [vmem:[%s4454_s5 + $0x230] sm:$0xff] %vm1251_vm13, %v4085_v20 }
 0x158   :  { %v1018_v30 = vadd.f32 %v3482_v16, %v1017_v42  ;;  %v1202_v12 = vpop.f32.mrf.mxu1  ;;  %v2129_v8 = vadd.f32 %v2128_v14, %v2127_v41  ;;  %v1883_v53 = vadd.f32 %v1882_v5, %v1881_v9  ;;  %v2132_v42 = vsel %vm1251_vm13, %v2021_v11, 0.0 }
 0x159   :  { %v2551_v27 = vpop.f32.mrf.mxu0  ;;  %v4108_v43 = vadd.f32 %v3482_v16, %v1202_v12  ;;  %v2136_v5 = vsel %vm1251_vm13, %v2023_v48, 0.0 }
 0x15a   :  { %1286 = vst.msk [vmem:[%s4454_s5 + $0x110] sm:$0xff] %vm1251_vm13, %v1018_v30  ;;  %v2662_v46 = vpop.f32.mrf.mxu1  ;;  %v2131_v27 = vadd.f32 %v2130_v49, %v2129_v8  ;;  %v1885_v36 = vadd.f32 %v1884_v51, %v1883_v53  ;;  %v2024_v7 = vmul.f32 %v1018_v30, %v1018_v30  ;;  %v1890_v33 = vsel %vm1251_vm13, %v1018_v30, 0.0 }
 0x15b   :  { %v1022_v21 = vpop.f32.mrf.mxu0  ;;  %1323 = vst.msk [vmem:[%s4454_s5 + $0x238] sm:$0xff] %vm1251_vm13, %v4108_v43 }
 0x15c   :  { %v1023_v40 = vadd.f32 %v3482_v16, %v1022_v21  ;;  %v1207_v29 = vpop.f32.mrf.mxu1  ;;  %v2133_v60 = vadd.f32 %v2132_v42, %v2131_v27  ;;  %v1887_v11 = vadd.f32 %v1886_v45, %v1885_v36  ;;  %v2138_v17 = vsel %vm1251_vm13, %v2024_v7, 0.0 }
 0x15d   :  { %v2554_v23 = vpop.f32.mrf.mxu0  ;;  %v4129_v0 = vadd.f32 %v3482_v16, %v1207_v29 }
 0x15e   :  { %1287 = vst.msk [vmem:[%s4454_s5 + $0x118] sm:$0xff] %vm1251_vm13, %v1023_v40  ;;  %v2665_v61 = vpop.f32.mrf.mxu1  ;;  %v2025_v21 = vmul.f32 %v1023_v40, %v1023_v40  ;;  %v2135_v23 = vadd.f32 %v2134_v52, %v2133_v60  ;;  %v1889_v46 = vadd.f32 %v1888_v35, %v1887_v11  ;;  %v1892_v8 = vsel %vm1251_vm13, %v1023_v40, 0.0 }
 0x15f   :  { %v1027_v4 = vpop.f32.mrf.mxu0  ;;  %1324 = vst.msk [vmem:[%s4454_s5 + $0x240] sm:$0xff] %vm1251_vm13, %v4129_v0 }
 0x160   :  { %v1028_v54 = vadd.f32 %v3482_v16, %v1027_v4  ;;  %v1212_v14 = vpop.f32.mrf.mxu1  ;;  %v2137_v30 = vadd.f32 %v2136_v5, %v2135_v23  ;;  %v1891_v42 = vadd.f32 %v1890_v33, %v1889_v46  ;;  %v2140_v4 = vsel %vm1251_vm13, %v2025_v21, 0.0 }
 0x161   :  { %v2557_v2 = vpop.f32.mrf.mxu0  ;;  %v4146_v9 = vadd.f32 %v3482_v16, %v1212_v14 }
 0x162   :  { %1288 = vst.msk [vmem:[%s4454_s5 + $0x120] sm:$0xff] %vm1251_vm13, %v1028_v54  ;;  %v2668_v51 = vpop.f32.mrf.mxu1  ;;  %v2026_v53 = vmul.f32 %v1028_v54, %v1028_v54  ;;  %v1894_v40 = vsel %vm1251_vm13, %v1028_v54, 0.0  ;;  %v2139_v2 = vadd.f32 %v2138_v17, %v2137_v30  ;;  %v1893_v61 = vadd.f32 %v1892_v8, %v1891_v42 }
 0x163   :  { %v1032_v12 = vpop.f32.mrf.mxu0  ;;  %1325 = vst.msk [vmem:[%s4454_s5 + $0x248] sm:$0xff] %vm1251_vm13, %v4146_v9 }
 0x164   :  { %v1033_v41 = vadd.f32 %v3482_v16, %v1032_v12  ;;  %v1217_v45 = vpop.f32.mrf.mxu1  ;;  %v2142_v7 = vsel %vm1251_vm13, %v2026_v53, 0.0  ;;  %v2141_v11 = vadd.f32 %v2140_v4, %v2139_v2  ;;  %v1895_v21 = vadd.f32 %v1894_v40, %v1893_v61 }
 0x165   :  { %v2560_v49 = vpop.f32.mrf.mxu0  ;;  %v4163_v36 = vadd.f32 %v3482_v16, %v1217_v45 }
 0x166   :  { %1289 = vst.msk [vmem:[%s4454_s5 + $0x128] sm:$0xff] %vm1251_vm13, %v1033_v41  ;;  %v2027_v48 = vmul.f32 %v1033_v41, %v1033_v41  ;;  %v2671_v35 = vpop.f32.mrf.mxu1  ;;  %v1896_v60 = vsel %vm1251_vm13, %v1033_v41, 0.0  ;;  %v2143_v46 = vadd.f32 %v2142_v7, %v2141_v11  ;;  %v2031_v7 = vmul.f32 %v3521_v26, %v3521_v26 }
 0x167   :  { %v1037_v29 = vpop.f32.mrf.mxu0  ;;  %1326 = vst.msk [vmem:[%s4454_s5 + $0x250] sm:$0xff] %vm1251_vm13, %v4163_v36  ;;  %v1897_v49 = vadd.f32 %v1896_v60, %v1895_v21 }
 0x168   :  { %v1038_v27 = vadd.f32 %v3482_v16, %v1037_v29  ;;  %v1222_v14 = vpop.f32.mrf.mxu1  ;;  %v2144_v5 = vsel %vm1251_vm13, %v2027_v48, 0.0 }
 0x169   :  { %v2563_v52 = vpop.f32.mrf.mxu0  ;;  %v4180_v23 = vadd.f32 %v3482_v16, %v1222_v14  ;;  %v2145_v42 = vadd.f32 %v2144_v5, %v2143_v46  ;;  %v1904_v14 = vsel %vm1251_vm13, %v3521_v26, 0.0  ;;  %v2032_v5 = vmul.f32 %v3536_v37, %v3536_v37 }
 0x16a   :  { %1290 = vst.msk [vmem:[%s4454_s5 + $0x130] sm:$0xff] %vm1251_vm13, %v1038_v27  ;;  %v2028_v54 = vmul.f32 %v1038_v27, %v1038_v27  ;;  %v1898_v33 = vsel %vm1251_vm13, %v1038_v27, 0.0  ;;  %v2674_v17 = vpop.f32.mrf.mxu1  ;;  %v2033_v26 = vmul.f32 %v3551_v13, %v3551_v13 }
 0x16b   :  { %v1042_v12 = vpop.f32.mrf.mxu0  ;;  %1327 = vst.msk [vmem:[%s4454_s5 + $0x258] sm:$0xff] %vm1251_vm13, %v4180_v23  ;;  %v1899_v4 = vadd.f32 %v1898_v33, %v1897_v49 }
 0x16c   :  { %v1043_v41 = vadd.f32 %v3482_v16, %v1042_v12  ;;  %v2146_v8 = vsel %vm1251_vm13, %v2028_v54, 0.0  ;;  %v1227_v45 = vpop.f32.mrf.mxu1  ;;  %v1335_v12 = vlaneseq }
 0x16d   :  { %v2566_v51 = vpop.f32.mrf.mxu0  ;;  %v4196_v27 = vadd.f32 %v3482_v16, %v1227_v45  ;;  %v2147_v2 = vadd.f32 %v2146_v8, %v2145_v42  ;;  %v2152_v8 = vsel %vm1251_vm13, %v2031_v7, 0.0  ;;  %v2154_v45 = vsel %vm1251_vm13, %v2032_v5, 0.0 }
 0x16e   :  { %1291 = vst.msk [vmem:[%s4454_s5 + $0x138] sm:$0xff] %vm1251_vm13, %v1043_v41  ;;  %v1900_v53 = vsel %vm1251_vm13, %v1043_v41, 0.0  ;;  %v2029_v30 = vmul.f32 %v1043_v41, %v1043_v41  ;;  %v2677_v35 = vpop.f32.mrf.mxu1  ;;  %v2709_v41 = vld [vmem:[%s4453_s4] ss:$0 sm:$0xff]  ;;  %v1910_v7 = vsel %vm1251_vm13, %v3566_v57, 0.0 }
 0x16f   :  { %v1047_v29 = vpop.f32.mrf.mxu0  ;;  %v1901_v61 = vadd.f32 %v1900_v53, %v1899_v4  ;;  %1328 = vst.msk [vmem:[%s4454_s5 + $0x260] sm:$0xff] %vm1251_vm13, %v4196_v27  ;;  %v1906_v53 = vsel %vm1251_vm13, %v3536_v37, 0.0  ;;  %v2034_v37 = vmul.f32 %v3566_v57, %v3566_v57  ;;  %v2156_v35 = vsel %vm1251_vm13, %v2033_v26, 0.0 }
 0x170   :  { %v2148_v40 = vsel %vm1251_vm13, %v2029_v30, 0.0  ;;  %v1048_v48 = vadd.f32 %v3482_v16, %v1047_v29  ;;  %v1232_v21 = vpop.f32.mrf.mxu1  ;;  %v4230_v29 = vshrl.u32 %v1335_v12, 7  ;;  %v1912_v12 = vsel %vm1251_vm13, %v3583_v6, 0.0 }
 0x171   :  { %v2569_v52 = vpop.f32.mrf.mxu0  ;;  %v2149_v16 = vadd.f32 %v2148_v40, %v2147_v2  ;;  %v4218_v46 = vadd.f32 %v2709_v41, %v1232_v21  ;;  %v1908_v40 = vsel %vm1251_vm13, %v3551_v13, 0.0  ;;  %v2158_v21 = vsel %vm1251_vm13, %v2034_v37, 0.0 }
 0x172   :  { %1292 = vst.msk [vmem:[%s4454_s5 + $0x140] sm:$0xff] %vm1251_vm13, %v1048_v48  ;;  %v1902_v60 = vsel %vm1251_vm13, %v1048_v48, 0.0  ;;  %v2030_v54 = vmul.f32 %v1048_v48, %v1048_v48  ;;  %v2680_v17 = vpop.f32.mrf.mxu1  ;;  %v2036_v57 = vmul.f32 %v3603_v15, %v3603_v15  ;;  %vm2239_vm14 = vcmp.eq.s32.totalorder %v4230_v29, 1 }
 0x173   :  { %v1903_v11 = vadd.f32 %v1902_v60, %v1901_v61  ;;  %1329 = vst.msk [vmem:[%s4454_s5 + $0x268] sm:$0xff] %vm1251_vm13, %v4218_v46  ;;  %v2035_v60 = vmul.f32 %v3583_v6, %v3583_v6  ;;  %v1914_v17 = vsel %vm1251_vm13, %v3603_v15, 0.0  ;;  %v2038_v15 = vmul.f32 %v3639_v31, %v3639_v31 }
 0x174   :  { %v2150_v33 = vsel %vm1251_vm13, %v2030_v54, 0.0  ;;  %v1237_v4 = vpop.f32.mrf.mxu1  ;;  %vm2238_vm15 = vcmp.eq.s32.totalorder %v4230_v29, 0 }
 0x175   :  { %v1905_v49 = vadd.f32 %v1904_v14, %v1903_v11  ;;  %v2151_v51 = vadd.f32 %v2150_v33, %v2149_v16  ;;  %v4237_v48 = vadd.f32 %v2709_v41, %v1237_v4  ;;  %v1416_v11 = vadd.s32 640, %v4230_v29 }
 0x176   :  { %v2683_v52 = vpop.f32.mrf.mxu1 }
 0x177   :  { %v1907_v30 = vadd.f32 %v1906_v53, %v1905_v49  ;;  %v2153_v42 = vadd.f32 %v2152_v8, %v2151_v51  ;;  %1330 = vst.msk [vmem:[%s4454_s5 + $0x270] sm:$0xff] %vm1251_vm13, %v4237_v48  ;;  %v2160_v51 = vsel %vm1251_vm13, %v2035_v60, 0.0  ;;  %v2037_v8 = vmul.f32 %v3623_v24, %v3623_v24 }
 0x178   :  { %v1242_v16 = vpop.f32.mrf.mxu1  ;;  %vm1579_vm2 = vcmp.lt.s32.totalorder %v1416_v11, 642  ;;  %v2039_v52 = vmul.f32 %v3655_v38, %v3655_v38 }
 0x179   :  { %v1909_v2 = vadd.f32 %v1908_v40, %v1907_v30  ;;  %v2155_v61 = vadd.f32 %v2154_v45, %v2153_v42  ;;  %v4255_v14 = vadd.f32 %v2709_v41, %v1242_v16  ;;  %v2162_v30 = vsel %vm1251_vm13, %v2036_v57, 0.0 }
 0x17a   :  { %v2686_v49 = vpop.f32.mrf.mxu1  ;;  %v1916_v42 = vsel %vm1251_vm13, %v3623_v24, 0.0  ;;  %v1922_v57 = vsel %vm1251_vm13, %v3671_v44, 0.0 }
 0x17b   :  { %v1911_v13 = vadd.f32 %v1910_v7, %v1909_v2  ;;  %v2157_v54 = vadd.f32 %v2156_v35, %v2155_v61  ;;  %1331 = vst.msk [vmem:[%s4454_s5 + $0x278] sm:$0xff] %vm1251_vm13, %v4255_v14  ;;  %v2164_v2 = vsel %vm1251_vm13, %v2037_v8, 0.0  ;;  %v1918_v61 = vsel %vm1251_vm13, %v3639_v31, 0.0 }
 0x17c   :  { %v1247_v26 = vpop.f32.mrf.mxu1  ;;  %v1920_v31 = vsel %vm1251_vm13, %v3655_v38, 0.0 }
 0x17d   :  { %v1913_v5 = vadd.f32 %v1912_v12, %v1911_v13  ;;  %v2159_v33 = vadd.f32 %v2158_v21, %v2157_v54  ;;  %v1248_v4 = vadd.f32 %v2709_v41, %v1247_v26  ;;  %v2166_v13 = vsel %vm1251_vm13, %v2038_v15, 0.0 }
 0x17e   :  { %v2689_v37 = vpop.f32.mrf.mxu1  ;;  %v2040_v54 = vmul.f32 %v3671_v44, %v3671_v44  ;;  %v2168_v12 = vsel %vm1251_vm13, %v2039_v52, 0.0  ;;  %v1926_v44 = vsel %vm1251_vm13, %v3703_v55, 0.0  ;;  %v2043_v26 = vmul.f32 %v3719_v62, %v3719_v62 }
 0x17f   :  { %v1915_v6 = vadd.f32 %v1914_v17, %v1913_v5  ;;  %v2161_v53 = vadd.f32 %v2160_v51, %v2159_v33  ;;  %1333 = vst.msk [vmem:[%s4454_s5 + $0x280] sm:$0x3] %vm1332_vm0, %v1248_v4  ;;  %v1822_v24 = vsel %vm1579_vm2, %v1248_v4, 0.0  ;;  %v2041_v5 = vmul.f32 %v3687_v50, %v3687_v50  ;;  %s2734_s5 = smov [#allocation2]  }
 0x180   :  { %v4282_v41 = vsel %vm1332_vm0, %v1822_v24, 0.0  ;;  %v2070_v60 = vmul.f32 %v1822_v24, %v1822_v24  ;;  %v2170_v38 = vsel %vm1251_vm13, %v2040_v54, 0.0  ;;  %v1924_v51 = vsel %vm1251_vm13, %v3687_v50, 0.0  ;;  %s2251_s1 = sshll.u32 %s2734_s5, 4  ;;  %s2252_s1 = int_to_ptr.vmem [resolvable:$true] %s2251_s1 }
 0x181   :  { %v1917_v45 = vadd.f32 %v1916_v42, %v1915_v6  ;;  %v2163_v40 = vadd.f32 %v2162_v30, %v2161_v53  ;;  %v2042_v17 = vmul.f32 %v3703_v55, %v3703_v55  ;;  %v2172_v53 = vsel %vm1251_vm13, %v2041_v5, 0.0  ;;  %s2710_s25 = scalar_lea.vmem %s2252_s1, 128  ;;  %p2715_p1 = scmp.lt.s32.totalorder %s2252_s1, %s2252_s1 }
 0x182   :  { %v4290_v21 = vsel %vm1332_vm0, %v2070_v60, 0.0  ;;  %v1928_v50 = vsel %vm1251_vm13, %v3719_v62, 0.0  ;;  %v2044_v4 = vmul.f32 %v3735_v10, %v3735_v10  ;;  %v2176_v37 = vsel %vm1251_vm13, %v2043_v26, 0.0  ;;  %p2711_p0 = scmp.ne.s32.totalorder %s2252_s1, %s2710_s25  ;;  %p2716_p2 = scmp.lt.s32.totalorder %s2710_s25, %s2710_s25 }
 0x183   :  { %v1919_v35 = vadd.f32 %v1918_v61, %v1917_v45  ;;  %v2165_v7 = vadd.f32 %v2164_v2, %v2163_v40  ;;  %v2174_v15 = vsel %vm1251_vm13, %v2042_v17, 0.0  ;;  %v1930_v55 = vsel %vm1251_vm13, %v3735_v10, 0.0 }
 0x184   :  { %v2045_v2 = vmul.f32 %v3751_v18, %v3751_v18  ;;  %v2178_v24 = vsel %vm1251_vm13, %v2044_v4, 0.0  ;;  %v1932_v62 = vsel %vm1251_vm13, %v3751_v18, 0.0  ;;  %v1934_v10 = vsel %vm1251_vm13, %v3767_v28, 0.0  ;;  %p2717_p3 = por %p2716_p2, %p2715_p1 }
 0x185   :  { %v1921_v16 = vadd.f32 %v1920_v31, %v1919_v35  ;;  %v2167_v11 = vadd.f32 %v2166_v13, %v2165_v7  ;;  %v2046_v35 = vmul.f32 %v3767_v28, %v3767_v28  ;;  %v2047_v31 = vmul.f32 %v3783_v39, %v3783_v39 }
 0x186   :  { %v2180_v13 = vsel %vm1251_vm13, %v2045_v2, 0.0  ;;  %v1936_v18 = vsel %vm1251_vm13, %v3783_v39, 0.0  ;;  %v1938_v28 = vsel %vm1251_vm13, %v3799_v47, 0.0  ;;  %v1940_v39 = vsel %vm1251_vm13, %v3815_v56, 0.0  ;;  %p2718_p4 = pnand %p2717_p3, %p2711_p0 }
 0x187   :  { %v1923_v33 = vadd.f32 %v1922_v57, %v1921_v16  ;;  %v2169_v49 = vadd.f32 %v2168_v12, %v2167_v11  ;;  %v2182_v11 = vsel %vm1251_vm13, %v2046_v35, 0.0  ;;  %v2048_v12 = vmul.f32 %v3799_v47, %v3799_v47 }
 0x188   :  { %v1942_v47 = vsel %vm1251_vm13, %v3833_v3, 0.0  ;;  %v2051_v26 = vmul.f32 %v3854_v22, %v3854_v22 }
 0x189   :  { %v2171_v8 = vadd.f32 %v2170_v38, %v2169_v49  ;;  %v1925_v6 = vadd.f32 %v1924_v51, %v1923_v33  ;;  %v2184_v33 = vsel %vm1251_vm13, %v2047_v31, 0.0  ;;  %v2049_v49 = vmul.f32 %v3815_v56, %v3815_v56 }
 0x18a   :  { %v2186_v17 = vsel %vm1251_vm13, %v2048_v12, 0.0  ;;  %v1944_v56 = vsel %vm1251_vm13, %v3854_v22, 0.0  ;;  %v1948_v22 = vsel %vm1251_vm13, %v3908_v19, 0.0  ;;  %v2056_v31 = vmul.f32 %v3986_v59, %v3986_v59 }
 0x18b   :  { %v1927_v30 = vadd.f32 %v1926_v44, %v1925_v6  ;;  %v2173_v42 = vadd.f32 %v2172_v53, %v2171_v8  ;;  %v2050_v8 = vmul.f32 %v3833_v3, %v3833_v3  ;;  %v2188_v44 = vsel %vm1251_vm13, %v2049_v49, 0.0 }
 0x18c   :  { %v1946_v3 = vsel %vm1251_vm13, %v3881_v1, 0.0 }
 0x18d   :  { %v1929_v45 = vadd.f32 %v1928_v50, %v1927_v30  ;;  %v2175_v40 = vadd.f32 %v2174_v15, %v2173_v42  ;;  %v2190_v15 = vsel %vm1251_vm13, %v2050_v8, 0.0  ;;  %v2052_v50 = vmul.f32 %v3881_v1, %v3881_v1 }
 0x18e   :  { %v1950_v1 = vsel %vm1251_vm13, %v3934_v58, 0.0 }
 0x18f   :  { %v1931_v61 = vadd.f32 %v1930_v55, %v1929_v45  ;;  %v2177_v52 = vadd.f32 %v2176_v37, %v2175_v40  ;;  %v2192_v40 = vsel %vm1251_vm13, %v2051_v26, 0.0  ;;  %v2053_v37 = vmul.f32 %v3908_v19, %v3908_v19 }
 0x190   :  { %v1952_v19 = vsel %vm1251_vm13, %v3960_v25, 0.0  ;;  %v2061_v26 = vmul.f32 %v4108_v43, %v4108_v43 }
 0x191   :  { %v1933_v7 = vadd.f32 %v1932_v62, %v1931_v61  ;;  %v2179_v60 = vadd.f32 %v2178_v24, %v2177_v52  ;;  %v2194_v61 = vsel %vm1251_vm13, %v2052_v50, 0.0  ;;  %v2054_v52 = vmul.f32 %v3934_v58, %v3934_v58 }
 0x192   :  { %v2196_v35 = vsel %vm1251_vm13, %v2053_v37, 0.0  ;;  %v1954_v58 = vsel %vm1251_vm13, %v3986_v59, 0.0  ;;  %v1958_v59 = vsel %vm1251_vm13, %v4038_v63, 0.0 }
 0x193   :  { %v1935_v54 = vadd.f32 %v1934_v10, %v1933_v7  ;;  %v2181_v16 = vadd.f32 %v2180_v13, %v2179_v60  ;;  %v2055_v7 = vmul.f32 %v3960_v25, %v3960_v25  ;;  %v2198_v10 = vsel %vm1251_vm13, %v2054_v52, 0.0 }
 0x194   :  { %v1956_v25 = vsel %vm1251_vm13, %v4012_v32, 0.0 }
 0x195   :  { %v1937_v57 = vadd.f32 %v1936_v18, %v1935_v54  ;;  %v2183_v5 = vadd.f32 %v2182_v11, %v2181_v16  ;;  %v2200_v11 = vsel %vm1251_vm13, %v2055_v7, 0.0  ;;  %v2057_v18 = vmul.f32 %v4012_v32, %v4012_v32 }
 0x196   :  { %v1960_v32 = vsel %vm1251_vm13, %v4062_v34, 0.0  ;;  %v2066_v7 = vmul.f32 %v4196_v27, %v4196_v27 }
 0x197   :  { %v1939_v38 = vadd.f32 %v1938_v28, %v1937_v57  ;;  %v2185_v51 = vadd.f32 %v2184_v33, %v2183_v5  ;;  %v2202_v5 = vsel %vm1251_vm13, %v2056_v31, 0.0  ;;  %v2058_v33 = vmul.f32 %v4038_v63, %v4038_v63 }
 0x198   :  { %v1962_v63 = vsel %vm1251_vm13, %v4085_v20, 0.0 }
 0x199   :  { %v1941_v6 = vadd.f32 %v1940_v39, %v1939_v38  ;;  %v2187_v53 = vadd.f32 %v2186_v17, %v2185_v51  ;;  %v2204_v38 = vsel %vm1251_vm13, %v2057_v18, 0.0  ;;  %v2059_v51 = vmul.f32 %v4062_v34, %v4062_v34 }
 0x19a   :  { %v2206_v8 = vsel %vm1251_vm13, %v2058_v33, 0.0  ;;  %v1964_v34 = vsel %vm1251_vm13, %v4108_v43, 0.0  ;;  %v1968_v43 = vsel %vm1251_vm13, %v4146_v9, 0.0 }
 0x19b   :  { %v1943_v30 = vadd.f32 %v1942_v47, %v1941_v6  ;;  %v2189_v42 = vadd.f32 %v2188_v44, %v2187_v53  ;;  %v2060_v6 = vmul.f32 %v4085_v20, %v4085_v20  ;;  %v2208_v47 = vsel %vm1251_vm13, %v2059_v51, 0.0 }
 0x19c   :  { %v1966_v20 = vsel %vm1251_vm13, %v4129_v0, 0.0 }
 0x19d   :  { %v1945_v4 = vadd.f32 %v1944_v56, %v1943_v30  ;;  %v2191_v45 = vadd.f32 %v2190_v15, %v2189_v42  ;;  %v2210_v15 = vsel %vm1251_vm13, %v2060_v6, 0.0  ;;  %v2062_v56 = vmul.f32 %v4129_v0, %v4129_v0 }
 0x19e   :  { %v1970_v0 = vsel %vm1251_vm13, %v4163_v36, 0.0 }
 0x19f   :  { %v2193_v55 = vadd.f32 %v2192_v40, %v2191_v45  ;;  %v1947_v2 = vadd.f32 %v1946_v3, %v1945_v4  ;;  %v2212_v45 = vsel %vm1251_vm13, %v2061_v26, 0.0  ;;  %v2063_v40 = vmul.f32 %v4146_v9, %v4146_v9 }
 0x1a0   :  { %v1972_v9 = vsel %vm1251_vm13, %v4180_v23, 0.0 }
 0x1a1   :  { %v2195_v24 = vadd.f32 %v2194_v61, %v2193_v55  ;;  %v1949_v62 = vadd.f32 %v1948_v22, %v1947_v2  ;;  %v2214_v55 = vsel %vm1251_vm13, %v2062_v56, 0.0  ;;  %v2064_v2 = vmul.f32 %v4163_v36, %v4163_v36 }
 0x1a2   :  { %v2216_v52 = vsel %vm1251_vm13, %v2063_v40, 0.0  ;;  %v1974_v36 = vsel %vm1251_vm13, %v4196_v27, 0.0  ;;  %v1978_v27 = vsel %vm1251_vm13, %v4237_v48, 0.0 }
 0x1a3   :  { %v2197_v60 = vadd.f32 %v2196_v35, %v2195_v24  ;;  %v1951_v13 = vadd.f32 %v1950_v1, %v1949_v62  ;;  %v2065_v24 = vmul.f32 %v4180_v23, %v4180_v23  ;;  %v2218_v1 = vsel %vm1251_vm13, %v2064_v2, 0.0 }
 0x1a4   :  { %v1976_v23 = vsel %vm1251_vm13, %v4218_v46, 0.0 }
 0x1a5   :  { %v2199_v54 = vadd.f32 %v2198_v10, %v2197_v60  ;;  %v1953_v16 = vadd.f32 %v1952_v19, %v1951_v13  ;;  %v2220_v10 = vsel %vm1251_vm13, %v2065_v24, 0.0  ;;  %v2067_v19 = vmul.f32 %v4218_v46, %v4218_v46 }
 0x1a6   :  { %v1980_v46 = vsel %vm1251_vm13, %v4255_v14, 0.0 }
 0x1a7   :  { %v2201_v12 = vadd.f32 %v2200_v11, %v2199_v54  ;;  %v1955_v57 = vadd.f32 %v1954_v58, %v1953_v16  ;;  %v2222_v16 = vsel %vm1251_vm13, %v2066_v7, 0.0  ;;  %v2068_v11 = vmul.f32 %v4237_v48, %v4237_v48 }
 0x1a9   :  { %v2203_v28 = vadd.f32 %v2202_v5, %v2201_v12  ;;  %v1957_v49 = vadd.f32 %v1956_v25, %v1955_v57  ;;  %v2224_v12 = vsel %vm1251_vm13, %v2067_v19, 0.0  ;;  %v2069_v57 = vmul.f32 %v4255_v14, %v4255_v14 }
 0x1aa   :  { %v2226_v33 = vsel %vm1251_vm13, %v2068_v11, 0.0 }
 0x1ab   :  { %v2205_v17 = vadd.f32 %v2204_v38, %v2203_v28  ;;  %v1959_v39 = vadd.f32 %v1958_v59, %v1957_v49  ;;  %v2228_v38 = vsel %vm1251_vm13, %v2069_v57, 0.0 }
 0x1ad   :  { %v2207_v53 = vadd.f32 %v2206_v8, %v2205_v17  ;;  %v1961_v44 = vadd.f32 %v1960_v32, %v1959_v39 }
 0x1af   :  { %v2209_v30 = vadd.f32 %v2208_v47, %v2207_v53  ;;  %v1963_v42 = vadd.f32 %v1962_v63, %v1961_v44 }
 0x1b1   :  { %v2211_v50 = vadd.f32 %v2210_v15, %v2209_v30  ;;  %v1965_v4 = vadd.f32 %v1964_v34, %v1963_v42 }
 0x1b3   :  { %v2213_v3 = vadd.f32 %v2212_v45, %v2211_v50  ;;  %v1967_v37 = vadd.f32 %v1966_v20, %v1965_v4 }
 0x1b5   :  { %v2215_v61 = vadd.f32 %v2214_v55, %v2213_v3  ;;  %v1969_v22 = vadd.f32 %v1968_v43, %v1967_v37 }
 0x1b7   :  { %v2217_v62 = vadd.f32 %v2216_v52, %v2215_v61  ;;  %v1971_v35 = vadd.f32 %v1970_v0, %v1969_v22 }
 0x1b9   :  { %v2219_v60 = vadd.f32 %v2218_v1, %v2217_v62  ;;  %v1973_v13 = vadd.f32 %v1972_v9, %v1971_v35 }
 0x1bb   :  { %v2221_v31 = vadd.f32 %v2220_v10, %v2219_v60  ;;  %v1975_v54 = vadd.f32 %v1974_v36, %v1973_v13 }
 0x1bd   :  { %v2223_v58 = vadd.f32 %v2222_v16, %v2221_v31  ;;  %v1977_v18 = vadd.f32 %v1976_v23, %v1975_v54 }
 0x1bf   :  { %v2225_v5 = vadd.f32 %v2224_v12, %v2223_v58  ;;  %v1979_v25 = vadd.f32 %v1978_v27, %v1977_v18 }
 0x1c1   :  { %v2227_v28 = vadd.f32 %v2226_v33, %v2225_v5  ;;  %v1981_v49 = vadd.f32 %v1980_v46, %v1979_v25 }
 0x1c3   :  { %v2229_v59 = vadd.f32 %v2228_v38, %v2227_v28  ;;  %v1983_v51 = vadd.f32 %v4282_v41, %v1981_v49 }
 0x1c5   :  { %v1984_v17 = vrot.slane %v1983_v51, 4  ;;  %v2231_v48 = vadd.f32 %v4290_v21, %v2229_v59 }
 0x1c7   :  { %v1985_v39 = vadd.f32 %v1984_v17, %v1983_v51  ;;  %v2232_v8 = vrot.slane %v2231_v48, 4 }
 0x1c9   :  { %v1986_v32 = vrot.slane %v1985_v39, 2  ;;  %v2233_v6 = vadd.f32 %v2232_v8, %v2231_v48 }
 0x1cb   :  { %v1987_v53 = vadd.f32 %v1986_v32, %v1985_v39  ;;  %v2234_v44 = vrot.slane %v2233_v6, 2 }
 0x1cd   :  { %v2235_v47 = vadd.f32 %v2234_v44, %v2233_v6  ;;  %v1988_v63 = vrot.slane %v1987_v53, 1 }
 0x1cf   :  { %v2236_v26 = vrot.slane %v2235_v47, 1  ;;  %v1989_v41 = vadd.f32 %v1988_v63, %v1987_v53 }
 0x1d1   :  { %v2237_v14 = vadd.f32 %v2236_v26, %v2235_v47 }
 0x1d3   :  { %v2240_v30 = vsel %vm2239_vm14, %v2237_v14, 0.0 }
 0x1d4   :  { %v2241_v21 = vsel %vm2238_vm15, %v1989_v41, %v2240_v30 }
 0x1d5   :  { %2242 = vst.msk [vmem:[#allocation2] sm:$0xff] %vm1251_vm13, %v2241_v21 }
 0x1d6   :  { %2721 = shalt.err (!%p2718_p4)
}
 0x1d7   :  { %2254 = dma.vmem_to_hbm [thread:$0]  %s2252_s1, 128, %s4455_s6, [#allocation3]  }
 0x1d8   :  { %2730 = dma.done.wait [#allocation3], 128  }
 0x1d9   :  { %2731 = vsyncadd [#allocation3], 4294967168 }
 0x1da   :  { %2260 = vsyncpa [#allocation3], 1 }

// kernel: gen_phi_forward.6
= control target key start
LH: loop header
LB: loop body
LE: loop exit
PB: predicated region body
PF: predicated region fallthrough
CT: control target
= control target key end

     0   :  { %v2698_v0 = vmov 0.0   ;;  %vm2699_vm0 = vmmov 0   ;;  %vm536_vm2 = vcmask 457728   ;;  %s4413_s3 = inlined_call_operand.vmem [shape: f32[56,8], index: 3, kind: input, shape index: {}]   ;;  %s4414_s0 = inlined_call_operand.vmem [shape: f32[642,56], index: 0, kind: input, shape index: {}]   ;;  %s4415_s1 = inlined_call_operand.vmem [shape: f32[1,56], index: 1, kind: input, shape index: {}]   ;;  %s4416_s2 = inlined_call_operand.vmem [shape: f32[1,56], index: 2, kind: input, shape index: {}]   ;;  %s4417_s4 = inlined_call_operand.vmem [shape: f32[1,8], index: 4, kind: input, shape index: {}]   ;;  %s4418_s5 = inlined_call_operand.vmem [shape: f32[642,8], index: 5, kind: output, shape index: {0}]   ;;  %s4419_s6 = inlined_call_operand.vmem [shape: f32[1,8,8], index: 6, kind: output, shape index: {1}]  }
   0x1   :  { %2422 = vmatprep.subr.mxu0 %v2698_v0  ;;  %v528_v1 = vld [vmem:[%s4413_s3 + $0x30] sm:$0xff]  ;;  %v527_v2 = vld [vmem:[%s4413_s3 + $0x28] sm:$0xff]  ;;  %2436 = vmatprep.mubr.msk.f32.mxu0 %vm2699_vm0, %v2698_v0  ;;  %v526_v3 = vld [vmem:[%s4413_s3 + $0x20] sm:$0xff] }
   0x2   :  { %2423 = vmatpush3.msra.mxu0 %v528_v1  ;;  %2679 = vmatprep.subr.mxu1 %v2698_v0  ;;  %v22_v4 = vld [vmem:[%s4414_s0] sm:$0xff]  ;;  %v23_v8 = vld [vmem:[%s4414_s0 + $0x8] sm:$0xff]  ;;  %v525_v9 = vld [vmem:[%s4413_s3 + $0x18] sm:$0xff] }
   0x3   :  { %2424 = vmatprep.subr.mxu0 %v2698_v0  ;;  %v2755_v5 = vld [vmem:[%s4415_s1] ss:$0 sm:$0xff]  ;;  %2686 = vmatpush3.msra.mxu1 %v528_v1  ;;  %v24_v11 = vld [vmem:[%s4414_s0 + $0x10] sm:$0xff]  ;;  %v523_v17 = vld [vmem:[%s4413_s3 + $0x8] sm:$0xff] }
   0x4   :  { %2425 = vmatpush3.msra.mxu0 %v527_v2  ;;  %v110_v6 = vmul.f32 %v2755_v5, %v22_v4  ;;  %v2761_v7 = vld [vmem:[%s4416_s2] ss:$0 sm:$0xff]  ;;  %2680 = vmatprep.subr.mxu1 %v2698_v0  ;;  %v111_v10 = vmul.f32 %v2755_v5, %v23_v8  ;;  %v524_v13 = vld [vmem:[%s4413_s3 + $0x10] sm:$0xff]  ;;  %v112_v16 = vmul.f32 %v2755_v5, %v24_v11  ;;  %v25_v18 = vld [vmem:[%s4414_s0 + $0x18] sm:$0xff] }
   0x5   :  { %2426 = vmatprep.subr.mxu0 %v2698_v0  ;;  %2687 = vmatpush3.msra.mxu1 %v527_v2  ;;  %v522_v19 = vld [vmem:[%s4413_s3] sm:$0xff]  ;;  %v113_v23 = vmul.f32 %v2755_v5, %v25_v18  ;;  %v27_v29 = vld [vmem:[%s4414_s0 + $0x28] sm:$0xff]  ;;  %v28_v34 = vld [vmem:[%s4414_s0 + $0x30] sm:$0xff] }
   0x6   :  { %2427 = vmatpush3.msra.mxu0 %v526_v3  ;;  %v198_v12 = vadd.f32 %v2761_v7, %v110_v6  ;;  %v199_v15 = vadd.f32 %v2761_v7, %v111_v10  ;;  %2681 = vmatprep.subr.mxu1 %v2698_v0  ;;  %v200_v22 = vadd.f32 %v2761_v7, %v112_v16  ;;  %v26_v24 = vld [vmem:[%s4414_s0 + $0x20] sm:$0xff]  ;;  %v29_v39 = vld [vmem:[%s4414_s0 + $0x38] sm:$0xff]  ;;  %v63_v40 = vld [vmem:[%s4414_s0 + $0x148] sm:$0xff] }
   0x7   :  { %2428 = vmatprep.subr.mxu0 %v2698_v0  ;;  %2688 = vmatpush3.msra.mxu1 %v526_v3  ;;  %v201_v27 = vadd.f32 %v2761_v7, %v113_v23  ;;  %v114_v28 = vmul.f32 %v2755_v5, %v26_v24  ;;  %v115_v33 = vmul.f32 %v2755_v5, %v27_v29  ;;  %v64_v41 = vld [vmem:[%s4414_s0 + $0x150] sm:$0xff]  ;;  %v30_v48 = vld [vmem:[%s4414_s0 + $0x40] sm:$0xff]  ;;  %v65_v52 = vld [vmem:[%s4414_s0 + $0x158] sm:$0xff] }
   0x8   :  { %2429 = vmatpush3.msra.mxu0 %v525_v9  ;;  %v360_v14 = vmul.f32 0.2, %v198_v12  ;;  %vm279_vm1 = vcmp.ge.f32.partialorder %v198_v12, 0.0  ;;  %2682 = vmatprep.subr.mxu1 %v2698_v0  ;;  %v361_v21 = vmul.f32 0.2, %v199_v15  ;;  %vm280_vm3 = vcmp.ge.f32.partialorder %v199_v15, 0.0 }
   0x9   :  { %2430 = vmatprep.subr.mxu0 %v2698_v0  ;;  %2689 = vmatpush3.msra.mxu1 %v525_v9  ;;  %v362_v26 = vmul.f32 0.2, %v200_v22  ;;  %vm281_vm4 = vcmp.ge.f32.partialorder %v200_v22, 0.0  ;;  %v363_v31 = vmul.f32 0.2, %v201_v27  ;;  %v202_v32 = vadd.f32 %v2761_v7, %v114_v28  ;;  %v31_v56 = vld [vmem:[%s4414_s0 + $0x48] sm:$0xff] }
   0xa   :  { %2431 = vmatpush3.msra.mxu0 %v524_v13  ;;  %v441_v20 = vsel %vm279_vm1, %v198_v12, %v360_v14  ;;  %2683 = vmatprep.subr.mxu1 %v2698_v0  ;;  %v442_v25 = vsel %vm280_vm3, %v199_v15, %v361_v21  ;;  %vm282_vm5 = vcmp.ge.f32.partialorder %v201_v27, 0.0  ;;  %v116_v35 = vmul.f32 %v2755_v5, %v28_v34  ;;  %v66_v57 = vld [vmem:[%s4414_s0 + $0x160] sm:$0xff]  ;;  %v67_v61 = vld [vmem:[%s4414_s0 + $0x168] sm:$0xff]  ;;  %v32_v8 = vld [vmem:[%s4414_s0 + $0x50] sm:$0xff] }
   0xb   :  { %2432 = vmatprep.subr.mxu0 %v2698_v0  ;;  %2690 = vmatpush3.msra.mxu1 %v524_v13  ;;  %v443_v30 = vsel %vm281_vm4, %v200_v22, %v362_v26  ;;  %v444_v36 = vsel %vm282_vm5, %v201_v27, %v363_v31  ;;  %v364_v37 = vmul.f32 0.2, %v202_v32  ;;  %v203_v38 = vadd.f32 %v2761_v7, %v115_v33  ;;  %v68_v13 = vld [vmem:[%s4414_s0 + $0x170] sm:$0xff]  ;;  %v33_v18 = vld [vmem:[%s4414_s0 + $0x58] sm:$0xff]  ;;  %v34_v28 = vld [vmem:[%s4414_s0 + $0x60] sm:$0xff] }
   0xc   :  { %2433 = vmatpush3.msra.mxu0 %v523_v17  ;;  %2684 = vmatprep.subr.mxu1 %v2698_v0  ;;  %vm283_vm6 = vcmp.ge.f32.partialorder %v202_v32, 0.0  ;;  %v204_v42 = vadd.f32 %v2761_v7, %v116_v35  ;;  %v117_v43 = vmul.f32 %v2755_v5, %v29_v39  ;;  %v151_v46 = vmul.f32 %v2755_v5, %v63_v40  ;;  %v69_v23 = vld [vmem:[%s4414_s0 + $0x178] sm:$0xff]  ;;  %v70_v33 = vld [vmem:[%s4414_s0 + $0x180] sm:$0xff] }
   0xd   :  { %2434 = vmatprep.subr.mxu0 %v2698_v0  ;;  %2559 = vmatprep.mubr.msk.f32.mxu1 %vm2699_vm0, %v2698_v0  ;;  %v445_v44 = vsel %vm283_vm6, %v202_v32, %v364_v37  ;;  %v365_v45 = vmul.f32 0.2, %v203_v38  ;;  %v152_v47 = vmul.f32 %v2755_v5, %v64_v41  ;;  %vm284_vm7 = vcmp.ge.f32.partialorder %v203_v38, 0.0 }
   0xe   :  { %2435 = vmatpush3.msra.mxu0 %v522_v19  ;;  %2691 = vmatpush3.msra.mxu1 %v523_v17  ;;  %v239_v49 = vadd.f32 %v2761_v7, %v151_v46  ;;  %v205_v50 = vadd.f32 %v2761_v7, %v117_v43  ;;  %v366_v54 = vmul.f32 0.2, %v204_v42  ;;  %v118_v55 = vmul.f32 %v2755_v5, %v30_v48  ;;  %v71_v43 = vld [vmem:[%s4414_s0 + $0x188] sm:$0xff]  ;;  %v36_v48 = vld [vmem:[%s4414_s0 + $0x70] sm:$0xff] }
   0xf   :  { %2437 = vmatmul.mubr.msk.f32.vlgmr.msra.gmra.mxu0 %vm536_vm2, %v441_v20  ;;  %2685 = vmatprep.subr.mxu1 %v2698_v0  ;;  %v240_v51 = vadd.f32 %v2761_v7, %v152_v47  ;;  %v446_v53 = vsel %vm284_vm7, %v203_v38, %v365_v45  ;;  %vm285_vm9 = vcmp.ge.f32.partialorder %v204_v42, 0.0  ;;  %v153_v60 = vmul.f32 %v2755_v5, %v65_v52  ;;  %v35_v38 = vld [vmem:[%s4414_s0 + $0x68] sm:$0xff] }
  0x10   :  { %2439 = vmatprep.mubr.msk.f32.mxu0 %vm2699_vm0, %v2698_v0  ;;  %2692 = vmatpush3.msra.mxu1 %v522_v19  ;;  %vm320_vm8 = vcmp.ge.f32.partialorder %v239_v49, 0.0  ;;  %v401_v58 = vmul.f32 0.2, %v239_v49  ;;  %v119_v62 = vmul.f32 %v2755_v5, %v31_v56  ;;  %v154_v1 = vmul.f32 %v2755_v5, %v66_v57 }
  0x11   :  { %vm321_vm10 = vcmp.ge.f32.partialorder %v240_v51, 0.0  ;;  %v402_v59 = vmul.f32 0.2, %v240_v51  ;;  %v447_v2 = vsel %vm285_vm9, %v204_v42, %v366_v54  ;;  %v367_v3 = vmul.f32 0.2, %v205_v50 }
  0x12   :  { %v482_v63 = vsel %vm320_vm8, %v239_v49, %v401_v58  ;;  %v206_v4 = vadd.f32 %v2761_v7, %v118_v55  ;;  %v241_v6 = vadd.f32 %v2761_v7, %v153_v60  ;;  %vm286_vm11 = vcmp.ge.f32.partialorder %v205_v50, 0.0  ;;  %v37_v58 = vld [vmem:[%s4414_s0 + $0x78] sm:$0xff] }
  0x13   :  { %2440 = vmatmul.mubr.msk.f32.gmra.mxu0 %vm536_vm2, %v442_v25  ;;  %2560 = vmatmul.mubr.msk.f32.vlgmr.msra.gmra.mxu1 %vm536_vm2, %v482_v63  ;;  %v483_v9 = vsel %vm321_vm10, %v240_v51, %v402_v59  ;;  %v242_v10 = vadd.f32 %v2761_v7, %v154_v1  ;;  %v155_v11 = vmul.f32 %v2755_v5, %v67_v61  ;;  %v73_v63 = vld [vmem:[%s4414_s0 + $0x198] sm:$0xff] }
  0x14   :  { %2442 = vmatprep.mubr.msk.f32.mxu0 %vm2699_vm0, %v2698_v0  ;;  %2562 = vmatprep.mubr.msk.f32.mxu1 %vm2699_vm0, %v2698_v0  ;;  %vm322_vm12 = vcmp.ge.f32.partialorder %v241_v6, 0.0  ;;  %v403_v12 = vmul.f32 0.2, %v241_v6  ;;  %v448_v14 = vsel %vm286_vm11, %v205_v50, %v367_v3  ;;  %v368_v15 = vmul.f32 0.2, %v206_v4 }
  0x15   :  { %v207_v16 = vadd.f32 %v2761_v7, %v119_v62  ;;  %v120_v17 = vmul.f32 %v2755_v5, %v32_v8  ;;  %vm287_vm13 = vcmp.ge.f32.partialorder %v206_v4, 0.0  ;;  %v404_v20 = vmul.f32 0.2, %v242_v10 }
  0x16   :  { %v484_v19 = vsel %vm322_vm12, %v241_v6, %v403_v12  ;;  %v243_v21 = vadd.f32 %v2761_v7, %v155_v11  ;;  %vm323_vm14 = vcmp.ge.f32.partialorder %v242_v10, 0.0  ;;  %v156_v22 = vmul.f32 %v2755_v5, %v68_v13  ;;  %v38_v6 = vld [vmem:[%s4414_s0 + $0x80] sm:$0xff] }
  0x17   :  { %2443 = vmatmul.mubr.msk.f32.gmra.mxu0 %vm536_vm2, %v443_v30  ;;  %2563 = vmatmul.mubr.msk.f32.gmra.mxu1 %vm536_vm2, %v483_v9  ;;  %v121_v24 = vmul.f32 %v2755_v5, %v33_v18  ;;  %v449_v25 = vsel %vm287_vm13, %v206_v4, %v368_v15  ;;  %vm288_vm15 = vcmp.ge.f32.partialorder %v207_v16, 0.0  ;;  %v369_v26 = vmul.f32 0.2, %v207_v16  ;;  %v74_v12 = vld [vmem:[%s4414_s0 + $0x1a0] sm:$0xff] }
  0x18   :  { %2445 = vmatprep.mubr.msk.f32.mxu0 %vm2699_vm0, %v2698_v0  ;;  %2565 = vmatprep.mubr.msk.f32.mxu1 %vm2699_vm0, %v2698_v0  ;;  %v208_v27 = vadd.f32 %v2761_v7, %v120_v17  ;;  %v485_v29 = vsel %vm323_vm14, %v242_v10, %v404_v20  ;;  %v405_v30 = vmul.f32 0.2, %v243_v21  ;;  %v244_v31 = vadd.f32 %v2761_v7, %v156_v22  ;;  %v39_v17 = vld [vmem:[%s4414_s0 + $0x88] sm:$0xff] }
  0x19   :  { %v157_v32 = vmul.f32 %v2755_v5, %v69_v23  ;;  %vm324_vm1 = vcmp.ge.f32.partialorder %v243_v21, 0.0  ;;  %v122_v34 = vmul.f32 %v2755_v5, %v34_v28  ;;  %v450_v35 = vsel %vm288_vm15, %v207_v16, %v369_v26  ;;  %v75_v22 = vld [vmem:[%s4414_s0 + $0x1a8] sm:$0xff] }
  0x1a   :  { %vm289_vm3 = vcmp.ge.f32.partialorder %v208_v27, 0.0  ;;  %v209_v37 = vadd.f32 %v2761_v7, %v121_v24  ;;  %v486_v39 = vsel %vm324_vm1, %v243_v21, %v405_v30  ;;  %v406_v40 = vmul.f32 0.2, %v244_v31 }
  0x1b   :  { %2446 = vmatmul.mubr.msk.f32.gmra.mxu0 %vm536_vm2, %v444_v36  ;;  %2566 = vmatmul.mubr.msk.f32.gmra.mxu1 %vm536_vm2, %v484_v19  ;;  %v370_v36 = vmul.f32 0.2, %v208_v27  ;;  %v245_v41 = vadd.f32 %v2761_v7, %v157_v32  ;;  %v158_v42 = vmul.f32 %v2755_v5, %v70_v33  ;;  %vm325_vm4 = vcmp.ge.f32.partialorder %v244_v31, 0.0  ;;  %v76_v32 = vld [vmem:[%s4414_s0 + $0x1b0] sm:$0xff] }
  0x1c   :  { %2448 = vmatprep.mubr.msk.f32.mxu0 %vm2699_vm0, %v2698_v0  ;;  %2568 = vmatprep.mubr.msk.f32.mxu1 %vm2699_vm0, %v2698_v0  ;;  %vm290_vm5 = vcmp.ge.f32.partialorder %v209_v37, 0.0  ;;  %v371_v46 = vmul.f32 0.2, %v209_v37  ;;  %v123_v47 = vmul.f32 %v2755_v5, %v35_v38  ;;  %v487_v49 = vsel %vm325_vm4, %v244_v31, %v406_v40 }
  0x1d   :  { %v451_v45 = vsel %vm289_vm3, %v208_v27, %v370_v36  ;;  %v407_v50 = vmul.f32 0.2, %v245_v41  ;;  %v246_v51 = vadd.f32 %v2761_v7, %v158_v42  ;;  %v159_v52 = vmul.f32 %v2755_v5, %v71_v43  ;;  %v40_v27 = vld [vmem:[%s4414_s0 + $0x90] sm:$0xff]  ;;  %v77_v42 = vld [vmem:[%s4414_s0 + $0x1b8] sm:$0xff] }
  0x1e   :  { %vm326_vm6 = vcmp.ge.f32.partialorder %v245_v41, 0.0  ;;  %v124_v54 = vmul.f32 %v2755_v5, %v36_v48  ;;  %v452_v55 = vsel %vm290_vm5, %v209_v37, %v371_v46  ;;  %v211_v57 = vadd.f32 %v2761_v7, %v123_v47  ;;  %v41_v37 = vld [vmem:[%s4414_s0 + $0x98] sm:$0xff]  ;;  %v42_v47 = vld [vmem:[%s4414_s0 + $0xa0] sm:$0xff] }
  0x1f   :  { %2449 = vmatmul.mubr.msk.f32.gmra.mxu0 %vm536_vm2, %v445_v44  ;;  %2569 = vmatmul.mubr.msk.f32.gmra.mxu1 %vm536_vm2, %v485_v29  ;;  %v210_v44 = vadd.f32 %v2761_v7, %v122_v34  ;;  %v488_v59 = vsel %vm326_vm6, %v245_v41, %v407_v50  ;;  %v408_v60 = vmul.f32 0.2, %v246_v51  ;;  %v247_v61 = vadd.f32 %v2761_v7, %v159_v52  ;;  %v78_v52 = vld [vmem:[%s4414_s0 + $0x1c0] sm:$0xff] }
  0x20   :  { %2451 = vmatprep.mubr.msk.f32.mxu0 %vm2699_vm0, %v2698_v0  ;;  %2571 = vmatprep.mubr.msk.f32.mxu1 %vm2699_vm0, %v2698_v0  ;;  %vm327_vm8 = vcmp.ge.f32.partialorder %v246_v51, 0.0  ;;  %v125_v1 = vmul.f32 %v2755_v5, %v37_v58  ;;  %vm292_vm9 = vcmp.ge.f32.partialorder %v211_v57, 0.0  ;;  %v373_v3 = vmul.f32 0.2, %v211_v57 }
  0x21   :  { %vm291_vm7 = vcmp.ge.f32.partialorder %v210_v44, 0.0  ;;  %v372_v56 = vmul.f32 0.2, %v210_v44  ;;  %v212_v4 = vadd.f32 %v2761_v7, %v124_v54  ;;  %v489_v8 = vsel %vm327_vm8, %v246_v51, %v408_v60 }
  0x22   :  { %v409_v9 = vmul.f32 0.2, %v247_v61  ;;  %v161_v11 = vmul.f32 %v2755_v5, %v73_v63  ;;  %vm328_vm10 = vcmp.ge.f32.partialorder %v247_v61, 0.0  ;;  %v213_v13 = vadd.f32 %v2761_v7, %v125_v1 }
  0x23   :  { %2452 = vmatmul.mubr.msk.f32.gmra.mxu0 %vm536_vm2, %v446_v53  ;;  %2572 = vmatmul.mubr.msk.f32.gmra.mxu1 %vm536_vm2, %v486_v39  ;;  %v72_v53 = vld [vmem:[%s4414_s0 + $0x190] sm:$0xff]  ;;  %vm293_vm11 = vcmp.ge.f32.partialorder %v212_v4, 0.0  ;;  %v374_v15 = vmul.f32 0.2, %v212_v4  ;;  %v126_v16 = vmul.f32 %v2755_v5, %v38_v6  ;;  %v162_v21 = vmul.f32 %v2755_v5, %v74_v12 }
  0x24   :  { %2454 = vmatprep.mubr.msk.f32.mxu0 %vm2699_vm0, %v2698_v0  ;;  %2574 = vmatprep.mubr.msk.f32.mxu1 %vm2699_vm0, %v2698_v0  ;;  %v160_v62 = vmul.f32 %v2755_v5, %v72_v53  ;;  %v490_v18 = vsel %vm328_vm10, %v247_v61, %v409_v9  ;;  %v249_v20 = vadd.f32 %v2761_v7, %v161_v11  ;;  %vm294_vm13 = vcmp.ge.f32.partialorder %v213_v13, 0.0  ;;  %v80_v11 = vld [vmem:[%s4414_s0 + $0x1d0] sm:$0xff] }
  0x25   :  { %v455_v23 = vsel %vm293_vm11, %v212_v4, %v374_v15  ;;  %v375_v24 = vmul.f32 0.2, %v213_v13  ;;  %v127_v26 = vmul.f32 %v2755_v5, %v39_v17  ;;  %v250_v30 = vadd.f32 %v2761_v7, %v162_v21  ;;  %v44_v4 = vld [vmem:[%s4414_s0 + $0xb0] sm:$0xff]  ;;  %v81_v21 = vld [vmem:[%s4414_s0 + $0x1d8] sm:$0xff] }
  0x26   :  { %v248_v10 = vadd.f32 %v2761_v7, %v160_v62  ;;  %v411_v29 = vmul.f32 0.2, %v249_v20  ;;  %v163_v31 = vmul.f32 %v2755_v5, %v75_v22  ;;  %vm330_vm14 = vcmp.ge.f32.partialorder %v249_v20, 0.0  ;;  %v79_v62 = vld [vmem:[%s4414_s0 + $0x1c8] sm:$0xff] }
  0x27   :  { %2455 = vmatmul.mubr.msk.f32.gmra.mxu0 %vm536_vm2, %v447_v2  ;;  %2575 = vmatmul.mubr.msk.f32.gmra.mxu1 %vm536_vm2, %v487_v49  ;;  %v453_v2 = vsel %vm291_vm7, %v210_v44, %v372_v56  ;;  %v128_v33 = vmul.f32 %v2755_v5, %v40_v27  ;;  %v456_v34 = vsel %vm294_vm13, %v213_v13, %v375_v24  ;;  %v412_v39 = vmul.f32 0.2, %v250_v30 }
  0x28   :  { %2457 = vmatprep.mubr.msk.f32.mxu0 %vm2699_vm0, %v2698_v0  ;;  %2577 = vmatprep.mubr.msk.f32.mxu1 %vm2699_vm0, %v2698_v0  ;;  %v410_v19 = vmul.f32 0.2, %v248_v10  ;;  %vm329_vm12 = vcmp.ge.f32.partialorder %v248_v10, 0.0  ;;  %v215_v36 = vadd.f32 %v2761_v7, %v127_v26  ;;  %v492_v38 = vsel %vm330_vm14, %v249_v20, %v411_v29  ;;  %v46_v26 = vld [vmem:[%s4414_s0 + $0xc0] sm:$0xff] }
  0x29   :  { %v251_v40 = vadd.f32 %v2761_v7, %v163_v31  ;;  %v164_v41 = vmul.f32 %v2755_v5, %v76_v32  ;;  %vm331_vm1 = vcmp.ge.f32.partialorder %v250_v30, 0.0  ;;  %v129_v43 = vmul.f32 %v2755_v5, %v41_v37  ;;  %v82_v31 = vld [vmem:[%s4414_s0 + $0x1e0] sm:$0xff] }
  0x2a   :  { %v491_v28 = vsel %vm329_vm12, %v248_v10, %v410_v19  ;;  %vm296_vm3 = vcmp.ge.f32.partialorder %v215_v36, 0.0  ;;  %v216_v46 = vadd.f32 %v2761_v7, %v128_v33  ;;  %v493_v48 = vsel %vm331_vm1, %v250_v30, %v412_v39 }
  0x2b   :  { %2458 = vmatmul.mubr.msk.f32.gmra.mxu0 %vm536_vm2, %v448_v14  ;;  %2578 = vmatmul.mubr.msk.f32.gmra.mxu1 %vm536_vm2, %v488_v59  ;;  %v454_v14 = vsel %vm292_vm9, %v211_v57, %v373_v3  ;;  %v413_v49 = vmul.f32 0.2, %v251_v40  ;;  %v252_v50 = vadd.f32 %v2761_v7, %v164_v41  ;;  %v165_v51 = vmul.f32 %v2755_v5, %v77_v42  ;;  %v43_v57 = vld [vmem:[%s4414_s0 + $0xa8] sm:$0xff] }
  0x2c   :  { %2460 = vmatprep.mubr.msk.f32.mxu0 %vm2699_vm0, %v2698_v0  ;;  %2580 = vmatprep.mubr.msk.f32.mxu1 %vm2699_vm0, %v2698_v0  ;;  %vm332_vm4 = vcmp.ge.f32.partialorder %v251_v40, 0.0  ;;  %v217_v53 = vadd.f32 %v2761_v7, %v129_v43  ;;  %vm297_vm5 = vcmp.ge.f32.partialorder %v216_v46, 0.0  ;;  %v130_v56 = vmul.f32 %v2755_v5, %v42_v47  ;;  %v83_v41 = vld [vmem:[%s4414_s0 + $0x1e8] sm:$0xff] }
  0x2d   :  { %v494_v58 = vsel %vm332_vm4, %v251_v40, %v413_v49  ;;  %v414_v59 = vmul.f32 0.2, %v252_v50  ;;  %v253_v60 = vadd.f32 %v2761_v7, %v165_v51  ;;  %v166_v61 = vmul.f32 %v2755_v5, %v78_v52  ;;  %v84_v51 = vld [vmem:[%s4414_s0 + $0x1f0] sm:$0xff] }
  0x2e   :  { %vm333_vm6 = vcmp.ge.f32.partialorder %v252_v50, 0.0  ;;  %v131_v63 = vmul.f32 %v2755_v5, %v43_v57  ;;  %vm298_vm7 = vcmp.ge.f32.partialorder %v217_v53, 0.0  ;;  %v218_v3 = vadd.f32 %v2761_v7, %v130_v56  ;;  %v49_v56 = vld [vmem:[%s4414_s0 + $0xd8] sm:$0xff] }
  0x2f   :  { %2461 = vmatmul.mubr.msk.f32.gmra.mxu0 %vm536_vm2, %v449_v25  ;;  %2581 = vmatmul.mubr.msk.f32.gmra.mxu1 %vm536_vm2, %v489_v8  ;;  %v214_v25 = vadd.f32 %v2761_v7, %v126_v16  ;;  %v495_v6 = vsel %vm333_vm6, %v252_v50, %v414_v59  ;;  %v415_v8 = vmul.f32 0.2, %v253_v60  ;;  %v254_v9 = vadd.f32 %v2761_v7, %v166_v61  ;;  %v45_v16 = vld [vmem:[%s4414_s0 + $0xb8] sm:$0xff] }
  0x30   :  { %2463 = vmatprep.mubr.msk.f32.mxu0 %vm2699_vm0, %v2698_v0  ;;  %2583 = vmatprep.mubr.msk.f32.mxu1 %vm2699_vm0, %v2698_v0  ;;  %v167_v10 = vmul.f32 %v2755_v5, %v79_v62  ;;  %vm334_vm8 = vcmp.ge.f32.partialorder %v253_v60, 0.0  ;;  %v219_v12 = vadd.f32 %v2761_v7, %v131_v63  ;;  %vm299_vm9 = vcmp.ge.f32.partialorder %v218_v3, 0.0  ;;  %v85_v61 = vld [vmem:[%s4414_s0 + $0x1f8] sm:$0xff] }
  0x31   :  { %vm295_vm15 = vcmp.ge.f32.partialorder %v214_v25, 0.0  ;;  %v132_v15 = vmul.f32 %v2755_v5, %v44_v4  ;;  %v496_v17 = vsel %vm334_vm8, %v253_v60, %v415_v8  ;;  %v168_v20 = vmul.f32 %v2755_v5, %v80_v11 }
  0x32   :  { %v255_v19 = vadd.f32 %v2761_v7, %v167_v10  ;;  %vm335_vm10 = vcmp.ge.f32.partialorder %v254_v9, 0.0  ;;  %v133_v22 = vmul.f32 %v2755_v5, %v45_v16  ;;  %vm300_vm11 = vcmp.ge.f32.partialorder %v219_v12, 0.0  ;;  %v86_v10 = vld [vmem:[%s4414_s0 + $0x200] sm:$0xff] }
  0x33   :  { %2464 = vmatmul.mubr.msk.f32.gmra.mxu0 %vm536_vm2, %v450_v35  ;;  %2584 = vmatmul.mubr.msk.f32.gmra.mxu1 %vm536_vm2, %v490_v18  ;;  %v376_v35 = vmul.f32 0.2, %v214_v25  ;;  %v416_v18 = vmul.f32 0.2, %v254_v9  ;;  %v381_v24 = vmul.f32 0.2, %v219_v12  ;;  %v256_v29 = vadd.f32 %v2761_v7, %v168_v20 }
  0x34   :  { %2466 = vmatprep.mubr.msk.f32.mxu0 %vm2699_vm0, %v2698_v0  ;;  %2586 = vmatprep.mubr.msk.f32.mxu1 %vm2699_vm0, %v2698_v0  ;;  %v169_v30 = vmul.f32 %v2755_v5, %v81_v21  ;;  %vm336_vm12 = vcmp.ge.f32.partialorder %v255_v19, 0.0  ;;  %v221_v32 = vadd.f32 %v2761_v7, %v133_v22  ;;  %v170_v40 = vmul.f32 %v2755_v5, %v82_v31  ;;  %v87_v20 = vld [vmem:[%s4414_s0 + $0x208] sm:$0xff] }
  0x35   :  { %v457_v44 = vsel %vm295_vm15, %v214_v25, %v376_v35  ;;  %v220_v25 = vadd.f32 %v2761_v7, %v132_v15  ;;  %v497_v27 = vsel %vm335_vm10, %v254_v9, %v416_v18  ;;  %v462_v33 = vsel %vm300_vm11, %v219_v12, %v381_v24  ;;  %v51_v15 = vld [vmem:[%s4414_s0 + $0xe8] sm:$0xff] }
  0x36   :  { %v134_v35 = vmul.f32 %v2755_v5, %v46_v26  ;;  %v257_v39 = vadd.f32 %v2761_v7, %v169_v30  ;;  %vm337_vm14 = vcmp.ge.f32.partialorder %v256_v29, 0.0  ;;  %vm302_vm15 = vcmp.ge.f32.partialorder %v221_v32, 0.0  ;;  %v88_v30 = vld [vmem:[%s4414_s0 + $0x210] sm:$0xff] }
  0x37   :  { %2467 = vmatmul.mubr.msk.f32.gmra.mxu0 %vm536_vm2, %v451_v45  ;;  %2587 = vmatmul.mubr.msk.f32.gmra.mxu1 %vm536_vm2, %v491_v28  ;;  %v377_v45 = vmul.f32 0.2, %v215_v36  ;;  %v417_v28 = vmul.f32 0.2, %v255_v19  ;;  %vm301_vm13 = vcmp.ge.f32.partialorder %v220_v25, 0.0  ;;  %v258_v49 = vadd.f32 %v2761_v7, %v170_v40  ;;  %v89_v40 = vld [vmem:[%s4414_s0 + $0x218] sm:$0xff] }
  0x38   :  { %2469 = vmatprep.mubr.msk.f32.mxu0 %vm2699_vm0, %v2698_v0  ;;  %2589 = vmatprep.mubr.msk.f32.mxu1 %vm2699_vm0, %v2698_v0  ;;  %v383_v43 = vmul.f32 0.2, %v221_v32  ;;  %v171_v50 = vmul.f32 %v2755_v5, %v83_v41  ;;  %vm338_vm1 = vcmp.ge.f32.partialorder %v257_v39, 0.0  ;;  %v172_v60 = vmul.f32 %v2755_v5, %v84_v51 }
  0x39   :  { %v458_v54 = vsel %vm296_vm3, %v215_v36, %v377_v45  ;;  %v47_v36 = vld [vmem:[%s4414_s0 + $0xc8] sm:$0xff]  ;;  %v498_v37 = vsel %vm336_vm12, %v255_v19, %v417_v28  ;;  %vm339_vm4 = vcmp.ge.f32.partialorder %v258_v49, 0.0  ;;  %v173_v9 = vmul.f32 %v2755_v5, %v85_v61 }
  0x3a   :  { %v135_v45 = vmul.f32 %v2755_v5, %v47_v36  ;;  %v259_v59 = vadd.f32 %v2761_v7, %v171_v50  ;;  %v260_v8 = vadd.f32 %v2761_v7, %v172_v60  ;;  %v174_v19 = vmul.f32 %v2755_v5, %v86_v10  ;;  %v90_v50 = vld [vmem:[%s4414_s0 + $0x220] sm:$0xff]  ;;  %v91_v60 = vld [vmem:[%s4414_s0 + $0x228] sm:$0xff] }
  0x3b   :  { %2470 = vmatmul.mubr.msk.f32.gmra.mxu0 %vm536_vm2, %v452_v55  ;;  %2590 = vmatmul.mubr.msk.f32.gmra.mxu1 %vm536_vm2, %v492_v38  ;;  %v378_v55 = vmul.f32 0.2, %v216_v46  ;;  %v418_v38 = vmul.f32 0.2, %v256_v29  ;;  %v261_v18 = vadd.f32 %v2761_v7, %v173_v9  ;;  %v139_v21 = vmul.f32 %v2755_v5, %v51_v15  ;;  %v92_v9 = vld [vmem:[%s4414_s0 + $0x230] sm:$0xff] }
  0x3c   :  { %2472 = vmatprep.mubr.msk.f32.mxu0 %vm2699_vm0, %v2698_v0  ;;  %2592 = vmatprep.mubr.msk.f32.mxu1 %vm2699_vm0, %v2698_v0  ;;  %vm340_vm6 = vcmp.ge.f32.partialorder %v259_v59, 0.0  ;;  %vm341_vm8 = vcmp.ge.f32.partialorder %v260_v8, 0.0  ;;  %v262_v28 = vadd.f32 %v2761_v7, %v174_v19  ;;  %v93_v19 = vld [vmem:[%s4414_s0 + $0x238] sm:$0xff] }
  0x3d   :  { %v459_v1 = vsel %vm297_vm5, %v216_v46, %v378_v55  ;;  %v48_v46 = vld [vmem:[%s4414_s0 + $0xd0] sm:$0xff]  ;;  %v499_v47 = vsel %vm337_vm14, %v256_v29, %v418_v38  ;;  %v223_v55 = vadd.f32 %v2761_v7, %v135_v45  ;;  %v175_v29 = vmul.f32 %v2755_v5, %v87_v20  ;;  %v54_v45 = vld [vmem:[%s4414_s0 + $0x100] sm:$0xff] }
  0x3e   :  { %v136_v52 = vmul.f32 %v2755_v5, %v48_v46  ;;  %vm342_vm10 = vcmp.ge.f32.partialorder %v261_v18, 0.0  ;;  %v227_v31 = vadd.f32 %v2761_v7, %v139_v21  ;;  %vm343_vm12 = vcmp.ge.f32.partialorder %v262_v28, 0.0 }
  0x3f   :  { %2473 = vmatmul.mubr.msk.f32.gmra.mxu0 %vm536_vm2, %v453_v2  ;;  %2593 = vmatmul.mubr.msk.f32.gmra.mxu1 %vm536_vm2, %v493_v48  ;;  %v379_v2 = vmul.f32 0.2, %v217_v53  ;;  %v419_v48 = vmul.f32 0.2, %v257_v39  ;;  %vm304_vm5 = vcmp.ge.f32.partialorder %v223_v55, 0.0  ;;  %v263_v38 = vadd.f32 %v2761_v7, %v175_v29  ;;  %v94_v29 = vld [vmem:[%s4414_s0 + $0x240] sm:$0xff] }
  0x40   :  { %2475 = vmatprep.mubr.msk.f32.mxu0 %vm2699_vm0, %v2698_v0  ;;  %2595 = vmatprep.mubr.msk.f32.mxu1 %vm2699_vm0, %v2698_v0  ;;  %v224_v62 = vadd.f32 %v2761_v7, %v136_v52  ;;  %v389_v41 = vmul.f32 0.2, %v227_v31 }
  0x41   :  { %v460_v13 = vsel %vm298_vm7, %v217_v53, %v379_v2  ;;  %v464_v53 = vsel %vm302_vm15, %v221_v32, %v383_v43  ;;  %v500_v57 = vsel %vm338_vm1, %v257_v39, %v419_v48  ;;  %v137_v2 = vmul.f32 %v2755_v5, %v49_v56 }
  0x42   :  { %vm305_vm7 = vcmp.ge.f32.partialorder %v224_v62, 0.0  ;;  %v386_v12 = vmul.f32 0.2, %v224_v62  ;;  %v176_v39 = vmul.f32 %v2755_v5, %v88_v30  ;;  %vm344_vm14 = vcmp.ge.f32.partialorder %v263_v38, 0.0 }
  0x43   :  { %2476 = vmatmul.mubr.msk.f32.gmra.mxu0 %vm536_vm2, %v454_v14  ;;  %2596 = vmatmul.mubr.msk.f32.gmra.mxu1 %vm536_vm2, %v494_v58  ;;  %v380_v14 = vmul.f32 0.2, %v218_v3  ;;  %v420_v58 = vmul.f32 0.2, %v258_v49 }
  0x44   :  { %2478 = vmatprep.mubr.msk.f32.mxu0 %vm2699_vm0, %v2698_v0  ;;  %2598 = vmatprep.mubr.msk.f32.mxu1 %vm2699_vm0, %v2698_v0  ;;  %v467_v22 = vsel %vm305_vm7, %v224_v62, %v386_v12  ;;  %v264_v48 = vadd.f32 %v2761_v7, %v176_v39  ;;  %v95_v39 = vld [vmem:[%s4414_s0 + $0x248] sm:$0xff] }
  0x45   :  { %v501_v4 = vsel %vm339_vm4, %v258_v49, %v420_v58  ;;  %v177_v49 = vmul.f32 %v2755_v5, %v89_v40 }
  0x46   :  { %vm345_vm1 = vcmp.ge.f32.partialorder %v264_v48, 0.0 }
  0x47   :  { %2479 = vmatmul.mubr.msk.f32.gmra.mxu0 %vm536_vm2, %v455_v23  ;;  %2599 = vmatmul.mubr.msk.f32.gmra.mxu1 %vm536_vm2, %v495_v6  ;;  %v461_v23 = vsel %vm299_vm9, %v218_v3, %v380_v14  ;;  %v50_v3 = vld [vmem:[%s4414_s0 + $0xe0] sm:$0xff]  ;;  %v421_v6 = vmul.f32 0.2, %v259_v59  ;;  %v265_v58 = vadd.f32 %v2761_v7, %v177_v49  ;;  %v96_v49 = vld [vmem:[%s4414_s0 + $0x250] sm:$0xff] }
  0x48   :  { %2481 = vmatprep.mubr.msk.f32.mxu0 %vm2699_vm0, %v2698_v0  ;;  %2601 = vmatprep.mubr.msk.f32.mxu1 %vm2699_vm0, %v2698_v0  ;;  %v138_v14 = vmul.f32 %v2755_v5, %v50_v3 }
  0x49   :  { %v502_v16 = vsel %vm340_vm6, %v259_v59, %v421_v6  ;;  %v178_v59 = vmul.f32 %v2755_v5, %v90_v50  ;;  %vm346_vm4 = vcmp.ge.f32.partialorder %v265_v58, 0.0 }
  0x4a   :  { %v226_v24 = vadd.f32 %v2761_v7, %v138_v14  ;;  %v57_v14 = vld [vmem:[%s4414_s0 + $0x118] sm:$0xff] }
  0x4b   :  { %2482 = vmatmul.mubr.msk.f32.gmra.mxu0 %vm536_vm2, %v456_v34  ;;  %2602 = vmatmul.mubr.msk.f32.gmra.mxu1 %vm536_vm2, %v496_v17  ;;  %v382_v34 = vmul.f32 0.2, %v220_v25  ;;  %v422_v17 = vmul.f32 0.2, %v260_v8  ;;  %v266_v6 = vadd.f32 %v2761_v7, %v178_v59  ;;  %v97_v59 = vld [vmem:[%s4414_s0 + $0x258] sm:$0xff] }
  0x4c   :  { %2484 = vmatprep.mubr.msk.f32.mxu0 %vm2699_vm0, %v2698_v0  ;;  %2604 = vmatprep.mubr.msk.f32.mxu1 %vm2699_vm0, %v2698_v0  ;;  %vm307_vm11 = vcmp.ge.f32.partialorder %v226_v24, 0.0 }
  0x4d   :  { %v463_v42 = vsel %vm301_vm13, %v220_v25, %v382_v34  ;;  %v52_v25 = vld [vmem:[%s4414_s0 + $0xf0] sm:$0xff]  ;;  %v503_v26 = vsel %vm341_vm8, %v260_v8, %v422_v17  ;;  %vm308_vm13 = vcmp.ge.f32.partialorder %v227_v31, 0.0  ;;  %v179_v8 = vmul.f32 %v2755_v5, %v91_v60 }
  0x4e   :  { %v140_v34 = vmul.f32 %v2755_v5, %v52_v25  ;;  %v470_v51 = vsel %vm308_vm13, %v227_v31, %v389_v41  ;;  %vm347_vm6 = vcmp.ge.f32.partialorder %v266_v6, 0.0 }
  0x4f   :  { %2485 = vmatmul.mubr.msk.f32.gmra.mxu0 %vm536_vm2, %v457_v44  ;;  %2605 = vmatmul.mubr.msk.f32.gmra.mxu1 %vm536_vm2, %v497_v27  ;;  %v222_v44 = vadd.f32 %v2761_v7, %v134_v35  ;;  %v423_v27 = vmul.f32 0.2, %v261_v18  ;;  %v53_v35 = vld [vmem:[%s4414_s0 + $0xf8] sm:$0xff] }
  0x50   :  { %2487 = vmatprep.mubr.msk.f32.mxu0 %vm2699_vm0, %v2698_v0  ;;  %2607 = vmatprep.mubr.msk.f32.mxu1 %vm2699_vm0, %v2698_v0  ;;  %v228_v43 = vadd.f32 %v2761_v7, %v140_v34  ;;  %v59_v34 = vld [vmem:[%s4414_s0 + $0x128] sm:$0xff] }
  0x51   :  { %vm303_vm3 = vcmp.ge.f32.partialorder %v222_v44, 0.0  ;;  %v504_v36 = vsel %vm342_vm10, %v261_v18, %v423_v27 }
  0x52   :  { %vm309_vm15 = vcmp.ge.f32.partialorder %v228_v43, 0.0  ;;  %v390_v52 = vmul.f32 0.2, %v228_v43 }
  0x53   :  { %2488 = vmatmul.mubr.msk.f32.gmra.mxu0 %vm536_vm2, %v458_v54  ;;  %2608 = vmatmul.mubr.msk.f32.gmra.mxu1 %vm536_vm2, %v498_v37  ;;  %v384_v54 = vmul.f32 0.2, %v222_v44  ;;  %v424_v37 = vmul.f32 0.2, %v262_v28 }
  0x54   :  { %2490 = vmatprep.mubr.msk.f32.mxu0 %vm2699_vm0, %v2698_v0  ;;  %2610 = vmatprep.mubr.msk.f32.mxu1 %vm2699_vm0, %v2698_v0  ;;  %v471_v62 = vsel %vm309_vm15, %v228_v43, %v390_v52 }
  0x55   :  { %v465_v63 = vsel %vm303_vm3, %v222_v44, %v384_v54  ;;  %v141_v44 = vmul.f32 %v2755_v5, %v53_v35  ;;  %v505_v46 = vsel %vm343_vm12, %v262_v28, %v424_v37  ;;  %v142_v54 = vmul.f32 %v2755_v5, %v54_v45 }
  0x57   :  { %2491 = vmatmul.mubr.msk.f32.gmra.mxu0 %vm536_vm2, %v459_v1  ;;  %2611 = vmatmul.mubr.msk.f32.gmra.mxu1 %vm536_vm2, %v499_v47  ;;  %v385_v1 = vmul.f32 0.2, %v223_v55  ;;  %v425_v47 = vmul.f32 0.2, %v263_v38 }
  0x58   :  { %2493 = vmatprep.mubr.msk.f32.mxu0 %vm2699_vm0, %v2698_v0  ;;  %2613 = vmatprep.mubr.msk.f32.mxu1 %vm2699_vm0, %v2698_v0 }
  0x59   :  { %v466_v11 = vsel %vm304_vm5, %v223_v55, %v385_v1  ;;  %v55_v55 = vld [vmem:[%s4414_s0 + $0x108] sm:$0xff]  ;;  %v506_v56 = vsel %vm344_vm14, %v263_v38, %v425_v47  ;;  %v230_v1 = vadd.f32 %v2761_v7, %v142_v54  ;;  %v61_v54 = vld [vmem:[%s4414_s0 + $0x138] sm:$0xff] }
  0x5a   :  { %v143_v61 = vmul.f32 %v2755_v5, %v55_v55 }
  0x5b   :  { %2494 = vmatmul.mubr.msk.f32.gmra.mxu0 %vm536_vm2, %v460_v13  ;;  %2614 = vmatmul.mubr.msk.f32.gmra.mxu1 %vm536_vm2, %v500_v57  ;;  %v225_v13 = vadd.f32 %v2761_v7, %v137_v2  ;;  %v426_v57 = vmul.f32 0.2, %v264_v48  ;;  %v56_v2 = vld [vmem:[%s4414_s0 + $0x110] sm:$0xff]  ;;  %vm311_vm5 = vcmp.ge.f32.partialorder %v230_v1, 0.0  ;;  %v392_v12 = vmul.f32 0.2, %v230_v1 }
  0x5c   :  { %2496 = vmatprep.mubr.msk.f32.mxu0 %vm2699_vm0, %v2698_v0  ;;  %2616 = vmatprep.mubr.msk.f32.mxu1 %vm2699_vm0, %v2698_v0  ;;  %v231_v10 = vadd.f32 %v2761_v7, %v143_v61 }
  0x5d   :  { %vm306_vm9 = vcmp.ge.f32.partialorder %v225_v13, 0.0  ;;  %v507_v3 = vsel %vm345_vm1, %v264_v48, %v426_v57  ;;  %v473_v21 = vsel %vm311_vm5, %v230_v1, %v392_v12  ;;  %v62_v1 = vld [vmem:[%s4414_s0 + $0x140] sm:$0xff] }
  0x5e   :  { %v393_v20 = vmul.f32 0.2, %v231_v10  ;;  %vm312_vm7 = vcmp.ge.f32.partialorder %v231_v10, 0.0 }
  0x5f   :  { %2497 = vmatmul.mubr.msk.f32.gmra.mxu0 %vm536_vm2, %v461_v23  ;;  %2617 = vmatmul.mubr.msk.f32.gmra.mxu1 %vm536_vm2, %v501_v4  ;;  %v387_v23 = vmul.f32 0.2, %v225_v13  ;;  %v427_v4 = vmul.f32 0.2, %v265_v58 }
  0x60   :  { %2499 = vmatprep.mubr.msk.f32.mxu0 %vm2699_vm0, %v2698_v0  ;;  %2619 = vmatprep.mubr.msk.f32.mxu1 %vm2699_vm0, %v2698_v0  ;;  %v474_v30 = vsel %vm312_vm7, %v231_v10, %v393_v20 }
  0x61   :  { %v468_v32 = vsel %vm306_vm9, %v225_v13, %v387_v23  ;;  %v144_v13 = vmul.f32 %v2755_v5, %v56_v2  ;;  %v508_v15 = vsel %vm346_vm4, %v265_v58, %v427_v4  ;;  %v3293_v5 = vld [vmem:[%s4415_s1] ss:$0 sm:$0xff] }
  0x62   :  { %v180_v18 = vmul.f32 %v3293_v5, %v92_v9  ;;  %v145_v23 = vmul.f32 %v3293_v5, %v57_v14  ;;  %v181_v28 = vmul.f32 %v3293_v5, %v93_v19  ;;  %v182_v38 = vmul.f32 %v3293_v5, %v94_v29 }
  0x63   :  { %2500 = vmatmul.mubr.msk.f32.gmra.mxu0 %vm536_vm2, %v462_v33  ;;  %2620 = vmatmul.mubr.msk.f32.gmra.mxu1 %vm536_vm2, %v502_v16  ;;  %v388_v33 = vmul.f32 0.2, %v226_v24  ;;  %v428_v16 = vmul.f32 0.2, %v266_v6  ;;  %v147_v40 = vmul.f32 %v3293_v5, %v59_v34  ;;  %v183_v48 = vmul.f32 %v3293_v5, %v95_v39 }
  0x64   :  { %2502 = vmatprep.mubr.msk.f32.mxu0 %vm2699_vm0, %v2698_v0  ;;  %2622 = vmatprep.mubr.msk.f32.mxu1 %vm2699_vm0, %v2698_v0  ;;  %v184_v58 = vmul.f32 %v3293_v5, %v96_v49  ;;  %v150_v12 = vmul.f32 %v3293_v5, %v62_v1 }
  0x65   :  { %v509_v25 = vsel %vm347_vm6, %v266_v6, %v428_v16  ;;  %v185_v6 = vmul.f32 %v3293_v5, %v97_v59 }
  0x67   :  { %2503 = vmatmul.mubr.msk.f32.gmra.mxu0 %vm536_vm2, %v463_v42  ;;  %2623 = vmatmul.mubr.msk.f32.gmra.mxu1 %vm536_vm2, %v503_v26  ;;  %v469_v42 = vsel %vm307_vm11, %v226_v24, %v388_v33  ;;  %v58_v24 = vld [vmem:[%s4414_s0 + $0x120] sm:$0xff] }
  0x68   :  { %2505 = vmatprep.mubr.msk.f32.mxu0 %vm2699_vm0, %v2698_v0  ;;  %2625 = vmatprep.mubr.msk.f32.mxu1 %vm2699_vm0, %v2698_v0  ;;  %v146_v33 = vmul.f32 %v3293_v5, %v58_v24 }
  0x6b   :  { %2506 = vmatmul.mubr.msk.f32.gmra.mxu0 %vm536_vm2, %v464_v53  ;;  %2626 = vmatmul.mubr.msk.f32.gmra.mxu1 %vm536_vm2, %v504_v36  ;;  %v229_v53 = vadd.f32 %v2761_v7, %v141_v44  ;;  %v3287_v7 = vld [vmem:[%s4416_s2] ss:$0 sm:$0xff]  ;;  %v60_v44 = vld [vmem:[%s4414_s0 + $0x130] sm:$0xff] }
  0x6c   :  { %2508 = vmatprep.mubr.msk.f32.mxu0 %vm2699_vm0, %v2698_v0  ;;  %2628 = vmatprep.mubr.msk.f32.mxu1 %vm2699_vm0, %v2698_v0  ;;  %v267_v17 = vadd.f32 %v3287_v7, %v179_v8  ;;  %v268_v27 = vadd.f32 %v3287_v7, %v180_v18  ;;  %v269_v37 = vadd.f32 %v3287_v7, %v181_v28  ;;  %v98_v8 = vld [vmem:[%s4414_s0 + $0x260] sm:$0xff] }
  0x6d   :  { %vm310_vm3 = vcmp.ge.f32.partialorder %v229_v53, 0.0  ;;  %v234_v43 = vadd.f32 %v3287_v7, %v146_v33  ;;  %v270_v47 = vadd.f32 %v3287_v7, %v182_v38  ;;  %v235_v50 = vadd.f32 %v3287_v7, %v147_v40  ;;  %v102_v38 = vld [vmem:[%s4414_s0 + $0x280] sm:$0x3] }
  0x6e   :  { %v429_v26 = vmul.f32 0.2, %v267_v17  ;;  %vm348_vm8 = vcmp.ge.f32.partialorder %v267_v17, 0.0  ;;  %v430_v36 = vmul.f32 0.2, %v268_v27  ;;  %vm349_vm10 = vcmp.ge.f32.partialorder %v268_v27, 0.0 }
  0x6f   :  { %2509 = vmatmul.mubr.msk.f32.gmra.mxu0 %vm536_vm2, %v465_v63  ;;  %2629 = vmatmul.mubr.msk.f32.gmra.mxu1 %vm536_vm2, %v505_v46  ;;  %v391_v63 = vmul.f32 0.2, %v229_v53  ;;  %v431_v46 = vmul.f32 0.2, %v269_v37  ;;  %vm350_vm12 = vcmp.ge.f32.partialorder %v269_v37, 0.0  ;;  %vm315_vm13 = vcmp.ge.f32.partialorder %v234_v43, 0.0 }
  0x70   :  { %2511 = vmatprep.mubr.msk.f32.mxu0 %vm2699_vm0, %v2698_v0  ;;  %2631 = vmatprep.mubr.msk.f32.mxu1 %vm2699_vm0, %v2698_v0  ;;  %v510_v35 = vsel %vm348_vm8, %v267_v17, %v429_v26  ;;  %v511_v45 = vsel %vm349_vm10, %v268_v27, %v430_v36  ;;  %v396_v52 = vmul.f32 0.2, %v234_v43  ;;  %v271_v57 = vadd.f32 %v3287_v7, %v183_v48  ;;  %v99_v17 = vld [vmem:[%s4414_s0 + $0x268] sm:$0xff] }
  0x71   :  { %v512_v55 = vsel %vm350_vm12, %v269_v37, %v431_v46  ;;  %vm351_vm14 = vcmp.ge.f32.partialorder %v270_v47, 0.0  ;;  %v397_v60 = vmul.f32 0.2, %v235_v50  ;;  %vm316_vm15 = vcmp.ge.f32.partialorder %v235_v50, 0.0 }
  0x72   :  { %v477_v61 = vsel %vm315_vm13, %v234_v43, %v396_v52  ;;  %v272_v4 = vadd.f32 %v3287_v7, %v184_v58  ;;  %vm352_vm1 = vcmp.ge.f32.partialorder %v271_v57, 0.0  ;;  %v186_v16 = vmul.f32 %v3293_v5, %v98_v8 }
  0x73   :  { %2512 = vmatmul.mubr.msk.f32.gmra.mxu0 %vm536_vm2, %v466_v11  ;;  %2632 = vmatmul.mubr.msk.f32.gmra.mxu1 %vm536_vm2, %v506_v56  ;;  %v472_v11 = vsel %vm310_vm3, %v229_v53, %v391_v63  ;;  %v148_v53 = vmul.f32 %v3293_v5, %v60_v44  ;;  %v432_v56 = vmul.f32 0.2, %v270_v47  ;;  %v149_v63 = vmul.f32 %v3293_v5, %v61_v54 }
  0x74   :  { %2514 = vmatprep.mubr.msk.f32.mxu0 %vm2699_vm0, %v2698_v0  ;;  %2634 = vmatprep.mubr.msk.f32.mxu1 %vm2699_vm0, %v2698_v0  ;;  %v478_v9 = vsel %vm316_vm15, %v235_v50, %v397_v60  ;;  %v434_v14 = vmul.f32 0.2, %v272_v4  ;;  %vm353_vm4 = vcmp.ge.f32.partialorder %v272_v4, 0.0  ;;  %v238_v20 = vadd.f32 %v3287_v7, %v150_v12 }
  0x75   :  { %v513_v2 = vsel %vm351_vm14, %v270_v47, %v432_v56  ;;  %v187_v24 = vmul.f32 %v3293_v5, %v99_v17  ;;  %vm1250_vm13 = vcmask 64512  }
  0x76   :  { %vm319_vm7 = vcmp.ge.f32.partialorder %v238_v20, 0.0  ;;  %v400_v27 = vmul.f32 0.2, %v238_v20 }
  0x77   :  { %2515 = vmatmul.mubr.msk.f32.gmra.mxu0 %vm536_vm2, %v467_v22  ;;  %2635 = vmatmul.mubr.msk.f32.gmra.mxu1 %vm536_vm2, %v507_v3  ;;  %v232_v22 = vadd.f32 %v3287_v7, %v144_v13  ;;  %v433_v3 = vmul.f32 0.2, %v271_v57 }
  0x78   :  { %2517 = vmatprep.mubr.msk.f32.mxu0 %vm2699_vm0, %v2698_v0  ;;  %2637 = vmatprep.mubr.msk.f32.mxu1 %vm2699_vm0, %v2698_v0  ;;  %v481_v33 = vsel %vm319_vm7, %v238_v20, %v400_v27 }
  0x79   :  { %vm313_vm9 = vcmp.ge.f32.partialorder %v232_v22, 0.0  ;;  %v394_v31 = vmul.f32 0.2, %v232_v22  ;;  %v514_v13 = vsel %vm352_vm1, %v271_v57, %v433_v3 }
  0x7b   :  { %2518 = vmatmul.mubr.msk.f32.gmra.mxu0 %vm536_vm2, %v468_v32  ;;  %2638 = vmatmul.mubr.msk.f32.gmra.mxu1 %vm536_vm2, %v508_v15  ;;  %v233_v32 = vadd.f32 %v3287_v7, %v145_v23  ;;  %v475_v41 = vsel %vm313_vm9, %v232_v22, %v394_v31  ;;  %v273_v15 = vadd.f32 %v3287_v7, %v185_v6 }
  0x7c   :  { %2520 = vmatprep.mubr.msk.f32.mxu0 %vm2699_vm0, %v2698_v0  ;;  %2640 = vmatprep.mubr.msk.f32.mxu1 %vm2699_vm0, %v2698_v0  ;;  %v274_v23 = vadd.f32 %v3287_v7, %v186_v16 }
  0x7d   :  { %vm314_vm11 = vcmp.ge.f32.partialorder %v233_v32, 0.0  ;;  %v435_v22 = vmul.f32 0.2, %v273_v15  ;;  %vm354_vm6 = vcmp.ge.f32.partialorder %v273_v15, 0.0 }
  0x7e   :  { %v436_v29 = vmul.f32 0.2, %v274_v23  ;;  %vm355_vm8 = vcmp.ge.f32.partialorder %v274_v23, 0.0 }
  0x7f   :  { %2521 = vmatmul.mubr.msk.f32.gmra.mxu0 %vm536_vm2, %v469_v42  ;;  %2641 = vmatmul.mubr.msk.f32.gmra.mxu1 %vm536_vm2, %v509_v25  ;;  %v395_v42 = vmul.f32 0.2, %v233_v32  ;;  %v100_v25 = vld [vmem:[%s4414_s0 + $0x270] sm:$0xff]  ;;  %v516_v28 = vsel %vm354_vm6, %v273_v15, %v435_v22 }
  0x80   :  { %2523 = vmatprep.mubr.msk.f32.mxu0 %vm2699_vm0, %v2698_v0  ;;  %2643 = vmatprep.mubr.msk.f32.mxu1 %vm2699_vm0, %v2698_v0  ;;  %v188_v31 = vmul.f32 %v3293_v5, %v100_v25  ;;  %v517_v34 = vsel %vm355_vm8, %v274_v23, %v436_v29 }
  0x82   :  { %v276_v36 = vadd.f32 %v3287_v7, %v188_v31 }
  0x83   :  { %2524 = vmatmul.mubr.msk.f32.gmra.mxu0 %vm536_vm2, %v470_v51  ;;  %2644 = vmatmul.mubr.msk.f32.gmra.mxu1 %vm536_vm2, %v510_v35  ;;  %v476_v51 = vsel %vm314_vm11, %v233_v32, %v395_v42  ;;  %v101_v32 = vld [vmem:[%s4414_s0 + $0x278] sm:$0xff]  ;;  %v190_v42 = vmul.f32 %v3293_v5, %v102_v38 }
  0x84   :  { %2526 = vmatprep.mubr.msk.f32.mxu0 %vm2699_vm0, %v2698_v0  ;;  %2646 = vmatprep.mubr.msk.f32.mxu1 %vm2699_vm0, %v2698_v0  ;;  %v189_v37 = vmul.f32 %v3293_v5, %v101_v32  ;;  %v438_v40 = vmul.f32 0.2, %v276_v36  ;;  %vm357_vm10 = vcmp.ge.f32.partialorder %v276_v36, 0.0 }
  0x86   :  { %v519_v43 = vsel %vm357_vm10, %v276_v36, %v438_v40 }
  0x87   :  { %2527 = vmatmul.mubr.msk.f32.gmra.mxu0 %vm536_vm2, %v471_v62  ;;  %2647 = vmatmul.mubr.msk.f32.gmra.mxu1 %vm536_vm2, %v511_v45  ;;  %v236_v62 = vadd.f32 %v3287_v7, %v148_v53  ;;  %v278_v45 = vadd.f32 %v3287_v7, %v190_v42 }
  0x88   :  { %2529 = vmatprep.mubr.msk.f32.mxu0 %vm2699_vm0, %v2698_v0  ;;  %2649 = vmatprep.mubr.msk.f32.mxu1 %vm2699_vm0, %v2698_v0 }
  0x89   :  { %vm317_vm3 = vcmp.ge.f32.partialorder %v236_v62, 0.0  ;;  %v398_v10 = vmul.f32 0.2, %v236_v62  ;;  %v440_v47 = vmul.f32 0.2, %v278_v45  ;;  %vm359_vm12 = vcmp.ge.f32.partialorder %v278_v45, 0.0 }
  0x8b   :  { %2530 = vmatmul.mubr.msk.f32.gmra.mxu0 %vm536_vm2, %v472_v11  ;;  %2650 = vmatmul.mubr.msk.f32.gmra.mxu1 %vm536_vm2, %v512_v55  ;;  %v237_v11 = vadd.f32 %v3287_v7, %v149_v63  ;;  %v479_v18 = vsel %vm317_vm3, %v236_v62, %v398_v10  ;;  %v521_v5 = vsel %vm359_vm12, %v278_v45, %v440_v47 }
  0x8c   :  { %2532 = vmatprep.mubr.msk.f32.mxu0 %vm2699_vm0, %v2698_v0  ;;  %2652 = vmatprep.mubr.msk.f32.mxu1 %vm2699_vm0, %v2698_v0 }
  0x8d   :  { %vm318_vm5 = vcmp.ge.f32.partialorder %v237_v11, 0.0  ;;  %v399_v19 = vmul.f32 0.2, %v237_v11 }
  0x8f   :  { %2533 = vmatmul.mubr.msk.f32.gmra.mxu0 %vm536_vm2, %v473_v21  ;;  %2653 = vmatmul.mubr.msk.f32.gmra.mxu1 %vm536_vm2, %v513_v2  ;;  %v515_v21 = vsel %vm353_vm4, %v272_v4, %v434_v14  ;;  %v480_v26 = vsel %vm318_vm5, %v237_v11, %v399_v19 }
  0x90   :  { %2535 = vmatprep.mubr.msk.f32.mxu0 %vm2699_vm0, %v2698_v0  ;;  %2655 = vmatprep.mubr.msk.f32.mxu1 %vm2699_vm0, %v2698_v0 }
  0x93   :  { %2536 = vmatmul.mubr.msk.f32.gmra.mxu0 %vm536_vm2, %v474_v30  ;;  %2656 = vmatmul.mubr.msk.f32.gmra.mxu1 %vm536_vm2, %v514_v13  ;;  %v275_v30 = vadd.f32 %v3287_v7, %v187_v24 }
  0x94   :  { %2538 = vmatprep.mubr.msk.f32.mxu0 %vm2699_vm0, %v2698_v0  ;;  %2658 = vmatprep.mubr.msk.f32.mxu1 %vm2699_vm0, %v2698_v0 }
  0x95   :  { %v437_v35 = vmul.f32 0.2, %v275_v30  ;;  %vm356_vm9 = vcmp.ge.f32.partialorder %v275_v30, 0.0 }
  0x97   :  { %2539 = vmatmul.mubr.msk.f32.gmra.mxu0 %vm536_vm2, %v475_v41  ;;  %2659 = vmatmul.mubr.msk.f32.gmra.mxu1 %vm536_vm2, %v515_v21  ;;  %v518_v39 = vsel %vm356_vm9, %v275_v30, %v437_v35  ;;  %v277_v41 = vadd.f32 %v3287_v7, %v189_v37  ;;  %v3448_v7 = vld [vmem:[%s4417_s4] ss:$0 sm:$0xff] }
  0x98   :  { %2541 = vmatprep.mubr.msk.f32.mxu0 %vm2699_vm0, %v2698_v0  ;;  %2661 = vmatprep.mubr.msk.f32.mxu1 %vm2699_vm0, %v2698_v0 }
  0x99   :  { %v439_v44 = vmul.f32 0.2, %v277_v41  ;;  %vm358_vm11 = vcmp.ge.f32.partialorder %v277_v41, 0.0 }
  0x9b   :  { %2542 = vmatmul.mubr.msk.f32.gmra.mxu0 %vm536_vm2, %v476_v51  ;;  %2662 = vmatmul.mubr.msk.f32.gmra.mxu1 %vm536_vm2, %v516_v28  ;;  %v520_v46 = vsel %vm358_vm11, %v277_v41, %v439_v44 }
  0x9c   :  { %2544 = vmatprep.mubr.msk.f32.mxu0 %vm2699_vm0, %v2698_v0  ;;  %2664 = vmatprep.mubr.msk.f32.mxu1 %vm2699_vm0, %v2698_v0 }
  0x9f   :  { %2545 = vmatmul.mubr.msk.f32.gmra.mxu0 %vm536_vm2, %v477_v61  ;;  %2665 = vmatmul.mubr.msk.f32.gmra.mxu1 %vm536_vm2, %v517_v34 }
  0xa0   :  { %2547 = vmatprep.mubr.msk.f32.mxu0 %vm2699_vm0, %v2698_v0  ;;  %2667 = vmatprep.mubr.msk.f32.mxu1 %vm2699_vm0, %v2698_v0 }
  0xa3   :  { %2548 = vmatmul.mubr.msk.f32.gmra.mxu0 %vm536_vm2, %v478_v9  ;;  %2668 = vmatmul.mubr.msk.f32.gmra.mxu1 %vm536_vm2, %v518_v39 }
  0xa4   :  { %2550 = vmatprep.mubr.msk.f32.mxu0 %vm2699_vm0, %v2698_v0  ;;  %2670 = vmatprep.mubr.msk.f32.mxu1 %vm2699_vm0, %v2698_v0 }
  0xa7   :  { %2551 = vmatmul.mubr.msk.f32.gmra.mxu0 %vm536_vm2, %v479_v18  ;;  %2671 = vmatmul.mubr.msk.f32.gmra.mxu1 %vm536_vm2, %v519_v43 }
  0xa8   :  { %2553 = vmatprep.mubr.msk.f32.mxu0 %vm2699_vm0, %v2698_v0  ;;  %2673 = vmatprep.mubr.msk.f32.mxu1 %vm2699_vm0, %v2698_v0 }
  0xab   :  { %2554 = vmatmul.mubr.msk.f32.gmra.mxu0 %vm536_vm2, %v480_v26  ;;  %2674 = vmatmul.mubr.msk.f32.gmra.mxu1 %vm536_vm2, %v520_v46 }
  0xac   :  { %2556 = vmatprep.mubr.msk.f32.mxu0 %vm2699_vm0, %v2698_v0  ;;  %2676 = vmatprep.mubr.msk.f32.mxu1 %vm2699_vm0, %v2698_v0  ;;  %vm1331_vm0 = vcmask 58368  }
  0xaf   :  { %2557 = vmatmul.mubr.msk.f32.gmra.mxu0 %vm536_vm2, %v481_v33  ;;  %2677 = vmatmul.mubr.msk.f32.gmra.mxu1 %vm536_vm2, %v521_v5 }
  0xcf   :  { %v846_v48 = vpop.f32.mrf.mxu0 }
  0xd0   :  { %v847_v49 = vadd.f32 %v3448_v7, %v846_v48 }
  0xd1   :  { %v2438_v50 = vpop.f32.mrf.mxu0 }
  0xd2   :  { %1251 = vst.msk [vmem:[%s4418_s5] sm:$0xff] %vm1250_vm13, %v847_v49  ;;  %v1989_v0 = vmul.f32 %v847_v49, %v847_v49  ;;  %v1822_v54 = vsel %vm1250_vm13, %v847_v49, 0.0 }
  0xd3   :  { %v851_v51 = vpop.f32.mrf.mxu0  ;;  %v1051_v25 = vpop.f32.mrf.mxu1 }
  0xd4   :  { %v852_v52 = vadd.f32 %v3448_v7, %v851_v51  ;;  %v2070_v59 = vsel %vm1250_vm13, %v1989_v0, 0.0  ;;  %v3487_v28 = vadd.f32 %v3448_v7, %v1051_v25 }
  0xd5   :  { %v2441_v53 = vpop.f32.mrf.mxu0  ;;  %v2561_v31 = vpop.f32.mrf.mxu1 }
  0xd6   :  { %1252 = vst.msk [vmem:[%s4418_s5 + $0x8] sm:$0xff] %vm1250_vm13, %v852_v52  ;;  %v1823_v55 = vsel %vm1250_vm13, %v852_v52, 0.0  ;;  %v1990_v56 = vmul.f32 %v852_v52, %v852_v52  ;;  %1292 = vst.msk [vmem:[%s4418_s5 + $0x148] sm:$0xff] %vm1250_vm13, %v3487_v28 }
  0xd7   :  { %v1824_v57 = vadd.f32 %v1823_v55, %v1822_v54  ;;  %v856_v58 = vpop.f32.mrf.mxu0  ;;  %v1056_v36 = vpop.f32.mrf.mxu1 }
  0xd8   :  { %v2071_v60 = vsel %vm1250_vm13, %v1990_v56, 0.0  ;;  %v857_v61 = vadd.f32 %v3448_v7, %v856_v58  ;;  %v3502_v39 = vadd.f32 %v3448_v7, %v1056_v36 }
  0xd9   :  { %v2072_v62 = vadd.f32 %v2071_v60, %v2070_v59  ;;  %v2444_v63 = vpop.f32.mrf.mxu0  ;;  %v2564_v42 = vpop.f32.mrf.mxu1 }
  0xda   :  { %1253 = vst.msk [vmem:[%s4418_s5 + $0x10] sm:$0xff] %vm1250_vm13, %v857_v61  ;;  %v1825_v1 = vsel %vm1250_vm13, %v857_v61, 0.0  ;;  %v1991_v2 = vmul.f32 %v857_v61, %v857_v61  ;;  %1293 = vst.msk [vmem:[%s4418_s5 + $0x150] sm:$0xff] %vm1250_vm13, %v3502_v39 }
  0xdb   :  { %v1826_v3 = vadd.f32 %v1825_v1, %v1824_v57  ;;  %v861_v4 = vpop.f32.mrf.mxu0  ;;  %v1061_v47 = vpop.f32.mrf.mxu1 }
  0xdc   :  { %v2073_v6 = vsel %vm1250_vm13, %v1991_v2, 0.0  ;;  %v862_v8 = vadd.f32 %v3448_v7, %v861_v4  ;;  %v3517_v49 = vadd.f32 %v3448_v7, %v1061_v47 }
  0xdd   :  { %v2074_v9 = vadd.f32 %v2073_v6, %v2072_v62  ;;  %v2447_v10 = vpop.f32.mrf.mxu0  ;;  %v2567_v0 = vpop.f32.mrf.mxu1 }
  0xde   :  { %1254 = vst.msk [vmem:[%s4418_s5 + $0x18] sm:$0xff] %vm1250_vm13, %v862_v8  ;;  %v1827_v11 = vsel %vm1250_vm13, %v862_v8, 0.0  ;;  %v1992_v12 = vmul.f32 %v862_v8, %v862_v8  ;;  %1294 = vst.msk [vmem:[%s4418_s5 + $0x158] sm:$0xff] %vm1250_vm13, %v3517_v49 }
  0xdf   :  { %v1828_v13 = vadd.f32 %v1827_v11, %v1826_v3  ;;  %v866_v14 = vpop.f32.mrf.mxu0  ;;  %v1066_v56 = vpop.f32.mrf.mxu1 }
  0xe0   :  { %v2075_v15 = vsel %vm1250_vm13, %v1992_v12, 0.0  ;;  %v867_v16 = vadd.f32 %v3448_v7, %v866_v14  ;;  %v3532_v59 = vadd.f32 %v3448_v7, %v1066_v56 }
  0xe1   :  { %v2076_v17 = vadd.f32 %v2075_v15, %v2074_v9  ;;  %v2450_v18 = vpop.f32.mrf.mxu0  ;;  %v2570_v62 = vpop.f32.mrf.mxu1 }
  0xe2   :  { %1255 = vst.msk [vmem:[%s4418_s5 + $0x20] sm:$0xff] %vm1250_vm13, %v867_v16  ;;  %v1829_v19 = vsel %vm1250_vm13, %v867_v16, 0.0  ;;  %v1993_v20 = vmul.f32 %v867_v16, %v867_v16  ;;  %1295 = vst.msk [vmem:[%s4418_s5 + $0x160] sm:$0xff] %vm1250_vm13, %v3532_v59 }
  0xe3   :  { %v1830_v21 = vadd.f32 %v1829_v19, %v1828_v13  ;;  %v871_v22 = vpop.f32.mrf.mxu0  ;;  %v1071_v4 = vpop.f32.mrf.mxu1 }
  0xe4   :  { %v2077_v23 = vsel %vm1250_vm13, %v1993_v20, 0.0  ;;  %v872_v24 = vadd.f32 %v3448_v7, %v871_v22  ;;  %v3551_v9 = vadd.f32 %v3448_v7, %v1071_v4 }
  0xe5   :  { %v2078_v26 = vadd.f32 %v2077_v23, %v2076_v17  ;;  %v2453_v27 = vpop.f32.mrf.mxu0  ;;  %v2573_v11 = vpop.f32.mrf.mxu1 }
  0xe6   :  { %1256 = vst.msk [vmem:[%s4418_s5 + $0x28] sm:$0xff] %vm1250_vm13, %v872_v24  ;;  %v1831_v29 = vsel %vm1250_vm13, %v872_v24, 0.0  ;;  %v1994_v30 = vmul.f32 %v872_v24, %v872_v24  ;;  %1296 = vst.msk [vmem:[%s4418_s5 + $0x168] sm:$0xff] %vm1250_vm13, %v3551_v9 }
  0xe7   :  { %v1832_v32 = vadd.f32 %v1831_v29, %v1830_v21  ;;  %v876_v33 = vpop.f32.mrf.mxu0  ;;  %v1076_v15 = vpop.f32.mrf.mxu1 }
  0xe8   :  { %v2079_v34 = vsel %vm1250_vm13, %v1994_v30, 0.0  ;;  %v877_v35 = vadd.f32 %v3448_v7, %v876_v33  ;;  %v3569_v17 = vadd.f32 %v3448_v7, %v1076_v15 }
  0xe9   :  { %v2080_v37 = vadd.f32 %v2079_v34, %v2078_v26  ;;  %v2456_v38 = vpop.f32.mrf.mxu0  ;;  %v2576_v19 = vpop.f32.mrf.mxu1 }
  0xea   :  { %1257 = vst.msk [vmem:[%s4418_s5 + $0x30] sm:$0xff] %vm1250_vm13, %v877_v35  ;;  %v1833_v40 = vsel %vm1250_vm13, %v877_v35, 0.0  ;;  %v1995_v41 = vmul.f32 %v877_v35, %v877_v35  ;;  %1297 = vst.msk [vmem:[%s4418_s5 + $0x170] sm:$0xff] %vm1250_vm13, %v3569_v17 }
  0xeb   :  { %v1834_v43 = vadd.f32 %v1833_v40, %v1832_v32  ;;  %v881_v44 = vpop.f32.mrf.mxu0  ;;  %v1081_v23 = vpop.f32.mrf.mxu1 }
  0xec   :  { %v2081_v45 = vsel %vm1250_vm13, %v1995_v41, 0.0  ;;  %v882_v46 = vadd.f32 %v3448_v7, %v881_v44  ;;  %v3589_v25 = vadd.f32 %v3448_v7, %v1081_v23 }
  0xed   :  { %v2082_v5 = vadd.f32 %v2081_v45, %v2080_v37  ;;  %v2459_v48 = vpop.f32.mrf.mxu0  ;;  %v2579_v26 = vpop.f32.mrf.mxu1 }
  0xee   :  { %1258 = vst.msk [vmem:[%s4418_s5 + $0x38] sm:$0xff] %vm1250_vm13, %v882_v46  ;;  %v1835_v50 = vsel %vm1250_vm13, %v882_v46, 0.0  ;;  %v1996_v51 = vmul.f32 %v882_v46, %v882_v46  ;;  %1298 = vst.msk [vmem:[%s4418_s5 + $0x178] sm:$0xff] %vm1250_vm13, %v3589_v25 }
  0xef   :  { %v1836_v52 = vadd.f32 %v1835_v50, %v1834_v43  ;;  %v886_v53 = vpop.f32.mrf.mxu0  ;;  %v1086_v30 = vpop.f32.mrf.mxu1 }
  0xf0   :  { %v2083_v54 = vsel %vm1250_vm13, %v1996_v51, 0.0  ;;  %v887_v55 = vadd.f32 %v3448_v7, %v886_v53  ;;  %v3605_v32 = vadd.f32 %v3448_v7, %v1086_v30 }
  0xf1   :  { %v2084_v57 = vadd.f32 %v2083_v54, %v2082_v5  ;;  %v2462_v58 = vpop.f32.mrf.mxu0  ;;  %v2582_v33 = vpop.f32.mrf.mxu1 }
  0xf2   :  { %1259 = vst.msk [vmem:[%s4418_s5 + $0x40] sm:$0xff] %vm1250_vm13, %v887_v55  ;;  %v1837_v60 = vsel %vm1250_vm13, %v887_v55, 0.0  ;;  %v1997_v61 = vmul.f32 %v887_v55, %v887_v55  ;;  %1299 = vst.msk [vmem:[%s4418_s5 + $0x180] sm:$0xff] %vm1250_vm13, %v3605_v32 }
  0xf3   :  { %v1838_v63 = vadd.f32 %v1837_v60, %v1836_v52  ;;  %v891_v1 = vpop.f32.mrf.mxu0  ;;  %v1091_v36 = vpop.f32.mrf.mxu1 }
  0xf4   :  { %v2085_v2 = vsel %vm1250_vm13, %v1997_v61, 0.0  ;;  %v3546_v3 = vadd.f32 %v3448_v7, %v891_v1  ;;  %v3621_v38 = vadd.f32 %v3448_v7, %v1091_v36 }
  0xf5   :  { %v3548_v6 = vadd.f32 %v2085_v2, %v2084_v57  ;;  %v2465_v8 = vpop.f32.mrf.mxu0  ;;  %v2585_v40 = vpop.f32.mrf.mxu1 }
  0xf6   :  { %1260 = vst.msk [vmem:[%s4418_s5 + $0x48] sm:$0xff] %vm1250_vm13, %v3546_v3  ;;  %v1839_v10 = vsel %vm1250_vm13, %v3546_v3, 0.0  ;;  %1300 = vst.msk [vmem:[%s4418_s5 + $0x188] sm:$0xff] %vm1250_vm13, %v3621_v38 }
  0xf7   :  { %v1840_v12 = vadd.f32 %v1839_v10, %v1838_v63  ;;  %v896_v13 = vpop.f32.mrf.mxu0  ;;  %v1096_v43 = vpop.f32.mrf.mxu1 }
  0xf8   :  { %v3566_v14 = vadd.f32 %v3448_v7, %v896_v13  ;;  %v3637_v45 = vadd.f32 %v3448_v7, %v1096_v43 }
  0xf9   :  { %v2468_v16 = vpop.f32.mrf.mxu0  ;;  %v2588_v46 = vpop.f32.mrf.mxu1 }
  0xfa   :  { %1261 = vst.msk [vmem:[%s4418_s5 + $0x50] sm:$0xff] %vm1250_vm13, %v3566_v14  ;;  %v1841_v18 = vsel %vm1250_vm13, %v3566_v14, 0.0  ;;  %1301 = vst.msk [vmem:[%s4418_s5 + $0x190] sm:$0xff] %vm1250_vm13, %v3637_v45 }
  0xfb   :  { %v3578_v20 = vadd.f32 %v1841_v18, %v1840_v12  ;;  %v901_v21 = vpop.f32.mrf.mxu0  ;;  %v1101_v48 = vpop.f32.mrf.mxu1 }
  0xfc   :  { %v3586_v22 = vadd.f32 %v3448_v7, %v901_v21  ;;  %v3653_v51 = vadd.f32 %v3448_v7, %v1101_v48 }
  0xfd   :  { %v2471_v24 = vpop.f32.mrf.mxu0  ;;  %v2591_v0 = vpop.f32.mrf.mxu1 }
  0xfe   :  { %1262 = vst.msk [vmem:[%s4418_s5 + $0x58] sm:$0xff] %vm1250_vm13, %v3586_v22  ;;  %1302 = vst.msk [vmem:[%s4418_s5 + $0x198] sm:$0xff] %vm1250_vm13, %v3653_v51 }
  0xff   :  { %v906_v27 = vpop.f32.mrf.mxu0  ;;  %v1106_v54 = vpop.f32.mrf.mxu1 }
 0x100   :  { %v3602_v29 = vadd.f32 %v3448_v7, %v906_v27  ;;  %v3669_v56 = vadd.f32 %v3448_v7, %v1106_v54 }
 0x101   :  { %v2474_v31 = vpop.f32.mrf.mxu0  ;;  %v2594_v57 = vpop.f32.mrf.mxu1 }
 0x102   :  { %1263 = vst.msk [vmem:[%s4418_s5 + $0x60] sm:$0xff] %vm1250_vm13, %v3602_v29  ;;  %1303 = vst.msk [vmem:[%s4418_s5 + $0x1a0] sm:$0xff] %vm1250_vm13, %v3669_v56 }
 0x103   :  { %v911_v34 = vpop.f32.mrf.mxu0  ;;  %v1111_v61 = vpop.f32.mrf.mxu1 }
 0x104   :  { %v3618_v35 = vadd.f32 %v3448_v7, %v911_v34  ;;  %v3685_v63 = vadd.f32 %v3448_v7, %v1111_v61 }
 0x105   :  { %v2477_v37 = vpop.f32.mrf.mxu0  ;;  %v2597_v1 = vpop.f32.mrf.mxu1 }
 0x106   :  { %1264 = vst.msk [vmem:[%s4418_s5 + $0x68] sm:$0xff] %vm1250_vm13, %v3618_v35  ;;  %1304 = vst.msk [vmem:[%s4418_s5 + $0x1a8] sm:$0xff] %vm1250_vm13, %v3685_v63 }
 0x107   :  { %v916_v41 = vpop.f32.mrf.mxu0  ;;  %v1116_v8 = vpop.f32.mrf.mxu1 }
 0x108   :  { %v3634_v42 = vadd.f32 %v3448_v7, %v916_v41  ;;  %v3701_v11 = vadd.f32 %v3448_v7, %v1116_v8 }
 0x109   :  { %v2480_v44 = vpop.f32.mrf.mxu0  ;;  %v2600_v12 = vpop.f32.mrf.mxu1 }
 0x10a   :  { %1265 = vst.msk [vmem:[%s4418_s5 + $0x70] sm:$0xff] %vm1250_vm13, %v3634_v42  ;;  %1305 = vst.msk [vmem:[%s4418_s5 + $0x1b0] sm:$0xff] %vm1250_vm13, %v3701_v11  ;;  %v1999_v12 = vmul.f32 %v3566_v14, %v3566_v14 }
 0x10b   :  { %v921_v47 = vpop.f32.mrf.mxu0  ;;  %v1121_v16 = vpop.f32.mrf.mxu1 }
 0x10c   :  { %v3650_v5 = vadd.f32 %v3448_v7, %v921_v47  ;;  %v3717_v19 = vadd.f32 %v3448_v7, %v1121_v16 }
 0x10d   :  { %v2483_v50 = vpop.f32.mrf.mxu0  ;;  %v2603_v21 = vpop.f32.mrf.mxu1 }
 0x10e   :  { %1266 = vst.msk [vmem:[%s4418_s5 + $0x78] sm:$0xff] %vm1250_vm13, %v3650_v5  ;;  %1306 = vst.msk [vmem:[%s4418_s5 + $0x1b8] sm:$0xff] %vm1250_vm13, %v3717_v19 }
 0x10f   :  { %v926_v52 = vpop.f32.mrf.mxu0  ;;  %v1126_v26 = vpop.f32.mrf.mxu1 }
 0x110   :  { %v3666_v53 = vadd.f32 %v3448_v7, %v926_v52  ;;  %v3733_v30 = vadd.f32 %v3448_v7, %v1126_v26 }
 0x111   :  { %v2486_v55 = vpop.f32.mrf.mxu0  ;;  %v2606_v31 = vpop.f32.mrf.mxu1 }
 0x112   :  { %1267 = vst.msk [vmem:[%s4418_s5 + $0x80] sm:$0xff] %vm1250_vm13, %v3666_v53  ;;  %1307 = vst.msk [vmem:[%s4418_s5 + $0x1c0] sm:$0xff] %vm1250_vm13, %v3733_v30  ;;  %v1843_v31 = vsel %vm1250_vm13, %v3586_v22, 0.0 }
 0x113   :  { %v931_v58 = vpop.f32.mrf.mxu0  ;;  %v1131_v36 = vpop.f32.mrf.mxu1 }
 0x114   :  { %v3682_v60 = vadd.f32 %v3448_v7, %v931_v58  ;;  %v3749_v40 = vadd.f32 %v3448_v7, %v1131_v36 }
 0x115   :  { %v2489_v62 = vpop.f32.mrf.mxu0  ;;  %v2609_v41 = vpop.f32.mrf.mxu1 }
 0x116   :  { %1268 = vst.msk [vmem:[%s4418_s5 + $0x88] sm:$0xff] %vm1250_vm13, %v3682_v60  ;;  %1308 = vst.msk [vmem:[%s4418_s5 + $0x1c8] sm:$0xff] %vm1250_vm13, %v3749_v40  ;;  %v1998_v62 = vmul.f32 %v3546_v3, %v3546_v3 }
 0x117   :  { %v936_v2 = vpop.f32.mrf.mxu0  ;;  %v1136_v46 = vpop.f32.mrf.mxu1 }
 0x118   :  { %v3698_v4 = vadd.f32 %v3448_v7, %v936_v2  ;;  %v3765_v48 = vadd.f32 %v3448_v7, %v1136_v46  ;;  %v2087_v3 = vsel %vm1250_vm13, %v1998_v62, 0.0  ;;  %v2002_v46 = vmul.f32 %v3618_v35, %v3618_v35 }
 0x119   :  { %v2492_v10 = vpop.f32.mrf.mxu0  ;;  %v2612_v50 = vpop.f32.mrf.mxu1 }
 0x11a   :  { %1269 = vst.msk [vmem:[%s4418_s5 + $0x90] sm:$0xff] %vm1250_vm13, %v3698_v4  ;;  %1309 = vst.msk [vmem:[%s4418_s5 + $0x1d0] sm:$0xff] %vm1250_vm13, %v3765_v48 }
 0x11b   :  { %v941_v13 = vpop.f32.mrf.mxu0  ;;  %v1141_v54 = vpop.f32.mrf.mxu1 }
 0x11c   :  { %v3714_v15 = vadd.f32 %v3448_v7, %v941_v13  ;;  %v3781_v57 = vadd.f32 %v3448_v7, %v1141_v54 }
 0x11d   :  { %v2495_v18 = vpop.f32.mrf.mxu0  ;;  %v2615_v58 = vpop.f32.mrf.mxu1 }
 0x11e   :  { %1270 = vst.msk [vmem:[%s4418_s5 + $0x98] sm:$0xff] %vm1250_vm13, %v3714_v15  ;;  %1310 = vst.msk [vmem:[%s4418_s5 + $0x1d8] sm:$0xff] %vm1250_vm13, %v3781_v57  ;;  %v2000_v18 = vmul.f32 %v3586_v22, %v3586_v22 }
 0x11f   :  { %v946_v23 = vpop.f32.mrf.mxu0  ;;  %v1146_v2 = vpop.f32.mrf.mxu1 }
 0x120   :  { %v3730_v24 = vadd.f32 %v3448_v7, %v946_v23  ;;  %v3799_v10 = vadd.f32 %v3448_v7, %v1146_v2  ;;  %v2091_v22 = vsel %vm1250_vm13, %v2000_v18, 0.0 }
 0x121   :  { %v2498_v27 = vpop.f32.mrf.mxu0  ;;  %v2618_v13 = vpop.f32.mrf.mxu1 }
 0x122   :  { %1271 = vst.msk [vmem:[%s4418_s5 + $0xa0] sm:$0xff] %vm1250_vm13, %v3730_v24  ;;  %1311 = vst.msk [vmem:[%s4418_s5 + $0x1e0] sm:$0xff] %vm1250_vm13, %v3799_v10  ;;  %v2089_v27 = vsel %vm1250_vm13, %v1999_v12, 0.0  ;;  %v1849_v12 = vsel %vm1250_vm13, %v3634_v42, 0.0  ;;  %v2004_v13 = vmul.f32 %v3650_v5, %v3650_v5 }
 0x123   :  { %v951_v33 = vpop.f32.mrf.mxu0  ;;  %v1151_v21 = vpop.f32.mrf.mxu1 }
 0x124   :  { %v3746_v34 = vadd.f32 %v3448_v7, %v951_v33  ;;  %v3820_v26 = vadd.f32 %v3448_v7, %v1151_v21  ;;  %v2001_v33 = vmul.f32 %v3602_v29, %v3602_v29 }
 0x125   :  { %v2501_v37 = vpop.f32.mrf.mxu0  ;;  %v2621_v36 = vpop.f32.mrf.mxu1 }
 0x126   :  { %1272 = vst.msk [vmem:[%s4418_s5 + $0xa8] sm:$0xff] %vm1250_vm13, %v3746_v34  ;;  %v2088_v37 = vadd.f32 %v2087_v3, %v3548_v6  ;;  %1312 = vst.msk [vmem:[%s4418_s5 + $0x1e8] sm:$0xff] %vm1250_vm13, %v3820_v26  ;;  %v2093_v58 = vsel %vm1250_vm13, %v2001_v33, 0.0  ;;  %v1851_v33 = vsel %vm1250_vm13, %v3650_v5, 0.0  ;;  %v2099_v5 = vsel %vm1250_vm13, %v2004_v13, 0.0 }
 0x127   :  { %v956_v43 = vpop.f32.mrf.mxu0  ;;  %v1156_v50 = vpop.f32.mrf.mxu1  ;;  %v2008_v13 = vmul.f32 %v3714_v15, %v3714_v15 }
 0x128   :  { %v3762_v44 = vadd.f32 %v3448_v7, %v956_v43  ;;  %v1845_v43 = vsel %vm1250_vm13, %v3602_v29, 0.0  ;;  %v2090_v6 = vadd.f32 %v2089_v27, %v2088_v37  ;;  %v2003_v29 = vmul.f32 %v3634_v42, %v3634_v42 }
 0x129   :  { %v2504_v47 = vpop.f32.mrf.mxu0  ;;  %v2624_v62 = vpop.f32.mrf.mxu1  ;;  %v2005_v42 = vmul.f32 %v3666_v53, %v3666_v53 }
 0x12a   :  { %1273 = vst.msk [vmem:[%s4418_s5 + $0xb0] sm:$0xff] %vm1250_vm13, %v3762_v44  ;;  %v1855_v62 = vsel %vm1250_vm13, %v3682_v60, 0.0 }
 0x12b   :  { %v961_v0 = vpop.f32.mrf.mxu0  ;;  %v1161_v3 = vpop.f32.mrf.mxu1 }
 0x12c   :  { %v3778_v52 = vadd.f32 %v3448_v7, %v961_v0  ;;  %v1844_v0 = vadd.f32 %v1843_v31, %v3578_v20  ;;  %v2092_v20 = vadd.f32 %v2091_v22, %v2090_v6  ;;  %v3874_v27 = vadd.f32 %v3448_v7, %v1161_v3 }
 0x12d   :  { %v2507_v55 = vpop.f32.mrf.mxu0  ;;  %v2097_v31 = vsel %vm1250_vm13, %v2003_v29, 0.0  ;;  %v2627_v36 = vpop.f32.mrf.mxu1  ;;  %v2101_v29 = vsel %vm1250_vm13, %v2005_v42, 0.0 }
 0x12e   :  { %1274 = vst.msk [vmem:[%s4418_s5 + $0xb8] sm:$0xff] %vm1250_vm13, %v3778_v52  ;;  %v3848_v55 = vadd.f32 %v3448_v7, %v1156_v50  ;;  %v1846_v2 = vadd.f32 %v1845_v43, %v1844_v0  ;;  %v2094_v18 = vadd.f32 %v2093_v58, %v2092_v20  ;;  %1314 = vst.msk [vmem:[%s4418_s5 + $0x1f8] sm:$0xff] %vm1250_vm13, %v3874_v27  ;;  %v1853_v43 = vsel %vm1250_vm13, %v3666_v53, 0.0 }
 0x12f   :  { %v966_v61 = vpop.f32.mrf.mxu0  ;;  %v1166_v6 = vpop.f32.mrf.mxu1  ;;  %v2007_v53 = vmul.f32 %v3698_v4, %v3698_v4  ;;  %v1859_v36 = vsel %vm1250_vm13, %v3714_v15, 0.0  ;;  %v2107_v15 = vsel %vm1250_vm13, %v2008_v13, 0.0  ;;  %v2012_v13 = vmul.f32 %v3778_v52, %v3778_v52 }
 0x130   :  { %v3796_v1 = vadd.f32 %v3448_v7, %v966_v61  ;;  %v1847_v61 = vsel %vm1250_vm13, %v3618_v35, 0.0  ;;  %1313 = vst.msk [vmem:[%s4418_s5 + $0x1f0] sm:$0xff] %vm1250_vm13, %v3848_v55  ;;  %v2095_v35 = vsel %vm1250_vm13, %v2002_v46, 0.0  ;;  %v2006_v46 = vmul.f32 %v3682_v60, %v3682_v60 }
 0x131   :  { %v2510_v8 = vpop.f32.mrf.mxu0  ;;  %v1848_v21 = vadd.f32 %v1847_v61, %v1846_v2  ;;  %v2096_v37 = vadd.f32 %v2095_v35, %v2094_v18  ;;  %v3900_v61 = vadd.f32 %v3448_v7, %v1166_v6  ;;  %v2630_v20 = vpop.f32.mrf.mxu1  ;;  %v2105_v42 = vsel %vm1250_vm13, %v2007_v53, 0.0 }
 0x132   :  { %1275 = vst.msk [vmem:[%s4418_s5 + $0xc0] sm:$0xff] %vm1250_vm13, %v3796_v1  ;;  %v2103_v60 = vsel %vm1250_vm13, %v2006_v46, 0.0  ;;  %v2010_v46 = vmul.f32 %v3746_v34, %v3746_v34  ;;  %v1863_v20 = vsel %vm1250_vm13, %v3746_v34, 0.0 }
 0x133   :  { %v971_v16 = vpop.f32.mrf.mxu0  ;;  %v2098_v0 = vadd.f32 %v2097_v31, %v2096_v37  ;;  %1315 = vst.msk [vmem:[%s4418_s5 + $0x200] sm:$0xff] %vm1250_vm13, %v3900_v61  ;;  %v1171_v18 = vpop.f32.mrf.mxu1 }
 0x134   :  { %v3817_v14 = vadd.f32 %v3448_v7, %v971_v16  ;;  %v2111_v34 = vsel %vm1250_vm13, %v2010_v46, 0.0 }
 0x135   :  { %v2513_v23 = vpop.f32.mrf.mxu0  ;;  %v2100_v2 = vadd.f32 %v2099_v5, %v2098_v0  ;;  %v2633_v37 = vpop.f32.mrf.mxu1 }
 0x136   :  { %1276 = vst.msk [vmem:[%s4418_s5 + $0xc8] sm:$0xff] %vm1250_vm13, %v3817_v14  ;;  %v1867_v37 = vsel %vm1250_vm13, %v3778_v52, 0.0  ;;  %v2115_v52 = vsel %vm1250_vm13, %v2012_v13, 0.0  ;;  %v2014_v46 = vmul.f32 %v3817_v14, %v3817_v14 }
 0x137   :  { %v976_v41 = vpop.f32.mrf.mxu0  ;;  %v1176_v0 = vpop.f32.mrf.mxu1 }
 0x138   :  { %v3844_v47 = vadd.f32 %v3448_v7, %v976_v41  ;;  %v1850_v41 = vadd.f32 %v1849_v12, %v1848_v21  ;;  %v1857_v12 = vsel %vm1250_vm13, %v3698_v4, 0.0  ;;  %v2102_v21 = vadd.f32 %v2101_v29, %v2100_v2 }
 0x139   :  { %v2516_v54 = vpop.f32.mrf.mxu0  ;;  %v2009_v4 = vmul.f32 %v3730_v24, %v3730_v24  ;;  %v2636_v2 = vpop.f32.mrf.mxu1 }
 0x13a   :  { %1277 = vst.msk [vmem:[%s4418_s5 + $0xd0] sm:$0xff] %vm1250_vm13, %v3844_v47  ;;  %v1852_v54 = vadd.f32 %v1851_v33, %v1850_v41  ;;  %v3926_v33 = vadd.f32 %v3448_v7, %v1171_v18  ;;  %v2104_v41 = vadd.f32 %v2103_v60, %v2102_v21  ;;  %v1871_v2 = vsel %vm1250_vm13, %v3817_v14, 0.0 }
 0x13b   :  { %v981_v8 = vpop.f32.mrf.mxu0  ;;  %v2109_v53 = vsel %vm1250_vm13, %v2009_v4, 0.0  ;;  %v1181_v21 = vpop.f32.mrf.mxu1  ;;  %v2119_v14 = vsel %vm1250_vm13, %v2014_v46, 0.0 }
 0x13c   :  { %v3871_v16 = vadd.f32 %v3448_v7, %v981_v8  ;;  %v1854_v8 = vadd.f32 %v1853_v43, %v1852_v54  ;;  %1316 = vst.msk [vmem:[%s4418_s5 + $0x208] sm:$0xff] %vm1250_vm13, %v3926_v33  ;;  %v1861_v43 = vsel %vm1250_vm13, %v3730_v24, 0.0  ;;  %v2106_v54 = vadd.f32 %v2105_v42, %v2104_v41 }
 0x13d   :  { %v2519_v23 = vpop.f32.mrf.mxu0  ;;  %v2011_v24 = vmul.f32 %v3762_v44, %v3762_v44  ;;  %v2639_v41 = vpop.f32.mrf.mxu1 }
 0x13e   :  { %1278 = vst.msk [vmem:[%s4418_s5 + $0xd8] sm:$0xff] %vm1250_vm13, %v3871_v16  ;;  %v1856_v23 = vadd.f32 %v1855_v62, %v1854_v8  ;;  %v3952_v62 = vadd.f32 %v3448_v7, %v1176_v0  ;;  %v2108_v8 = vadd.f32 %v2107_v15, %v2106_v54  ;;  %v2016_v13 = vmul.f32 %v3871_v16, %v3871_v16 }
 0x13f   :  { %v986_v22 = vpop.f32.mrf.mxu0  ;;  %v2113_v4 = vsel %vm1250_vm13, %v2011_v24, 0.0  ;;  %v1186_v54 = vpop.f32.mrf.mxu1  ;;  %v1875_v41 = vsel %vm1250_vm13, %v3871_v16, 0.0 }
 0x140   :  { %v3897_v50 = vadd.f32 %v3448_v7, %v986_v22  ;;  %v1858_v22 = vadd.f32 %v1857_v12, %v1856_v23  ;;  %1317 = vst.msk [vmem:[%s4418_s5 + $0x210] sm:$0xff] %vm1250_vm13, %v3952_v62  ;;  %v1865_v12 = vsel %vm1250_vm13, %v3762_v44, 0.0  ;;  %v2110_v23 = vadd.f32 %v2109_v53, %v2108_v8 }
 0x141   :  { %v2522_v58 = vpop.f32.mrf.mxu0  ;;  %v2013_v44 = vmul.f32 %v3796_v1, %v3796_v1  ;;  %v2642_v8 = vpop.f32.mrf.mxu1  ;;  %v2123_v16 = vsel %vm1250_vm13, %v2016_v13, 0.0 }
 0x142   :  { %1279 = vst.msk [vmem:[%s4418_s5 + $0xe0] sm:$0xff] %vm1250_vm13, %v3897_v50  ;;  %v1860_v58 = vadd.f32 %v1859_v36, %v1858_v22  ;;  %v3978_v36 = vadd.f32 %v3448_v7, %v1181_v21  ;;  %v2112_v22 = vadd.f32 %v2111_v34, %v2110_v23 }
 0x143   :  { %v991_v35 = vpop.f32.mrf.mxu0  ;;  %v2117_v24 = vsel %vm1250_vm13, %v2013_v44, 0.0  ;;  %v1191_v23 = vpop.f32.mrf.mxu1 }
 0x144   :  { %v3923_v3 = vadd.f32 %v3448_v7, %v991_v35  ;;  %v1862_v35 = vadd.f32 %v1861_v43, %v1860_v58  ;;  %1318 = vst.msk [vmem:[%s4418_s5 + $0x218] sm:$0xff] %vm1250_vm13, %v3978_v36  ;;  %v1869_v43 = vsel %vm1250_vm13, %v3796_v1, 0.0  ;;  %v2114_v58 = vadd.f32 %v2113_v4, %v2112_v22 }
 0x145   :  { %v2525_v31 = vpop.f32.mrf.mxu0  ;;  %v2015_v1 = vmul.f32 %v3844_v47, %v3844_v47  ;;  %v2645_v22 = vpop.f32.mrf.mxu1 }
 0x146   :  { %1280 = vst.msk [vmem:[%s4418_s5 + $0xe8] sm:$0xff] %vm1250_vm13, %v3923_v3  ;;  %v1864_v31 = vadd.f32 %v1863_v20, %v1862_v35  ;;  %v4004_v20 = vadd.f32 %v3448_v7, %v1186_v54  ;;  %v2116_v35 = vadd.f32 %v2115_v52, %v2114_v58  ;;  %v2018_v46 = vmul.f32 %v3923_v3, %v3923_v3 }
 0x147   :  { %v996_v5 = vpop.f32.mrf.mxu0  ;;  %v2121_v44 = vsel %vm1250_vm13, %v2015_v1, 0.0  ;;  %v1196_v58 = vpop.f32.mrf.mxu1  ;;  %v1879_v8 = vsel %vm1250_vm13, %v3923_v3, 0.0 }
 0x148   :  { %v3949_v6 = vadd.f32 %v3448_v7, %v996_v5  ;;  %v1866_v5 = vadd.f32 %v1865_v12, %v1864_v31  ;;  %1319 = vst.msk [vmem:[%s4418_s5 + $0x220] sm:$0xff] %vm1250_vm13, %v4004_v20  ;;  %v1873_v12 = vsel %vm1250_vm13, %v3844_v47, 0.0  ;;  %v2118_v31 = vadd.f32 %v2117_v24, %v2116_v35 }
 0x149   :  { %v2528_v29 = vpop.f32.mrf.mxu0  ;;  %v2017_v47 = vmul.f32 %v3897_v50, %v3897_v50  ;;  %v2648_v35 = vpop.f32.mrf.mxu1  ;;  %v2127_v3 = vsel %vm1250_vm13, %v2018_v46, 0.0 }
 0x14a   :  { %1281 = vst.msk [vmem:[%s4418_s5 + $0xf0] sm:$0xff] %vm1250_vm13, %v3949_v6  ;;  %v1868_v29 = vadd.f32 %v1867_v37, %v1866_v5  ;;  %v4028_v37 = vadd.f32 %v3448_v7, %v1191_v23  ;;  %v2120_v5 = vadd.f32 %v2119_v14, %v2118_v31 }
 0x14b   :  { %v1001_v60 = vpop.f32.mrf.mxu0  ;;  %v2125_v1 = vsel %vm1250_vm13, %v2017_v47, 0.0  ;;  %v1201_v31 = vpop.f32.mrf.mxu1 }
 0x14c   :  { %v3975_v18 = vadd.f32 %v3448_v7, %v1001_v60  ;;  %v1870_v60 = vadd.f32 %v1869_v43, %v1868_v29  ;;  %1320 = vst.msk [vmem:[%s4418_s5 + $0x228] sm:$0xff] %vm1250_vm13, %v4028_v37  ;;  %v1877_v43 = vsel %vm1250_vm13, %v3897_v50, 0.0  ;;  %v2122_v29 = vadd.f32 %v2121_v44, %v2120_v5 }
 0x14d   :  { %v2531_v42 = vpop.f32.mrf.mxu0  ;;  %v2019_v50 = vmul.f32 %v3949_v6, %v3949_v6  ;;  %v2651_v5 = vpop.f32.mrf.mxu1 }
 0x14e   :  { %1282 = vst.msk [vmem:[%s4418_s5 + $0xf8] sm:$0xff] %vm1250_vm13, %v3975_v18  ;;  %v1872_v42 = vadd.f32 %v1871_v2, %v1870_v60  ;;  %v4051_v2 = vadd.f32 %v3448_v7, %v1196_v58  ;;  %v2124_v60 = vadd.f32 %v2123_v16, %v2122_v29  ;;  %v2020_v13 = vmul.f32 %v3975_v18, %v3975_v18 }
 0x14f   :  { %v1006_v15 = vpop.f32.mrf.mxu0  ;;  %v2129_v47 = vsel %vm1250_vm13, %v2019_v50, 0.0  ;;  %v1883_v22 = vsel %vm1250_vm13, %v3975_v18, 0.0  ;;  %v1206_v29 = vpop.f32.mrf.mxu1 }
 0x150   :  { %v4001_v0 = vadd.f32 %v3448_v7, %v1006_v15  ;;  %v1874_v15 = vadd.f32 %v1873_v12, %v1872_v42  ;;  %1321 = vst.msk [vmem:[%s4418_s5 + $0x230] sm:$0xff] %vm1250_vm13, %v4051_v2  ;;  %v1881_v12 = vsel %vm1250_vm13, %v3949_v6, 0.0  ;;  %v2126_v42 = vadd.f32 %v2125_v1, %v2124_v60 }
 0x151   :  { %v2534_v53 = vpop.f32.mrf.mxu0  ;;  %v2131_v18 = vsel %vm1250_vm13, %v2020_v13, 0.0 }
 0x152   :  { %1283 = vst.msk [vmem:[%s4418_s5 + $0x100] sm:$0xff] %vm1250_vm13, %v4001_v0  ;;  %v1876_v53 = vadd.f32 %v1875_v41, %v1874_v15  ;;  %v4074_v41 = vadd.f32 %v3448_v7, %v1201_v31  ;;  %v2021_v6 = vmul.f32 %v4001_v0, %v4001_v0  ;;  %v2128_v15 = vadd.f32 %v2127_v3, %v2126_v42 }
 0x153   :  { %v1011_v34 = vpop.f32.mrf.mxu0 }
 0x154   :  { %v1012_v21 = vadd.f32 %v3448_v7, %v1011_v34  ;;  %v1878_v34 = vadd.f32 %v1877_v43, %v1876_v53  ;;  %1322 = vst.msk [vmem:[%s4418_s5 + $0x238] sm:$0xff] %vm1250_vm13, %v4074_v41  ;;  %v1885_v43 = vsel %vm1250_vm13, %v4001_v0, 0.0  ;;  %v2130_v53 = vadd.f32 %v2129_v47, %v2128_v15  ;;  %v2654_v0 = vpop.f32.mrf.mxu1 }
 0x155   :  { %v2537_v4 = vpop.f32.mrf.mxu0  ;;  %v2133_v50 = vsel %vm1250_vm13, %v2021_v6, 0.0 }
 0x156   :  { %1284 = vst.msk [vmem:[%s4418_s5 + $0x108] sm:$0xff] %vm1250_vm13, %v1012_v21  ;;  %v1880_v4 = vadd.f32 %v1879_v8, %v1878_v34  ;;  %v2022_v46 = vmul.f32 %v1012_v21, %v1012_v21  ;;  %v4095_v8 = vadd.f32 %v3448_v7, %v1206_v29  ;;  %v1887_v35 = vsel %vm1250_vm13, %v1012_v21, 0.0  ;;  %v1211_v42 = vpop.f32.mrf.mxu1 }
 0x157   :  { %v1016_v52 = vpop.f32.mrf.mxu0  ;;  %v2132_v34 = vadd.f32 %v2131_v18, %v2130_v53 }
 0x158   :  { %v1017_v54 = vadd.f32 %v3448_v7, %v1016_v52  ;;  %v1882_v52 = vadd.f32 %v1881_v12, %v1880_v4  ;;  %1323 = vst.msk [vmem:[%s4418_s5 + $0x240] sm:$0xff] %vm1250_vm13, %v4095_v8  ;;  %v2135_v12 = vsel %vm1250_vm13, %v2022_v46, 0.0 }
 0x159   :  { %v2540_v24 = vpop.f32.mrf.mxu0  ;;  %v2134_v4 = vadd.f32 %v2133_v50, %v2132_v34 }
 0x15a   :  { %1285 = vst.msk [vmem:[%s4418_s5 + $0x110] sm:$0xff] %vm1250_vm13, %v1017_v54  ;;  %v1884_v24 = vadd.f32 %v1883_v22, %v1882_v52  ;;  %v2023_v60 = vmul.f32 %v1017_v54, %v1017_v54  ;;  %v1889_v21 = vsel %vm1250_vm13, %v1017_v54, 0.0  ;;  %v4112_v22 = vadd.f32 %v3448_v7, %v1211_v42  ;;  %v2657_v54 = vpop.f32.mrf.mxu1 }
 0x15b   :  { %v1021_v14 = vpop.f32.mrf.mxu0  ;;  %v2136_v52 = vadd.f32 %v2135_v12, %v2134_v4 }
 0x15c   :  { %v1022_v23 = vadd.f32 %v3448_v7, %v1021_v14  ;;  %v1886_v14 = vadd.f32 %v1885_v43, %v1884_v24  ;;  %v2137_v6 = vsel %vm1250_vm13, %v2023_v60, 0.0  ;;  %1324 = vst.msk [vmem:[%s4418_s5 + $0x248] sm:$0xff] %vm1250_vm13, %v4112_v22  ;;  %v1216_v53 = vpop.f32.mrf.mxu1 }
 0x15d   :  { %v2543_v44 = vpop.f32.mrf.mxu0  ;;  %v2138_v24 = vadd.f32 %v2137_v6, %v2136_v52 }
 0x15e   :  { %1286 = vst.msk [vmem:[%s4418_s5 + $0x118] sm:$0xff] %vm1250_vm13, %v1022_v23  ;;  %v2024_v13 = vmul.f32 %v1022_v23, %v1022_v23  ;;  %v1888_v44 = vadd.f32 %v1887_v35, %v1886_v14  ;;  %v1891_v5 = vsel %vm1250_vm13, %v1022_v23, 0.0  ;;  %v4129_v35 = vadd.f32 %v3448_v7, %v1216_v53  ;;  %v2660_v34 = vpop.f32.mrf.mxu1 }
 0x15f   :  { %v1026_v16 = vpop.f32.mrf.mxu0 }
 0x160   :  { %v1027_v58 = vadd.f32 %v3448_v7, %v1026_v16  ;;  %v1890_v16 = vadd.f32 %v1889_v21, %v1888_v44  ;;  %v2139_v43 = vsel %vm1250_vm13, %v2024_v13, 0.0  ;;  %1325 = vst.msk [vmem:[%s4418_s5 + $0x250] sm:$0xff] %vm1250_vm13, %v4129_v35  ;;  %v1221_v42 = vpop.f32.mrf.mxu1 }
 0x161   :  { %v2546_v1 = vpop.f32.mrf.mxu0  ;;  %v2140_v14 = vadd.f32 %v2139_v43, %v2138_v24  ;;  %v4146_v6 = vadd.f32 %v3448_v7, %v1221_v42 }
 0x162   :  { %1287 = vst.msk [vmem:[%s4418_s5 + $0x120] sm:$0xff] %vm1250_vm13, %v1027_v58  ;;  %v2025_v15 = vmul.f32 %v1027_v58, %v1027_v58  ;;  %v1893_v23 = vsel %vm1250_vm13, %v1027_v58, 0.0  ;;  %v1892_v1 = vadd.f32 %v1891_v5, %v1890_v16  ;;  %v2663_v52 = vpop.f32.mrf.mxu1 }
 0x163   :  { %v1031_v3 = vpop.f32.mrf.mxu0  ;;  %1326 = vst.msk [vmem:[%s4418_s5 + $0x258] sm:$0xff] %vm1250_vm13, %v4146_v6 }
 0x164   :  { %v1032_v31 = vadd.f32 %v3448_v7, %v1031_v3  ;;  %v2141_v60 = vsel %vm1250_vm13, %v2025_v15, 0.0  ;;  %v1894_v3 = vadd.f32 %v1893_v23, %v1892_v1 }
 0x165   :  { %v2549_v47 = vpop.f32.mrf.mxu0  ;;  %v2142_v4 = vadd.f32 %v2141_v60, %v2140_v14  ;;  %v2030_v60 = vmul.f32 %v3487_v28, %v3487_v28 }
 0x166   :  { %1288 = vst.msk [vmem:[%s4418_s5 + $0x128] sm:$0xff] %vm1250_vm13, %v1032_v31  ;;  %v2026_v46 = vmul.f32 %v1032_v31, %v1032_v31  ;;  %v1895_v0 = vsel %vm1250_vm13, %v1032_v31, 0.0 }
 0x167   :  { %v1036_v18 = vpop.f32.mrf.mxu0  ;;  %v1896_v44 = vadd.f32 %v1895_v0, %v1894_v3 }
 0x168   :  { %v1037_v29 = vadd.f32 %v3448_v7, %v1036_v18  ;;  %v2143_v21 = vsel %vm1250_vm13, %v2026_v46, 0.0 }
 0x169   :  { %v2552_v50 = vpop.f32.mrf.mxu0  ;;  %v2144_v16 = vadd.f32 %v2143_v21, %v2142_v4  ;;  %v2697_v4 = vld [vmem:[%s4417_s4] ss:$0 sm:$0xff] }
 0x16a   :  { %1289 = vst.msk [vmem:[%s4418_s5 + $0x130] sm:$0xff] %vm1250_vm13, %v1037_v29  ;;  %v2027_v58 = vmul.f32 %v1037_v29, %v1037_v29  ;;  %v1897_v13 = vsel %vm1250_vm13, %v1037_v29, 0.0  ;;  %v1226_v29 = vpop.f32.mrf.mxu1 }
 0x16b   :  { %v1041_v12 = vpop.f32.mrf.mxu0  ;;  %v1898_v18 = vadd.f32 %v1897_v13, %v1896_v44  ;;  %v4162_v50 = vadd.f32 %v3448_v7, %v1226_v29 }
 0x16c   :  { %v1042_v31 = vadd.f32 %v3448_v7, %v1041_v12  ;;  %v2145_v5 = vsel %vm1250_vm13, %v2027_v58, 0.0  ;;  %v2666_v34 = vpop.f32.mrf.mxu1  ;;  %v2031_v12 = vmul.f32 %v3502_v39, %v3502_v39 }
 0x16d   :  { %v2555_v47 = vpop.f32.mrf.mxu0  ;;  %v2146_v53 = vadd.f32 %v2145_v5, %v2144_v16  ;;  %1327 = vst.msk [vmem:[%s4418_s5 + $0x260] sm:$0xff] %vm1250_vm13, %v4162_v50  ;;  %v1905_v5 = vsel %vm1250_vm13, %v3502_v39, 0.0  ;;  %v2033_v39 = vmul.f32 %v3532_v59, %v3532_v59  ;;  %v1911_v34 = vsel %vm1250_vm13, %v3551_v9, 0.0 }
 0x16e   :  { %1290 = vst.msk [vmem:[%s4418_s5 + $0x138] sm:$0xff] %vm1250_vm13, %v1042_v31  ;;  %v1899_v15 = vsel %vm1250_vm13, %v1042_v31, 0.0  ;;  %v2028_v54 = vmul.f32 %v1042_v31, %v1042_v31  ;;  %v1231_v13 = vpop.f32.mrf.mxu1  ;;  %v2151_v47 = vsel %vm1250_vm13, %v2030_v60, 0.0  ;;  %v2153_v16 = vsel %vm1250_vm13, %v2031_v12, 0.0 }
 0x16f   :  { %v1046_v43 = vpop.f32.mrf.mxu0  ;;  %v1900_v24 = vadd.f32 %v1899_v15, %v1898_v18  ;;  %v4184_v44 = vadd.f32 %v2697_v4, %v1231_v13  ;;  %v1907_v18 = vsel %vm1250_vm13, %v3517_v49, 0.0  ;;  %v1913_v13 = vsel %vm1250_vm13, %v3569_v17, 0.0 }
 0x170   :  { %v2147_v23 = vsel %vm1250_vm13, %v2028_v54, 0.0  ;;  %v1047_v46 = vadd.f32 %v3448_v7, %v1046_v43  ;;  %v1903_v7 = vsel %vm1250_vm13, %v3487_v28, 0.0  ;;  %v2032_v28 = vmul.f32 %v3517_v49, %v3517_v49  ;;  %v2669_v15 = vpop.f32.mrf.mxu1 }
 0x171   :  { %v2558_v1 = vpop.f32.mrf.mxu0  ;;  %v2148_v14 = vadd.f32 %v2147_v23, %v2146_v53  ;;  %1328 = vst.msk [vmem:[%s4418_s5 + $0x268] sm:$0xff] %vm1250_vm13, %v4184_v44  ;;  %v2157_v49 = vsel %vm1250_vm13, %v2033_v39, 0.0  ;;  %v1917_v39 = vsel %vm1250_vm13, %v3605_v32, 0.0 }
 0x172   :  { %1291 = vst.msk [vmem:[%s4418_s5 + $0x140] sm:$0xff] %vm1250_vm13, %v1047_v46  ;;  %v1901_v0 = vsel %vm1250_vm13, %v1047_v46, 0.0  ;;  %v2029_v58 = vmul.f32 %v1047_v46, %v1047_v46  ;;  %v1236_v43 = vpop.f32.mrf.mxu1  ;;  %v2155_v53 = vsel %vm1250_vm13, %v2032_v28, 0.0  ;;  %v2034_v1 = vmul.f32 %v3551_v9, %v3551_v9 }
 0x173   :  { %v1902_v3 = vadd.f32 %v1901_v0, %v1900_v24  ;;  %v4201_v29 = vadd.f32 %v2697_v4, %v1236_v43  ;;  %v1909_v24 = vsel %vm1250_vm13, %v3532_v59, 0.0  ;;  %v2035_v59 = vmul.f32 %v3569_v17, %v3569_v17 }
 0x174   :  { %v2149_v21 = vsel %vm1250_vm13, %v2029_v58, 0.0  ;;  %v2672_v60 = vpop.f32.mrf.mxu1  ;;  %v1915_v28 = vsel %vm1250_vm13, %v3589_v25, 0.0  ;;  %v2037_v17 = vmul.f32 %v3605_v32, %v3605_v32  ;;  %v2038_v43 = vmul.f32 %v3621_v38, %v3621_v38 }
 0x175   :  { %v1904_v31 = vadd.f32 %v1903_v7, %v1902_v3  ;;  %v2150_v42 = vadd.f32 %v2149_v21, %v2148_v14  ;;  %1329 = vst.msk [vmem:[%s4418_s5 + $0x270] sm:$0xff] %vm1250_vm13, %v4201_v29  ;;  %v2159_v21 = vsel %vm1250_vm13, %v2034_v1, 0.0  ;;  %v2161_v9 = vsel %vm1250_vm13, %v2035_v59, 0.0 }
 0x176   :  { %v1241_v14 = vpop.f32.mrf.mxu1  ;;  %v2039_v32 = vmul.f32 %v3637_v45, %v3637_v45  ;;  %v2167_v60 = vsel %vm1250_vm13, %v2038_v43, 0.0 }
 0x177   :  { %v1906_v54 = vadd.f32 %v1905_v5, %v1904_v31  ;;  %v2152_v52 = vadd.f32 %v2151_v47, %v2150_v42  ;;  %v4218_v12 = vadd.f32 %v2697_v4, %v1241_v14  ;;  %v2036_v31 = vmul.f32 %v3589_v25, %v3589_v25 }
 0x178   :  { %v2675_v42 = vpop.f32.mrf.mxu1  ;;  %v2169_v59 = vsel %vm1250_vm13, %v2039_v32, 0.0  ;;  %v2041_v14 = vmul.f32 %v3669_v56, %v3669_v56 }
 0x179   :  { %v1908_v23 = vadd.f32 %v1907_v18, %v1906_v54  ;;  %v2154_v46 = vadd.f32 %v2153_v16, %v2152_v52  ;;  %1330 = vst.msk [vmem:[%s4418_s5 + $0x278] sm:$0xff] %vm1250_vm13, %v4218_v12  ;;  %v2163_v18 = vsel %vm1250_vm13, %v2036_v31, 0.0 }
 0x17a   :  { %v1246_v15 = vpop.f32.mrf.mxu1 }
 0x17b   :  { %v1910_v0 = vadd.f32 %v1909_v24, %v1908_v23  ;;  %v2156_v58 = vadd.f32 %v2155_v53, %v2154_v46  ;;  %v4235_v16 = vadd.f32 %v2697_v4, %v1246_v15  ;;  %v2165_v4 = vsel %vm1250_vm13, %v2037_v17, 0.0 }
 0x17c   :  { %v2678_v23 = vpop.f32.mrf.mxu1  ;;  %v1919_v53 = vsel %vm1250_vm13, %v3621_v38, 0.0  ;;  %v1923_v38 = vsel %vm1250_vm13, %v3653_v51, 0.0  ;;  %v2044_v15 = vmul.f32 %v3717_v19, %v3717_v19 }
 0x17d   :  { %v1912_v3 = vadd.f32 %v1911_v34, %v1910_v0  ;;  %v2158_v7 = vadd.f32 %v2157_v49, %v2156_v58  ;;  %1332 = vst.msk [vmem:[%s4418_s5 + $0x280] sm:$0x3] %vm1331_vm0, %v4235_v16  ;;  %v1921_v0 = vsel %vm1250_vm13, %v3637_v45, 0.0  ;;  %v2040_v58 = vmul.f32 %v3653_v51, %v3653_v51 }
 0x17e   :  { %v1925_v45 = vsel %vm1250_vm13, %v3669_v56, 0.0  ;;  %v1927_v51 = vsel %vm1250_vm13, %v3685_v63, 0.0  ;;  %v1929_v56 = vsel %vm1250_vm13, %v3701_v11, 0.0 }
 0x17f   :  { %v1914_v47 = vadd.f32 %v1913_v13, %v1912_v3  ;;  %v2160_v5 = vadd.f32 %v2159_v21, %v2158_v7  ;;  %v2171_v21 = vsel %vm1250_vm13, %v2040_v58, 0.0  ;;  %v2042_v13 = vmul.f32 %v3685_v63, %v3685_v63 }
 0x180   :  { %v1931_v63 = vsel %vm1250_vm13, %v3717_v19, 0.0  ;;  %v1935_v19 = vsel %vm1250_vm13, %v3749_v40, 0.0  ;;  %v2048_v58 = vmul.f32 %v3781_v57, %v3781_v57 }
 0x181   :  { %v1916_v54 = vadd.f32 %v1915_v28, %v1914_v47  ;;  %v2162_v52 = vadd.f32 %v2161_v9, %v2160_v5  ;;  %v2173_v47 = vsel %vm1250_vm13, %v2041_v14, 0.0  ;;  %v2043_v5 = vmul.f32 %v3701_v11, %v3701_v11 }
 0x182   :  { %v2175_v17 = vsel %vm1250_vm13, %v2042_v13, 0.0  ;;  %v1933_v11 = vsel %vm1250_vm13, %v3733_v30, 0.0 }
 0x183   :  { %v1918_v46 = vadd.f32 %v1917_v39, %v1916_v54  ;;  %v2164_v25 = vadd.f32 %v2163_v18, %v2162_v52  ;;  %v2177_v18 = vsel %vm1250_vm13, %v2043_v5, 0.0  ;;  %v2045_v39 = vmul.f32 %v3733_v30, %v3733_v30 }
 0x184   :  { %v1937_v30 = vsel %vm1250_vm13, %v3765_v48, 0.0 }
 0x185   :  { %v1920_v24 = vadd.f32 %v1919_v53, %v1918_v46  ;;  %v2166_v1 = vadd.f32 %v2165_v4, %v2164_v25  ;;  %v2179_v46 = vsel %vm1250_vm13, %v2044_v15, 0.0  ;;  %v2046_v25 = vmul.f32 %v3749_v40, %v3749_v40 }
 0x186   :  { %v2181_v32 = vsel %vm1250_vm13, %v2045_v39, 0.0  ;;  %v1939_v40 = vsel %vm1250_vm13, %v3781_v57, 0.0  ;;  %v1943_v57 = vsel %vm1250_vm13, %v3820_v26, 0.0  ;;  %v2053_v15 = vmul.f32 %v3900_v61, %v3900_v61 }
 0x187   :  { %v1922_v49 = vadd.f32 %v1921_v0, %v1920_v24  ;;  %v2168_v34 = vadd.f32 %v2167_v60, %v2166_v1  ;;  %v2047_v24 = vmul.f32 %v3765_v48, %v3765_v48  ;;  %v2183_v0 = vsel %vm1250_vm13, %v2046_v25, 0.0 }
 0x188   :  { %v1941_v48 = vsel %vm1250_vm13, %v3799_v10, 0.0 }
 0x189   :  { %v2170_v3 = vadd.f32 %v2169_v59, %v2168_v34  ;;  %v1924_v7 = vadd.f32 %v1923_v38, %v1922_v49  ;;  %v2185_v59 = vsel %vm1250_vm13, %v2047_v24, 0.0  ;;  %v2049_v38 = vmul.f32 %v3799_v10, %v3799_v10 }
 0x18a   :  { %v1945_v10 = vsel %vm1250_vm13, %v3848_v55, 0.0 }
 0x18b   :  { %v1926_v31 = vadd.f32 %v1925_v45, %v1924_v7  ;;  %v2172_v42 = vadd.f32 %v2171_v21, %v2170_v3  ;;  %v2187_v7 = vsel %vm1250_vm13, %v2048_v58, 0.0  ;;  %v2050_v21 = vmul.f32 %v3820_v26, %v3820_v26 }
 0x18c   :  { %v1947_v26 = vsel %vm1250_vm13, %v3874_v27, 0.0  ;;  %v2058_v58 = vmul.f32 %v4028_v37, %v4028_v37 }
 0x18d   :  { %v1928_v9 = vadd.f32 %v1927_v51, %v1926_v31  ;;  %v2174_v28 = vadd.f32 %v2173_v47, %v2172_v42  ;;  %v2189_v31 = vsel %vm1250_vm13, %v2049_v38, 0.0  ;;  %v2051_v42 = vmul.f32 %v3848_v55, %v3848_v55 }
 0x18e   :  { %v2191_v5 = vsel %vm1250_vm13, %v2050_v21, 0.0  ;;  %v1949_v55 = vsel %vm1250_vm13, %v3900_v61, 0.0  ;;  %v1953_v61 = vsel %vm1250_vm13, %v3952_v62, 0.0  ;;  %v1334_v38 = vlaneseq }
 0x18f   :  { %v1930_v54 = vadd.f32 %v1929_v56, %v1928_v9  ;;  %v2176_v52 = vadd.f32 %v2175_v17, %v2174_v28  ;;  %v2052_v9 = vmul.f32 %v3874_v27, %v3874_v27  ;;  %v2193_v56 = vsel %vm1250_vm13, %v2051_v42, 0.0 }
 0x190   :  { %v1951_v27 = vsel %vm1250_vm13, %v3926_v33, 0.0 }
 0x191   :  { %v1932_v43 = vadd.f32 %v1931_v63, %v1930_v54  ;;  %v2178_v23 = vadd.f32 %v2177_v18, %v2176_v52  ;;  %v2195_v18 = vsel %vm1250_vm13, %v2052_v9, 0.0  ;;  %v2054_v63 = vmul.f32 %v3926_v33, %v3926_v33 }
 0x192   :  { %v1955_v33 = vsel %vm1250_vm13, %v3978_v36, 0.0 }
 0x193   :  { %v1934_v4 = vadd.f32 %v1933_v11, %v1932_v43  ;;  %v2180_v53 = vadd.f32 %v2179_v46, %v2178_v23  ;;  %v2197_v23 = vsel %vm1250_vm13, %v2053_v15, 0.0  ;;  %v2055_v46 = vmul.f32 %v3952_v62, %v3952_v62 }
 0x194   :  { %v1957_v62 = vsel %vm1250_vm13, %v4004_v20, 0.0 }
 0x195   :  { %v1936_v1 = vadd.f32 %v1935_v19, %v1934_v4  ;;  %v2182_v60 = vadd.f32 %v2181_v32, %v2180_v53  ;;  %v2199_v4 = vsel %vm1250_vm13, %v2054_v63, 0.0  ;;  %v2056_v53 = vmul.f32 %v3978_v36, %v3978_v36 }
 0x196   :  { %v2201_v24 = vsel %vm1250_vm13, %v2055_v46, 0.0  ;;  %v1959_v36 = vsel %vm1250_vm13, %v4028_v37, 0.0  ;;  %v1963_v37 = vsel %vm1250_vm13, %v4074_v41, 0.0  ;;  %v2066_v46 = vmul.f32 %v4184_v44, %v4184_v44 }
 0x197   :  { %v1938_v49 = vadd.f32 %v1937_v30, %v1936_v1  ;;  %v2184_v34 = vadd.f32 %v2183_v0, %v2182_v60  ;;  %v2057_v1 = vmul.f32 %v4004_v20, %v4004_v20  ;;  %v2203_v30 = vsel %vm1250_vm13, %v2056_v53, 0.0 }
 0x198   :  { %v1961_v20 = vsel %vm1250_vm13, %v4051_v2, 0.0  ;;  %v2067_v53 = vmul.f32 %v4201_v29, %v4201_v29 }
 0x199   :  { %v1940_v14 = vadd.f32 %v1939_v40, %v1938_v49  ;;  %v2186_v3 = vadd.f32 %v2185_v59, %v2184_v34  ;;  %v2205_v59 = vsel %vm1250_vm13, %v2057_v1, 0.0  ;;  %v2059_v40 = vmul.f32 %v4051_v2, %v4051_v2 }
 0x19a   :  { %v1965_v2 = vsel %vm1250_vm13, %v4095_v8, 0.0 }
 0x19b   :  { %v1942_v45 = vadd.f32 %v1941_v48, %v1940_v14  ;;  %v2188_v13 = vadd.f32 %v2187_v7, %v2186_v3  ;;  %v2207_v7 = vsel %vm1250_vm13, %v2058_v58, 0.0  ;;  %v2060_v48 = vmul.f32 %v4074_v41, %v4074_v41 }
 0x19c   :  { %v1967_v41 = vsel %vm1250_vm13, %v4112_v22, 0.0 }
 0x19d   :  { %v1944_v47 = vadd.f32 %v1943_v57, %v1942_v45  ;;  %v2190_v51 = vadd.f32 %v2189_v31, %v2188_v13  ;;  %v2209_v13 = vsel %vm1250_vm13, %v2059_v40, 0.0  ;;  %v2061_v31 = vmul.f32 %v4095_v8, %v4095_v8 }
 0x19e   :  { %v4362_v57 = vshrl.u32 %v1334_v38, 7  ;;  %v1969_v8 = vsel %vm1250_vm13, %v4129_v35, 0.0 }
 0x19f   :  { %v2192_v28 = vadd.f32 %v2191_v5, %v2190_v51  ;;  %v1946_v17 = vadd.f32 %v1945_v10, %v1944_v47  ;;  %v2211_v51 = vsel %vm1250_vm13, %v2060_v48, 0.0  ;;  %v2062_v5 = vmul.f32 %v4112_v22, %v4112_v22 }
 0x1a0   :  { %v1971_v22 = vsel %vm1250_vm13, %v4146_v6, 0.0  ;;  %vm2238_vm14 = vcmp.eq.s32.totalorder %v4362_v57, 1  ;;  %vm2237_vm15 = vcmp.eq.s32.totalorder %v4362_v57, 0 }
 0x1a1   :  { %v2194_v54 = vadd.f32 %v2193_v56, %v2192_v28  ;;  %v1948_v52 = vadd.f32 %v1947_v26, %v1946_v17  ;;  %v2213_v28 = vsel %vm1250_vm13, %v2061_v31, 0.0  ;;  %v2063_v17 = vmul.f32 %v4129_v35, %v4129_v35 }
 0x1a2   :  { %v1415_v56 = vadd.s32 640, %v4362_v57  ;;  %v1973_v35 = vsel %vm1250_vm13, %v4162_v50, 0.0 }
 0x1a3   :  { %v2196_v39 = vadd.f32 %v2195_v18, %v2194_v54  ;;  %v1950_v43 = vadd.f32 %v1949_v55, %v1948_v52  ;;  %v2215_v54 = vsel %vm1250_vm13, %v2062_v5, 0.0  ;;  %v2064_v52 = vmul.f32 %v4146_v6, %v4146_v6 }
 0x1a4   :  { %v2217_v63 = vsel %vm1250_vm13, %v2063_v17, 0.0  ;;  %vm1578_vm2 = vcmp.lt.s32.totalorder %v1415_v56, 642 }
 0x1a5   :  { %v2198_v11 = vadd.f32 %v2197_v23, %v2196_v39  ;;  %v1952_v25 = vadd.f32 %v1951_v27, %v1950_v43  ;;  %v2065_v39 = vmul.f32 %v4162_v50, %v4162_v50  ;;  %v2219_v27 = vsel %vm1250_vm13, %v2064_v52, 0.0 }
 0x1a6   :  { %v1977_v50 = vsel %vm1250_vm13, %v4201_v29, 0.0 }
 0x1a7   :  { %v2200_v32 = vadd.f32 %v2199_v4, %v2198_v11  ;;  %v1954_v19 = vadd.f32 %v1953_v61, %v1952_v25  ;;  %v1821_v4 = vsel %vm1578_vm2, %v4235_v16, 0.0  ;;  %v2221_v6 = vsel %vm1250_vm13, %v2065_v39, 0.0 }
 0x1a8   :  { %v1975_v61 = vsel %vm1250_vm13, %v4184_v44, 0.0  ;;  %v2069_v1 = vmul.f32 %v1821_v4, %v1821_v4  ;;  %v1979_v44 = vsel %vm1250_vm13, %v4218_v12, 0.0 }
 0x1a9   :  { %v2202_v60 = vadd.f32 %v2201_v24, %v2200_v32  ;;  %v1956_v0 = vadd.f32 %v1955_v33, %v1954_v19  ;;  %v2223_v24 = vsel %vm1250_vm13, %v2066_v46, 0.0  ;;  %v2068_v33 = vmul.f32 %v4218_v12, %v4218_v12 }
 0x1ab   :  { %v2204_v49 = vadd.f32 %v2203_v30, %v2202_v60  ;;  %v1958_v34 = vadd.f32 %v1957_v62, %v1956_v0  ;;  %v2225_v0 = vsel %vm1250_vm13, %v2067_v53, 0.0  ;;  %v1981_v30 = vsel %vm1331_vm0, %v1821_v4, 0.0 }
 0x1ad   :  { %v2206_v14 = vadd.f32 %v2205_v59, %v2204_v49  ;;  %v1960_v3 = vadd.f32 %v1959_v36, %v1958_v34  ;;  %v2227_v49 = vsel %vm1250_vm13, %v2068_v33, 0.0  ;;  %v2229_v34 = vsel %vm1331_vm0, %v2069_v1, 0.0 }
 0x1af   :  { %v2208_v21 = vadd.f32 %v2207_v7, %v2206_v14  ;;  %v1962_v45 = vadd.f32 %v1961_v20, %v1960_v3 }
 0x1b1   :  { %v2210_v42 = vadd.f32 %v2209_v13, %v2208_v21  ;;  %v1964_v47 = vadd.f32 %v1963_v37, %v1962_v45 }
 0x1b3   :  { %v2212_v10 = vadd.f32 %v2211_v51, %v2210_v42  ;;  %v1966_v9 = vadd.f32 %v1965_v2, %v1964_v47 }
 0x1b5   :  { %v2214_v26 = vadd.f32 %v2213_v28, %v2212_v10  ;;  %v1968_v15 = vadd.f32 %v1967_v41, %v1966_v9 }
 0x1b7   :  { %v2216_v18 = vadd.f32 %v2215_v54, %v2214_v26  ;;  %v1970_v55 = vadd.f32 %v1969_v8, %v1968_v15 }
 0x1b9   :  { %v2218_v43 = vadd.f32 %v2217_v63, %v2216_v18  ;;  %v1972_v23 = vadd.f32 %v1971_v22, %v1970_v55 }
 0x1bb   :  { %v2220_v11 = vadd.f32 %v2219_v27, %v2218_v43  ;;  %v1974_v25 = vadd.f32 %v1973_v35, %v1972_v23 }
 0x1bd   :  { %v2222_v32 = vadd.f32 %v2221_v6, %v2220_v11  ;;  %v1976_v19 = vadd.f32 %v1975_v61, %v1974_v25 }
 0x1bf   :  { %v2224_v16 = vadd.f32 %v2223_v24, %v2222_v32  ;;  %v1978_v60 = vadd.f32 %v1977_v50, %v1976_v19 }
 0x1c1   :  { %v2226_v62 = vadd.f32 %v2225_v0, %v2224_v16  ;;  %v1980_v58 = vadd.f32 %v1979_v44, %v1978_v60 }
 0x1c3   :  { %v2228_v29 = vadd.f32 %v2227_v49, %v2226_v62  ;;  %v1982_v59 = vadd.f32 %v1981_v30, %v1980_v58 }
 0x1c5   :  { %v1983_v36 = vrot.slane %v1982_v59, 4  ;;  %v2230_v40 = vadd.f32 %v2229_v34, %v2228_v29 }
 0x1c7   :  { %v1984_v38 = vadd.f32 %v1983_v36, %v1982_v59  ;;  %v2231_v14 = vrot.slane %v2230_v40, 4 }
 0x1c9   :  { %v1985_v3 = vrot.slane %v1984_v38, 2  ;;  %v2232_v7 = vadd.f32 %v2231_v14, %v2230_v40 }
 0x1cb   :  { %v1986_v20 = vadd.f32 %v1985_v3, %v1984_v38  ;;  %v2233_v48 = vrot.slane %v2232_v7, 2 }
 0x1cd   :  { %v2234_v21 = vadd.f32 %v2233_v48, %v2232_v7  ;;  %v1987_v12 = vrot.slane %v1986_v20, 1 }
 0x1cf   :  { %v2235_v45 = vrot.slane %v2234_v21, 1  ;;  %v1988_v37 = vadd.f32 %v1987_v12, %v1986_v20 }
 0x1d1   :  { %v2236_v13 = vadd.f32 %v2235_v45, %v2234_v21 }
 0x1d3   :  { %v2239_v31 = vsel %vm2238_vm14, %v2236_v13, 0.0 }
 0x1d4   :  { %v2240_v42 = vsel %vm2237_vm15, %v1988_v37, %v2239_v31 }
 0x1d5   :  { %2241 = vst.msk [vmem:[%s4419_s6] sm:$0xff] %vm1250_vm13, %v2240_v42 }

</bundles_post_ra>
